<compile_context>
chip_gen: v7x
topology: tpu7x:2x2x1
jax: 0.10.0
libtpu: 0.0.40
codegen_flags: <defaults>
</compile_context>

<pallas_src>
import functools

import jax
import jax.numpy as jnp
from jax import lax
from jax.experimental import pallas as pl
from jax.experimental.pallas import tpu as pltpu


# ---------------------------------------------------------------------------
# In-kernel conv helpers (operate on zero-padded VMEM scratch refs)
# ---------------------------------------------------------------------------
def _conv1_vpu(xp_ref, w_ref, b_ref, Hout, Wout):
    """First VGG conv: one (replicated) input channel -> C1, on the VPU.

    xp_ref: (Hout+2, Wout+2, 1) f32 zero-padded image.
    w_ref : (9, C1) f32 taps in (dy, dx) row-major order, pre-summed over the
            3 replicated input channels (identical math to cat((x,x,x),1)).
    b_ref : (1, C1) f32.
    """
    Cout = w_ref.shape[-1]
    acc = jnp.broadcast_to(b_ref[...], (Hout, Wout, Cout))      # bias init
    for dx in range(3):
        slab = xp_ref[:, dx:dx + Wout, :]                       # (Hout+2, Wout, 1)
        for dy in range(3):
            patch = slab[dy:dy + Hout]                          # (Hout, Wout, 1)
            t = 3 * dy + dx
            wtap = w_ref[t:t + 1, :].reshape(1, 1, Cout)
            acc = acc + patch * wtap                            # lane-broadcast MAC
    return jnp.maximum(acc, 0.0)


def _conv3x3_mxu(xp_ref, w_ref, b_ref, Hout, Wout):
    """3x3 'same' conv on a zero-padded VMEM ref + bias + ReLU (MXU path).

    xp_ref: (Hout+2, Wout+2, Cin) f32, w_ref: (3, 3, Cin, Cout) bf16,
    b_ref: (1, Cout) f32.  bf16 x bf16 matmuls with f32 accumulation.
    Returns (Hout, Wout, Cout) f32.
    """
    Cin = xp_ref.shape[-1]
    Cout = w_ref.shape[-1]
    # bias-initialized f32 accumulator (saves a separate bias pass)
    acc = jnp.broadcast_to(b_ref[...], (Hout * Wout, Cout))
    for dx in range(3):
        # one sublane-offset slice per dx; the dy taps slice the cheap outer dim
        slab = xp_ref[:, dx:dx + Wout, :]                       # (Hout+2, Wout, Cin)
        for dy in range(3):
            patch = slab[dy:dy + Hout].reshape(Hout * Wout, Cin)
            acc = acc + jnp.dot(patch.astype(jnp.bfloat16), w_ref[dy, dx],
                                preferred_element_type=jnp.float32)
    return jnp.maximum(acc, 0.0).reshape(Hout, Wout, Cout)


# ---------------------------------------------------------------------------
# Fused kernel: one (input, target) pair per grid step
# ---------------------------------------------------------------------------
def _perceptual_kernel(a_ref, t_ref,
                       w1_ref, b1_ref, w2_ref, b2_ref,
                       w3_ref, b3_ref, w4_ref, b4_ref,
                       out_ref,
                       img_pad, c1_pad, c2_buf, c2_rows, p_pad, c3_pad, feat_a,
                       *, H, W):
    Hh, Wh = H // 2, W // 2

    # Zero the padded scratches once per grid step; the interiors are fully
    # overwritten for each image and the borders stay zero.
    img_pad[...] = jnp.zeros_like(img_pad)
    c1_pad[...] = jnp.zeros_like(c1_pad)
    p_pad[...] = jnp.zeros_like(p_pad)
    c3_pad[...] = jnp.zeros_like(c3_pad)

    def features(x_ref):
        # conv1 + ReLU (replicated input channels folded into the weights)
        img_pad[1:H + 1, 1:W + 1, :] = x_ref[0]
        y1 = _conv1_vpu(img_pad, w1_ref, b1_ref, H, W)           # (H, W, 64) f32
        # conv2 + ReLU
        c1_pad[1:H + 1, 1:W + 1, :] = y1
        c2_buf[...] = _conv3x3_mxu(c1_pad, w2_ref, b2_ref, H, W)  # (H, W, 64) f32
        # fused 2x2 max-pool, stride 2: rows (outer dim) then columns (sublane)
        c2_rows[...] = jnp.maximum(c2_buf[pl.ds(0, Hh, stride=2), :, :],
                                   c2_buf[pl.ds(1, Hh, stride=2), :, :])
        pooled = jnp.maximum(c2_rows[:, pl.ds(0, Wh, stride=2), :],
                             c2_rows[:, pl.ds(1, Wh, stride=2), :])
        # conv3 + ReLU
        p_pad[1:Hh + 1, 1:Wh + 1, :] = pooled
        y3 = _conv3x3_mxu(p_pad, w3_ref, b3_ref, Hh, Wh)          # (Hh, Wh, 128)
        # conv4 + ReLU
        c3_pad[1:Hh + 1, 1:Wh + 1, :] = y3
        return _conv3x3_mxu(c3_pad, w4_ref, b4_ref, Hh, Wh)       # (Hh, Wh, 128)

    feat_a[...] = features(a_ref)
    d = features(t_ref) - feat_a[...]
    # fused MSE partial sum for this pair; reduce only the outer (row) axis so
    # the store stays lane-dense (Wh x 128)
    out_ref[0] = jnp.sum(d * d, axis=0)


# ---------------------------------------------------------------------------
# Wrapper glue
# ---------------------------------------------------------------------------
def init_params(key):
    cfg = [(3, 64), (64, 64), (64, 128), (128, 128)]   # VGG16 features[:9] convs
    params = []
    for cin, cout in cfg:
        key, kw, kb = jax.random.split(key, 3)
        scale = 1.0 / jnp.sqrt(9.0 * cin)
        w = jax.random.normal(kw, (3, 3, cin, cout), jnp.float32) * scale
        b = jax.random.normal(kb, (cout,), jnp.float32) * 0.01
        params.append((w, b))
    return params


def _prepare_params(params):
    (w1, b1), (w2, b2), (w3, b3), (w4, b4) = params
    c1 = w1.shape[-1]
    # fold torch.cat((x,x,x),1) into conv1's weights: sum over the input dim
    w1e = jnp.sum(w1.astype(jnp.float32), axis=2).reshape(9, c1)
    return (w1e, b1.reshape(1, -1).astype(jnp.float32),
            w2.astype(jnp.bfloat16), b2.reshape(1, -1).astype(jnp.float32),
            w3.astype(jnp.bfloat16), b3.reshape(1, -1).astype(jnp.float32),
            w4.astype(jnp.bfloat16), b4.reshape(1, -1).astype(jnp.float32))


def _const_spec(shape):
    return pl.BlockSpec(shape, lambda n: (0,) * len(shape))


def perceptual_loss(inputs, targets, params):
    """inputs/targets: (N, 1, H, W) f32 (PyTorch NCHW, single channel)."""
    N, C, H, W = inputs.shape
    assert C == 1, "module replicates a single input channel"
    assert H % 2 == 0 and W % 16 == 0, "even H; W multiple of 16 (tile-aligned)"
    Hh, Wh = H // 2, W // 2

    w1e, b1, w2, b2, w3, b3, w4, b4 = _prepare_params(params)
    C1, C2, C3, C4 = w1e.shape[-1], w2.shape[-1], w3.shape[-1], w4.shape[-1]

    a = inputs.reshape(N, H, W, 1)      # NCHW with C==1 -> NHWC (free reshape)
    b = targets.reshape(N, H, W, 1)

    kernel = functools.partial(_perceptual_kernel, H=H, W=W)
    partials = pl.pallas_call(
        kernel,
        out_shape=jax.ShapeDtypeStruct((N, Wh, C4), jnp.float32),
        grid_spec=pltpu.PrefetchScalarGridSpec(
            num_scalar_prefetch=0,
            grid=(N,),
            in_specs=[
                pl.BlockSpec((1, H, W, 1), lambda n: (n, 0, 0, 0)),   # inputs
                pl.BlockSpec((1, H, W, 1), lambda n: (n, 0, 0, 0)),   # targets
                _const_spec((9, C1)), _const_spec((1, C1)),           # conv1
                _const_spec((3, 3, C1, C2)), _const_spec((1, C2)),    # conv2
                _const_spec((3, 3, C2, C3)), _const_spec((1, C3)),    # conv3
                _const_spec((3, 3, C3, C4)), _const_spec((1, C4)),    # conv4
            ],
            out_specs=pl.BlockSpec((1, Wh, C4), lambda n: (n, 0, 0)),
            scratch_shapes=[
                pltpu.VMEM((H + 2, W + 2, 1), jnp.float32),     # padded raw image
                pltpu.VMEM((H + 2, W + 2, C1), jnp.float32),    # padded conv1 out
                pltpu.VMEM((H, W, C2), jnp.float32),            # conv2 out (pre-pool)
                pltpu.VMEM((Hh, W, C2), jnp.float32),           # row-pooled conv2 out
                pltpu.VMEM((Hh + 2, Wh + 2, C2), jnp.float32),  # padded pooled
                pltpu.VMEM((Hh + 2, Wh + 2, C3), jnp.float32),  # padded conv3 out
                pltpu.VMEM((Hh, Wh, C4), jnp.float32),          # features(inputs)
            ]),
        compiler_params=pltpu.CompilerParams(
            dimension_semantics=("parallel",)),
    )(a, b, w1e, b1, w2, b2, w3, b3, w4, b4)

    return jnp.sum(partials) / (N * Hh * Wh * C4)


# ---------------------------------------------------------------------------
# Pure-JAX reference for sanity checking
# ---------------------------------------------------------------------------
def _ref_feature(x_nchw, params):
    x = jnp.transpose(x_nchw, (0, 2, 3, 1))
    x = jnp.concatenate([x, x, x], axis=-1)

    def conv(h, w, b):
        y = lax.conv_general_dilated(
            h, w, (1, 1), 'SAME',
            dimension_numbers=('NHWC', 'HWIO', 'NHWC'),
            precision=lax.Precision.HIGHEST)
        return jnp.maximum(y + b, 0.0)

    x = conv(x, *params[0])
    x = conv(x, *params[1])
    x = lax.reduce_window(x, -jnp.inf, lax.max, (1, 2, 2, 1), (1, 2, 2, 1), 'VALID')
    x = conv(x, *params[2])
    x = conv(x, *params[3])
    return x


def _ref_loss(inputs, targets, params):
    fa = _ref_feature(inputs, params)
    fb = _ref_feature(targets, params)
    return jnp.mean((fa - fb) ** 2)


if __name__ == "__main__":
    key = jax.random.PRNGKey(0)
    kp, ki, kt = jax.random.split(key, 3)
    params = init_params(kp)

    # inputs/targets: single-channel images (the module concatenates to 3 ch)
    inputs = jax.random.normal(ki, (2, 1, 16, 16), jnp.float32)
    targets = jax.random.normal(kt, (2, 1, 16, 16), jnp.float32)

    loss = jax.block_until_ready(jax.jit(perceptual_loss)(inputs, targets, params))

    ref = jax.block_until_ready(_ref_loss(inputs, targets, params))
    rel_err = abs(float(loss) - float(ref)) / max(abs(float(ref)), 1e-8)
    assert rel_err < 5e-2, f"mismatch: pallas={float(loss)} ref={float(ref)} rel={rel_err}"

    print("KERNEL_OK")
</pallas_src>

<mosaic_0001>
module attributes {stable_mosaic.version = 11 : i64} {
  func.func @_perceptual_kernel(%arg0: i32, %arg1: memref<1x16x16x1xf32, #tpu.memory_space<vmem>>, %arg2: memref<1x16x16x1xf32, #tpu.memory_space<vmem>>, %arg3: memref<9x64xf32, #tpu.memory_space<vmem>>, %arg4: memref<1x64xf32, #tpu.memory_space<vmem>>, %arg5: memref<3x3x64x64xbf16, #tpu.memory_space<vmem>>, %arg6: memref<1x64xf32, #tpu.memory_space<vmem>>, %arg7: memref<3x3x64x128xbf16, #tpu.memory_space<vmem>>, %arg8: memref<1x128xf32, #tpu.memory_space<vmem>>, %arg9: memref<3x3x128x128xbf16, #tpu.memory_space<vmem>>, %arg10: memref<1x128xf32, #tpu.memory_space<vmem>>, %arg11: memref<1x8x128xf32, #tpu.memory_space<vmem>>, %arg12: memref<18x18x1xf32, #tpu.memory_space<vmem>>, %arg13: memref<18x18x64xf32, #tpu.memory_space<vmem>>, %arg14: memref<16x16x64xf32, #tpu.memory_space<vmem>>, %arg15: memref<8x16x64xf32, #tpu.memory_space<vmem>>, %arg16: memref<10x10x64xf32, #tpu.memory_space<vmem>>, %arg17: memref<10x10x128xf32, #tpu.memory_space<vmem>>, %arg18: memref<8x8x128xf32, #tpu.memory_space<vmem>>) attributes {dimension_semantics = [#tpu.dimension_semantics<parallel>], iteration_bounds = array<i64: 2>, scalar_prefetch = 0 : i64, scratch_operands = 7 : i64, tpu.core_type = #tpu.core_type<tc>, window_params = [{transform_indices = @transform_0, window_bounds = array<i64: 1, 16, 16, 1>}, {transform_indices = @transform_1, window_bounds = array<i64: 1, 16, 16, 1>}, {pipeline_mode = #tpu.pipeline_mode<synchronous>, transform_indices = @transform_2, window_bounds = array<i64: 9, 64>}, {pipeline_mode = #tpu.pipeline_mode<synchronous>, transform_indices = @transform_3, window_bounds = array<i64: 1, 64>}, {pipeline_mode = #tpu.pipeline_mode<synchronous>, transform_indices = @transform_4, window_bounds = array<i64: 3, 3, 64, 64>}, {pipeline_mode = #tpu.pipeline_mode<synchronous>, transform_indices = @transform_5, window_bounds = array<i64: 1, 64>}, {pipeline_mode = #tpu.pipeline_mode<synchronous>, transform_indices = @transform_6, window_bounds = array<i64: 3, 3, 64, 128>}, {pipeline_mode = #tpu.pipeline_mode<synchronous>, transform_indices = @transform_7, window_bounds = array<i64: 1, 128>}, {pipeline_mode = #tpu.pipeline_mode<synchronous>, transform_indices = @transform_8, window_bounds = array<i64: 3, 3, 128, 128>}, {pipeline_mode = #tpu.pipeline_mode<synchronous>, transform_indices = @transform_9, window_bounds = array<i64: 1, 128>}, {transform_indices = @transform_10, window_bounds = array<i64: 1, 8, 128>}]} {
    %cst = arith.constant 0.000000e+00 : f32
    %0 = vector.broadcast %cst : f32 to vector<18x18x1xf32>
    %c0 = arith.constant 0 : index
    %c0_0 = arith.constant 0 : index
    %c0_1 = arith.constant 0 : index
    %1 = vector.load %arg12[%c0, %c0_0, %c0_1] : memref<18x18x1xf32, #tpu.memory_space<vmem>>, vector<18x18x1xf32>
    tpu.vector_store %arg12[%c0, %c0_0, %c0_1], %0 {strides = array<i32>} : memref<18x18x1xf32, #tpu.memory_space<vmem>>, vector<18x18x1xf32>,
    %cst_2 = arith.constant 0.000000e+00 : f32
    %2 = vector.broadcast %cst_2 : f32 to vector<18x18x64xf32>
    %c0_3 = arith.constant 0 : index
    %c0_4 = arith.constant 0 : index
    %c0_5 = arith.constant 0 : index
    %3 = vector.load %arg13[%c0_3, %c0_4, %c0_5] : memref<18x18x64xf32, #tpu.memory_space<vmem>>, vector<18x18x64xf32>
    tpu.vector_store %arg13[%c0_3, %c0_4, %c0_5], %2 {strides = array<i32>} : memref<18x18x64xf32, #tpu.memory_space<vmem>>, vector<18x18x64xf32>,
    %cst_6 = arith.constant 0.000000e+00 : f32
    %4 = vector.broadcast %cst_6 : f32 to vector<10x10x64xf32>
    %c0_7 = arith.constant 0 : index
    %c0_8 = arith.constant 0 : index
    %c0_9 = arith.constant 0 : index
    %5 = vector.load %arg16[%c0_7, %c0_8, %c0_9] : memref<10x10x64xf32, #tpu.memory_space<vmem>>, vector<10x10x64xf32>
    tpu.vector_store %arg16[%c0_7, %c0_8, %c0_9], %4 {strides = array<i32>} : memref<10x10x64xf32, #tpu.memory_space<vmem>>, vector<10x10x64xf32>,
    %cst_10 = arith.constant 0.000000e+00 : f32
    %6 = vector.broadcast %cst_10 : f32 to vector<10x10x128xf32>
    %c0_11 = arith.constant 0 : index
    %c0_12 = arith.constant 0 : index
    %c0_13 = arith.constant 0 : index
    %7 = vector.load %arg17[%c0_11, %c0_12, %c0_13] : memref<10x10x128xf32, #tpu.memory_space<vmem>>, vector<10x10x128xf32>
    tpu.vector_store %arg17[%c0_11, %c0_12, %c0_13], %6 {strides = array<i32>} : memref<10x10x128xf32, #tpu.memory_space<vmem>>, vector<10x10x128xf32>,
    %c0_14 = arith.constant 0 : index
    %c0_15 = arith.constant 0 : index
    %c0_16 = arith.constant 0 : index
    %c0_17 = arith.constant 0 : index
    %8 = vector.load %arg1[%c0_14, %c0_15, %c0_16, %c0_17] : memref<1x16x16x1xf32, #tpu.memory_space<vmem>>, vector<1x16x16x1xf32>
    %9 = vector.shape_cast %8 : vector<1x16x16x1xf32> to vector<16x16x1xf32>
    %c1 = arith.constant 1 : index
    %c1_18 = arith.constant 1 : index
    %c0_19 = arith.constant 0 : index
    %10 = vector.load %arg12[%c1, %c1_18, %c0_19] : memref<18x18x1xf32, #tpu.memory_space<vmem>>, vector<16x16x1xf32>
    tpu.vector_store %arg12[%c1, %c1_18, %c0_19], %9 {strides = array<i32>} : memref<18x18x1xf32, #tpu.memory_space<vmem>>, vector<16x16x1xf32>,
    %c0_20 = arith.constant 0 : index
    %c0_21 = arith.constant 0 : index
    %11 = vector.load %arg4[%c0_20, %c0_21] : memref<1x64xf32, #tpu.memory_space<vmem>>, vector<1x64xf32>
    %12 = vector.shape_cast %11 : vector<1x64xf32> to vector<1x1x64xf32>
    %13 = vector.broadcast %12 : vector<1x1x64xf32> to vector<16x16x64xf32>
    %c0_22 = arith.constant 0 : index
    %c0_23 = arith.constant 0 : index
    %c0_24 = arith.constant 0 : index
    %14 = vector.load %arg12[%c0_22, %c0_23, %c0_24] : memref<18x18x1xf32, #tpu.memory_space<vmem>>, vector<18x16x1xf32>
    %15 = vector.extract_strided_slice %14 {offsets = [0, 0, 0], sizes = [16, 16, 1], strides = [1, 1, 1]} : vector<18x16x1xf32> to vector<16x16x1xf32>
    %c0_25 = arith.constant 0 : index
    %c0_26 = arith.constant 0 : index
    %16 = vector.load %arg3[%c0_25, %c0_26] : memref<9x64xf32, #tpu.memory_space<vmem>>, vector<1x64xf32>
    %17 = vector.shape_cast %16 : vector<1x64xf32> to vector<1x1x64xf32>
    %18 = vector.broadcast %15 : vector<16x16x1xf32> to vector<16x16x64xf32>
    %19 = vector.broadcast %17 : vector<1x1x64xf32> to vector<16x16x64xf32>
    %20 = arith.mulf %18, %19 : vector<16x16x64xf32>
    %21 = arith.addf %13, %20 : vector<16x16x64xf32>
    %22 = vector.extract_strided_slice %14 {offsets = [1, 0, 0], sizes = [16, 16, 1], strides = [1, 1, 1]} : vector<18x16x1xf32> to vector<16x16x1xf32>
    %c3 = arith.constant 3 : index
    %c0_27 = arith.constant 0 : index
    %23 = vector.load %arg3[%c3, %c0_27] : memref<9x64xf32, #tpu.memory_space<vmem>>, vector<1x64xf32>
    %24 = vector.shape_cast %23 : vector<1x64xf32> to vector<1x1x64xf32>
    %25 = vector.broadcast %22 : vector<16x16x1xf32> to vector<16x16x64xf32>
    %26 = vector.broadcast %24 : vector<1x1x64xf32> to vector<16x16x64xf32>
    %27 = arith.mulf %25, %26 : vector<16x16x64xf32>
    %28 = arith.addf %21, %27 : vector<16x16x64xf32>
    %29 = vector.extract_strided_slice %14 {offsets = [2, 0, 0], sizes = [16, 16, 1], strides = [1, 1, 1]} : vector<18x16x1xf32> to vector<16x16x1xf32>
    %c6 = arith.constant 6 : index
    %c0_28 = arith.constant 0 : index
    %30 = vector.load %arg3[%c6, %c0_28] : memref<9x64xf32, #tpu.memory_space<vmem>>, vector<1x64xf32>
    %31 = vector.shape_cast %30 : vector<1x64xf32> to vector<1x1x64xf32>
    %32 = vector.broadcast %29 : vector<16x16x1xf32> to vector<16x16x64xf32>
    %33 = vector.broadcast %31 : vector<1x1x64xf32> to vector<16x16x64xf32>
    %34 = arith.mulf %32, %33 : vector<16x16x64xf32>
    %35 = arith.addf %28, %34 : vector<16x16x64xf32>
    %c0_29 = arith.constant 0 : index
    %c1_30 = arith.constant 1 : index
    %c0_31 = arith.constant 0 : index
    %36 = vector.load %arg12[%c0_29, %c1_30, %c0_31] : memref<18x18x1xf32, #tpu.memory_space<vmem>>, vector<18x16x1xf32>
    %37 = vector.extract_strided_slice %36 {offsets = [0, 0, 0], sizes = [16, 16, 1], strides = [1, 1, 1]} : vector<18x16x1xf32> to vector<16x16x1xf32>
    %c1_32 = arith.constant 1 : index
    %c0_33 = arith.constant 0 : index
    %38 = vector.load %arg3[%c1_32, %c0_33] : memref<9x64xf32, #tpu.memory_space<vmem>>, vector<1x64xf32>
    %39 = vector.shape_cast %38 : vector<1x64xf32> to vector<1x1x64xf32>
    %40 = vector.broadcast %37 : vector<16x16x1xf32> to vector<16x16x64xf32>
    %41 = vector.broadcast %39 : vector<1x1x64xf32> to vector<16x16x64xf32>
    %42 = arith.mulf %40, %41 : vector<16x16x64xf32>
    %43 = arith.addf %35, %42 : vector<16x16x64xf32>
    %44 = vector.extract_strided_slice %36 {offsets = [1, 0, 0], sizes = [16, 16, 1], strides = [1, 1, 1]} : vector<18x16x1xf32> to vector<16x16x1xf32>
    %c4 = arith.constant 4 : index
    %c0_34 = arith.constant 0 : index
    %45 = vector.load %arg3[%c4, %c0_34] : memref<9x64xf32, #tpu.memory_space<vmem>>, vector<1x64xf32>
    %46 = vector.shape_cast %45 : vector<1x64xf32> to vector<1x1x64xf32>
    %47 = vector.broadcast %44 : vector<16x16x1xf32> to vector<16x16x64xf32>
    %48 = vector.broadcast %46 : vector<1x1x64xf32> to vector<16x16x64xf32>
    %49 = arith.mulf %47, %48 : vector<16x16x64xf32>
    %50 = arith.addf %43, %49 : vector<16x16x64xf32>
    %51 = vector.extract_strided_slice %36 {offsets = [2, 0, 0], sizes = [16, 16, 1], strides = [1, 1, 1]} : vector<18x16x1xf32> to vector<16x16x1xf32>
    %c7 = arith.constant 7 : index
    %c0_35 = arith.constant 0 : index
    %52 = vector.load %arg3[%c7, %c0_35] : memref<9x64xf32, #tpu.memory_space<vmem>>, vector<1x64xf32>
    %53 = vector.shape_cast %52 : vector<1x64xf32> to vector<1x1x64xf32>
    %54 = vector.broadcast %51 : vector<16x16x1xf32> to vector<16x16x64xf32>
    %55 = vector.broadcast %53 : vector<1x1x64xf32> to vector<16x16x64xf32>
    %56 = arith.mulf %54, %55 : vector<16x16x64xf32>
    %57 = arith.addf %50, %56 : vector<16x16x64xf32>
    %c0_36 = arith.constant 0 : index
    %c2 = arith.constant 2 : index
    %c0_37 = arith.constant 0 : index
    %58 = vector.load %arg12[%c0_36, %c2, %c0_37] : memref<18x18x1xf32, #tpu.memory_space<vmem>>, vector<18x16x1xf32>
    %59 = vector.extract_strided_slice %58 {offsets = [0, 0, 0], sizes = [16, 16, 1], strides = [1, 1, 1]} : vector<18x16x1xf32> to vector<16x16x1xf32>
    %c2_38 = arith.constant 2 : index
    %c0_39 = arith.constant 0 : index
    %60 = vector.load %arg3[%c2_38, %c0_39] : memref<9x64xf32, #tpu.memory_space<vmem>>, vector<1x64xf32>
    %61 = vector.shape_cast %60 : vector<1x64xf32> to vector<1x1x64xf32>
    %62 = vector.broadcast %59 : vector<16x16x1xf32> to vector<16x16x64xf32>
    %63 = vector.broadcast %61 : vector<1x1x64xf32> to vector<16x16x64xf32>
    %64 = arith.mulf %62, %63 : vector<16x16x64xf32>
    %65 = arith.addf %57, %64 : vector<16x16x64xf32>
    %66 = vector.extract_strided_slice %58 {offsets = [1, 0, 0], sizes = [16, 16, 1], strides = [1, 1, 1]} : vector<18x16x1xf32> to vector<16x16x1xf32>
    %c5 = arith.constant 5 : index
    %c0_40 = arith.constant 0 : index
    %67 = vector.load %arg3[%c5, %c0_40] : memref<9x64xf32, #tpu.memory_space<vmem>>, vector<1x64xf32>
    %68 = vector.shape_cast %67 : vector<1x64xf32> to vector<1x1x64xf32>
    %69 = vector.broadcast %66 : vector<16x16x1xf32> to vector<16x16x64xf32>
    %70 = vector.broadcast %68 : vector<1x1x64xf32> to vector<16x16x64xf32>
    %71 = arith.mulf %69, %70 : vector<16x16x64xf32>
    %72 = arith.addf %65, %71 : vector<16x16x64xf32>
    %73 = vector.extract_strided_slice %58 {offsets = [2, 0, 0], sizes = [16, 16, 1], strides = [1, 1, 1]} : vector<18x16x1xf32> to vector<16x16x1xf32>
    %c8 = arith.constant 8 : index
    %c0_41 = arith.constant 0 : index
    %74 = vector.load %arg3[%c8, %c0_41] : memref<9x64xf32, #tpu.memory_space<vmem>>, vector<1x64xf32>
    %75 = vector.shape_cast %74 : vector<1x64xf32> to vector<1x1x64xf32>
    %76 = vector.broadcast %73 : vector<16x16x1xf32> to vector<16x16x64xf32>
    %77 = vector.broadcast %75 : vector<1x1x64xf32> to vector<16x16x64xf32>
    %78 = arith.mulf %76, %77 : vector<16x16x64xf32>
    %79 = arith.addf %72, %78 : vector<16x16x64xf32>
    %cst_42 = arith.constant 0.000000e+00 : f32
    %80 = vector.broadcast %cst_42 : f32 to vector<16x16x64xf32>
    %81 = arith.maximumf %79, %80 : vector<16x16x64xf32>
    %c1_43 = arith.constant 1 : index
    %c1_44 = arith.constant 1 : index
    %c0_45 = arith.constant 0 : index
    %82 = vector.load %arg13[%c1_43, %c1_44, %c0_45] : memref<18x18x64xf32, #tpu.memory_space<vmem>>, vector<16x16x64xf32>
    tpu.vector_store %arg13[%c1_43, %c1_44, %c0_45], %81 {strides = array<i32>} : memref<18x18x64xf32, #tpu.memory_space<vmem>>, vector<16x16x64xf32>,
    %c0_46 = arith.constant 0 : index
    %c0_47 = arith.constant 0 : index
    %83 = vector.load %arg6[%c0_46, %c0_47] : memref<1x64xf32, #tpu.memory_space<vmem>>, vector<1x64xf32>
    %84 = vector.shape_cast %83 : vector<1x64xf32> to vector<1x64xf32>
    %85 = vector.broadcast %84 : vector<1x64xf32> to vector<256x64xf32>
    %c0_48 = arith.constant 0 : index
    %c0_49 = arith.constant 0 : index
    %c0_50 = arith.constant 0 : index
    %86 = vector.load %arg13[%c0_48, %c0_49, %c0_50] : memref<18x18x64xf32, #tpu.memory_space<vmem>>, vector<18x16x64xf32>
    %87 = vector.extract_strided_slice %86 {offsets = [0, 0, 0], sizes = [16, 16, 64], strides = [1, 1, 1]} : vector<18x16x64xf32> to vector<16x16x64xf32>
    %88 = vector.shape_cast %87 : vector<16x16x64xf32> to vector<256x64xf32>
    %89 = arith.truncf %88 : vector<256x64xf32> to vector<256x64xbf16>
    %c0_51 = arith.constant 0 : index
    %c0_52 = arith.constant 0 : index
    %c0_53 = arith.constant 0 : index
    %c0_54 = arith.constant 0 : index
    %90 = vector.load %arg5[%c0_51, %c0_52, %c0_53, %c0_54] : memref<3x3x64x64xbf16, #tpu.memory_space<vmem>>, vector<1x1x64x64xbf16>
    %91 = vector.shape_cast %90 : vector<1x1x64x64xbf16> to vector<64x64xbf16>
    %cst_55 = arith.constant dense<0.000000e+00> : vector<256x64xf32>
    %92 = tpu.matmul %89, %91, %cst_55 {dimension_numbers = #tpu.dot_dimension_numbers<[1], [0], [0], [1], [0, 0, 1, 1], [], []>} : vector<256x64xbf16>, vector<64x64xbf16>, vector<256x64xf32> -> vector<256x64xf32>
    %93 = arith.addf %85, %92 : vector<256x64xf32>
    %94 = vector.extract_strided_slice %86 {offsets = [1, 0, 0], sizes = [16, 16, 64], strides = [1, 1, 1]} : vector<18x16x64xf32> to vector<16x16x64xf32>
    %95 = vector.shape_cast %94 : vector<16x16x64xf32> to vector<256x64xf32>
    %96 = arith.truncf %95 : vector<256x64xf32> to vector<256x64xbf16>
    %c1_56 = arith.constant 1 : index
    %c0_57 = arith.constant 0 : index
    %c0_58 = arith.constant 0 : index
    %c0_59 = arith.constant 0 : index
    %97 = vector.load %arg5[%c1_56, %c0_57, %c0_58, %c0_59] : memref<3x3x64x64xbf16, #tpu.memory_space<vmem>>, vector<1x1x64x64xbf16>
    %98 = vector.shape_cast %97 : vector<1x1x64x64xbf16> to vector<64x64xbf16>
    %cst_60 = arith.constant dense<0.000000e+00> : vector<256x64xf32>
    %99 = tpu.matmul %96, %98, %cst_60 {dimension_numbers = #tpu.dot_dimension_numbers<[1], [0], [0], [1], [0, 0, 1, 1], [], []>} : vector<256x64xbf16>, vector<64x64xbf16>, vector<256x64xf32> -> vector<256x64xf32>
    %100 = arith.addf %93, %99 : vector<256x64xf32>
    %101 = vector.extract_strided_slice %86 {offsets = [2, 0, 0], sizes = [16, 16, 64], strides = [1, 1, 1]} : vector<18x16x64xf32> to vector<16x16x64xf32>
    %102 = vector.shape_cast %101 : vector<16x16x64xf32> to vector<256x64xf32>
    %103 = arith.truncf %102 : vector<256x64xf32> to vector<256x64xbf16>
    %c2_61 = arith.constant 2 : index
    %c0_62 = arith.constant 0 : index
    %c0_63 = arith.constant 0 : index
    %c0_64 = arith.constant 0 : index
    %104 = vector.load %arg5[%c2_61, %c0_62, %c0_63, %c0_64] : memref<3x3x64x64xbf16, #tpu.memory_space<vmem>>, vector<1x1x64x64xbf16>
    %105 = vector.shape_cast %104 : vector<1x1x64x64xbf16> to vector<64x64xbf16>
    %cst_65 = arith.constant dense<0.000000e+00> : vector<256x64xf32>
    %106 = tpu.matmul %103, %105, %cst_65 {dimension_numbers = #tpu.dot_dimension_numbers<[1], [0], [0], [1], [0, 0, 1, 1], [], []>} : vector<256x64xbf16>, vector<64x64xbf16>, vector<256x64xf32> -> vector<256x64xf32>
    %107 = arith.addf %100, %106 : vector<256x64xf32>
    %c0_66 = arith.constant 0 : index
    %c1_67 = arith.constant 1 : index
    %c0_68 = arith.constant 0 : index
    %108 = vector.load %arg13[%c0_66, %c1_67, %c0_68] : memref<18x18x64xf32, #tpu.memory_space<vmem>>, vector<18x16x64xf32>
    %109 = vector.extract_strided_slice %108 {offsets = [0, 0, 0], sizes = [16, 16, 64], strides = [1, 1, 1]} : vector<18x16x64xf32> to vector<16x16x64xf32>
    %110 = vector.shape_cast %109 : vector<16x16x64xf32> to vector<256x64xf32>
    %111 = arith.truncf %110 : vector<256x64xf32> to vector<256x64xbf16>
    %c0_69 = arith.constant 0 : index
    %c1_70 = arith.constant 1 : index
    %c0_71 = arith.constant 0 : index
    %c0_72 = arith.constant 0 : index
    %112 = vector.load %arg5[%c0_69, %c1_70, %c0_71, %c0_72] : memref<3x3x64x64xbf16, #tpu.memory_space<vmem>>, vector<1x1x64x64xbf16>
    %113 = vector.shape_cast %112 : vector<1x1x64x64xbf16> to vector<64x64xbf16>
    %cst_73 = arith.constant dense<0.000000e+00> : vector<256x64xf32>
    %114 = tpu.matmul %111, %113, %cst_73 {dimension_numbers = #tpu.dot_dimension_numbers<[1], [0], [0], [1], [0, 0, 1, 1], [], []>} : vector<256x64xbf16>, vector<64x64xbf16>, vector<256x64xf32> -> vector<256x64xf32>
    %115 = arith.addf %107, %114 : vector<256x64xf32>
    %116 = vector.extract_strided_slice %108 {offsets = [1, 0, 0], sizes = [16, 16, 64], strides = [1, 1, 1]} : vector<18x16x64xf32> to vector<16x16x64xf32>
    %117 = vector.shape_cast %116 : vector<16x16x64xf32> to vector<256x64xf32>
    %118 = arith.truncf %117 : vector<256x64xf32> to vector<256x64xbf16>
    %c1_74 = arith.constant 1 : index
    %c1_75 = arith.constant 1 : index
    %c0_76 = arith.constant 0 : index
    %c0_77 = arith.constant 0 : index
    %119 = vector.load %arg5[%c1_74, %c1_75, %c0_76, %c0_77] : memref<3x3x64x64xbf16, #tpu.memory_space<vmem>>, vector<1x1x64x64xbf16>
    %120 = vector.shape_cast %119 : vector<1x1x64x64xbf16> to vector<64x64xbf16>
    %cst_78 = arith.constant dense<0.000000e+00> : vector<256x64xf32>
    %121 = tpu.matmul %118, %120, %cst_78 {dimension_numbers = #tpu.dot_dimension_numbers<[1], [0], [0], [1], [0, 0, 1, 1], [], []>} : vector<256x64xbf16>, vector<64x64xbf16>, vector<256x64xf32> -> vector<256x64xf32>
    %122 = arith.addf %115, %121 : vector<256x64xf32>
    %123 = vector.extract_strided_slice %108 {offsets = [2, 0, 0], sizes = [16, 16, 64], strides = [1, 1, 1]} : vector<18x16x64xf32> to vector<16x16x64xf32>
    %124 = vector.shape_cast %123 : vector<16x16x64xf32> to vector<256x64xf32>
    %125 = arith.truncf %124 : vector<256x64xf32> to vector<256x64xbf16>
    %c2_79 = arith.constant 2 : index
    %c1_80 = arith.constant 1 : index
    %c0_81 = arith.constant 0 : index
    %c0_82 = arith.constant 0 : index
    %126 = vector.load %arg5[%c2_79, %c1_80, %c0_81, %c0_82] : memref<3x3x64x64xbf16, #tpu.memory_space<vmem>>, vector<1x1x64x64xbf16>
    %127 = vector.shape_cast %126 : vector<1x1x64x64xbf16> to vector<64x64xbf16>
    %cst_83 = arith.constant dense<0.000000e+00> : vector<256x64xf32>
    %128 = tpu.matmul %125, %127, %cst_83 {dimension_numbers = #tpu.dot_dimension_numbers<[1], [0], [0], [1], [0, 0, 1, 1], [], []>} : vector<256x64xbf16>, vector<64x64xbf16>, vector<256x64xf32> -> vector<256x64xf32>
    %129 = arith.addf %122, %128 : vector<256x64xf32>
    %c0_84 = arith.constant 0 : index
    %c2_85 = arith.constant 2 : index
    %c0_86 = arith.constant 0 : index
    %130 = vector.load %arg13[%c0_84, %c2_85, %c0_86] : memref<18x18x64xf32, #tpu.memory_space<vmem>>, vector<18x16x64xf32>
    %131 = vector.extract_strided_slice %130 {offsets = [0, 0, 0], sizes = [16, 16, 64], strides = [1, 1, 1]} : vector<18x16x64xf32> to vector<16x16x64xf32>
    %132 = vector.shape_cast %131 : vector<16x16x64xf32> to vector<256x64xf32>
    %133 = arith.truncf %132 : vector<256x64xf32> to vector<256x64xbf16>
    %c0_87 = arith.constant 0 : index
    %c2_88 = arith.constant 2 : index
    %c0_89 = arith.constant 0 : index
    %c0_90 = arith.constant 0 : index
    %134 = vector.load %arg5[%c0_87, %c2_88, %c0_89, %c0_90] : memref<3x3x64x64xbf16, #tpu.memory_space<vmem>>, vector<1x1x64x64xbf16>
    %135 = vector.shape_cast %134 : vector<1x1x64x64xbf16> to vector<64x64xbf16>
    %cst_91 = arith.constant dense<0.000000e+00> : vector<256x64xf32>
    %136 = tpu.matmul %133, %135, %cst_91 {dimension_numbers = #tpu.dot_dimension_numbers<[1], [0], [0], [1], [0, 0, 1, 1], [], []>} : vector<256x64xbf16>, vector<64x64xbf16>, vector<256x64xf32> -> vector<256x64xf32>
    %137 = arith.addf %129, %136 : vector<256x64xf32>
    %138 = vector.extract_strided_slice %130 {offsets = [1, 0, 0], sizes = [16, 16, 64], strides = [1, 1, 1]} : vector<18x16x64xf32> to vector<16x16x64xf32>
    %139 = vector.shape_cast %138 : vector<16x16x64xf32> to vector<256x64xf32>
    %140 = arith.truncf %139 : vector<256x64xf32> to vector<256x64xbf16>
    %c1_92 = arith.constant 1 : index
    %c2_93 = arith.constant 2 : index
    %c0_94 = arith.constant 0 : index
    %c0_95 = arith.constant 0 : index
    %141 = vector.load %arg5[%c1_92, %c2_93, %c0_94, %c0_95] : memref<3x3x64x64xbf16, #tpu.memory_space<vmem>>, vector<1x1x64x64xbf16>
    %142 = vector.shape_cast %141 : vector<1x1x64x64xbf16> to vector<64x64xbf16>
    %cst_96 = arith.constant dense<0.000000e+00> : vector<256x64xf32>
    %143 = tpu.matmul %140, %142, %cst_96 {dimension_numbers = #tpu.dot_dimension_numbers<[1], [0], [0], [1], [0, 0, 1, 1], [], []>} : vector<256x64xbf16>, vector<64x64xbf16>, vector<256x64xf32> -> vector<256x64xf32>
    %144 = arith.addf %137, %143 : vector<256x64xf32>
    %145 = vector.extract_strided_slice %130 {offsets = [2, 0, 0], sizes = [16, 16, 64], strides = [1, 1, 1]} : vector<18x16x64xf32> to vector<16x16x64xf32>
    %146 = vector.shape_cast %145 : vector<16x16x64xf32> to vector<256x64xf32>
    %147 = arith.truncf %146 : vector<256x64xf32> to vector<256x64xbf16>
    %c2_97 = arith.constant 2 : index
    %c2_98 = arith.constant 2 : index
    %c0_99 = arith.constant 0 : index
    %c0_100 = arith.constant 0 : index
    %148 = vector.load %arg5[%c2_97, %c2_98, %c0_99, %c0_100] : memref<3x3x64x64xbf16, #tpu.memory_space<vmem>>, vector<1x1x64x64xbf16>
    %149 = vector.shape_cast %148 : vector<1x1x64x64xbf16> to vector<64x64xbf16>
    %cst_101 = arith.constant dense<0.000000e+00> : vector<256x64xf32>
    %150 = tpu.matmul %147, %149, %cst_101 {dimension_numbers = #tpu.dot_dimension_numbers<[1], [0], [0], [1], [0, 0, 1, 1], [], []>} : vector<256x64xbf16>, vector<64x64xbf16>, vector<256x64xf32> -> vector<256x64xf32>
    %151 = arith.addf %144, %150 : vector<256x64xf32>
    %cst_102 = arith.constant 0.000000e+00 : f32
    %152 = vector.broadcast %cst_102 : f32 to vector<256x64xf32>
    %153 = arith.maximumf %151, %152 : vector<256x64xf32>
    %154 = vector.shape_cast %153 : vector<256x64xf32> to vector<16x16x64xf32>
    %c0_103 = arith.constant 0 : index
    %c0_104 = arith.constant 0 : index
    %c0_105 = arith.constant 0 : index
    %155 = vector.load %arg14[%c0_103, %c0_104, %c0_105] : memref<16x16x64xf32, #tpu.memory_space<vmem>>, vector<16x16x64xf32>
    tpu.vector_store %arg14[%c0_103, %c0_104, %c0_105], %154 {strides = array<i32>} : memref<16x16x64xf32, #tpu.memory_space<vmem>>, vector<16x16x64xf32>,
    %c0_106 = arith.constant 0 : index
    %c0_107 = arith.constant 0 : index
    %c0_108 = arith.constant 0 : index
    %156 = tpu.strided_load %arg14[%c0_106, %c0_107, %c0_108] {strides = array<i32: 2, 1, 1>} : memref<16x16x64xf32, #tpu.memory_space<vmem>>, vector<8x16x64xf32>
    %c1_109 = arith.constant 1 : index
    %c0_110 = arith.constant 0 : index
    %c0_111 = arith.constant 0 : index
    %157 = tpu.strided_load %arg14[%c1_109, %c0_110, %c0_111] {strides = array<i32: 2, 1, 1>} : memref<16x16x64xf32, #tpu.memory_space<vmem>>, vector<8x16x64xf32>
    %158 = arith.maximumf %156, %157 : vector<8x16x64xf32>
    %c0_112 = arith.constant 0 : index
    %c0_113 = arith.constant 0 : index
    %c0_114 = arith.constant 0 : index
    %159 = vector.load %arg15[%c0_112, %c0_113, %c0_114] : memref<8x16x64xf32, #tpu.memory_space<vmem>>, vector<8x16x64xf32>
    tpu.vector_store %arg15[%c0_112, %c0_113, %c0_114], %158 {strides = array<i32>} : memref<8x16x64xf32, #tpu.memory_space<vmem>>, vector<8x16x64xf32>,
    %c0_115 = arith.constant 0 : index
    %c0_116 = arith.constant 0 : index
    %c0_117 = arith.constant 0 : index
    %160 = tpu.strided_load %arg15[%c0_115, %c0_116, %c0_117] {strides = array<i32: 1, 2, 1>} : memref<8x16x64xf32, #tpu.memory_space<vmem>>, vector<8x8x64xf32>
    %c0_118 = arith.constant 0 : index
    %c1_119 = arith.constant 1 : index
    %c0_120 = arith.constant 0 : index
    %161 = tpu.strided_load %arg15[%c0_118, %c1_119, %c0_120] {strides = array<i32: 1, 2, 1>} : memref<8x16x64xf32, #tpu.memory_space<vmem>>, vector<8x8x64xf32>
    %162 = arith.maximumf %160, %161 : vector<8x8x64xf32>
    %c1_121 = arith.constant 1 : index
    %c1_122 = arith.constant 1 : index
    %c0_123 = arith.constant 0 : index
    %163 = vector.load %arg16[%c1_121, %c1_122, %c0_123] : memref<10x10x64xf32, #tpu.memory_space<vmem>>, vector<8x8x64xf32>
    tpu.vector_store %arg16[%c1_121, %c1_122, %c0_123], %162 {strides = array<i32>} : memref<10x10x64xf32, #tpu.memory_space<vmem>>, vector<8x8x64xf32>,
    %c0_124 = arith.constant 0 : index
    %c0_125 = arith.constant 0 : index
    %164 = vector.load %arg8[%c0_124, %c0_125] : memref<1x128xf32, #tpu.memory_space<vmem>>, vector<1x128xf32>
    %165 = vector.shape_cast %164 : vector<1x128xf32> to vector<1x128xf32>
    %166 = vector.broadcast %165 : vector<1x128xf32> to vector<64x128xf32>
    %c0_126 = arith.constant 0 : index
    %c0_127 = arith.constant 0 : index
    %c0_128 = arith.constant 0 : index
    %167 = vector.load %arg16[%c0_126, %c0_127, %c0_128] : memref<10x10x64xf32, #tpu.memory_space<vmem>>, vector<10x8x64xf32>
    %168 = vector.extract_strided_slice %167 {offsets = [0, 0, 0], sizes = [8, 8, 64], strides = [1, 1, 1]} : vector<10x8x64xf32> to vector<8x8x64xf32>
    %169 = vector.shape_cast %168 : vector<8x8x64xf32> to vector<64x64xf32>
    %170 = arith.truncf %169 : vector<64x64xf32> to vector<64x64xbf16>
    %c0_129 = arith.constant 0 : index
    %c0_130 = arith.constant 0 : index
    %c0_131 = arith.constant 0 : index
    %c0_132 = arith.constant 0 : index
    %171 = vector.load %arg7[%c0_129, %c0_130, %c0_131, %c0_132] : memref<3x3x64x128xbf16, #tpu.memory_space<vmem>>, vector<1x1x64x128xbf16>
    %172 = vector.shape_cast %171 : vector<1x1x64x128xbf16> to vector<64x128xbf16>
    %cst_133 = arith.constant dense<0.000000e+00> : vector<64x128xf32>
    %173 = tpu.matmul %170, %172, %cst_133 {dimension_numbers = #tpu.dot_dimension_numbers<[1], [0], [0], [1], [0, 0, 1, 1], [], []>} : vector<64x64xbf16>, vector<64x128xbf16>, vector<64x128xf32> -> vector<64x128xf32>
    %174 = arith.addf %166, %173 : vector<64x128xf32>
    %175 = vector.extract_strided_slice %167 {offsets = [1, 0, 0], sizes = [8, 8, 64], strides = [1, 1, 1]} : vector<10x8x64xf32> to vector<8x8x64xf32>
    %176 = vector.shape_cast %175 : vector<8x8x64xf32> to vector<64x64xf32>
    %177 = arith.truncf %176 : vector<64x64xf32> to vector<64x64xbf16>
    %c1_134 = arith.constant 1 : index
    %c0_135 = arith.constant 0 : index
    %c0_136 = arith.constant 0 : index
    %c0_137 = arith.constant 0 : index
    %178 = vector.load %arg7[%c1_134, %c0_135, %c0_136, %c0_137] : memref<3x3x64x128xbf16, #tpu.memory_space<vmem>>, vector<1x1x64x128xbf16>
    %179 = vector.shape_cast %178 : vector<1x1x64x128xbf16> to vector<64x128xbf16>
    %cst_138 = arith.constant dense<0.000000e+00> : vector<64x128xf32>
    %180 = tpu.matmul %177, %179, %cst_138 {dimension_numbers = #tpu.dot_dimension_numbers<[1], [0], [0], [1], [0, 0, 1, 1], [], []>} : vector<64x64xbf16>, vector<64x128xbf16>, vector<64x128xf32> -> vector<64x128xf32>
    %181 = arith.addf %174, %180 : vector<64x128xf32>
    %182 = vector.extract_strided_slice %167 {offsets = [2, 0, 0], sizes = [8, 8, 64], strides = [1, 1, 1]} : vector<10x8x64xf32> to vector<8x8x64xf32>
    %183 = vector.shape_cast %182 : vector<8x8x64xf32> to vector<64x64xf32>
    %184 = arith.truncf %183 : vector<64x64xf32> to vector<64x64xbf16>
    %c2_139 = arith.constant 2 : index
    %c0_140 = arith.constant 0 : index
    %c0_141 = arith.constant 0 : index
    %c0_142 = arith.constant 0 : index
    %185 = vector.load %arg7[%c2_139, %c0_140, %c0_141, %c0_142] : memref<3x3x64x128xbf16, #tpu.memory_space<vmem>>, vector<1x1x64x128xbf16>
    %186 = vector.shape_cast %185 : vector<1x1x64x128xbf16> to vector<64x128xbf16>
    %cst_143 = arith.constant dense<0.000000e+00> : vector<64x128xf32>
    %187 = tpu.matmul %184, %186, %cst_143 {dimension_numbers = #tpu.dot_dimension_numbers<[1], [0], [0], [1], [0, 0, 1, 1], [], []>} : vector<64x64xbf16>, vector<64x128xbf16>, vector<64x128xf32> -> vector<64x128xf32>
    %188 = arith.addf %181, %187 : vector<64x128xf32>
    %c0_144 = arith.constant 0 : index
    %c1_145 = arith.constant 1 : index
    %c0_146 = arith.constant 0 : index
    %189 = vector.load %arg16[%c0_144, %c1_145, %c0_146] : memref<10x10x64xf32, #tpu.memory_space<vmem>>, vector<10x8x64xf32>
    %190 = vector.extract_strided_slice %189 {offsets = [0, 0, 0], sizes = [8, 8, 64], strides = [1, 1, 1]} : vector<10x8x64xf32> to vector<8x8x64xf32>
    %191 = vector.shape_cast %190 : vector<8x8x64xf32> to vector<64x64xf32>
    %192 = arith.truncf %191 : vector<64x64xf32> to vector<64x64xbf16>
    %c0_147 = arith.constant 0 : index
    %c1_148 = arith.constant 1 : index
    %c0_149 = arith.constant 0 : index
    %c0_150 = arith.constant 0 : index
    %193 = vector.load %arg7[%c0_147, %c1_148, %c0_149, %c0_150] : memref<3x3x64x128xbf16, #tpu.memory_space<vmem>>, vector<1x1x64x128xbf16>
    %194 = vector.shape_cast %193 : vector<1x1x64x128xbf16> to vector<64x128xbf16>
    %cst_151 = arith.constant dense<0.000000e+00> : vector<64x128xf32>
    %195 = tpu.matmul %192, %194, %cst_151 {dimension_numbers = #tpu.dot_dimension_numbers<[1], [0], [0], [1], [0, 0, 1, 1], [], []>} : vector<64x64xbf16>, vector<64x128xbf16>, vector<64x128xf32> -> vector<64x128xf32>
    %196 = arith.addf %188, %195 : vector<64x128xf32>
    %197 = vector.extract_strided_slice %189 {offsets = [1, 0, 0], sizes = [8, 8, 64], strides = [1, 1, 1]} : vector<10x8x64xf32> to vector<8x8x64xf32>
    %198 = vector.shape_cast %197 : vector<8x8x64xf32> to vector<64x64xf32>
    %199 = arith.truncf %198 : vector<64x64xf32> to vector<64x64xbf16>
    %c1_152 = arith.constant 1 : index
    %c1_153 = arith.constant 1 : index
    %c0_154 = arith.constant 0 : index
    %c0_155 = arith.constant 0 : index
    %200 = vector.load %arg7[%c1_152, %c1_153, %c0_154, %c0_155] : memref<3x3x64x128xbf16, #tpu.memory_space<vmem>>, vector<1x1x64x128xbf16>
    %201 = vector.shape_cast %200 : vector<1x1x64x128xbf16> to vector<64x128xbf16>
    %cst_156 = arith.constant dense<0.000000e+00> : vector<64x128xf32>
    %202 = tpu.matmul %199, %201, %cst_156 {dimension_numbers = #tpu.dot_dimension_numbers<[1], [0], [0], [1], [0, 0, 1, 1], [], []>} : vector<64x64xbf16>, vector<64x128xbf16>, vector<64x128xf32> -> vector<64x128xf32>
    %203 = arith.addf %196, %202 : vector<64x128xf32>
    %204 = vector.extract_strided_slice %189 {offsets = [2, 0, 0], sizes = [8, 8, 64], strides = [1, 1, 1]} : vector<10x8x64xf32> to vector<8x8x64xf32>
    %205 = vector.shape_cast %204 : vector<8x8x64xf32> to vector<64x64xf32>
    %206 = arith.truncf %205 : vector<64x64xf32> to vector<64x64xbf16>
    %c2_157 = arith.constant 2 : index
    %c1_158 = arith.constant 1 : index
    %c0_159 = arith.constant 0 : index
    %c0_160 = arith.constant 0 : index
    %207 = vector.load %arg7[%c2_157, %c1_158, %c0_159, %c0_160] : memref<3x3x64x128xbf16, #tpu.memory_space<vmem>>, vector<1x1x64x128xbf16>
    %208 = vector.shape_cast %207 : vector<1x1x64x128xbf16> to vector<64x128xbf16>
    %cst_161 = arith.constant dense<0.000000e+00> : vector<64x128xf32>
    %209 = tpu.matmul %206, %208, %cst_161 {dimension_numbers = #tpu.dot_dimension_numbers<[1], [0], [0], [1], [0, 0, 1, 1], [], []>} : vector<64x64xbf16>, vector<64x128xbf16>, vector<64x128xf32> -> vector<64x128xf32>
    %210 = arith.addf %203, %209 : vector<64x128xf32>
    %c0_162 = arith.constant 0 : index
    %c2_163 = arith.constant 2 : index
    %c0_164 = arith.constant 0 : index
    %211 = vector.load %arg16[%c0_162, %c2_163, %c0_164] : memref<10x10x64xf32, #tpu.memory_space<vmem>>, vector<10x8x64xf32>
    %212 = vector.extract_strided_slice %211 {offsets = [0, 0, 0], sizes = [8, 8, 64], strides = [1, 1, 1]} : vector<10x8x64xf32> to vector<8x8x64xf32>
    %213 = vector.shape_cast %212 : vector<8x8x64xf32> to vector<64x64xf32>
    %214 = arith.truncf %213 : vector<64x64xf32> to vector<64x64xbf16>
    %c0_165 = arith.constant 0 : index
    %c2_166 = arith.constant 2 : index
    %c0_167 = arith.constant 0 : index
    %c0_168 = arith.constant 0 : index
    %215 = vector.load %arg7[%c0_165, %c2_166, %c0_167, %c0_168] : memref<3x3x64x128xbf16, #tpu.memory_space<vmem>>, vector<1x1x64x128xbf16>
    %216 = vector.shape_cast %215 : vector<1x1x64x128xbf16> to vector<64x128xbf16>
    %cst_169 = arith.constant dense<0.000000e+00> : vector<64x128xf32>
    %217 = tpu.matmul %214, %216, %cst_169 {dimension_numbers = #tpu.dot_dimension_numbers<[1], [0], [0], [1], [0, 0, 1, 1], [], []>} : vector<64x64xbf16>, vector<64x128xbf16>, vector<64x128xf32> -> vector<64x128xf32>
    %218 = arith.addf %210, %217 : vector<64x128xf32>
    %219 = vector.extract_strided_slice %211 {offsets = [1, 0, 0], sizes = [8, 8, 64], strides = [1, 1, 1]} : vector<10x8x64xf32> to vector<8x8x64xf32>
    %220 = vector.shape_cast %219 : vector<8x8x64xf32> to vector<64x64xf32>
    %221 = arith.truncf %220 : vector<64x64xf32> to vector<64x64xbf16>
    %c1_170 = arith.constant 1 : index
    %c2_171 = arith.constant 2 : index
    %c0_172 = arith.constant 0 : index
    %c0_173 = arith.constant 0 : index
    %222 = vector.load %arg7[%c1_170, %c2_171, %c0_172, %c0_173] : memref<3x3x64x128xbf16, #tpu.memory_space<vmem>>, vector<1x1x64x128xbf16>
    %223 = vector.shape_cast %222 : vector<1x1x64x128xbf16> to vector<64x128xbf16>
    %cst_174 = arith.constant dense<0.000000e+00> : vector<64x128xf32>
    %224 = tpu.matmul %221, %223, %cst_174 {dimension_numbers = #tpu.dot_dimension_numbers<[1], [0], [0], [1], [0, 0, 1, 1], [], []>} : vector<64x64xbf16>, vector<64x128xbf16>, vector<64x128xf32> -> vector<64x128xf32>
    %225 = arith.addf %218, %224 : vector<64x128xf32>
    %226 = vector.extract_strided_slice %211 {offsets = [2, 0, 0], sizes = [8, 8, 64], strides = [1, 1, 1]} : vector<10x8x64xf32> to vector<8x8x64xf32>
    %227 = vector.shape_cast %226 : vector<8x8x64xf32> to vector<64x64xf32>
    %228 = arith.truncf %227 : vector<64x64xf32> to vector<64x64xbf16>
    %c2_175 = arith.constant 2 : index
    %c2_176 = arith.constant 2 : index
    %c0_177 = arith.constant 0 : index
    %c0_178 = arith.constant 0 : index
    %229 = vector.load %arg7[%c2_175, %c2_176, %c0_177, %c0_178] : memref<3x3x64x128xbf16, #tpu.memory_space<vmem>>, vector<1x1x64x128xbf16>
    %230 = vector.shape_cast %229 : vector<1x1x64x128xbf16> to vector<64x128xbf16>
    %cst_179 = arith.constant dense<0.000000e+00> : vector<64x128xf32>
    %231 = tpu.matmul %228, %230, %cst_179 {dimension_numbers = #tpu.dot_dimension_numbers<[1], [0], [0], [1], [0, 0, 1, 1], [], []>} : vector<64x64xbf16>, vector<64x128xbf16>, vector<64x128xf32> -> vector<64x128xf32>
    %232 = arith.addf %225, %231 : vector<64x128xf32>
    %cst_180 = arith.constant 0.000000e+00 : f32
    %233 = vector.broadcast %cst_180 : f32 to vector<64x128xf32>
    %234 = arith.maximumf %232, %233 : vector<64x128xf32>
    %235 = vector.shape_cast %234 : vector<64x128xf32> to vector<8x8x128xf32>
    %c1_181 = arith.constant 1 : index
    %c1_182 = arith.constant 1 : index
    %c0_183 = arith.constant 0 : index
    %236 = vector.load %arg17[%c1_181, %c1_182, %c0_183] : memref<10x10x128xf32, #tpu.memory_space<vmem>>, vector<8x8x128xf32>
    tpu.vector_store %arg17[%c1_181, %c1_182, %c0_183], %235 {strides = array<i32>} : memref<10x10x128xf32, #tpu.memory_space<vmem>>, vector<8x8x128xf32>,
    %c0_184 = arith.constant 0 : index
    %c0_185 = arith.constant 0 : index
    %237 = vector.load %arg10[%c0_184, %c0_185] : memref<1x128xf32, #tpu.memory_space<vmem>>, vector<1x128xf32>
    %238 = vector.shape_cast %237 : vector<1x128xf32> to vector<1x128xf32>
    %239 = vector.broadcast %238 : vector<1x128xf32> to vector<64x128xf32>
    %c0_186 = arith.constant 0 : index
    %c0_187 = arith.constant 0 : index
    %c0_188 = arith.constant 0 : index
    %240 = vector.load %arg17[%c0_186, %c0_187, %c0_188] : memref<10x10x128xf32, #tpu.memory_space<vmem>>, vector<10x8x128xf32>
    %241 = vector.extract_strided_slice %240 {offsets = [0, 0, 0], sizes = [8, 8, 128], strides = [1, 1, 1]} : vector<10x8x128xf32> to vector<8x8x128xf32>
    %242 = vector.shape_cast %241 : vector<8x8x128xf32> to vector<64x128xf32>
    %243 = arith.truncf %242 : vector<64x128xf32> to vector<64x128xbf16>
    %c0_189 = arith.constant 0 : index
    %c0_190 = arith.constant 0 : index
    %c0_191 = arith.constant 0 : index
    %c0_192 = arith.constant 0 : index
    %244 = vector.load %arg9[%c0_189, %c0_190, %c0_191, %c0_192] : memref<3x3x128x128xbf16, #tpu.memory_space<vmem>>, vector<1x1x128x128xbf16>
    %245 = vector.shape_cast %244 : vector<1x1x128x128xbf16> to vector<128x128xbf16>
    %cst_193 = arith.constant dense<0.000000e+00> : vector<64x128xf32>
    %246 = tpu.matmul %243, %245, %cst_193 {dimension_numbers = #tpu.dot_dimension_numbers<[1], [0], [0], [1], [0, 0, 1, 1], [], []>} : vector<64x128xbf16>, vector<128x128xbf16>, vector<64x128xf32> -> vector<64x128xf32>
    %247 = arith.addf %239, %246 : vector<64x128xf32>
    %248 = vector.extract_strided_slice %240 {offsets = [1, 0, 0], sizes = [8, 8, 128], strides = [1, 1, 1]} : vector<10x8x128xf32> to vector<8x8x128xf32>
    %249 = vector.shape_cast %248 : vector<8x8x128xf32> to vector<64x128xf32>
    %250 = arith.truncf %249 : vector<64x128xf32> to vector<64x128xbf16>
    %c1_194 = arith.constant 1 : index
    %c0_195 = arith.constant 0 : index
    %c0_196 = arith.constant 0 : index
    %c0_197 = arith.constant 0 : index
    %251 = vector.load %arg9[%c1_194, %c0_195, %c0_196, %c0_197] : memref<3x3x128x128xbf16, #tpu.memory_space<vmem>>, vector<1x1x128x128xbf16>
    %252 = vector.shape_cast %251 : vector<1x1x128x128xbf16> to vector<128x128xbf16>
    %cst_198 = arith.constant dense<0.000000e+00> : vector<64x128xf32>
    %253 = tpu.matmul %250, %252, %cst_198 {dimension_numbers = #tpu.dot_dimension_numbers<[1], [0], [0], [1], [0, 0, 1, 1], [], []>} : vector<64x128xbf16>, vector<128x128xbf16>, vector<64x128xf32> -> vector<64x128xf32>
    %254 = arith.addf %247, %253 : vector<64x128xf32>
    %255 = vector.extract_strided_slice %240 {offsets = [2, 0, 0], sizes = [8, 8, 128], strides = [1, 1, 1]} : vector<10x8x128xf32> to vector<8x8x128xf32>
    %256 = vector.shape_cast %255 : vector<8x8x128xf32> to vector<64x128xf32>
    %257 = arith.truncf %256 : vector<64x128xf32> to vector<64x128xbf16>
    %c2_199 = arith.constant 2 : index
    %c0_200 = arith.constant 0 : index
    %c0_201 = arith.constant 0 : index
    %c0_202 = arith.constant 0 : index
    %258 = vector.load %arg9[%c2_199, %c0_200, %c0_201, %c0_202] : memref<3x3x128x128xbf16, #tpu.memory_space<vmem>>, vector<1x1x128x128xbf16>
    %259 = vector.shape_cast %258 : vector<1x1x128x128xbf16> to vector<128x128xbf16>
    %cst_203 = arith.constant dense<0.000000e+00> : vector<64x128xf32>
    %260 = tpu.matmul %257, %259, %cst_203 {dimension_numbers = #tpu.dot_dimension_numbers<[1], [0], [0], [1], [0, 0, 1, 1], [], []>} : vector<64x128xbf16>, vector<128x128xbf16>, vector<64x128xf32> -> vector<64x128xf32>
    %261 = arith.addf %254, %260 : vector<64x128xf32>
    %c0_204 = arith.constant 0 : index
    %c1_205 = arith.constant 1 : index
    %c0_206 = arith.constant 0 : index
    %262 = vector.load %arg17[%c0_204, %c1_205, %c0_206] : memref<10x10x128xf32, #tpu.memory_space<vmem>>, vector<10x8x128xf32>
    %263 = vector.extract_strided_slice %262 {offsets = [0, 0, 0], sizes = [8, 8, 128], strides = [1, 1, 1]} : vector<10x8x128xf32> to vector<8x8x128xf32>
    %264 = vector.shape_cast %263 : vector<8x8x128xf32> to vector<64x128xf32>
    %265 = arith.truncf %264 : vector<64x128xf32> to vector<64x128xbf16>
    %c0_207 = arith.constant 0 : index
    %c1_208 = arith.constant 1 : index
    %c0_209 = arith.constant 0 : index
    %c0_210 = arith.constant 0 : index
    %266 = vector.load %arg9[%c0_207, %c1_208, %c0_209, %c0_210] : memref<3x3x128x128xbf16, #tpu.memory_space<vmem>>, vector<1x1x128x128xbf16>
    %267 = vector.shape_cast %266 : vector<1x1x128x128xbf16> to vector<128x128xbf16>
    %cst_211 = arith.constant dense<0.000000e+00> : vector<64x128xf32>
    %268 = tpu.matmul %265, %267, %cst_211 {dimension_numbers = #tpu.dot_dimension_numbers<[1], [0], [0], [1], [0, 0, 1, 1], [], []>} : vector<64x128xbf16>, vector<128x128xbf16>, vector<64x128xf32> -> vector<64x128xf32>
    %269 = arith.addf %261, %268 : vector<64x128xf32>
    %270 = vector.extract_strided_slice %262 {offsets = [1, 0, 0], sizes = [8, 8, 128], strides = [1, 1, 1]} : vector<10x8x128xf32> to vector<8x8x128xf32>
    %271 = vector.shape_cast %270 : vector<8x8x128xf32> to vector<64x128xf32>
    %272 = arith.truncf %271 : vector<64x128xf32> to vector<64x128xbf16>
    %c1_212 = arith.constant 1 : index
    %c1_213 = arith.constant 1 : index
    %c0_214 = arith.constant 0 : index
    %c0_215 = arith.constant 0 : index
    %273 = vector.load %arg9[%c1_212, %c1_213, %c0_214, %c0_215] : memref<3x3x128x128xbf16, #tpu.memory_space<vmem>>, vector<1x1x128x128xbf16>
    %274 = vector.shape_cast %273 : vector<1x1x128x128xbf16> to vector<128x128xbf16>
    %cst_216 = arith.constant dense<0.000000e+00> : vector<64x128xf32>
    %275 = tpu.matmul %272, %274, %cst_216 {dimension_numbers = #tpu.dot_dimension_numbers<[1], [0], [0], [1], [0, 0, 1, 1], [], []>} : vector<64x128xbf16>, vector<128x128xbf16>, vector<64x128xf32> -> vector<64x128xf32>
    %276 = arith.addf %269, %275 : vector<64x128xf32>
    %277 = vector.extract_strided_slice %262 {offsets = [2, 0, 0], sizes = [8, 8, 128], strides = [1, 1, 1]} : vector<10x8x128xf32> to vector<8x8x128xf32>
    %278 = vector.shape_cast %277 : vector<8x8x128xf32> to vector<64x128xf32>
    %279 = arith.truncf %278 : vector<64x128xf32> to vector<64x128xbf16>
    %c2_217 = arith.constant 2 : index
    %c1_218 = arith.constant 1 : index
    %c0_219 = arith.constant 0 : index
    %c0_220 = arith.constant 0 : index
    %280 = vector.load %arg9[%c2_217, %c1_218, %c0_219, %c0_220] : memref<3x3x128x128xbf16, #tpu.memory_space<vmem>>, vector<1x1x128x128xbf16>
    %281 = vector.shape_cast %280 : vector<1x1x128x128xbf16> to vector<128x128xbf16>
    %cst_221 = arith.constant dense<0.000000e+00> : vector<64x128xf32>
    %282 = tpu.matmul %279, %281, %cst_221 {dimension_numbers = #tpu.dot_dimension_numbers<[1], [0], [0], [1], [0, 0, 1, 1], [], []>} : vector<64x128xbf16>, vector<128x128xbf16>, vector<64x128xf32> -> vector<64x128xf32>
    %283 = arith.addf %276, %282 : vector<64x128xf32>
    %c0_222 = arith.constant 0 : index
    %c2_223 = arith.constant 2 : index
    %c0_224 = arith.constant 0 : index
    %284 = vector.load %arg17[%c0_222, %c2_223, %c0_224] : memref<10x10x128xf32, #tpu.memory_space<vmem>>, vector<10x8x128xf32>
    %285 = vector.extract_strided_slice %284 {offsets = [0, 0, 0], sizes = [8, 8, 128], strides = [1, 1, 1]} : vector<10x8x128xf32> to vector<8x8x128xf32>
    %286 = vector.shape_cast %285 : vector<8x8x128xf32> to vector<64x128xf32>
    %287 = arith.truncf %286 : vector<64x128xf32> to vector<64x128xbf16>
    %c0_225 = arith.constant 0 : index
    %c2_226 = arith.constant 2 : index
    %c0_227 = arith.constant 0 : index
    %c0_228 = arith.constant 0 : index
    %288 = vector.load %arg9[%c0_225, %c2_226, %c0_227, %c0_228] : memref<3x3x128x128xbf16, #tpu.memory_space<vmem>>, vector<1x1x128x128xbf16>
    %289 = vector.shape_cast %288 : vector<1x1x128x128xbf16> to vector<128x128xbf16>
    %cst_229 = arith.constant dense<0.000000e+00> : vector<64x128xf32>
    %290 = tpu.matmul %287, %289, %cst_229 {dimension_numbers = #tpu.dot_dimension_numbers<[1], [0], [0], [1], [0, 0, 1, 1], [], []>} : vector<64x128xbf16>, vector<128x128xbf16>, vector<64x128xf32> -> vector<64x128xf32>
    %291 = arith.addf %283, %290 : vector<64x128xf32>
    %292 = vector.extract_strided_slice %284 {offsets = [1, 0, 0], sizes = [8, 8, 128], strides = [1, 1, 1]} : vector<10x8x128xf32> to vector<8x8x128xf32>
    %293 = vector.shape_cast %292 : vector<8x8x128xf32> to vector<64x128xf32>
    %294 = arith.truncf %293 : vector<64x128xf32> to vector<64x128xbf16>
    %c1_230 = arith.constant 1 : index
    %c2_231 = arith.constant 2 : index
    %c0_232 = arith.constant 0 : index
    %c0_233 = arith.constant 0 : index
    %295 = vector.load %arg9[%c1_230, %c2_231, %c0_232, %c0_233] : memref<3x3x128x128xbf16, #tpu.memory_space<vmem>>, vector<1x1x128x128xbf16>
    %296 = vector.shape_cast %295 : vector<1x1x128x128xbf16> to vector<128x128xbf16>
    %cst_234 = arith.constant dense<0.000000e+00> : vector<64x128xf32>
    %297 = tpu.matmul %294, %296, %cst_234 {dimension_numbers = #tpu.dot_dimension_numbers<[1], [0], [0], [1], [0, 0, 1, 1], [], []>} : vector<64x128xbf16>, vector<128x128xbf16>, vector<64x128xf32> -> vector<64x128xf32>
    %298 = arith.addf %291, %297 : vector<64x128xf32>
    %299 = vector.extract_strided_slice %284 {offsets = [2, 0, 0], sizes = [8, 8, 128], strides = [1, 1, 1]} : vector<10x8x128xf32> to vector<8x8x128xf32>
    %300 = vector.shape_cast %299 : vector<8x8x128xf32> to vector<64x128xf32>
    %301 = arith.truncf %300 : vector<64x128xf32> to vector<64x128xbf16>
    %c2_235 = arith.constant 2 : index
    %c2_236 = arith.constant 2 : index
    %c0_237 = arith.constant 0 : index
    %c0_238 = arith.constant 0 : index
    %302 = vector.load %arg9[%c2_235, %c2_236, %c0_237, %c0_238] : memref<3x3x128x128xbf16, #tpu.memory_space<vmem>>, vector<1x1x128x128xbf16>
    %303 = vector.shape_cast %302 : vector<1x1x128x128xbf16> to vector<128x128xbf16>
    %cst_239 = arith.constant dense<0.000000e+00> : vector<64x128xf32>
    %304 = tpu.matmul %301, %303, %cst_239 {dimension_numbers = #tpu.dot_dimension_numbers<[1], [0], [0], [1], [0, 0, 1, 1], [], []>} : vector<64x128xbf16>, vector<128x128xbf16>, vector<64x128xf32> -> vector<64x128xf32>
    %305 = arith.addf %298, %304 : vector<64x128xf32>
    %cst_240 = arith.constant 0.000000e+00 : f32
    %306 = vector.broadcast %cst_240 : f32 to vector<64x128xf32>
    %307 = arith.maximumf %305, %306 : vector<64x128xf32>
    %308 = vector.shape_cast %307 : vector<64x128xf32> to vector<8x8x128xf32>
    %c0_241 = arith.constant 0 : index
    %c0_242 = arith.constant 0 : index
    %c0_243 = arith.constant 0 : index
    %309 = vector.load %arg18[%c0_241, %c0_242, %c0_243] : memref<8x8x128xf32, #tpu.memory_space<vmem>>, vector<8x8x128xf32>
    tpu.vector_store %arg18[%c0_241, %c0_242, %c0_243], %308 {strides = array<i32>} : memref<8x8x128xf32, #tpu.memory_space<vmem>>, vector<8x8x128xf32>,
    %c0_244 = arith.constant 0 : index
    %c0_245 = arith.constant 0 : index
    %c0_246 = arith.constant 0 : index
    %c0_247 = arith.constant 0 : index
    %310 = vector.load %arg2[%c0_244, %c0_245, %c0_246, %c0_247] : memref<1x16x16x1xf32, #tpu.memory_space<vmem>>, vector<1x16x16x1xf32>
    %311 = vector.shape_cast %310 : vector<1x16x16x1xf32> to vector<16x16x1xf32>
    %c1_248 = arith.constant 1 : index
    %c1_249 = arith.constant 1 : index
    %c0_250 = arith.constant 0 : index
    %312 = vector.load %arg12[%c1_248, %c1_249, %c0_250] : memref<18x18x1xf32, #tpu.memory_space<vmem>>, vector<16x16x1xf32>
    tpu.vector_store %arg12[%c1_248, %c1_249, %c0_250], %311 {strides = array<i32>} : memref<18x18x1xf32, #tpu.memory_space<vmem>>, vector<16x16x1xf32>,
    %c0_251 = arith.constant 0 : index
    %c0_252 = arith.constant 0 : index
    %313 = vector.load %arg4[%c0_251, %c0_252] : memref<1x64xf32, #tpu.memory_space<vmem>>, vector<1x64xf32>
    %314 = vector.shape_cast %313 : vector<1x64xf32> to vector<1x1x64xf32>
    %315 = vector.broadcast %314 : vector<1x1x64xf32> to vector<16x16x64xf32>
    %c0_253 = arith.constant 0 : index
    %c0_254 = arith.constant 0 : index
    %c0_255 = arith.constant 0 : index
    %316 = vector.load %arg12[%c0_253, %c0_254, %c0_255] : memref<18x18x1xf32, #tpu.memory_space<vmem>>, vector<18x16x1xf32>
    %317 = vector.extract_strided_slice %316 {offsets = [0, 0, 0], sizes = [16, 16, 1], strides = [1, 1, 1]} : vector<18x16x1xf32> to vector<16x16x1xf32>
    %c0_256 = arith.constant 0 : index
    %c0_257 = arith.constant 0 : index
    %318 = vector.load %arg3[%c0_256, %c0_257] : memref<9x64xf32, #tpu.memory_space<vmem>>, vector<1x64xf32>
    %319 = vector.shape_cast %318 : vector<1x64xf32> to vector<1x1x64xf32>
    %320 = vector.broadcast %317 : vector<16x16x1xf32> to vector<16x16x64xf32>
    %321 = vector.broadcast %319 : vector<1x1x64xf32> to vector<16x16x64xf32>
    %322 = arith.mulf %320, %321 : vector<16x16x64xf32>
    %323 = arith.addf %315, %322 : vector<16x16x64xf32>
    %324 = vector.extract_strided_slice %316 {offsets = [1, 0, 0], sizes = [16, 16, 1], strides = [1, 1, 1]} : vector<18x16x1xf32> to vector<16x16x1xf32>
    %c3_258 = arith.constant 3 : index
    %c0_259 = arith.constant 0 : index
    %325 = vector.load %arg3[%c3_258, %c0_259] : memref<9x64xf32, #tpu.memory_space<vmem>>, vector<1x64xf32>
    %326 = vector.shape_cast %325 : vector<1x64xf32> to vector<1x1x64xf32>
    %327 = vector.broadcast %324 : vector<16x16x1xf32> to vector<16x16x64xf32>
    %328 = vector.broadcast %326 : vector<1x1x64xf32> to vector<16x16x64xf32>
    %329 = arith.mulf %327, %328 : vector<16x16x64xf32>
    %330 = arith.addf %323, %329 : vector<16x16x64xf32>
    %331 = vector.extract_strided_slice %316 {offsets = [2, 0, 0], sizes = [16, 16, 1], strides = [1, 1, 1]} : vector<18x16x1xf32> to vector<16x16x1xf32>
    %c6_260 = arith.constant 6 : index
    %c0_261 = arith.constant 0 : index
    %332 = vector.load %arg3[%c6_260, %c0_261] : memref<9x64xf32, #tpu.memory_space<vmem>>, vector<1x64xf32>
    %333 = vector.shape_cast %332 : vector<1x64xf32> to vector<1x1x64xf32>
    %334 = vector.broadcast %331 : vector<16x16x1xf32> to vector<16x16x64xf32>
    %335 = vector.broadcast %333 : vector<1x1x64xf32> to vector<16x16x64xf32>
    %336 = arith.mulf %334, %335 : vector<16x16x64xf32>
    %337 = arith.addf %330, %336 : vector<16x16x64xf32>
    %c0_262 = arith.constant 0 : index
    %c1_263 = arith.constant 1 : index
    %c0_264 = arith.constant 0 : index
    %338 = vector.load %arg12[%c0_262, %c1_263, %c0_264] : memref<18x18x1xf32, #tpu.memory_space<vmem>>, vector<18x16x1xf32>
    %339 = vector.extract_strided_slice %338 {offsets = [0, 0, 0], sizes = [16, 16, 1], strides = [1, 1, 1]} : vector<18x16x1xf32> to vector<16x16x1xf32>
    %c1_265 = arith.constant 1 : index
    %c0_266 = arith.constant 0 : index
    %340 = vector.load %arg3[%c1_265, %c0_266] : memref<9x64xf32, #tpu.memory_space<vmem>>, vector<1x64xf32>
    %341 = vector.shape_cast %340 : vector<1x64xf32> to vector<1x1x64xf32>
    %342 = vector.broadcast %339 : vector<16x16x1xf32> to vector<16x16x64xf32>
    %343 = vector.broadcast %341 : vector<1x1x64xf32> to vector<16x16x64xf32>
    %344 = arith.mulf %342, %343 : vector<16x16x64xf32>
    %345 = arith.addf %337, %344 : vector<16x16x64xf32>
    %346 = vector.extract_strided_slice %338 {offsets = [1, 0, 0], sizes = [16, 16, 1], strides = [1, 1, 1]} : vector<18x16x1xf32> to vector<16x16x1xf32>
    %c4_267 = arith.constant 4 : index
    %c0_268 = arith.constant 0 : index
    %347 = vector.load %arg3[%c4_267, %c0_268] : memref<9x64xf32, #tpu.memory_space<vmem>>, vector<1x64xf32>
    %348 = vector.shape_cast %347 : vector<1x64xf32> to vector<1x1x64xf32>
    %349 = vector.broadcast %346 : vector<16x16x1xf32> to vector<16x16x64xf32>
    %350 = vector.broadcast %348 : vector<1x1x64xf32> to vector<16x16x64xf32>
    %351 = arith.mulf %349, %350 : vector<16x16x64xf32>
    %352 = arith.addf %345, %351 : vector<16x16x64xf32>
    %353 = vector.extract_strided_slice %338 {offsets = [2, 0, 0], sizes = [16, 16, 1], strides = [1, 1, 1]} : vector<18x16x1xf32> to vector<16x16x1xf32>
    %c7_269 = arith.constant 7 : index
    %c0_270 = arith.constant 0 : index
    %354 = vector.load %arg3[%c7_269, %c0_270] : memref<9x64xf32, #tpu.memory_space<vmem>>, vector<1x64xf32>
    %355 = vector.shape_cast %354 : vector<1x64xf32> to vector<1x1x64xf32>
    %356 = vector.broadcast %353 : vector<16x16x1xf32> to vector<16x16x64xf32>
    %357 = vector.broadcast %355 : vector<1x1x64xf32> to vector<16x16x64xf32>
    %358 = arith.mulf %356, %357 : vector<16x16x64xf32>
    %359 = arith.addf %352, %358 : vector<16x16x64xf32>
    %c0_271 = arith.constant 0 : index
    %c2_272 = arith.constant 2 : index
    %c0_273 = arith.constant 0 : index
    %360 = vector.load %arg12[%c0_271, %c2_272, %c0_273] : memref<18x18x1xf32, #tpu.memory_space<vmem>>, vector<18x16x1xf32>
    %361 = vector.extract_strided_slice %360 {offsets = [0, 0, 0], sizes = [16, 16, 1], strides = [1, 1, 1]} : vector<18x16x1xf32> to vector<16x16x1xf32>
    %c2_274 = arith.constant 2 : index
    %c0_275 = arith.constant 0 : index
    %362 = vector.load %arg3[%c2_274, %c0_275] : memref<9x64xf32, #tpu.memory_space<vmem>>, vector<1x64xf32>
    %363 = vector.shape_cast %362 : vector<1x64xf32> to vector<1x1x64xf32>
    %364 = vector.broadcast %361 : vector<16x16x1xf32> to vector<16x16x64xf32>
    %365 = vector.broadcast %363 : vector<1x1x64xf32> to vector<16x16x64xf32>
    %366 = arith.mulf %364, %365 : vector<16x16x64xf32>
    %367 = arith.addf %359, %366 : vector<16x16x64xf32>
    %368 = vector.extract_strided_slice %360 {offsets = [1, 0, 0], sizes = [16, 16, 1], strides = [1, 1, 1]} : vector<18x16x1xf32> to vector<16x16x1xf32>
    %c5_276 = arith.constant 5 : index
    %c0_277 = arith.constant 0 : index
    %369 = vector.load %arg3[%c5_276, %c0_277] : memref<9x64xf32, #tpu.memory_space<vmem>>, vector<1x64xf32>
    %370 = vector.shape_cast %369 : vector<1x64xf32> to vector<1x1x64xf32>
    %371 = vector.broadcast %368 : vector<16x16x1xf32> to vector<16x16x64xf32>
    %372 = vector.broadcast %370 : vector<1x1x64xf32> to vector<16x16x64xf32>
    %373 = arith.mulf %371, %372 : vector<16x16x64xf32>
    %374 = arith.addf %367, %373 : vector<16x16x64xf32>
    %375 = vector.extract_strided_slice %360 {offsets = [2, 0, 0], sizes = [16, 16, 1], strides = [1, 1, 1]} : vector<18x16x1xf32> to vector<16x16x1xf32>
    %c8_278 = arith.constant 8 : index
    %c0_279 = arith.constant 0 : index
    %376 = vector.load %arg3[%c8_278, %c0_279] : memref<9x64xf32, #tpu.memory_space<vmem>>, vector<1x64xf32>
    %377 = vector.shape_cast %376 : vector<1x64xf32> to vector<1x1x64xf32>
    %378 = vector.broadcast %375 : vector<16x16x1xf32> to vector<16x16x64xf32>
    %379 = vector.broadcast %377 : vector<1x1x64xf32> to vector<16x16x64xf32>
    %380 = arith.mulf %378, %379 : vector<16x16x64xf32>
    %381 = arith.addf %374, %380 : vector<16x16x64xf32>
    %cst_280 = arith.constant 0.000000e+00 : f32
    %382 = vector.broadcast %cst_280 : f32 to vector<16x16x64xf32>
    %383 = arith.maximumf %381, %382 : vector<16x16x64xf32>
    %c1_281 = arith.constant 1 : index
    %c1_282 = arith.constant 1 : index
    %c0_283 = arith.constant 0 : index
    %384 = vector.load %arg13[%c1_281, %c1_282, %c0_283] : memref<18x18x64xf32, #tpu.memory_space<vmem>>, vector<16x16x64xf32>
    tpu.vector_store %arg13[%c1_281, %c1_282, %c0_283], %383 {strides = array<i32>} : memref<18x18x64xf32, #tpu.memory_space<vmem>>, vector<16x16x64xf32>,
    %c0_284 = arith.constant 0 : index
    %c0_285 = arith.constant 0 : index
    %385 = vector.load %arg6[%c0_284, %c0_285] : memref<1x64xf32, #tpu.memory_space<vmem>>, vector<1x64xf32>
    %386 = vector.shape_cast %385 : vector<1x64xf32> to vector<1x64xf32>
    %387 = vector.broadcast %386 : vector<1x64xf32> to vector<256x64xf32>
    %c0_286 = arith.constant 0 : index
    %c0_287 = arith.constant 0 : index
    %c0_288 = arith.constant 0 : index
    %388 = vector.load %arg13[%c0_286, %c0_287, %c0_288] : memref<18x18x64xf32, #tpu.memory_space<vmem>>, vector<18x16x64xf32>
    %389 = vector.extract_strided_slice %388 {offsets = [0, 0, 0], sizes = [16, 16, 64], strides = [1, 1, 1]} : vector<18x16x64xf32> to vector<16x16x64xf32>
    %390 = vector.shape_cast %389 : vector<16x16x64xf32> to vector<256x64xf32>
    %391 = arith.truncf %390 : vector<256x64xf32> to vector<256x64xbf16>
    %c0_289 = arith.constant 0 : index
    %c0_290 = arith.constant 0 : index
    %c0_291 = arith.constant 0 : index
    %c0_292 = arith.constant 0 : index
    %392 = vector.load %arg5[%c0_289, %c0_290, %c0_291, %c0_292] : memref<3x3x64x64xbf16, #tpu.memory_space<vmem>>, vector<1x1x64x64xbf16>
    %393 = vector.shape_cast %392 : vector<1x1x64x64xbf16> to vector<64x64xbf16>
    %cst_293 = arith.constant dense<0.000000e+00> : vector<256x64xf32>
    %394 = tpu.matmul %391, %393, %cst_293 {dimension_numbers = #tpu.dot_dimension_numbers<[1], [0], [0], [1], [0, 0, 1, 1], [], []>} : vector<256x64xbf16>, vector<64x64xbf16>, vector<256x64xf32> -> vector<256x64xf32>
    %395 = arith.addf %387, %394 : vector<256x64xf32>
    %396 = vector.extract_strided_slice %388 {offsets = [1, 0, 0], sizes = [16, 16, 64], strides = [1, 1, 1]} : vector<18x16x64xf32> to vector<16x16x64xf32>
    %397 = vector.shape_cast %396 : vector<16x16x64xf32> to vector<256x64xf32>
    %398 = arith.truncf %397 : vector<256x64xf32> to vector<256x64xbf16>
    %c1_294 = arith.constant 1 : index
    %c0_295 = arith.constant 0 : index
    %c0_296 = arith.constant 0 : index
    %c0_297 = arith.constant 0 : index
    %399 = vector.load %arg5[%c1_294, %c0_295, %c0_296, %c0_297] : memref<3x3x64x64xbf16, #tpu.memory_space<vmem>>, vector<1x1x64x64xbf16>
    %400 = vector.shape_cast %399 : vector<1x1x64x64xbf16> to vector<64x64xbf16>
    %cst_298 = arith.constant dense<0.000000e+00> : vector<256x64xf32>
    %401 = tpu.matmul %398, %400, %cst_298 {dimension_numbers = #tpu.dot_dimension_numbers<[1], [0], [0], [1], [0, 0, 1, 1], [], []>} : vector<256x64xbf16>, vector<64x64xbf16>, vector<256x64xf32> -> vector<256x64xf32>
    %402 = arith.addf %395, %401 : vector<256x64xf32>
    %403 = vector.extract_strided_slice %388 {offsets = [2, 0, 0], sizes = [16, 16, 64], strides = [1, 1, 1]} : vector<18x16x64xf32> to vector<16x16x64xf32>
    %404 = vector.shape_cast %403 : vector<16x16x64xf32> to vector<256x64xf32>
    %405 = arith.truncf %404 : vector<256x64xf32> to vector<256x64xbf16>
    %c2_299 = arith.constant 2 : index
    %c0_300 = arith.constant 0 : index
    %c0_301 = arith.constant 0 : index
    %c0_302 = arith.constant 0 : index
    %406 = vector.load %arg5[%c2_299, %c0_300, %c0_301, %c0_302] : memref<3x3x64x64xbf16, #tpu.memory_space<vmem>>, vector<1x1x64x64xbf16>
    %407 = vector.shape_cast %406 : vector<1x1x64x64xbf16> to vector<64x64xbf16>
    %cst_303 = arith.constant dense<0.000000e+00> : vector<256x64xf32>
    %408 = tpu.matmul %405, %407, %cst_303 {dimension_numbers = #tpu.dot_dimension_numbers<[1], [0], [0], [1], [0, 0, 1, 1], [], []>} : vector<256x64xbf16>, vector<64x64xbf16>, vector<256x64xf32> -> vector<256x64xf32>
    %409 = arith.addf %402, %408 : vector<256x64xf32>
    %c0_304 = arith.constant 0 : index
    %c1_305 = arith.constant 1 : index
    %c0_306 = arith.constant 0 : index
    %410 = vector.load %arg13[%c0_304, %c1_305, %c0_306] : memref<18x18x64xf32, #tpu.memory_space<vmem>>, vector<18x16x64xf32>
    %411 = vector.extract_strided_slice %410 {offsets = [0, 0, 0], sizes = [16, 16, 64], strides = [1, 1, 1]} : vector<18x16x64xf32> to vector<16x16x64xf32>
    %412 = vector.shape_cast %411 : vector<16x16x64xf32> to vector<256x64xf32>
    %413 = arith.truncf %412 : vector<256x64xf32> to vector<256x64xbf16>
    %c0_307 = arith.constant 0 : index
    %c1_308 = arith.constant 1 : index
    %c0_309 = arith.constant 0 : index
    %c0_310 = arith.constant 0 : index
    %414 = vector.load %arg5[%c0_307, %c1_308, %c0_309, %c0_310] : memref<3x3x64x64xbf16, #tpu.memory_space<vmem>>, vector<1x1x64x64xbf16>
    %415 = vector.shape_cast %414 : vector<1x1x64x64xbf16> to vector<64x64xbf16>
    %cst_311 = arith.constant dense<0.000000e+00> : vector<256x64xf32>
    %416 = tpu.matmul %413, %415, %cst_311 {dimension_numbers = #tpu.dot_dimension_numbers<[1], [0], [0], [1], [0, 0, 1, 1], [], []>} : vector<256x64xbf16>, vector<64x64xbf16>, vector<256x64xf32> -> vector<256x64xf32>
    %417 = arith.addf %409, %416 : vector<256x64xf32>
    %418 = vector.extract_strided_slice %410 {offsets = [1, 0, 0], sizes = [16, 16, 64], strides = [1, 1, 1]} : vector<18x16x64xf32> to vector<16x16x64xf32>
    %419 = vector.shape_cast %418 : vector<16x16x64xf32> to vector<256x64xf32>
    %420 = arith.truncf %419 : vector<256x64xf32> to vector<256x64xbf16>
    %c1_312 = arith.constant 1 : index
    %c1_313 = arith.constant 1 : index
    %c0_314 = arith.constant 0 : index
    %c0_315 = arith.constant 0 : index
    %421 = vector.load %arg5[%c1_312, %c1_313, %c0_314, %c0_315] : memref<3x3x64x64xbf16, #tpu.memory_space<vmem>>, vector<1x1x64x64xbf16>
    %422 = vector.shape_cast %421 : vector<1x1x64x64xbf16> to vector<64x64xbf16>
    %cst_316 = arith.constant dense<0.000000e+00> : vector<256x64xf32>
    %423 = tpu.matmul %420, %422, %cst_316 {dimension_numbers = #tpu.dot_dimension_numbers<[1], [0], [0], [1], [0, 0, 1, 1], [], []>} : vector<256x64xbf16>, vector<64x64xbf16>, vector<256x64xf32> -> vector<256x64xf32>
    %424 = arith.addf %417, %423 : vector<256x64xf32>
    %425 = vector.extract_strided_slice %410 {offsets = [2, 0, 0], sizes = [16, 16, 64], strides = [1, 1, 1]} : vector<18x16x64xf32> to vector<16x16x64xf32>
    %426 = vector.shape_cast %425 : vector<16x16x64xf32> to vector<256x64xf32>
    %427 = arith.truncf %426 : vector<256x64xf32> to vector<256x64xbf16>
    %c2_317 = arith.constant 2 : index
    %c1_318 = arith.constant 1 : index
    %c0_319 = arith.constant 0 : index
    %c0_320 = arith.constant 0 : index
    %428 = vector.load %arg5[%c2_317, %c1_318, %c0_319, %c0_320] : memref<3x3x64x64xbf16, #tpu.memory_space<vmem>>, vector<1x1x64x64xbf16>
    %429 = vector.shape_cast %428 : vector<1x1x64x64xbf16> to vector<64x64xbf16>
    %cst_321 = arith.constant dense<0.000000e+00> : vector<256x64xf32>
    %430 = tpu.matmul %427, %429, %cst_321 {dimension_numbers = #tpu.dot_dimension_numbers<[1], [0], [0], [1], [0, 0, 1, 1], [], []>} : vector<256x64xbf16>, vector<64x64xbf16>, vector<256x64xf32> -> vector<256x64xf32>
    %431 = arith.addf %424, %430 : vector<256x64xf32>
    %c0_322 = arith.constant 0 : index
    %c2_323 = arith.constant 2 : index
    %c0_324 = arith.constant 0 : index
    %432 = vector.load %arg13[%c0_322, %c2_323, %c0_324] : memref<18x18x64xf32, #tpu.memory_space<vmem>>, vector<18x16x64xf32>
    %433 = vector.extract_strided_slice %432 {offsets = [0, 0, 0], sizes = [16, 16, 64], strides = [1, 1, 1]} : vector<18x16x64xf32> to vector<16x16x64xf32>
    %434 = vector.shape_cast %433 : vector<16x16x64xf32> to vector<256x64xf32>
    %435 = arith.truncf %434 : vector<256x64xf32> to vector<256x64xbf16>
    %c0_325 = arith.constant 0 : index
    %c2_326 = arith.constant 2 : index
    %c0_327 = arith.constant 0 : index
    %c0_328 = arith.constant 0 : index
    %436 = vector.load %arg5[%c0_325, %c2_326, %c0_327, %c0_328] : memref<3x3x64x64xbf16, #tpu.memory_space<vmem>>, vector<1x1x64x64xbf16>
    %437 = vector.shape_cast %436 : vector<1x1x64x64xbf16> to vector<64x64xbf16>
    %cst_329 = arith.constant dense<0.000000e+00> : vector<256x64xf32>
    %438 = tpu.matmul %435, %437, %cst_329 {dimension_numbers = #tpu.dot_dimension_numbers<[1], [0], [0], [1], [0, 0, 1, 1], [], []>} : vector<256x64xbf16>, vector<64x64xbf16>, vector<256x64xf32> -> vector<256x64xf32>
    %439 = arith.addf %431, %438 : vector<256x64xf32>
    %440 = vector.extract_strided_slice %432 {offsets = [1, 0, 0], sizes = [16, 16, 64], strides = [1, 1, 1]} : vector<18x16x64xf32> to vector<16x16x64xf32>
    %441 = vector.shape_cast %440 : vector<16x16x64xf32> to vector<256x64xf32>
    %442 = arith.truncf %441 : vector<256x64xf32> to vector<256x64xbf16>
    %c1_330 = arith.constant 1 : index
    %c2_331 = arith.constant 2 : index
    %c0_332 = arith.constant 0 : index
    %c0_333 = arith.constant 0 : index
    %443 = vector.load %arg5[%c1_330, %c2_331, %c0_332, %c0_333] : memref<3x3x64x64xbf16, #tpu.memory_space<vmem>>, vector<1x1x64x64xbf16>
    %444 = vector.shape_cast %443 : vector<1x1x64x64xbf16> to vector<64x64xbf16>
    %cst_334 = arith.constant dense<0.000000e+00> : vector<256x64xf32>
    %445 = tpu.matmul %442, %444, %cst_334 {dimension_numbers = #tpu.dot_dimension_numbers<[1], [0], [0], [1], [0, 0, 1, 1], [], []>} : vector<256x64xbf16>, vector<64x64xbf16>, vector<256x64xf32> -> vector<256x64xf32>
    %446 = arith.addf %439, %445 : vector<256x64xf32>
    %447 = vector.extract_strided_slice %432 {offsets = [2, 0, 0], sizes = [16, 16, 64], strides = [1, 1, 1]} : vector<18x16x64xf32> to vector<16x16x64xf32>
    %448 = vector.shape_cast %447 : vector<16x16x64xf32> to vector<256x64xf32>
    %449 = arith.truncf %448 : vector<256x64xf32> to vector<256x64xbf16>
    %c2_335 = arith.constant 2 : index
    %c2_336 = arith.constant 2 : index
    %c0_337 = arith.constant 0 : index
    %c0_338 = arith.constant 0 : index
    %450 = vector.load %arg5[%c2_335, %c2_336, %c0_337, %c0_338] : memref<3x3x64x64xbf16, #tpu.memory_space<vmem>>, vector<1x1x64x64xbf16>
    %451 = vector.shape_cast %450 : vector<1x1x64x64xbf16> to vector<64x64xbf16>
    %cst_339 = arith.constant dense<0.000000e+00> : vector<256x64xf32>
    %452 = tpu.matmul %449, %451, %cst_339 {dimension_numbers = #tpu.dot_dimension_numbers<[1], [0], [0], [1], [0, 0, 1, 1], [], []>} : vector<256x64xbf16>, vector<64x64xbf16>, vector<256x64xf32> -> vector<256x64xf32>
    %453 = arith.addf %446, %452 : vector<256x64xf32>
    %cst_340 = arith.constant 0.000000e+00 : f32
    %454 = vector.broadcast %cst_340 : f32 to vector<256x64xf32>
    %455 = arith.maximumf %453, %454 : vector<256x64xf32>
    %456 = vector.shape_cast %455 : vector<256x64xf32> to vector<16x16x64xf32>
    %c0_341 = arith.constant 0 : index
    %c0_342 = arith.constant 0 : index
    %c0_343 = arith.constant 0 : index
    %457 = vector.load %arg14[%c0_341, %c0_342, %c0_343] : memref<16x16x64xf32, #tpu.memory_space<vmem>>, vector<16x16x64xf32>
    tpu.vector_store %arg14[%c0_341, %c0_342, %c0_343], %456 {strides = array<i32>} : memref<16x16x64xf32, #tpu.memory_space<vmem>>, vector<16x16x64xf32>,
    %c0_344 = arith.constant 0 : index
    %c0_345 = arith.constant 0 : index
    %c0_346 = arith.constant 0 : index
    %458 = tpu.strided_load %arg14[%c0_344, %c0_345, %c0_346] {strides = array<i32: 2, 1, 1>} : memref<16x16x64xf32, #tpu.memory_space<vmem>>, vector<8x16x64xf32>
    %c1_347 = arith.constant 1 : index
    %c0_348 = arith.constant 0 : index
    %c0_349 = arith.constant 0 : index
    %459 = tpu.strided_load %arg14[%c1_347, %c0_348, %c0_349] {strides = array<i32: 2, 1, 1>} : memref<16x16x64xf32, #tpu.memory_space<vmem>>, vector<8x16x64xf32>
    %460 = arith.maximumf %458, %459 : vector<8x16x64xf32>
    %c0_350 = arith.constant 0 : index
    %c0_351 = arith.constant 0 : index
    %c0_352 = arith.constant 0 : index
    %461 = vector.load %arg15[%c0_350, %c0_351, %c0_352] : memref<8x16x64xf32, #tpu.memory_space<vmem>>, vector<8x16x64xf32>
    tpu.vector_store %arg15[%c0_350, %c0_351, %c0_352], %460 {strides = array<i32>} : memref<8x16x64xf32, #tpu.memory_space<vmem>>, vector<8x16x64xf32>,
    %c0_353 = arith.constant 0 : index
    %c0_354 = arith.constant 0 : index
    %c0_355 = arith.constant 0 : index
    %462 = tpu.strided_load %arg15[%c0_353, %c0_354, %c0_355] {strides = array<i32: 1, 2, 1>} : memref<8x16x64xf32, #tpu.memory_space<vmem>>, vector<8x8x64xf32>
    %c0_356 = arith.constant 0 : index
    %c1_357 = arith.constant 1 : index
    %c0_358 = arith.constant 0 : index
    %463 = tpu.strided_load %arg15[%c0_356, %c1_357, %c0_358] {strides = array<i32: 1, 2, 1>} : memref<8x16x64xf32, #tpu.memory_space<vmem>>, vector<8x8x64xf32>
    %464 = arith.maximumf %462, %463 : vector<8x8x64xf32>
    %c1_359 = arith.constant 1 : index
    %c1_360 = arith.constant 1 : index
    %c0_361 = arith.constant 0 : index
    %465 = vector.load %arg16[%c1_359, %c1_360, %c0_361] : memref<10x10x64xf32, #tpu.memory_space<vmem>>, vector<8x8x64xf32>
    tpu.vector_store %arg16[%c1_359, %c1_360, %c0_361], %464 {strides = array<i32>} : memref<10x10x64xf32, #tpu.memory_space<vmem>>, vector<8x8x64xf32>,
    %c0_362 = arith.constant 0 : index
    %c0_363 = arith.constant 0 : index
    %466 = vector.load %arg8[%c0_362, %c0_363] : memref<1x128xf32, #tpu.memory_space<vmem>>, vector<1x128xf32>
    %467 = vector.shape_cast %466 : vector<1x128xf32> to vector<1x128xf32>
    %468 = vector.broadcast %467 : vector<1x128xf32> to vector<64x128xf32>
    %c0_364 = arith.constant 0 : index
    %c0_365 = arith.constant 0 : index
    %c0_366 = arith.constant 0 : index
    %469 = vector.load %arg16[%c0_364, %c0_365, %c0_366] : memref<10x10x64xf32, #tpu.memory_space<vmem>>, vector<10x8x64xf32>
    %470 = vector.extract_strided_slice %469 {offsets = [0, 0, 0], sizes = [8, 8, 64], strides = [1, 1, 1]} : vector<10x8x64xf32> to vector<8x8x64xf32>
    %471 = vector.shape_cast %470 : vector<8x8x64xf32> to vector<64x64xf32>
    %472 = arith.truncf %471 : vector<64x64xf32> to vector<64x64xbf16>
    %c0_367 = arith.constant 0 : index
    %c0_368 = arith.constant 0 : index
    %c0_369 = arith.constant 0 : index
    %c0_370 = arith.constant 0 : index
    %473 = vector.load %arg7[%c0_367, %c0_368, %c0_369, %c0_370] : memref<3x3x64x128xbf16, #tpu.memory_space<vmem>>, vector<1x1x64x128xbf16>
    %474 = vector.shape_cast %473 : vector<1x1x64x128xbf16> to vector<64x128xbf16>
    %cst_371 = arith.constant dense<0.000000e+00> : vector<64x128xf32>
    %475 = tpu.matmul %472, %474, %cst_371 {dimension_numbers = #tpu.dot_dimension_numbers<[1], [0], [0], [1], [0, 0, 1, 1], [], []>} : vector<64x64xbf16>, vector<64x128xbf16>, vector<64x128xf32> -> vector<64x128xf32>
    %476 = arith.addf %468, %475 : vector<64x128xf32>
    %477 = vector.extract_strided_slice %469 {offsets = [1, 0, 0], sizes = [8, 8, 64], strides = [1, 1, 1]} : vector<10x8x64xf32> to vector<8x8x64xf32>
    %478 = vector.shape_cast %477 : vector<8x8x64xf32> to vector<64x64xf32>
    %479 = arith.truncf %478 : vector<64x64xf32> to vector<64x64xbf16>
    %c1_372 = arith.constant 1 : index
    %c0_373 = arith.constant 0 : index
    %c0_374 = arith.constant 0 : index
    %c0_375 = arith.constant 0 : index
    %480 = vector.load %arg7[%c1_372, %c0_373, %c0_374, %c0_375] : memref<3x3x64x128xbf16, #tpu.memory_space<vmem>>, vector<1x1x64x128xbf16>
    %481 = vector.shape_cast %480 : vector<1x1x64x128xbf16> to vector<64x128xbf16>
    %cst_376 = arith.constant dense<0.000000e+00> : vector<64x128xf32>
    %482 = tpu.matmul %479, %481, %cst_376 {dimension_numbers = #tpu.dot_dimension_numbers<[1], [0], [0], [1], [0, 0, 1, 1], [], []>} : vector<64x64xbf16>, vector<64x128xbf16>, vector<64x128xf32> -> vector<64x128xf32>
    %483 = arith.addf %476, %482 : vector<64x128xf32>
    %484 = vector.extract_strided_slice %469 {offsets = [2, 0, 0], sizes = [8, 8, 64], strides = [1, 1, 1]} : vector<10x8x64xf32> to vector<8x8x64xf32>
    %485 = vector.shape_cast %484 : vector<8x8x64xf32> to vector<64x64xf32>
    %486 = arith.truncf %485 : vector<64x64xf32> to vector<64x64xbf16>
    %c2_377 = arith.constant 2 : index
    %c0_378 = arith.constant 0 : index
    %c0_379 = arith.constant 0 : index
    %c0_380 = arith.constant 0 : index
    %487 = vector.load %arg7[%c2_377, %c0_378, %c0_379, %c0_380] : memref<3x3x64x128xbf16, #tpu.memory_space<vmem>>, vector<1x1x64x128xbf16>
    %488 = vector.shape_cast %487 : vector<1x1x64x128xbf16> to vector<64x128xbf16>
    %cst_381 = arith.constant dense<0.000000e+00> : vector<64x128xf32>
    %489 = tpu.matmul %486, %488, %cst_381 {dimension_numbers = #tpu.dot_dimension_numbers<[1], [0], [0], [1], [0, 0, 1, 1], [], []>} : vector<64x64xbf16>, vector<64x128xbf16>, vector<64x128xf32> -> vector<64x128xf32>
    %490 = arith.addf %483, %489 : vector<64x128xf32>
    %c0_382 = arith.constant 0 : index
    %c1_383 = arith.constant 1 : index
    %c0_384 = arith.constant 0 : index
    %491 = vector.load %arg16[%c0_382, %c1_383, %c0_384] : memref<10x10x64xf32, #tpu.memory_space<vmem>>, vector<10x8x64xf32>
    %492 = vector.extract_strided_slice %491 {offsets = [0, 0, 0], sizes = [8, 8, 64], strides = [1, 1, 1]} : vector<10x8x64xf32> to vector<8x8x64xf32>
    %493 = vector.shape_cast %492 : vector<8x8x64xf32> to vector<64x64xf32>
    %494 = arith.truncf %493 : vector<64x64xf32> to vector<64x64xbf16>
    %c0_385 = arith.constant 0 : index
    %c1_386 = arith.constant 1 : index
    %c0_387 = arith.constant 0 : index
    %c0_388 = arith.constant 0 : index
    %495 = vector.load %arg7[%c0_385, %c1_386, %c0_387, %c0_388] : memref<3x3x64x128xbf16, #tpu.memory_space<vmem>>, vector<1x1x64x128xbf16>
    %496 = vector.shape_cast %495 : vector<1x1x64x128xbf16> to vector<64x128xbf16>
    %cst_389 = arith.constant dense<0.000000e+00> : vector<64x128xf32>
    %497 = tpu.matmul %494, %496, %cst_389 {dimension_numbers = #tpu.dot_dimension_numbers<[1], [0], [0], [1], [0, 0, 1, 1], [], []>} : vector<64x64xbf16>, vector<64x128xbf16>, vector<64x128xf32> -> vector<64x128xf32>
    %498 = arith.addf %490, %497 : vector<64x128xf32>
    %499 = vector.extract_strided_slice %491 {offsets = [1, 0, 0], sizes = [8, 8, 64], strides = [1, 1, 1]} : vector<10x8x64xf32> to vector<8x8x64xf32>
    %500 = vector.shape_cast %499 : vector<8x8x64xf32> to vector<64x64xf32>
    %501 = arith.truncf %500 : vector<64x64xf32> to vector<64x64xbf16>
    %c1_390 = arith.constant 1 : index
    %c1_391 = arith.constant 1 : index
    %c0_392 = arith.constant 0 : index
    %c0_393 = arith.constant 0 : index
    %502 = vector.load %arg7[%c1_390, %c1_391, %c0_392, %c0_393] : memref<3x3x64x128xbf16, #tpu.memory_space<vmem>>, vector<1x1x64x128xbf16>
    %503 = vector.shape_cast %502 : vector<1x1x64x128xbf16> to vector<64x128xbf16>
    %cst_394 = arith.constant dense<0.000000e+00> : vector<64x128xf32>
    %504 = tpu.matmul %501, %503, %cst_394 {dimension_numbers = #tpu.dot_dimension_numbers<[1], [0], [0], [1], [0, 0, 1, 1], [], []>} : vector<64x64xbf16>, vector<64x128xbf16>, vector<64x128xf32> -> vector<64x128xf32>
    %505 = arith.addf %498, %504 : vector<64x128xf32>
    %506 = vector.extract_strided_slice %491 {offsets = [2, 0, 0], sizes = [8, 8, 64], strides = [1, 1, 1]} : vector<10x8x64xf32> to vector<8x8x64xf32>
    %507 = vector.shape_cast %506 : vector<8x8x64xf32> to vector<64x64xf32>
    %508 = arith.truncf %507 : vector<64x64xf32> to vector<64x64xbf16>
    %c2_395 = arith.constant 2 : index
    %c1_396 = arith.constant 1 : index
    %c0_397 = arith.constant 0 : index
    %c0_398 = arith.constant 0 : index
    %509 = vector.load %arg7[%c2_395, %c1_396, %c0_397, %c0_398] : memref<3x3x64x128xbf16, #tpu.memory_space<vmem>>, vector<1x1x64x128xbf16>
    %510 = vector.shape_cast %509 : vector<1x1x64x128xbf16> to vector<64x128xbf16>
    %cst_399 = arith.constant dense<0.000000e+00> : vector<64x128xf32>
    %511 = tpu.matmul %508, %510, %cst_399 {dimension_numbers = #tpu.dot_dimension_numbers<[1], [0], [0], [1], [0, 0, 1, 1], [], []>} : vector<64x64xbf16>, vector<64x128xbf16>, vector<64x128xf32> -> vector<64x128xf32>
    %512 = arith.addf %505, %511 : vector<64x128xf32>
    %c0_400 = arith.constant 0 : index
    %c2_401 = arith.constant 2 : index
    %c0_402 = arith.constant 0 : index
    %513 = vector.load %arg16[%c0_400, %c2_401, %c0_402] : memref<10x10x64xf32, #tpu.memory_space<vmem>>, vector<10x8x64xf32>
    %514 = vector.extract_strided_slice %513 {offsets = [0, 0, 0], sizes = [8, 8, 64], strides = [1, 1, 1]} : vector<10x8x64xf32> to vector<8x8x64xf32>
    %515 = vector.shape_cast %514 : vector<8x8x64xf32> to vector<64x64xf32>
    %516 = arith.truncf %515 : vector<64x64xf32> to vector<64x64xbf16>
    %c0_403 = arith.constant 0 : index
    %c2_404 = arith.constant 2 : index
    %c0_405 = arith.constant 0 : index
    %c0_406 = arith.constant 0 : index
    %517 = vector.load %arg7[%c0_403, %c2_404, %c0_405, %c0_406] : memref<3x3x64x128xbf16, #tpu.memory_space<vmem>>, vector<1x1x64x128xbf16>
    %518 = vector.shape_cast %517 : vector<1x1x64x128xbf16> to vector<64x128xbf16>
    %cst_407 = arith.constant dense<0.000000e+00> : vector<64x128xf32>
    %519 = tpu.matmul %516, %518, %cst_407 {dimension_numbers = #tpu.dot_dimension_numbers<[1], [0], [0], [1], [0, 0, 1, 1], [], []>} : vector<64x64xbf16>, vector<64x128xbf16>, vector<64x128xf32> -> vector<64x128xf32>
    %520 = arith.addf %512, %519 : vector<64x128xf32>
    %521 = vector.extract_strided_slice %513 {offsets = [1, 0, 0], sizes = [8, 8, 64], strides = [1, 1, 1]} : vector<10x8x64xf32> to vector<8x8x64xf32>
    %522 = vector.shape_cast %521 : vector<8x8x64xf32> to vector<64x64xf32>
    %523 = arith.truncf %522 : vector<64x64xf32> to vector<64x64xbf16>
    %c1_408 = arith.constant 1 : index
    %c2_409 = arith.constant 2 : index
    %c0_410 = arith.constant 0 : index
    %c0_411 = arith.constant 0 : index
    %524 = vector.load %arg7[%c1_408, %c2_409, %c0_410, %c0_411] : memref<3x3x64x128xbf16, #tpu.memory_space<vmem>>, vector<1x1x64x128xbf16>
    %525 = vector.shape_cast %524 : vector<1x1x64x128xbf16> to vector<64x128xbf16>
    %cst_412 = arith.constant dense<0.000000e+00> : vector<64x128xf32>
    %526 = tpu.matmul %523, %525, %cst_412 {dimension_numbers = #tpu.dot_dimension_numbers<[1], [0], [0], [1], [0, 0, 1, 1], [], []>} : vector<64x64xbf16>, vector<64x128xbf16>, vector<64x128xf32> -> vector<64x128xf32>
    %527 = arith.addf %520, %526 : vector<64x128xf32>
    %528 = vector.extract_strided_slice %513 {offsets = [2, 0, 0], sizes = [8, 8, 64], strides = [1, 1, 1]} : vector<10x8x64xf32> to vector<8x8x64xf32>
    %529 = vector.shape_cast %528 : vector<8x8x64xf32> to vector<64x64xf32>
    %530 = arith.truncf %529 : vector<64x64xf32> to vector<64x64xbf16>
    %c2_413 = arith.constant 2 : index
    %c2_414 = arith.constant 2 : index
    %c0_415 = arith.constant 0 : index
    %c0_416 = arith.constant 0 : index
    %531 = vector.load %arg7[%c2_413, %c2_414, %c0_415, %c0_416] : memref<3x3x64x128xbf16, #tpu.memory_space<vmem>>, vector<1x1x64x128xbf16>
    %532 = vector.shape_cast %531 : vector<1x1x64x128xbf16> to vector<64x128xbf16>
    %cst_417 = arith.constant dense<0.000000e+00> : vector<64x128xf32>
    %533 = tpu.matmul %530, %532, %cst_417 {dimension_numbers = #tpu.dot_dimension_numbers<[1], [0], [0], [1], [0, 0, 1, 1], [], []>} : vector<64x64xbf16>, vector<64x128xbf16>, vector<64x128xf32> -> vector<64x128xf32>
    %534 = arith.addf %527, %533 : vector<64x128xf32>
    %cst_418 = arith.constant 0.000000e+00 : f32
    %535 = vector.broadcast %cst_418 : f32 to vector<64x128xf32>
    %536 = arith.maximumf %534, %535 : vector<64x128xf32>
    %537 = vector.shape_cast %536 : vector<64x128xf32> to vector<8x8x128xf32>
    %c1_419 = arith.constant 1 : index
    %c1_420 = arith.constant 1 : index
    %c0_421 = arith.constant 0 : index
    %538 = vector.load %arg17[%c1_419, %c1_420, %c0_421] : memref<10x10x128xf32, #tpu.memory_space<vmem>>, vector<8x8x128xf32>
    tpu.vector_store %arg17[%c1_419, %c1_420, %c0_421], %537 {strides = array<i32>} : memref<10x10x128xf32, #tpu.memory_space<vmem>>, vector<8x8x128xf32>,
    %c0_422 = arith.constant 0 : index
    %c0_423 = arith.constant 0 : index
    %539 = vector.load %arg10[%c0_422, %c0_423] : memref<1x128xf32, #tpu.memory_space<vmem>>, vector<1x128xf32>
    %540 = vector.shape_cast %539 : vector<1x128xf32> to vector<1x128xf32>
    %541 = vector.broadcast %540 : vector<1x128xf32> to vector<64x128xf32>
    %c0_424 = arith.constant 0 : index
    %c0_425 = arith.constant 0 : index
    %c0_426 = arith.constant 0 : index
    %542 = vector.load %arg17[%c0_424, %c0_425, %c0_426] : memref<10x10x128xf32, #tpu.memory_space<vmem>>, vector<10x8x128xf32>
    %543 = vector.extract_strided_slice %542 {offsets = [0, 0, 0], sizes = [8, 8, 128], strides = [1, 1, 1]} : vector<10x8x128xf32> to vector<8x8x128xf32>
    %544 = vector.shape_cast %543 : vector<8x8x128xf32> to vector<64x128xf32>
    %545 = arith.truncf %544 : vector<64x128xf32> to vector<64x128xbf16>
    %c0_427 = arith.constant 0 : index
    %c0_428 = arith.constant 0 : index
    %c0_429 = arith.constant 0 : index
    %c0_430 = arith.constant 0 : index
    %546 = vector.load %arg9[%c0_427, %c0_428, %c0_429, %c0_430] : memref<3x3x128x128xbf16, #tpu.memory_space<vmem>>, vector<1x1x128x128xbf16>
    %547 = vector.shape_cast %546 : vector<1x1x128x128xbf16> to vector<128x128xbf16>
    %cst_431 = arith.constant dense<0.000000e+00> : vector<64x128xf32>
    %548 = tpu.matmul %545, %547, %cst_431 {dimension_numbers = #tpu.dot_dimension_numbers<[1], [0], [0], [1], [0, 0, 1, 1], [], []>} : vector<64x128xbf16>, vector<128x128xbf16>, vector<64x128xf32> -> vector<64x128xf32>
    %549 = arith.addf %541, %548 : vector<64x128xf32>
    %550 = vector.extract_strided_slice %542 {offsets = [1, 0, 0], sizes = [8, 8, 128], strides = [1, 1, 1]} : vector<10x8x128xf32> to vector<8x8x128xf32>
    %551 = vector.shape_cast %550 : vector<8x8x128xf32> to vector<64x128xf32>
    %552 = arith.truncf %551 : vector<64x128xf32> to vector<64x128xbf16>
    %c1_432 = arith.constant 1 : index
    %c0_433 = arith.constant 0 : index
    %c0_434 = arith.constant 0 : index
    %c0_435 = arith.constant 0 : index
    %553 = vector.load %arg9[%c1_432, %c0_433, %c0_434, %c0_435] : memref<3x3x128x128xbf16, #tpu.memory_space<vmem>>, vector<1x1x128x128xbf16>
    %554 = vector.shape_cast %553 : vector<1x1x128x128xbf16> to vector<128x128xbf16>
    %cst_436 = arith.constant dense<0.000000e+00> : vector<64x128xf32>
    %555 = tpu.matmul %552, %554, %cst_436 {dimension_numbers = #tpu.dot_dimension_numbers<[1], [0], [0], [1], [0, 0, 1, 1], [], []>} : vector<64x128xbf16>, vector<128x128xbf16>, vector<64x128xf32> -> vector<64x128xf32>
    %556 = arith.addf %549, %555 : vector<64x128xf32>
    %557 = vector.extract_strided_slice %542 {offsets = [2, 0, 0], sizes = [8, 8, 128], strides = [1, 1, 1]} : vector<10x8x128xf32> to vector<8x8x128xf32>
    %558 = vector.shape_cast %557 : vector<8x8x128xf32> to vector<64x128xf32>
    %559 = arith.truncf %558 : vector<64x128xf32> to vector<64x128xbf16>
    %c2_437 = arith.constant 2 : index
    %c0_438 = arith.constant 0 : index
    %c0_439 = arith.constant 0 : index
    %c0_440 = arith.constant 0 : index
    %560 = vector.load %arg9[%c2_437, %c0_438, %c0_439, %c0_440] : memref<3x3x128x128xbf16, #tpu.memory_space<vmem>>, vector<1x1x128x128xbf16>
    %561 = vector.shape_cast %560 : vector<1x1x128x128xbf16> to vector<128x128xbf16>
    %cst_441 = arith.constant dense<0.000000e+00> : vector<64x128xf32>
    %562 = tpu.matmul %559, %561, %cst_441 {dimension_numbers = #tpu.dot_dimension_numbers<[1], [0], [0], [1], [0, 0, 1, 1], [], []>} : vector<64x128xbf16>, vector<128x128xbf16>, vector<64x128xf32> -> vector<64x128xf32>
    %563 = arith.addf %556, %562 : vector<64x128xf32>
    %c0_442 = arith.constant 0 : index
    %c1_443 = arith.constant 1 : index
    %c0_444 = arith.constant 0 : index
    %564 = vector.load %arg17[%c0_442, %c1_443, %c0_444] : memref<10x10x128xf32, #tpu.memory_space<vmem>>, vector<10x8x128xf32>
    %565 = vector.extract_strided_slice %564 {offsets = [0, 0, 0], sizes = [8, 8, 128], strides = [1, 1, 1]} : vector<10x8x128xf32> to vector<8x8x128xf32>
    %566 = vector.shape_cast %565 : vector<8x8x128xf32> to vector<64x128xf32>
    %567 = arith.truncf %566 : vector<64x128xf32> to vector<64x128xbf16>
    %c0_445 = arith.constant 0 : index
    %c1_446 = arith.constant 1 : index
    %c0_447 = arith.constant 0 : index
    %c0_448 = arith.constant 0 : index
    %568 = vector.load %arg9[%c0_445, %c1_446, %c0_447, %c0_448] : memref<3x3x128x128xbf16, #tpu.memory_space<vmem>>, vector<1x1x128x128xbf16>
    %569 = vector.shape_cast %568 : vector<1x1x128x128xbf16> to vector<128x128xbf16>
    %cst_449 = arith.constant dense<0.000000e+00> : vector<64x128xf32>
    %570 = tpu.matmul %567, %569, %cst_449 {dimension_numbers = #tpu.dot_dimension_numbers<[1], [0], [0], [1], [0, 0, 1, 1], [], []>} : vector<64x128xbf16>, vector<128x128xbf16>, vector<64x128xf32> -> vector<64x128xf32>
    %571 = arith.addf %563, %570 : vector<64x128xf32>
    %572 = vector.extract_strided_slice %564 {offsets = [1, 0, 0], sizes = [8, 8, 128], strides = [1, 1, 1]} : vector<10x8x128xf32> to vector<8x8x128xf32>
    %573 = vector.shape_cast %572 : vector<8x8x128xf32> to vector<64x128xf32>
    %574 = arith.truncf %573 : vector<64x128xf32> to vector<64x128xbf16>
    %c1_450 = arith.constant 1 : index
    %c1_451 = arith.constant 1 : index
    %c0_452 = arith.constant 0 : index
    %c0_453 = arith.constant 0 : index
    %575 = vector.load %arg9[%c1_450, %c1_451, %c0_452, %c0_453] : memref<3x3x128x128xbf16, #tpu.memory_space<vmem>>, vector<1x1x128x128xbf16>
    %576 = vector.shape_cast %575 : vector<1x1x128x128xbf16> to vector<128x128xbf16>
    %cst_454 = arith.constant dense<0.000000e+00> : vector<64x128xf32>
    %577 = tpu.matmul %574, %576, %cst_454 {dimension_numbers = #tpu.dot_dimension_numbers<[1], [0], [0], [1], [0, 0, 1, 1], [], []>} : vector<64x128xbf16>, vector<128x128xbf16>, vector<64x128xf32> -> vector<64x128xf32>
    %578 = arith.addf %571, %577 : vector<64x128xf32>
    %579 = vector.extract_strided_slice %564 {offsets = [2, 0, 0], sizes = [8, 8, 128], strides = [1, 1, 1]} : vector<10x8x128xf32> to vector<8x8x128xf32>
    %580 = vector.shape_cast %579 : vector<8x8x128xf32> to vector<64x128xf32>
    %581 = arith.truncf %580 : vector<64x128xf32> to vector<64x128xbf16>
    %c2_455 = arith.constant 2 : index
    %c1_456 = arith.constant 1 : index
    %c0_457 = arith.constant 0 : index
    %c0_458 = arith.constant 0 : index
    %582 = vector.load %arg9[%c2_455, %c1_456, %c0_457, %c0_458] : memref<3x3x128x128xbf16, #tpu.memory_space<vmem>>, vector<1x1x128x128xbf16>
    %583 = vector.shape_cast %582 : vector<1x1x128x128xbf16> to vector<128x128xbf16>
    %cst_459 = arith.constant dense<0.000000e+00> : vector<64x128xf32>
    %584 = tpu.matmul %581, %583, %cst_459 {dimension_numbers = #tpu.dot_dimension_numbers<[1], [0], [0], [1], [0, 0, 1, 1], [], []>} : vector<64x128xbf16>, vector<128x128xbf16>, vector<64x128xf32> -> vector<64x128xf32>
    %585 = arith.addf %578, %584 : vector<64x128xf32>
    %c0_460 = arith.constant 0 : index
    %c2_461 = arith.constant 2 : index
    %c0_462 = arith.constant 0 : index
    %586 = vector.load %arg17[%c0_460, %c2_461, %c0_462] : memref<10x10x128xf32, #tpu.memory_space<vmem>>, vector<10x8x128xf32>
    %587 = vector.extract_strided_slice %586 {offsets = [0, 0, 0], sizes = [8, 8, 128], strides = [1, 1, 1]} : vector<10x8x128xf32> to vector<8x8x128xf32>
    %588 = vector.shape_cast %587 : vector<8x8x128xf32> to vector<64x128xf32>
    %589 = arith.truncf %588 : vector<64x128xf32> to vector<64x128xbf16>
    %c0_463 = arith.constant 0 : index
    %c2_464 = arith.constant 2 : index
    %c0_465 = arith.constant 0 : index
    %c0_466 = arith.constant 0 : index
    %590 = vector.load %arg9[%c0_463, %c2_464, %c0_465, %c0_466] : memref<3x3x128x128xbf16, #tpu.memory_space<vmem>>, vector<1x1x128x128xbf16>
    %591 = vector.shape_cast %590 : vector<1x1x128x128xbf16> to vector<128x128xbf16>
    %cst_467 = arith.constant dense<0.000000e+00> : vector<64x128xf32>
    %592 = tpu.matmul %589, %591, %cst_467 {dimension_numbers = #tpu.dot_dimension_numbers<[1], [0], [0], [1], [0, 0, 1, 1], [], []>} : vector<64x128xbf16>, vector<128x128xbf16>, vector<64x128xf32> -> vector<64x128xf32>
    %593 = arith.addf %585, %592 : vector<64x128xf32>
    %594 = vector.extract_strided_slice %586 {offsets = [1, 0, 0], sizes = [8, 8, 128], strides = [1, 1, 1]} : vector<10x8x128xf32> to vector<8x8x128xf32>
    %595 = vector.shape_cast %594 : vector<8x8x128xf32> to vector<64x128xf32>
    %596 = arith.truncf %595 : vector<64x128xf32> to vector<64x128xbf16>
    %c1_468 = arith.constant 1 : index
    %c2_469 = arith.constant 2 : index
    %c0_470 = arith.constant 0 : index
    %c0_471 = arith.constant 0 : index
    %597 = vector.load %arg9[%c1_468, %c2_469, %c0_470, %c0_471] : memref<3x3x128x128xbf16, #tpu.memory_space<vmem>>, vector<1x1x128x128xbf16>
    %598 = vector.shape_cast %597 : vector<1x1x128x128xbf16> to vector<128x128xbf16>
    %cst_472 = arith.constant dense<0.000000e+00> : vector<64x128xf32>
    %599 = tpu.matmul %596, %598, %cst_472 {dimension_numbers = #tpu.dot_dimension_numbers<[1], [0], [0], [1], [0, 0, 1, 1], [], []>} : vector<64x128xbf16>, vector<128x128xbf16>, vector<64x128xf32> -> vector<64x128xf32>
    %600 = arith.addf %593, %599 : vector<64x128xf32>
    %601 = vector.extract_strided_slice %586 {offsets = [2, 0, 0], sizes = [8, 8, 128], strides = [1, 1, 1]} : vector<10x8x128xf32> to vector<8x8x128xf32>
    %602 = vector.shape_cast %601 : vector<8x8x128xf32> to vector<64x128xf32>
    %603 = arith.truncf %602 : vector<64x128xf32> to vector<64x128xbf16>
    %c2_473 = arith.constant 2 : index
    %c2_474 = arith.constant 2 : index
    %c0_475 = arith.constant 0 : index
    %c0_476 = arith.constant 0 : index
    %604 = vector.load %arg9[%c2_473, %c2_474, %c0_475, %c0_476] : memref<3x3x128x128xbf16, #tpu.memory_space<vmem>>, vector<1x1x128x128xbf16>
    %605 = vector.shape_cast %604 : vector<1x1x128x128xbf16> to vector<128x128xbf16>
    %cst_477 = arith.constant dense<0.000000e+00> : vector<64x128xf32>
    %606 = tpu.matmul %603, %605, %cst_477 {dimension_numbers = #tpu.dot_dimension_numbers<[1], [0], [0], [1], [0, 0, 1, 1], [], []>} : vector<64x128xbf16>, vector<128x128xbf16>, vector<64x128xf32> -> vector<64x128xf32>
    %607 = arith.addf %600, %606 : vector<64x128xf32>
    %cst_478 = arith.constant 0.000000e+00 : f32
    %608 = vector.broadcast %cst_478 : f32 to vector<64x128xf32>
    %609 = arith.maximumf %607, %608 : vector<64x128xf32>
    %610 = vector.shape_cast %609 : vector<64x128xf32> to vector<8x8x128xf32>
    %c0_479 = arith.constant 0 : index
    %c0_480 = arith.constant 0 : index
    %c0_481 = arith.constant 0 : index
    %611 = vector.load %arg18[%c0_479, %c0_480, %c0_481] : memref<8x8x128xf32, #tpu.memory_space<vmem>>, vector<8x8x128xf32>
    %612 = arith.subf %610, %611 : vector<8x8x128xf32>
    %613 = arith.mulf %612, %612 : vector<8x8x128xf32>
    %cst_482 = arith.constant dense<0.000000e+00> : vector<8x128xf32>
    %614 = vector.multi_reduction <add>, %613, %cst_482 [0] : vector<8x8x128xf32> to vector<8x128xf32>
    %c0_483 = arith.constant 0 : index
    %c0_484 = arith.constant 0 : index
    %c0_485 = arith.constant 0 : index
    %615 = vector.load %arg11[%c0_483, %c0_484, %c0_485] : memref<1x8x128xf32, #tpu.memory_space<vmem>>, vector<1x8x128xf32>
    %616 = vector.shape_cast %615 : vector<1x8x128xf32> to vector<8x128xf32>
    %617 = vector.shape_cast %614 : vector<8x128xf32> to vector<1x8x128xf32>
    tpu.vector_store %arg11[%c0_483, %c0_484, %c0_485], %617 {strides = array<i32>} : memref<1x8x128xf32, #tpu.memory_space<vmem>>, vector<1x8x128xf32>,
    return
  }
  func.func @transform_0(%arg0: i32) -> (i32, i32, i32, i32) {
    %c0_i32 = arith.constant 0 : i32
    %c0_i32_0 = arith.constant 0 : i32
    %c0_i32_1 = arith.constant 0 : i32
    %c0_i32_2 = arith.constant 0 : i32
    return %arg0, %c0_i32, %c0_i32_0, %c0_i32_1 : i32, i32, i32, i32
  }
  func.func @transform_1(%arg0: i32) -> (i32, i32, i32, i32) {
    %c0_i32 = arith.constant 0 : i32
    %c0_i32_0 = arith.constant 0 : i32
    %c0_i32_1 = arith.constant 0 : i32
    %c0_i32_2 = arith.constant 0 : i32
    return %arg0, %c0_i32, %c0_i32_0, %c0_i32_1 : i32, i32, i32, i32
  }
  func.func @transform_2(%arg0: i32) -> (i32, i32) {
    %c0_i32 = arith.constant 0 : i32
    %c0_i32_0 = arith.constant 0 : i32
    %c0_i32_1 = arith.constant 0 : i32
    return %c0_i32, %c0_i32_0 : i32, i32
  }
  func.func @transform_3(%arg0: i32) -> (i32, i32) {
    %c0_i32 = arith.constant 0 : i32
    %c0_i32_0 = arith.constant 0 : i32
    %c0_i32_1 = arith.constant 0 : i32
    return %c0_i32, %c0_i32_0 : i32, i32
  }
  func.func @transform_4(%arg0: i32) -> (i32, i32, i32, i32) {
    %c0_i32 = arith.constant 0 : i32
    %c0_i32_0 = arith.constant 0 : i32
    %c0_i32_1 = arith.constant 0 : i32
    %c0_i32_2 = arith.constant 0 : i32
    %c0_i32_3 = arith.constant 0 : i32
    return %c0_i32, %c0_i32_0, %c0_i32_1, %c0_i32_2 : i32, i32, i32, i32
  }
  func.func @transform_5(%arg0: i32) -> (i32, i32) {
    %c0_i32 = arith.constant 0 : i32
    %c0_i32_0 = arith.constant 0 : i32
    %c0_i32_1 = arith.constant 0 : i32
    return %c0_i32, %c0_i32_0 : i32, i32
  }
  func.func @transform_6(%arg0: i32) -> (i32, i32, i32, i32) {
    %c0_i32 = arith.constant 0 : i32
    %c0_i32_0 = arith.constant 0 : i32
    %c0_i32_1 = arith.constant 0 : i32
    %c0_i32_2 = arith.constant 0 : i32
    %c0_i32_3 = arith.constant 0 : i32
    return %c0_i32, %c0_i32_0, %c0_i32_1, %c0_i32_2 : i32, i32, i32, i32
  }
  func.func @transform_7(%arg0: i32) -> (i32, i32) {
    %c0_i32 = arith.constant 0 : i32
    %c0_i32_0 = arith.constant 0 : i32
    %c0_i32_1 = arith.constant 0 : i32
    return %c0_i32, %c0_i32_0 : i32, i32
  }
  func.func @transform_8(%arg0: i32) -> (i32, i32, i32, i32) {
    %c0_i32 = arith.constant 0 : i32
    %c0_i32_0 = arith.constant 0 : i32
    %c0_i32_1 = arith.constant 0 : i32
    %c0_i32_2 = arith.constant 0 : i32
    %c0_i32_3 = arith.constant 0 : i32
    return %c0_i32, %c0_i32_0, %c0_i32_1, %c0_i32_2 : i32, i32, i32, i32
  }
  func.func @transform_9(%arg0: i32) -> (i32, i32) {
    %c0_i32 = arith.constant 0 : i32
    %c0_i32_0 = arith.constant 0 : i32
    %c0_i32_1 = arith.constant 0 : i32
    return %c0_i32, %c0_i32_0 : i32, i32
  }
  func.func @transform_10(%arg0: i32) -> (i32, i32, i32) {
    %c0_i32 = arith.constant 0 : i32
    %c0_i32_0 = arith.constant 0 : i32
    %c0_i32_1 = arith.constant 0 : i32
    return %arg0, %c0_i32, %c0_i32_0 : i32, i32, i32
  }
}

</mosaic_0001>

<bundles_post_ra>
// kernel: perceptual_loss.1
= control target key start
LH: loop header
LB: loop body
LE: loop exit
PB: predicated region body
PF: predicated region fallthrough
CT: control target
= control target key end

     0   :  { %s17964_s13 = smov 0   ;;  %s22631_s0 = inlined_call_operand.vmem [shape: f32[2,16,16,1], index: 0, kind: input, shape index: {}]   ;;  %s22632_s1 = inlined_call_operand.vmem [shape: f32[2,16,16,1], index: 1, kind: input, shape index: {}]   ;;  %s22633_s2 = inlined_call_operand.vmem [shape: f32[9,64], index: 2, kind: input, shape index: {}]   ;;  %s22634_s3 = inlined_call_operand.vmem [shape: f32[1,64], index: 3, kind: input, shape index: {}]   ;;  %s22635_s4 = inlined_call_operand.vmem [shape: bf16[3,3,64,64], index: 4, kind: input, shape index: {}]   ;;  %s22636_s5 = inlined_call_operand.vmem [shape: f32[1,64], index: 5, kind: input, shape index: {}]   ;;  %s22637_s6 = inlined_call_operand.vmem [shape: bf16[3,3,64,128], index: 6, kind: input, shape index: {}]   ;;  %s22638_s7 = inlined_call_operand.vmem [shape: f32[1,128], index: 7, kind: input, shape index: {}]   ;;  %s22639_s8 = inlined_call_operand.vmem [shape: bf16[3,3,128,128], index: 8, kind: input, shape index: {}]   ;;  %s22640_s9 = inlined_call_operand.vmem [shape: f32[1,128], index: 9, kind: input, shape index: {}]   ;;  %s22641_s10 = inlined_call_operand.vmem [shape: f32[2,8,128], index: 10, kind: output, shape index: {}]  }
   0x1 LB: > { %s13342_s14 = sadd.s32 4294967295, %s17905_s13   ;;  %p13346_p0 = scmp.ge.s32.totalorder %s17905_s13, 1  ;;  %s17905_s13 = sphi %s17964_s13, %s20_s13  }
   0x2   : > { %p322_p1 = scmp.lt.s32.totalorder %s17905_s13, 3 }
   0x4   : > { %p323_p2 = pnand %p13346_p0, %p322_p1 }
   0x6   : > { %326 = sbr.rel (%p323_p2) target bundleno = 3425 (0xd61), region = 60 }
   0xd   : > { %vm379_vm0 = vcmask 7168   ;;  %vm382_vm1 = vcmask 1024   ;;  %p17974_p3 = scmp.lt.s32.totalorder %s13342_s14, 1  ;;  %v17907_v0 = vmov 0   ;;  %v17908_v1 = vmov 0.0  }
   0xe   : > { %17576 = vset.pattern.permute.xlu0 %v17907_v0  ;;  %380 = vst.msk [vmem:[#allocation2] sm:$0xff] %vm379_vm0, %v17908_v1  ;;  %381 = vst.msk [vmem:[#allocation2 + $0x8] sm:$0xff] %vm379_vm0, %v17908_v1  ;;  %17577 = vset.pattern.permute.xlu1 %v17907_v0  ;;  %vm435_vm2 = vcmask 523264   ;;  %vm438_vm3 = vcmask 517120  }
   0xf   : > { %384 = vst.msk [vmem:[#allocation2 + $0x18] sm:$0xff] %vm379_vm0, %v17908_v1  ;;  %385 = vst.msk [vmem:[#allocation2 + $0x20] sm:$0xff] %vm379_vm0, %v17908_v1  ;;  %s22707_s14 = smov (!%p17974_p3, %s13342_s14), 1 }
  0x10   : > { %387 = vst.msk [vmem:[#allocation2 + $0x30] sm:$0xff] %vm379_vm0, %v17908_v1  ;;  %388 = vst.msk [vmem:[#allocation2 + $0x38] sm:$0xff] %vm379_vm0, %v17908_v1  ;;  %s14540_s16 = sshll.u32 %s22707_s14, 8  ;;  %s13351_s29 = sshll.u32 %s22707_s14, 3 }
  0x11   : > { %390 = vst.msk [vmem:[#allocation2 + $0x48] sm:$0xff] %vm379_vm0, %v17908_v1  ;;  %391 = vst.msk [vmem:[#allocation2 + $0x50] sm:$0xff] %vm379_vm0, %v17908_v1  ;;  %s18116_s19 = scalar_lea.vmem %s22631_s0, %s14540_s16  ;;  %s18137_s22 = scalar_lea.vmem %s22632_s1, %s14540_s16 }
  0x12   : > { %393 = vst.msk [vmem:[#allocation2 + $0x60] sm:$0xff] %vm379_vm0, %v17908_v1  ;;  %394 = vst.msk [vmem:[#allocation2 + $0x68] sm:$0xff] %vm379_vm0, %v17908_v1  ;;  %v531_v2 = vld [vmem:[%s18116_s19] sm:$0xff]  ;;  %v532_v3 = vld [vmem:[%s18116_s19 + $0x8] sm:$0xff]  ;;  %s377_s12 = scalar_lea.vmem %s22641_s10, %s13351_s29 }
  0x13   : > { %396 = vst.msk [vmem:[#allocation2 + $0x78] sm:$0xff] %vm379_vm0, %v17908_v1  ;;  %397 = vst.msk [vmem:[#allocation2 + $0x80] sm:$0xff] %vm379_vm0, %v17908_v1  ;;  %v533_v4 = vld [vmem:[%s18116_s19 + $0x10] sm:$0xff]  ;;  %v534_v5 = vld [vmem:[%s18116_s19 + $0x18] sm:$0xff] }
  0x14   : > { %399 = vst.msk [vmem:[#allocation2 + $0x90] sm:$0xff] %vm379_vm0, %v17908_v1  ;;  %400 = vst.msk [vmem:[#allocation2 + $0x98] sm:$0xff] %vm379_vm0, %v17908_v1  ;;  %v535_v6 = vld [vmem:[%s18116_s19 + $0x20] sm:$0xff]  ;;  %v536_v7 = vld [vmem:[%s18116_s19 + $0x28] sm:$0xff] }
  0x15   : > { %402 = vst.msk [vmem:[#allocation2 + $0xa8] sm:$0xff] %vm379_vm0, %v17908_v1  ;;  %403 = vst.msk [vmem:[#allocation2 + $0xb0] sm:$0xff] %vm379_vm0, %v17908_v1  ;;  %v603_v8 = vld [vmem:[#allocation2] sm:$0xff]  ;;  %v537_v10 = vld [vmem:[%s18116_s19 + $0x30] sm:$0xff] }
  0x16   : > { %405 = vst.msk [vmem:[#allocation2 + $0xc0] sm:$0xff] %vm379_vm0, %v17908_v1  ;;  %406 = vst.msk [vmem:[#allocation2 + $0xc8] sm:$0xff] %vm379_vm0, %v17908_v1  ;;  %642 = vperm.xlu0 %17576, %v603_v8   ;;  %v538_v11 = vld [vmem:[%s18116_s19 + $0x38] sm:$0xff]  ;;  %v604_v12 = vld [vmem:[#allocation2 + $0x8] sm:$0xff] }
  0x17   : > { %408 = vst.msk [vmem:[#allocation2 + $0xd8] sm:$0xff] %vm379_vm0, %v17908_v1  ;;  %409 = vst.msk [vmem:[#allocation2 + $0xe0] sm:$0xff] %vm379_vm0, %v17908_v1  ;;  %v539_v13 = vld [vmem:[%s18116_s19 + $0x40] sm:$0xff]  ;;  %v540_v14 = vld [vmem:[%s18116_s19 + $0x48] sm:$0xff] }
  0x18   : > { %411 = vst.msk [vmem:[#allocation2 + $0xf0] sm:$0xff] %vm379_vm0, %v17908_v1  ;;  %412 = vst.msk [vmem:[#allocation2 + $0xf8] sm:$0xff] %vm379_vm0, %v17908_v1  ;;  %v541_v15 = vld [vmem:[%s18116_s19 + $0x50] sm:$0xff]  ;;  %v542_v16 = vld [vmem:[%s18116_s19 + $0x58] sm:$0xff] }
  0x19   : > { %414 = vst.msk [vmem:[#allocation2 + $0x108] sm:$0xff] %vm379_vm0, %v17908_v1  ;;  %415 = vst.msk [vmem:[#allocation2 + $0x110] sm:$0xff] %vm379_vm0, %v17908_v1  ;;  %v1026_v18 = vld [vmem:[#allocation2 + $0x1] sm:$0xff]  ;;  %v6916_v21 = vld [vmem:[%s18137_s22 + $0x10] sm:$0xff] }
  0x1a   : > { %417 = vst.msk [vmem:[#allocation2 + $0x120] sm:$0xff] %vm379_vm0, %v17908_v1  ;;  %418 = vst.msk [vmem:[#allocation2 + $0x128] sm:$0xff] %vm379_vm0, %v17908_v1  ;;  %647 = vperm.xlu0 %17576, %v604_v12   ;;  %v6914_v19 = vld [vmem:[%s18137_s22] sm:$0xff]  ;;  %v6915_v20 = vld [vmem:[%s18137_s22 + $0x8] sm:$0xff] }
  0x1b   : > { %420 = vst.msk [vmem:[#allocation2 + $0x138] sm:$0xff] %vm379_vm0, %v17908_v1  ;;  %421 = vst.msk [vmem:[#allocation2 + $0x140] sm:$0xff] %vm379_vm0, %v17908_v1  ;;  %v6917_v24 = vld [vmem:[%s18137_s22 + $0x18] sm:$0xff]  ;;  %v6918_v31 = vld [vmem:[%s18137_s22 + $0x20] sm:$0xff] }
  0x1c   : > { %423 = vst.msk [vmem:[#allocation2 + $0x150] sm:$0xff] %vm379_vm0, %v17908_v1  ;;  %424 = vst.msk [vmem:[#allocation2 + $0x158] sm:$0xff] %vm379_vm0, %v17908_v1  ;;  %v6919_v37 = vld [vmem:[%s18137_s22 + $0x28] sm:$0xff]  ;;  %v6920_v47 = vld [vmem:[%s18137_s22 + $0x30] sm:$0xff] }
  0x1d   : > { %426 = vst.msk [vmem:[#allocation2 + $0x168] sm:$0xff] %vm379_vm0, %v17908_v1  ;;  %427 = vst.msk [vmem:[#allocation2 + $0x170] sm:$0xff] %vm379_vm0, %v17908_v1  ;;  %v6921_v49 = vld [vmem:[%s18137_s22 + $0x38] sm:$0xff]  ;;  %v543_v50 = vld [vmem:[%s18116_s19 + $0x60] sm:$0xff] }
  0x1e   : > { %429 = vst.msk [vmem:[#allocation2 + $0x180] sm:$0xff] %vm379_vm0, %v17908_v1  ;;  %430 = vst.msk [vmem:[#allocation2 + $0x188] sm:$0xff] %vm379_vm0, %v17908_v1  ;;  %1065 = vperm.xlu0 %17576, %v1026_v18   ;;  %v544_v55 = vld [vmem:[%s18116_s19 + $0x68] sm:$0xff]  ;;  %v545_v59 = vld [vmem:[%s18116_s19 + $0x70] sm:$0xff] }
  0x1f   : > { %432 = vst.msk [vmem:[#allocation2 + $0x198] sm:$0xff] %vm379_vm0, %v17908_v1  ;;  %433 = vst.msk [vmem:[#allocation2 + $0x1a0] sm:$0xff] %vm379_vm0, %v17908_v1  ;;  %v546_v60 = vld [vmem:[%s18116_s19 + $0x78] sm:$0xff]  ;;  %v6922_v63 = vld [vmem:[%s18137_s22 + $0x40] sm:$0xff] }
  0x20   : > { %511 = vst [vmem:[#allocation7] sm:$0xff] %v17908_v1  ;;  %512 = vst [vmem:[#allocation7 + $0x8] sm:$0x3] %v17908_v1  ;;  %v548_v8 = vld [vmem:[%s18116_s19 + $0x88] sm:$0xff] }
  0x21   : > { %513 = vst [vmem:[#allocation7 + $0x10] sm:$0xff] %v17908_v1  ;;  %514 = vst [vmem:[#allocation7 + $0x18] sm:$0x3] %v17908_v1  ;;  %v6927_v12 = vld [vmem:[%s18137_s22 + $0x68] sm:$0xff] }
  0x22   : > { %515 = vst [vmem:[#allocation7 + $0x20] sm:$0xff] %v17908_v1  ;;  %516 = vst [vmem:[#allocation7 + $0x28] sm:$0x3] %v17908_v1 }
  0x23   : > { %517 = vst [vmem:[#allocation7 + $0x30] sm:$0xff] %v17908_v1  ;;  %518 = vst [vmem:[#allocation7 + $0x38] sm:$0x3] %v17908_v1 }
  0x24   : > { %519 = vst [vmem:[#allocation7 + $0x40] sm:$0xff] %v17908_v1  ;;  %520 = vst [vmem:[#allocation7 + $0x48] sm:$0x3] %v17908_v1 }
  0x25   : > { %521 = vst [vmem:[#allocation7 + $0x50] sm:$0xff] %v17908_v1  ;;  %522 = vst [vmem:[#allocation7 + $0x58] sm:$0x3] %v17908_v1 }
  0x26   : > { %523 = vst [vmem:[#allocation7 + $0x60] sm:$0xff] %v17908_v1  ;;  %524 = vst [vmem:[#allocation7 + $0x68] sm:$0x3] %v17908_v1 }
  0x27   : > { %525 = vst [vmem:[#allocation7 + $0x70] sm:$0xff] %v17908_v1  ;;  %526 = vst [vmem:[#allocation7 + $0x78] sm:$0x3] %v17908_v1 }
  0x28   : > { %527 = vst [vmem:[#allocation7 + $0x80] sm:$0xff] %v17908_v1  ;;  %528 = vst [vmem:[#allocation7 + $0x88] sm:$0x3] %v17908_v1 }
  0x29   : > { %529 = vst [vmem:[#allocation7 + $0x90] sm:$0xff] %v17908_v1  ;;  %530 = vst [vmem:[#allocation7 + $0x98] sm:$0x3] %v17908_v1 }
  0x2a   : > { %383 = vst.msk [vmem:[#allocation2 + $0x10] sm:$0x3] %vm382_vm1, %v17908_v1  ;;  %386 = vst.msk [vmem:[#allocation2 + $0x28] sm:$0x3] %vm382_vm1, %v17908_v1 }
  0x2b   : > { %389 = vst.msk [vmem:[#allocation2 + $0x40] sm:$0x3] %vm382_vm1, %v17908_v1  ;;  %392 = vst.msk [vmem:[#allocation2 + $0x58] sm:$0x3] %vm382_vm1, %v17908_v1 }
  0x2c   : > { %395 = vst.msk [vmem:[#allocation2 + $0x70] sm:$0x3] %vm382_vm1, %v17908_v1  ;;  %398 = vst.msk [vmem:[#allocation2 + $0x88] sm:$0x3] %vm382_vm1, %v17908_v1 }
  0x2d   : > { %401 = vst.msk [vmem:[#allocation2 + $0xa0] sm:$0x3] %vm382_vm1, %v17908_v1  ;;  %404 = vst.msk [vmem:[#allocation2 + $0xb8] sm:$0x3] %vm382_vm1, %v17908_v1 }
  0x2e   : > { %407 = vst.msk [vmem:[#allocation2 + $0xd0] sm:$0x3] %vm382_vm1, %v17908_v1  ;;  %410 = vst.msk [vmem:[#allocation2 + $0xe8] sm:$0x3] %vm382_vm1, %v17908_v1 }
  0x2f   : > { %413 = vst.msk [vmem:[#allocation2 + $0x100] sm:$0x3] %vm382_vm1, %v17908_v1  ;;  %416 = vst.msk [vmem:[#allocation2 + $0x118] sm:$0x3] %vm382_vm1, %v17908_v1 }
  0x30   : > { %419 = vst.msk [vmem:[#allocation2 + $0x130] sm:$0x3] %vm382_vm1, %v17908_v1  ;;  %422 = vst.msk [vmem:[#allocation2 + $0x148] sm:$0x3] %vm382_vm1, %v17908_v1 }
  0x31   : > { %425 = vst.msk [vmem:[#allocation2 + $0x160] sm:$0x3] %vm382_vm1, %v17908_v1  ;;  %428 = vst.msk [vmem:[#allocation2 + $0x178] sm:$0x3] %vm382_vm1, %v17908_v1  ;;  %v1027_v9 = vld [vmem:[#allocation2 + $0x9] sm:$0xff] }
  0x32   : > { %431 = vst.msk [vmem:[#allocation2 + $0x190] sm:$0x3] %vm382_vm1, %v17908_v1  ;;  %434 = vst.msk [vmem:[#allocation2 + $0x1a8] sm:$0x3] %vm382_vm1, %v17908_v1  ;;  %1070 = vperm.xlu1 %17577, %v1027_v9   ;;  %v549_v9 = vld [vmem:[%s18116_s19 + $0x90] sm:$0xff] }
  0x33   : > { %564 = vst.msk [vmem:[#allocation2 + $0x19] sm:$0xff] %vm379_vm0, %v531_v2  ;;  %565 = vst.msk [vmem:[#allocation2 + $0x21] sm:$0xff] %vm379_vm0, %v532_v3  ;;  %v6923_v2 = vld [vmem:[%s18137_s22 + $0x48] sm:$0xff] }
  0x34   : > { %566 = vst.msk [vmem:[#allocation2 + $0x31] sm:$0xff] %vm379_vm0, %v533_v4  ;;  %567 = vst.msk [vmem:[#allocation2 + $0x39] sm:$0xff] %vm379_vm0, %v534_v5  ;;  %v6924_v4 = vld [vmem:[%s18137_s22 + $0x50] sm:$0xff] }
  0x35   : > { %568 = vst.msk [vmem:[#allocation2 + $0x49] sm:$0xff] %vm379_vm0, %v535_v6  ;;  %569 = vst.msk [vmem:[#allocation2 + $0x51] sm:$0xff] %vm379_vm0, %v536_v7  ;;  %v6925_v6 = vld [vmem:[%s18137_s22 + $0x58] sm:$0xff]  ;;  %v547_v7 = vld [vmem:[%s18116_s19 + $0x80] sm:$0xff] }
  0x36   : > { %570 = vst.msk [vmem:[#allocation2 + $0x61] sm:$0xff] %vm379_vm0, %v537_v10  ;;  %571 = vst.msk [vmem:[#allocation2 + $0x69] sm:$0xff] %vm379_vm0, %v538_v11  ;;  %v550_v10 = vld [vmem:[%s18116_s19 + $0x98] sm:$0xff]  ;;  %v6926_v11 = vld [vmem:[%s18137_s22 + $0x60] sm:$0xff] }
  0x37   : > { %572 = vst.msk [vmem:[#allocation2 + $0x79] sm:$0xff] %vm379_vm0, %v539_v13  ;;  %573 = vst.msk [vmem:[#allocation2 + $0x81] sm:$0xff] %vm379_vm0, %v540_v14  ;;  %v6928_v13 = vld [vmem:[%s18137_s22 + $0x70] sm:$0xff] }
  0x38   : > { %574 = vst.msk [vmem:[#allocation2 + $0x91] sm:$0xff] %vm379_vm0, %v541_v15  ;;  %575 = vst.msk [vmem:[#allocation2 + $0x99] sm:$0xff] %vm379_vm0, %v542_v16  ;;  %v6929_v15 = vld [vmem:[%s18137_s22 + $0x78] sm:$0xff]  ;;  %v551_v16 = vld [vmem:[%s18116_s19 + $0xa0] sm:$0xff] }
  0x39   : > { %576 = vst.msk [vmem:[#allocation2 + $0xa9] sm:$0xff] %vm379_vm0, %v543_v50  ;;  %577 = vst.msk [vmem:[#allocation2 + $0xb1] sm:$0xff] %vm379_vm0, %v544_v55  ;;  %v6930_v50 = vld [vmem:[%s18137_s22 + $0x80] sm:$0xff] }
  0x3a   : > { %v605_v17 = vld [vmem:[#allocation2 + $0x18] sm:$0xff]  ;;  %v606_v22 = vld [vmem:[#allocation2 + $0x20] sm:$0xff]  ;;  %578 = vst.msk [vmem:[#allocation2 + $0xc1] sm:$0xff] %vm379_vm0, %v545_v59  ;;  %579 = vst.msk [vmem:[#allocation2 + $0xc9] sm:$0xff] %vm379_vm0, %v546_v60 }
  0x3b   : > { %652 = vperm.xlu1 %17577, %v605_v17   ;;  %v607_v23 = vld [vmem:[#allocation2 + $0x30] sm:$0xff]  ;;  %v608_v25 = vld [vmem:[#allocation2 + $0x38] sm:$0xff]  ;;  %v1029_v27 = vld [vmem:[#allocation2 + $0x21] sm:$0xff]  ;;  %580 = vst.msk [vmem:[#allocation2 + $0xd9] sm:$0xff] %vm379_vm0, %v547_v7 }
  0x3c   : > { %v1028_v26 = vld [vmem:[#allocation2 + $0x19] sm:$0xff]  ;;  %v18151_v28 = vld [vmem:[#allocation2 + $0x31] sm:$0xff]  ;;  %v18155_v30 = vld [vmem:[#allocation2 + $0x22] sm:$0xff]  ;;  %662 = vperm.xlu0 %17576, %v607_v23   ;;  %581 = vst.msk [vmem:[#allocation2 + $0xe1] sm:$0xff] %vm379_vm0, %v548_v8 }
  0x3d   : > { %v18153_v29 = vld [vmem:[#allocation2 + $0x1a] sm:$0xff]  ;;  %v18162_v33 = vld [vmem:[#allocation2 + $0x32] sm:$0xff]  ;;  %v609_v35 = vld [vmem:[#allocation2 + $0x48] sm:$0xff]  ;;  %582 = vst.msk [vmem:[#allocation2 + $0xf1] sm:$0xff] %vm379_vm0, %v549_v9 }
  0x3e   : > { %v18158_v32 = vld [vmem:[#allocation2 + $0x39] sm:$0xff]  ;;  %6946 = vst.msk [vmem:[#allocation2 + $0x19] sm:$0xff] %vm379_vm0, %v6914_v19  ;;  %6947 = vst.msk [vmem:[#allocation2 + $0x21] sm:$0xff] %vm379_vm0, %v6915_v20  ;;  %v610_v36 = vld [vmem:[#allocation2 + $0x50] sm:$0xff] }
  0x3f   : > { %657 = vperm.xlu1 %17577, %v606_v22   ;;  %v18164_v34 = vld [vmem:[#allocation2 + $0x3a] sm:$0xff]  ;;  %6948 = vst.msk [vmem:[#allocation2 + $0x31] sm:$0xff] %vm379_vm0, %v6916_v21  ;;  %v18171_v39 = vld [vmem:[#allocation2 + $0x68] sm:$0xff]  ;;  %v18175_v41 = vld [vmem:[#allocation2 + $0x51] sm:$0xff] }
  0x40   : > { %6949 = vst.msk [vmem:[#allocation2 + $0x39] sm:$0xff] %vm379_vm0, %v6917_v24  ;;  %v18169_v38 = vld [vmem:[#allocation2 + $0x60] sm:$0xff]  ;;  %v18173_v40 = vld [vmem:[#allocation2 + $0x49] sm:$0xff]  ;;  %v18181_v44 = vld [vmem:[#allocation2 + $0x52] sm:$0xff]  ;;  %1075 = vperm.xlu0 %17576, %v1028_v26  }
  0x41   : > { %v18177_v42 = vld [vmem:[#allocation2 + $0x61] sm:$0xff]  ;;  %v18179_v43 = vld [vmem:[#allocation2 + $0x4a] sm:$0xff]  ;;  %v18195_v51 = vld [vmem:[#allocation2 + $0x78] sm:$0xff]  ;;  %583 = vst.msk [vmem:[#allocation2 + $0xf9] sm:$0xff] %vm379_vm0, %v550_v10 }
  0x42   : > { %v18183_v45 = vld [vmem:[#allocation2 + $0x69] sm:$0xff]  ;;  %6950 = vst.msk [vmem:[#allocation2 + $0x49] sm:$0xff] %vm379_vm0, %v6918_v31  ;;  %6951 = vst.msk [vmem:[#allocation2 + $0x51] sm:$0xff] %vm379_vm0, %v6919_v37  ;;  %v18197_v52 = vld [vmem:[#allocation2 + $0x80] sm:$0xff] }
  0x43   : > { %667 = vperm.xlu1 %17577, %v608_v25   ;;  %v18187_v46 = vld [vmem:[#allocation2 + $0x62] sm:$0xff]  ;;  %v18191_v48 = vld [vmem:[#allocation2 + $0x6a] sm:$0xff]  ;;  %v18199_v53 = vld [vmem:[#allocation2 + $0x79] sm:$0xff]  ;;  %584 = vst.msk [vmem:[#allocation2 + $0x109] sm:$0xff] %vm379_vm0, %v551_v16 }
  0x44   : > { %6952 = vst.msk [vmem:[#allocation2 + $0x61] sm:$0xff] %vm379_vm0, %v6920_v47  ;;  %v18201_v54 = vld [vmem:[#allocation2 + $0x81] sm:$0xff]  ;;  %6953 = vst.msk [vmem:[#allocation2 + $0x69] sm:$0xff] %vm379_vm0, %v6921_v49  ;;  %v18206_v56 = vld [vmem:[#allocation2 + $0x90] sm:$0xff]  ;;  %672 = vperm.xlu0 %17576, %v609_v35  }
  0x45   : > { %v18208_v57 = vld [vmem:[#allocation2 + $0x98] sm:$0xff]  ;;  %v18222_v0 = vld [vmem:[#allocation2 + $0x82] sm:$0xff]  ;;  %v18251_v17 = vld [vmem:[#allocation2 + $0xb0] sm:$0xff]  ;;  %440 = vst.msk [vmem:[#allocation3 + $0x18] sm:$0xff] %vm435_vm2, %v17908_v1 }
  0x46   : > { %v18211_v58 = vld [vmem:[#allocation2 + $0x91] sm:$0xff]  ;;  %v18215_v61 = vld [vmem:[#allocation2 + $0x7a] sm:$0xff]  ;;  %v18246_v14 = vld [vmem:[#allocation2 + $0xa8] sm:$0xff]  ;;  %441 = vst.msk [vmem:[#allocation3 + $0x20] sm:$0xff] %vm435_vm2, %v17908_v1 }
  0x47   : > { %1080 = vperm.xlu1 %17577, %v1029_v27   ;;  %v18217_v62 = vld [vmem:[#allocation2 + $0x99] sm:$0xff]  ;;  %6954 = vst.msk [vmem:[#allocation2 + $0x79] sm:$0xff] %vm379_vm0, %v6922_v63  ;;  %6955 = vst.msk [vmem:[#allocation2 + $0x81] sm:$0xff] %vm379_vm0, %v6923_v2  ;;  %v18253_v18 = vld [vmem:[#allocation2 + $0xa9] sm:$0xff] }
  0x48   : > { %v18227_v3 = vld [vmem:[#allocation2 + $0x92] sm:$0xff]  ;;  %v18230_v5 = vld [vmem:[#allocation2 + $0x9a] sm:$0xff]  ;;  %1085 = vperm.xlu0 %17576, %v18151_v28   ;;  %v18255_v19 = vld [vmem:[#allocation2 + $0xaa] sm:$0xff]  ;;  %436 = vst.msk [vmem:[#allocation3] sm:$0xff] %vm435_vm2, %v17908_v1 }
  0x49   : > { %6956 = vst.msk [vmem:[#allocation2 + $0x91] sm:$0xff] %vm379_vm0, %v6924_v4  ;;  %6957 = vst.msk [vmem:[#allocation2 + $0x99] sm:$0xff] %vm379_vm0, %v6925_v6  ;;  %v18258_v20 = vld [vmem:[#allocation2 + $0xc0] sm:$0xff]  ;;  %v18260_v21 = vld [vmem:[#allocation2 + $0xc8] sm:$0xff] }
  0x4a   : > { %v18262_v22 = vld [vmem:[#allocation2 + $0xb1] sm:$0xff]  ;;  %6958 = vst.msk [vmem:[#allocation2 + $0xa9] sm:$0xff] %vm379_vm0, %v6926_v11  ;;  %v18266_v23 = vld [vmem:[#allocation2 + $0xc1] sm:$0xff]  ;;  %v18272_v26 = vld [vmem:[#allocation2 + $0xc9] sm:$0xff] }
  0x4b   : > { %677 = vperm.xlu1 %17577, %v610_v36   ;;  %v18268_v24 = vld [vmem:[#allocation2 + $0xb2] sm:$0xff]  ;;  %v18270_v25 = vld [vmem:[#allocation2 + $0xc2] sm:$0xff]  ;;  %v18276_v27 = vld [vmem:[#allocation2 + $0xca] sm:$0xff]  ;;  %437 = vst.msk [vmem:[#allocation3 + $0x8] sm:$0xff] %vm435_vm2, %v17908_v1 }
  0x4c   : > { %6959 = vst.msk [vmem:[#allocation2 + $0xb1] sm:$0xff] %vm379_vm0, %v6927_v12  ;;  %6960 = vst.msk [vmem:[#allocation2 + $0xc1] sm:$0xff] %vm379_vm0, %v6928_v13  ;;  %v552_v28 = vld [vmem:[%s18116_s19 + $0xa8] sm:$0xff]  ;;  %682 = vperm.xlu0 %17576, %v18169_v38   ;;  %v18283_v35 = vld [vmem:[#allocation2 + $0xd8] sm:$0xff] }
  0x4d   : > { %6961 = vst.msk [vmem:[#allocation2 + $0xc9] sm:$0xff] %vm379_vm0, %v6929_v15  ;;  %585 = vst.msk [vmem:[#allocation2 + $0x111] sm:$0xff] %vm379_vm0, %v552_v28  ;;  %v1449_v31 = vld [vmem:[#allocation2 + $0x2] sm:$0xff]  ;;  %v18287_v37 = vld [vmem:[#allocation2 + $0xd9] sm:$0xff] }
  0x4e   : > { %v18285_v36 = vld [vmem:[#allocation2 + $0xe0] sm:$0xff]  ;;  %v553_v47 = vld [vmem:[%s18116_s19 + $0xb0] sm:$0xff]  ;;  %v554_v38 = vld [vmem:[%s18116_s19 + $0xb8] sm:$0xff]  ;;  %443 = vst.msk [vmem:[#allocation3 + $0x30] sm:$0xff] %vm435_vm2, %v17908_v1 }
  0x4f   : > { %1090 = vperm.xlu1 %17577, %v18158_v32   ;;  %v1450_v32 = vld [vmem:[#allocation2 + $0xa] sm:$0xff]  ;;  %586 = vst.msk [vmem:[#allocation2 + $0x121] sm:$0xff] %vm379_vm0, %v553_v47  ;;  %v18292_v49 = vld [vmem:[#allocation2 + $0xda] sm:$0xff]  ;;  %587 = vst.msk [vmem:[#allocation2 + $0x129] sm:$0xff] %vm379_vm0, %v554_v38 }
  0x50   : > { %1488 = vperm.xlu0 %17576, %v1449_v31   ;;  %v18295_v55 = vld [vmem:[#allocation2 + $0xe1] sm:$0xff]  ;;  %6962 = vst.msk [vmem:[#allocation2 + $0xd9] sm:$0xff] %vm379_vm0, %v6930_v50  ;;  %v18302_v60 = vld [vmem:[#allocation2 + $0xf0] sm:$0xff]  ;;  %v18304_v63 = vld [vmem:[#allocation2 + $0xf8] sm:$0xff] }
  0x51   : > { %v6931_v59 = vld [vmem:[%s18137_s22 + $0x88] sm:$0xff]  ;;  %v18307_v2 = vld [vmem:[#allocation2 + $0xf1] sm:$0xff]  ;;  %v18313_v7 = vld [vmem:[#allocation2 + $0xf9] sm:$0xff]  ;;  %444 = vst.msk [vmem:[#allocation3 + $0x38] sm:$0xff] %vm435_vm2, %v17908_v1 }
  0x52   : > { %v18309_v4 = vld [vmem:[#allocation2 + $0xf2] sm:$0xff]  ;;  %v18316_v8 = vld [vmem:[#allocation2 + $0xfa] sm:$0xff]  ;;  %v18319_v10 = vld [vmem:[#allocation2 + $0x108] sm:$0xff]  ;;  %446 = vst.msk [vmem:[#allocation3 + $0x48] sm:$0xff] %vm435_vm2, %v17908_v1 }
  0x53   : > { %687 = vperm.xlu1 %17577, %v18171_v39   ;;  %v18299_v39 = vld [vmem:[#allocation2 + $0xe2] sm:$0xff]  ;;  %v6932_v6 = vld [vmem:[%s18137_s22 + $0x90] sm:$0xff]  ;;  %v6933_v9 = vld [vmem:[%s18137_s22 + $0x98] sm:$0xff]  ;;  %447 = vst.msk [vmem:[#allocation3 + $0x50] sm:$0xff] %vm435_vm2, %v17908_v1 }
  0x54   : > { %6963 = vst.msk [vmem:[#allocation2 + $0xe1] sm:$0xff] %vm379_vm0, %v6931_v59  ;;  %1498 = vperm.xlu0 %17576, %v18153_v29   ;;  %6964 = vst.msk [vmem:[#allocation2 + $0xf1] sm:$0xff] %vm379_vm0, %v6932_v6  ;;  %v18321_v11 = vld [vmem:[#allocation2 + $0x109] sm:$0xff]  ;;  %v555_v12 = vld [vmem:[%s18116_s19 + $0xc0] sm:$0xff] }
  0x55   : > { %6965 = vst.msk [vmem:[#allocation2 + $0xf9] sm:$0xff] %vm379_vm0, %v6933_v9  ;;  %v556_v13 = vld [vmem:[%s18116_s19 + $0xc8] sm:$0xff]  ;;  %v18327_v15 = vld [vmem:[#allocation2 + $0x110] sm:$0xff]  ;;  %588 = vst.msk [vmem:[#allocation2 + $0x139] sm:$0xff] %vm379_vm0, %v555_v12 }
  0x56   : > { %589 = vst.msk [vmem:[#allocation2 + $0x141] sm:$0xff] %vm379_vm0, %v556_v13  ;;  %v557_v29 = vld [vmem:[%s18116_s19 + $0xd0] sm:$0xff]  ;;  %v558_v16 = vld [vmem:[%s18116_s19 + $0xd8] sm:$0xff]  ;;  %v18343_v47 = vld [vmem:[#allocation2 + $0x128] sm:$0xff] }
  0x57   : > { %1493 = vperm.xlu1 %17577, %v1450_v32   ;;  %v18333_v28 = vld [vmem:[#allocation2 + $0x111] sm:$0xff]  ;;  %590 = vst.msk [vmem:[#allocation2 + $0x151] sm:$0xff] %vm379_vm0, %v557_v29  ;;  %591 = vst.msk [vmem:[#allocation2 + $0x159] sm:$0xff] %vm379_vm0, %v558_v16  ;;  %v18341_v32 = vld [vmem:[#allocation2 + $0x120] sm:$0xff] }
  0x58   : > { %v18337_v31 = vld [vmem:[#allocation2 + $0x10a] sm:$0xff]  ;;  %1095 = vperm.xlu0 %17576, %v18173_v40   ;;  %v18345_v38 = vld [vmem:[#allocation2 + $0x121] sm:$0xff]  ;;  %v18350_v59 = vld [vmem:[#allocation2 + $0x112] sm:$0xff]  ;;  %449 = vst.msk [vmem:[#allocation3 + $0x60] sm:$0xff] %vm435_vm2, %v17908_v1 }
  0x59   : > { %v18348_v50 = vld [vmem:[#allocation2 + $0x129] sm:$0xff]  ;;  %v6937_v13 = vld [vmem:[%s18137_s22 + $0xb8] sm:$0xff]  ;;  %v559_v29 = vld [vmem:[%s18116_s19 + $0xe0] sm:$0xff]  ;;  %450 = vst.msk [vmem:[#allocation3 + $0x68] sm:$0xff] %vm435_vm2, %v17908_v1 }
  0x5a   : > { %v6935_v6 = vld [vmem:[%s18137_s22 + $0xa8] sm:$0xff]  ;;  %v6936_v9 = vld [vmem:[%s18137_s22 + $0xb0] sm:$0xff]  ;;  %592 = vst.msk [vmem:[#allocation2 + $0x169] sm:$0xff] %vm379_vm0, %v559_v29 }
  0x5b   : > { %1503 = vperm.xlu1 %17577, %v18155_v30   ;;  %v6934_v30 = vld [vmem:[%s18137_s22 + $0xa0] sm:$0xff]  ;;  %6967 = vst.msk [vmem:[#allocation2 + $0x111] sm:$0xff] %vm379_vm0, %v6935_v6  ;;  %v18358_v12 = vld [vmem:[#allocation2 + $0x12a] sm:$0xff] }
  0x5c   : > { %6966 = vst.msk [vmem:[#allocation2 + $0x109] sm:$0xff] %vm379_vm0, %v6934_v30  ;;  %v18355_v40 = vld [vmem:[#allocation2 + $0x122] sm:$0xff]  ;;  %1508 = vperm.xlu0 %17576, %v18162_v33   ;;  %v562_v30 = vld [vmem:[%s18116_s19 + $0xf8] sm:$0xff] }
  0x5d   : > { %6968 = vst.msk [vmem:[#allocation2 + $0x121] sm:$0xff] %vm379_vm0, %v6936_v9  ;;  %v560_v16 = vld [vmem:[%s18116_s19 + $0xe8] sm:$0xff]  ;;  %6969 = vst.msk [vmem:[#allocation2 + $0x129] sm:$0xff] %vm379_vm0, %v6937_v13  ;;  %v17578_v33 = vld [vmem:[%s22635_s4] sm:$0xff]  }
  0x5e   : > { %593 = vst.msk [vmem:[#allocation2 + $0x171] sm:$0xff] %vm379_vm0, %v560_v16  ;;  %595 = vst.msk [vmem:[#allocation2 + $0x189] sm:$0xff] %vm379_vm0, %v562_v30  ;;  %15262 = vmatprep.subr.bf16.mxu0 %v17578_v33  ;;  %v18474_v6 = vld [vmem:[#allocation2 + $0x138] sm:$0xff]  ;;  %v18476_v9 = vld [vmem:[#allocation2 + $0x140] sm:$0xff] }
  0x5f   : > { %1100 = vperm.xlu1 %17577, %v18175_v41   ;;  %v561_v41 = vld [vmem:[%s18116_s19 + $0xf0] sm:$0xff]  ;;  %452 = vst.msk [vmem:[#allocation3 + $0x78] sm:$0xff] %vm435_vm2, %v17908_v1  ;;  %453 = vst.msk [vmem:[#allocation3 + $0x80] sm:$0xff] %vm435_vm2, %v17908_v1  ;;  %15263 = vmatpush3.bf16.msra.mxu0 %v17578_v33  ;;  %v18478_v13 = vld [vmem:[#allocation2 + $0x139] sm:$0xff] }
  0x60   : > { %594 = vst.msk [vmem:[#allocation2 + $0x181] sm:$0xff] %vm379_vm0, %v561_v41  ;;  %692 = vperm.xlu0 %17576, %v18195_v51   ;;  %v18540_v51 = vld [vmem:[#allocation2 + $0x13a] sm:$0xff]  ;;  %v18547_v16 = vld [vmem:[#allocation2 + $0x142] sm:$0xff]  ;;  %v18559_v33 = vld [vmem:[#allocation2 + $0x150] sm:$0xff] }
  0x61   : > { %455 = vst.msk [vmem:[#allocation3 + $0x90] sm:$0xff] %vm435_vm2, %v17908_v1  ;;  %456 = vst.msk [vmem:[#allocation3 + $0x98] sm:$0xff] %vm435_vm2, %v17908_v1  ;;  %v18543_v29 = vld [vmem:[#allocation2 + $0x141] sm:$0xff]  ;;  %v17581_v41 = vld [vmem:[%s22635_s4 + $0x18] sm:$0xff]  }
  0x62   : > { %458 = vst.msk [vmem:[#allocation3 + $0xa8] sm:$0xff] %vm435_vm2, %v17908_v1  ;;  %459 = vst.msk [vmem:[#allocation3 + $0xb0] sm:$0xff] %vm435_vm2, %v17908_v1  ;;  %v1945_v30 = vld [vmem:[#allocation3 + $0x8] sm:$0xff] }
  0x63   : > { %1513 = vperm.xlu1 %17577, %v18164_v34   ;;  %461 = vst.msk [vmem:[#allocation3 + $0xc0] sm:$0xff] %vm435_vm2, %v17908_v1  ;;  %462 = vst.msk [vmem:[#allocation3 + $0xc8] sm:$0xff] %vm435_vm2, %v17908_v1  ;;  %v17579_v34 = vld [vmem:[%s22635_s4 + $0x8] sm:$0xff]  }
  0x64   : > { %464 = vst.msk [vmem:[#allocation3 + $0xd8] sm:$0xff] %vm435_vm2, %v17908_v1  ;;  %465 = vst.msk [vmem:[#allocation3 + $0xe0] sm:$0xff] %vm435_vm2, %v17908_v1  ;;  %15264 = vmatprep.subr.bf16.mxu0 %v17579_v34  ;;  %1105 = vperm.xlu0 %17576, %v18177_v42   ;;  %v17580_v42 = vld [vmem:[%s22635_s4 + $0x10] sm:$0xff]  }
  0x65   : > { %467 = vst.msk [vmem:[#allocation3 + $0xf0] sm:$0xff] %vm435_vm2, %v17908_v1  ;;  %468 = vst.msk [vmem:[#allocation3 + $0xf8] sm:$0xff] %vm435_vm2, %v17908_v1  ;;  %15265 = vmatpush3.bf16.msra.mxu0 %v17579_v34  ;;  %v18563_v34 = vld [vmem:[#allocation2 + $0x151] sm:$0xff] }
  0x66   : > { %470 = vst.msk [vmem:[#allocation3 + $0x108] sm:$0xff] %vm435_vm2, %v17908_v1  ;;  %471 = vst.msk [vmem:[#allocation3 + $0x110] sm:$0xff] %vm435_vm2, %v17908_v1  ;;  %15266 = vmatprep.subr.bf16.mxu0 %v17580_v42 }
  0x67   : > { %473 = vst.msk [vmem:[#allocation3 + $0x120] sm:$0xff] %vm435_vm2, %v17908_v1  ;;  %474 = vst.msk [vmem:[#allocation3 + $0x128] sm:$0xff] %vm435_vm2, %v17908_v1  ;;  %697 = vperm.xlu1 %17577, %v18197_v52   ;;  %v6938_v52 = vld [vmem:[%s18137_s22 + $0xc0] sm:$0xff] }
  0x68   : > { %476 = vst.msk [vmem:[#allocation3 + $0x138] sm:$0xff] %vm435_vm2, %v17908_v1  ;;  %477 = vst.msk [vmem:[#allocation3 + $0x140] sm:$0xff] %vm435_vm2, %v17908_v1  ;;  %702 = vperm.xlu0 %17576, %v18206_v56  }
  0x69   : > { %479 = vst.msk [vmem:[#allocation3 + $0x150] sm:$0xff] %vm435_vm2, %v17908_v1  ;;  %480 = vst.msk [vmem:[#allocation3 + $0x158] sm:$0xff] %vm435_vm2, %v17908_v1  ;;  %15267 = vmatpush3.bf16.msra.mxu0 %v17580_v42  ;;  %v18566_v42 = vld [vmem:[#allocation2 + $0x152] sm:$0xff] }
  0x6a   : > { %482 = vst.msk [vmem:[#allocation3 + $0x168] sm:$0xff] %vm435_vm2, %v17908_v1  ;;  %483 = vst.msk [vmem:[#allocation3 + $0x170] sm:$0xff] %vm435_vm2, %v17908_v1  ;;  %15268 = vmatprep.subr.bf16.mxu0 %v17581_v41 }
  0x6b   : > { %485 = vst.msk [vmem:[#allocation3 + $0x180] sm:$0xff] %vm435_vm2, %v17908_v1  ;;  %486 = vst.msk [vmem:[#allocation3 + $0x188] sm:$0xff] %vm435_vm2, %v17908_v1  ;;  %1110 = vperm.xlu1 %17577, %v18183_v45   ;;  %v1944_v45 = vld [vmem:[#allocation3] sm:$0xff] }
  0x6c   : > { %488 = vst.msk [vmem:[#allocation3 + $0x198] sm:$0xff] %vm435_vm2, %v17908_v1  ;;  %489 = vst.msk [vmem:[#allocation3 + $0x1a0] sm:$0xff] %vm435_vm2, %v17908_v1  ;;  %1518 = vperm.xlu0 %17576, %v18179_v43   ;;  %v1980_v56 = vpack.c.bf16 %v1945_v30, %v1944_v45  ;;  %v6940_v43 = vld [vmem:[%s18137_s22 + $0xd0] sm:$0xff] }
  0x6d   : > { %491 = vst.msk [vmem:[#allocation6] sm:$0xff] %vm435_vm2, %v17908_v1  ;;  %493 = vst.msk [vmem:[#allocation6 + $0x10] sm:$0xff] %vm435_vm2, %v17908_v1  ;;  %15269 = vmatpush3.bf16.msra.mxu0 %v17581_v41  ;;  %v18583_v41 = vld [vmem:[#allocation2 + $0x169] sm:$0xff]  ;;  %v18592_v30 = vld [vmem:[#allocation2 + $0x171] sm:$0xff] }
  0x6e   : > { %495 = vst.msk [vmem:[#allocation6 + $0x20] sm:$0xff] %vm435_vm2, %v17908_v1  ;;  %497 = vst.msk [vmem:[#allocation6 + $0x30] sm:$0xff] %vm435_vm2, %v17908_v1  ;;  %15270 = vmatprep.mubr.msk.bf16.mxu0 %vm435_vm2, %v1980_v56  ;;  %v18585_v45 = vld [vmem:[#allocation2 + $0x16a] sm:$0xff]  ;;  %v18596_v56 = vld [vmem:[#allocation2 + $0x172] sm:$0xff] }
  0x6f   : > { %499 = vst.msk [vmem:[#allocation6 + $0x40] sm:$0xff] %vm435_vm2, %v17908_v1  ;;  %501 = vst.msk [vmem:[#allocation6 + $0x50] sm:$0xff] %vm435_vm2, %v17908_v1  ;;  %707 = vperm.xlu1 %17577, %v18208_v57   ;;  %v18561_v57 = vld [vmem:[#allocation2 + $0x158] sm:$0xff] }
  0x70   : > { %503 = vst.msk [vmem:[#allocation6 + $0x60] sm:$0xff] %vm435_vm2, %v17908_v1  ;;  %505 = vst.msk [vmem:[#allocation6 + $0x70] sm:$0xff] %vm435_vm2, %v17908_v1  ;;  %1115 = vperm.xlu0 %17576, %v18199_v53   ;;  %v6941_v53 = vld [vmem:[%s18137_s22 + $0xd8] sm:$0xff] }
  0x71   : > { %507 = vst.msk [vmem:[#allocation6 + $0x80] sm:$0xff] %vm435_vm2, %v17908_v1  ;;  %509 = vst.msk [vmem:[#allocation6 + $0x90] sm:$0xff] %vm435_vm2, %v17908_v1 }
  0x72   : > { %442 = vst.msk [vmem:[#allocation3 + $0x28] sm:$0x3] %vm438_vm3, %v17908_v1  ;;  %439 = vst.msk [vmem:[#allocation3 + $0x10] sm:$0x3] %vm438_vm3, %v17908_v1 }
  0x73   : > { %445 = vst.msk [vmem:[#allocation3 + $0x40] sm:$0x3] %vm438_vm3, %v17908_v1  ;;  %448 = vst.msk [vmem:[#allocation3 + $0x58] sm:$0x3] %vm438_vm3, %v17908_v1  ;;  %1523 = vperm.xlu1 %17577, %v18181_v44   ;;  %v18573_v44 = vld [vmem:[#allocation2 + $0x15a] sm:$0xff] }
  0x74   : > { %451 = vst.msk [vmem:[#allocation3 + $0x70] sm:$0x3] %vm438_vm3, %v17908_v1  ;;  %454 = vst.msk [vmem:[#allocation3 + $0x88] sm:$0x3] %vm438_vm3, %v17908_v1  ;;  %1528 = vperm.xlu0 %17576, %v18187_v46   ;;  %v18588_v46 = vld [vmem:[#allocation2 + $0x180] sm:$0xff] }
  0x75   : > { %457 = vst.msk [vmem:[#allocation3 + $0xa0] sm:$0x3] %vm438_vm3, %v17908_v1  ;;  %460 = vst.msk [vmem:[#allocation3 + $0xb8] sm:$0x3] %vm438_vm3, %v17908_v1 }
  0x76   : > { %463 = vst.msk [vmem:[#allocation3 + $0xd0] sm:$0x3] %vm438_vm3, %v17908_v1  ;;  %466 = vst.msk [vmem:[#allocation3 + $0xe8] sm:$0x3] %vm438_vm3, %v17908_v1 }
  0x77   : > { %469 = vst.msk [vmem:[#allocation3 + $0x100] sm:$0x3] %vm438_vm3, %v17908_v1  ;;  %472 = vst.msk [vmem:[#allocation3 + $0x118] sm:$0x3] %vm438_vm3, %v17908_v1  ;;  %1120 = vperm.xlu1 %17577, %v18201_v54   ;;  %v18579_v54 = vld [vmem:[#allocation2 + $0x168] sm:$0xff] }
  0x78   : > { %475 = vst.msk [vmem:[#allocation3 + $0x130] sm:$0x3] %vm438_vm3, %v17908_v1  ;;  %478 = vst.msk [vmem:[#allocation3 + $0x148] sm:$0x3] %vm438_vm3, %v17908_v1  ;;  %712 = vperm.xlu0 %17576, %v18246_v14   ;;  %v18594_v14 = vld [vmem:[#allocation2 + $0x181] sm:$0xff] }
  0x79   : > { %481 = vst.msk [vmem:[#allocation3 + $0x160] sm:$0x3] %vm438_vm3, %v17908_v1  ;;  %484 = vst.msk [vmem:[#allocation3 + $0x178] sm:$0x3] %vm438_vm3, %v17908_v1 }
  0x7a   : > { %487 = vst.msk [vmem:[#allocation3 + $0x190] sm:$0x3] %vm438_vm3, %v17908_v1  ;;  %490 = vst.msk [vmem:[#allocation3 + $0x1a8] sm:$0x3] %vm438_vm3, %v17908_v1 }
  0x7b   : > { %492 = vst.msk [vmem:[#allocation6 + $0x8] sm:$0x3] %vm438_vm3, %v17908_v1  ;;  %494 = vst.msk [vmem:[#allocation6 + $0x18] sm:$0x3] %vm438_vm3, %v17908_v1  ;;  %1533 = vperm.xlu1 %17577, %v18191_v48   ;;  %v18590_v48 = vld [vmem:[#allocation2 + $0x188] sm:$0xff] }
  0x7c   : > { %496 = vst.msk [vmem:[#allocation6 + $0x28] sm:$0x3] %vm438_vm3, %v17908_v1  ;;  %498 = vst.msk [vmem:[#allocation6 + $0x38] sm:$0x3] %vm438_vm3, %v17908_v1  ;;  %1125 = vperm.xlu0 %17576, %v18211_v58  }
  0x7d   : > { %500 = vst.msk [vmem:[#allocation6 + $0x48] sm:$0x3] %vm438_vm3, %v17908_v1  ;;  %502 = vst.msk [vmem:[#allocation6 + $0x58] sm:$0x3] %vm438_vm3, %v17908_v1 }
  0x7e   : > { %504 = vst.msk [vmem:[#allocation6 + $0x68] sm:$0x3] %vm438_vm3, %v17908_v1  ;;  %506 = vst.msk [vmem:[#allocation6 + $0x78] sm:$0x3] %vm438_vm3, %v17908_v1 }
  0x7f   : > { %508 = vst.msk [vmem:[#allocation6 + $0x88] sm:$0x3] %vm438_vm3, %v17908_v1  ;;  %510 = vst.msk [vmem:[#allocation6 + $0x98] sm:$0x3] %vm438_vm3, %v17908_v1  ;;  %v6939_v1 = vld [vmem:[%s18137_s22 + $0xc8] sm:$0xff]  ;;  %717 = vperm.xlu1 %17577, %v18251_v17  }
  0x80   : > { %6970 = vst.msk [vmem:[#allocation2 + $0x139] sm:$0xff] %vm379_vm0, %v6938_v52  ;;  %6971 = vst.msk [vmem:[#allocation2 + $0x141] sm:$0xff] %vm379_vm0, %v6939_v1  ;;  %v18569_v52 = vld [vmem:[#allocation2 + $0x159] sm:$0xff]  ;;  %v18581_v1 = vld [vmem:[#allocation2 + $0x170] sm:$0xff]  ;;  %722 = vperm.xlu0 %17576, %v18258_v20  }
  0x81   : > { %22644 = vst [vmem:[#allocation9_spill] sm:$0xff] %v18566_v42  ;;  %6972 = vst.msk [vmem:[#allocation2 + $0x151] sm:$0xff] %vm379_vm0, %v6940_v43  ;;  %v18598_v43 = vld [vmem:[#allocation2 + $0x182] sm:$0xff]  ;;  %v18607_v42 = vld [vmem:[#allocation2 + $0x18a] sm:$0xff] }
  0x82   : > { %22645 = vst [vmem:[#allocation10_spill] sm:$0xff] %v18573_v44  ;;  %6973 = vst.msk [vmem:[#allocation2 + $0x159] sm:$0xff] %vm379_vm0, %v6941_v53  ;;  %v18600_v53 = vld [vmem:[#allocation2 + $0x189] sm:$0xff]  ;;  %v6942_v44 = vld [vmem:[%s18137_s22 + $0xe0] sm:$0xff] }
  0x83   : > { %22646 = vst [vmem:[#allocation11_spill] sm:$0xff] %v18585_v45  ;;  %22647 = vst [vmem:[#allocation12_spill] sm:$0xff] %v18594_v14  ;;  %v6943_v17 = vld [vmem:[%s18137_s22 + $0xe8] sm:$0xff]  ;;  %v6944_v45 = vld [vmem:[%s18137_s22 + $0xf0] sm:$0xff]  ;;  %1130 = vperm.xlu1 %17577, %v18217_v62  }
  0x84   : > { %6974 = vst.msk [vmem:[#allocation2 + $0x169] sm:$0xff] %vm379_vm0, %v6942_v44  ;;  %6975 = vst.msk [vmem:[#allocation2 + $0x171] sm:$0xff] %vm379_vm0, %v6943_v17  ;;  %v6945_v14 = vld [vmem:[%s18137_s22 + $0xf8] sm:$0xff]  ;;  %1538 = vperm.xlu0 %17576, %v18215_v61   ;;  %v18735_v17 = vld [vmem:[%s22633_s2 + $0x2] ss:$0 sm:$0xff] }
  0x85   : > { %6976 = vst.msk [vmem:[#allocation2 + $0x181] sm:$0xff] %vm379_vm0, %v6944_v45  ;;  %6977 = vst.msk [vmem:[#allocation2 + $0x189] sm:$0xff] %vm379_vm0, %v6945_v14 }
  0x87   : > { %727 = vperm.xlu1 %17577, %v18260_v21  }
  0x88   : > { %1135 = vperm.xlu0 %17576, %v18253_v18  }
  0x8b   : > { %1543 = vperm.xlu1 %17577, %v18222_v0  }
  0x8c   : > { %1548 = vperm.xlu0 %17576, %v18227_v3  }
  0x8f   : > { %1140 = vperm.xlu1 %17577, %v18262_v22  }
  0x90   : > { %732 = vperm.xlu0 %17576, %v18283_v35  }
  0x93   : > { %1553 = vperm.xlu1 %17577, %v18230_v5  }
  0x94   : > { %1145 = vperm.xlu0 %17576, %v18266_v23   ;;  %v18661_v23 = vld [vmem:[%s22633_s2] ss:$0 sm:$0xff] }
  0x95   : > { %v643_v58 = vpop.permute.xlu0 %642 }
  0x97   : > { %737 = vperm.xlu1 %17577, %v18285_v36  }
  0x98   : > { %742 = vperm.xlu0 %17576, %v18302_v60  }
  0x99   : > { %v648_v62 = vpop.permute.xlu0 %647 }
  0x9a   : > { %v805_v36 = vmul.f32 %v18661_v23, %v648_v62  ;;  %v18746_v62 = vld [vmem:[%s22635_s4 + $0x60] sm:$0xff]  }
  0x9b   : > { %1150 = vperm.xlu1 %17577, %v18272_v26   ;;  %v18674_v26 = vld [vmem:[%s22633_s2 + $0x3] ss:$0 sm:$0xff]  ;;  %15302 = vmatprep.subr.bf16.mxu0 %v18746_v62 }
  0x9c   : > { %1558 = vperm.xlu0 %17576, %v18255_v19  }
  0x9d   : > { %v1066_v3 = vpop.permute.xlu0 %1065 }
  0x9f   : > { %747 = vperm.xlu1 %17577, %v18304_v63  }
  0xa0   : > { %1155 = vperm.xlu0 %17576, %v18287_v37   ;;  %v18684_v37 = vld [vmem:[%s22633_s2 + $0x6] ss:$0 sm:$0xff] }
  0xa3   : > { %1563 = vperm.xlu1 %17577, %v18268_v24  }
  0xa4   : > { %1568 = vperm.xlu0 %17576, %v18270_v25   ;;  %v18669_v25 = vld [vmem:[%s22634_s3] ss:$0 sm:$0xff] }
  0xa7   : > { %1160 = vperm.xlu1 %17577, %v18295_v55  }
  0xa8   : > { %752 = vperm.xlu0 %17576, %v18319_v10  }
  0xab   : > { %1573 = vperm.xlu1 %17577, %v18276_v27   ;;  %v804_v27 = vmul.f32 %v18661_v23, %v643_v58 }
  0xac   : > { %1165 = vperm.xlu0 %17576, %v18307_v2  }
  0xad   : > { %v836_v60 = vadd.f32 %v18669_v25, %v804_v27 }
  0xaf   : > { %757 = vperm.xlu1 %17577, %v18327_v15  }
  0xb0   : > { %762 = vperm.xlu0 %17576, %v18341_v32  }
  0xb1   : > { %v1071_v61 = vpop.permute.xlu1 %1070 }
  0xb3   : > { %1170 = vperm.xlu1 %17577, %v18313_v7  }
  0xb4   : > { %1578 = vperm.xlu0 %17576, %v18292_v49  }
  0xb7   : > { %767 = vperm.xlu1 %17577, %v18343_v47  }
  0xb8   : > { %1175 = vperm.xlu0 %17576, %v18321_v11   ;;  %v18706_v11 = vld [vmem:[%s22633_s2 + $0x1] ss:$0 sm:$0xff] }
  0xba   : > { %v653_v0 = vpop.permute.xlu1 %652 }
  0xbb   : > { %1583 = vperm.xlu1 %17577, %v18299_v39   ;;  %v18644_v18 = vpop.permute.xlu0 %662  ;;  %v883_v49 = vmul.f32 %v18674_v26, %v653_v0 }
  0xbc   : > { %1588 = vperm.xlu0 %17576, %v18309_v4   ;;  %v962_v63 = vmul.f32 %v18684_v37, %v18644_v18  ;;  %v837_v4 = vadd.f32 %v18669_v25, %v805_v36 }
  0xbe   : > { %v658_v5 = vpop.permute.xlu1 %657 }
  0xbf   : > { %1180 = vperm.xlu1 %17577, %v18333_v28   ;;  %v18650_v20 = vpop.permute.xlu0 %1075  ;;  %v884_v39 = vmul.f32 %v18674_v26, %v658_v5 }
  0xc0   : > { %772 = vperm.xlu0 %17576, %v18474_v6   ;;  %v1228_v6 = vmul.f32 %v18706_v11, %v1071_v61 }
  0xc1   : > { %v916_v15 = vadd.f32 %v884_v39, %v837_v4 }
  0xc2   : > { %v18647_v19 = vpop.permute.xlu1 %667 }
  0xc3   : > { %1593 = vperm.xlu1 %17577, %v18316_v8   ;;  %v18656_v22 = vpop.permute.xlu0 %672  ;;  %v963_v7 = vmul.f32 %v18684_v37, %v18647_v19  ;;  %v915_v8 = vadd.f32 %v883_v49, %v836_v60  ;;  %v886_v27 = vmul.f32 %v18674_v26, %v18647_v19 }
  0xc4   : > { %1185 = vperm.xlu0 %17576, %v18345_v38   ;;  %v18712_v38 = vld [vmem:[%s22633_s2 + $0x4] ss:$0 sm:$0xff] }
  0xc5   : > { %v994_v28 = vadd.f32 %v962_v63, %v915_v8  ;;  %v995_v47 = vadd.f32 %v963_v7, %v916_v15 }
  0xc6   : > { %v18653_v21 = vpop.permute.xlu1 %1080 }
  0xc7   : > { %777 = vperm.xlu1 %17577, %v18476_v9   ;;  %v18678_v35 = vpop.permute.xlu0 %1085  ;;  %v806_v9 = vmul.f32 %v18661_v23, %v653_v0  ;;  %v1260_v45 = vadd.f32 %v1228_v6, %v995_v47  ;;  %v1307_v14 = vmul.f32 %v18712_v38, %v18653_v21 }
  0xc8   : > { %782 = vperm.xlu0 %17576, %v18559_v33  }
  0xc9   : > { %v838_v0 = vadd.f32 %v18669_v25, %v806_v9  ;;  %v1339_v63 = vadd.f32 %v1307_v14, %v1260_v45 }
  0xca   : > { %v18664_v24 = vpop.permute.xlu1 %677 }
  0xcb   : > { %1190 = vperm.xlu1 %17577, %v18348_v50   ;;  %v18695_v2 = vpop.permute.xlu0 %682 }
  0xcc   : > { %1598 = vperm.xlu0 %17576, %v18337_v31   ;;  %v1227_v31 = vmul.f32 %v18706_v11, %v1066_v3  ;;  %v964_v3 = vmul.f32 %v18684_v37, %v18656_v22 }
  0xce   : > { %v18688_v55 = vpop.permute.xlu1 %1090  ;;  %v1259_v33 = vadd.f32 %v1227_v31, %v994_v28 }
  0xcf   : > { %787 = vperm.xlu1 %17577, %v18561_v57   ;;  %v1489_v32 = vpop.permute.xlu0 %1488  ;;  %v1306_v57 = vmul.f32 %v18712_v38, %v18650_v20 }
  0xd0   : > { %1195 = vperm.xlu0 %17576, %v18478_v13   ;;  %v885_v13 = vmul.f32 %v18674_v26, %v18644_v18  ;;  %v1650_v49 = vmul.f32 %v18735_v17, %v1489_v32 }
  0xd1   : > { %v1338_v36 = vadd.f32 %v1306_v57, %v1259_v33  ;;  %v1229_v33 = vmul.f32 %v18706_v11, %v18650_v20  ;;  %v1230_v20 = vmul.f32 %v18706_v11, %v18653_v21 }
  0xd2   : > { %v18701_v10 = vpop.permute.xlu1 %687  ;;  %v917_v60 = vadd.f32 %v885_v13, %v838_v0 }
  0xd3   : > { %1603 = vperm.xlu1 %17577, %v18350_v59   ;;  %v18721_v59 = vld [vmem:[%s22633_s2 + $0x7] ss:$0 sm:$0xff]  ;;  %v18726_v44 = vpop.permute.xlu0 %1498 }
  0xd4   : > { %1608 = vperm.xlu0 %17576, %v18355_v40   ;;  %v1385_v58 = vmul.f32 %v18721_v59, %v18678_v35  ;;  %v1386_v40 = vmul.f32 %v18721_v59, %v18688_v55  ;;  %v996_v32 = vadd.f32 %v964_v3, %v917_v60 }
  0xd6   : > { %v1494_v50 = vpop.permute.xlu1 %1493  ;;  %v1417_v8 = vadd.f32 %v1385_v58, %v1338_v36  ;;  %v1418_v47 = vadd.f32 %v1386_v40, %v1339_v63  ;;  %v1308_v58 = vmul.f32 %v18712_v38, %v18678_v35  ;;  %v809_v36 = vmul.f32 %v18661_v23, %v18647_v19 }
  0xd7   : > { %1200 = vperm.xlu1 %17577, %v18543_v29   ;;  %v807_v29 = vmul.f32 %v18661_v23, %v658_v5  ;;  %v18756_v5 = vld [vmem:[%s22633_s2 + $0x5] ss:$0 sm:$0xff]  ;;  %v18762_v39 = vpop.permute.xlu0 %1095  ;;  %v1651_v4 = vmul.f32 %v18735_v17, %v1494_v50 }
  0xd8   : > { %792 = vperm.xlu0 %17576, %v18579_v54   ;;  %v1729_v15 = vmul.f32 %v18756_v5, %v18726_v44  ;;  %v18780_v54 = vld [vmem:[%s22633_s2 + $0x8] ss:$0 sm:$0xff]  ;;  %v1682_v6 = vadd.f32 %v1650_v49, %v1417_v8  ;;  %v1387_v49 = vmul.f32 %v18721_v59, %v18762_v39 }
  0xd9   : > { %v839_v7 = vadd.f32 %v18669_v25, %v807_v29  ;;  %v1683_v57 = vadd.f32 %v1651_v4, %v1418_v47  ;;  %v1261_v29 = vadd.f32 %v1229_v33, %v996_v32  ;;  %v841_v47 = vadd.f32 %v18669_v25, %v809_v36 }
  0xda   : > { %v18741_v61 = vpop.permute.xlu1 %1503  ;;  %v1761_v45 = vadd.f32 %v1729_v15, %v1682_v6 }
  0xdb   : > { %1613 = vperm.xlu1 %17577, %v18358_v12   ;;  %v965_v12 = vmul.f32 %v18684_v37, %v18664_v24  ;;  %v1730_v31 = vmul.f32 %v18756_v5, %v18741_v61  ;;  %v918_v50 = vadd.f32 %v886_v27, %v839_v7  ;;  %v18782_v9 = vpop.permute.xlu0 %1508  ;;  %v888_v7 = vmul.f32 %v18674_v26, %v18664_v24 }
  0xdc   : > { %1205 = vperm.xlu0 %17576, %v18563_v34   ;;  %v808_v34 = vmul.f32 %v18661_v23, %v18644_v18  ;;  %v1309_v18 = vmul.f32 %v18712_v38, %v18688_v55  ;;  %v1340_v19 = vadd.f32 %v1308_v58, %v1261_v29 }
  0xdd   : > { %v997_v13 = vadd.f32 %v965_v12, %v918_v50  ;;  %v1762_v0 = vadd.f32 %v1730_v31, %v1683_v57  ;;  %v967_v31 = vmul.f32 %v18684_v37, %v18701_v10  ;;  %v920_v57 = vadd.f32 %v888_v7, %v841_v47 }
  0xde   : > { %v18772_v28 = vpop.permute.xlu1 %1100  ;;  %v840_v8 = vadd.f32 %v18669_v25, %v808_v34  ;;  %v1419_v50 = vadd.f32 %v1387_v49, %v1340_v19  ;;  %v1231_v34 = vmul.f32 %v18706_v11, %v18678_v35  ;;  %v17583_v19 = vld [vmem:[%s22635_s4 + $0x68] sm:$0xff]  }
  0xdf   : > { %797 = vperm.xlu1 %17577, %v18581_v1   ;;  %v1808_v1 = vmul.f32 %v18780_v54, %v18782_v9  ;;  %v18800_v27 = vpop.permute.xlu0 %692  ;;  %v1262_v63 = vadd.f32 %v1230_v20, %v997_v13  ;;  %v1388_v15 = vmul.f32 %v18721_v59, %v18772_v28  ;;  %v1652_v13 = vmul.f32 %v18735_v17, %v18726_v44 }
  0xe0   : > { %871 = vperm.xlu0 %17576, %v18588_v46   ;;  %v966_v46 = vmul.f32 %v18684_v37, %v18695_v2  ;;  %v999_v58 = vadd.f32 %v967_v31, %v920_v57  ;;  %v1310_v44 = vmul.f32 %v18712_v38, %v18762_v39  ;;  %v1311_v35 = vmul.f32 %v18712_v38, %v18772_v28 }
  0xe1   : > { %v1840_v40 = vadd.f32 %v1808_v1, %v1761_v45  ;;  %v1341_v6 = vadd.f32 %v1309_v18, %v1262_v63  ;;  %v968_v31 = vmul.f32 %v18684_v37, %v18800_v27 }
  0xe2   : > { %v18789_v14 = vpop.permute.xlu1 %1513 }
  0xe3   : > { %v1809_v3 = vmul.f32 %v18780_v54, %v18789_v14  ;;  %1210 = vperm.xlu1 %17577, %v18569_v52   ;;  %v887_v52 = vmul.f32 %v18674_v26, %v18656_v22  ;;  %v1872_v21 = vmax.f32 %v1840_v40, 0.0  ;;  %v18822_v32 = vpop.permute.xlu0 %1105  ;;  %v1420_v1 = vadd.f32 %v1388_v15, %v1341_v6 }
  0xe4   : > { %1618 = vperm.xlu0 %17576, %v18540_v51   ;;  %v810_v51 = vmul.f32 %v18661_v23, %v18656_v22  ;;  %v811_v40 = vmul.f32 %v18661_v23, %v18664_v24  ;;  %v889_v22 = vmul.f32 %v18674_v26, %v18695_v2  ;;  %v1732_v49 = vmul.f32 %v18756_v5, %v18789_v14 }
  0xe5   : > { %v1841_v60 = vadd.f32 %v1809_v3, %v1762_v0  ;;  %1905 = vst.msk [vmem:[#allocation3 + $0x19] sm:$0xff] %vm435_vm2, %v1872_v21  ;;  %v1684_v0 = vadd.f32 %v1652_v13, %v1419_v50  ;;  %v1731_v3 = vmul.f32 %v18756_v5, %v18782_v9  ;;  %v890_v6 = vmul.f32 %v18674_v26, %v18701_v10 }
  0xe6   : > { %v18811_v4 = vpop.permute.xlu1 %697  ;;  %v842_v15 = vadd.f32 %v18669_v25, %v810_v51 }
  0xe7   : > { %v1873_v12 = vmax.f32 %v1841_v60, 0.0  ;;  %876 = vperm.xlu1 %17577, %v18590_v48   ;;  %v919_v48 = vadd.f32 %v887_v52, %v840_v8  ;;  %v18834_v29 = vpop.permute.xlu0 %702  ;;  %v1389_v60 = vmul.f32 %v18721_v59, %v18822_v32  ;;  %v1763_v63 = vadd.f32 %v1731_v3, %v1684_v0 }
  0xe8   : > { %1215 = vperm.xlu0 %17576, %v18583_v41   ;;  %v1232_v41 = vmul.f32 %v18706_v11, %v18688_v55  ;;  %v921_v0 = vadd.f32 %v889_v22, %v842_v15  ;;  %v17584_v15 = vld [vmem:[%s22635_s4 + $0x70] sm:$0xff]  }
  0xe9   : > { %1906 = vst.msk [vmem:[#allocation3 + $0x21] sm:$0xff] %vm435_vm2, %v1873_v12  ;;  %v998_v45 = vadd.f32 %v966_v46, %v919_v48  ;;  %v22649_v48 = vld [vmem:[#allocation10_spill] sm:$0xff] }
  0xea   : > { %v18829_v33 = vpop.permute.xlu1 %1110  ;;  %v1264_v55 = vadd.f32 %v1232_v41, %v999_v58  ;;  %v843_v58 = vadd.f32 %v18669_v25, %v811_v40  ;;  %v1655_v40 = vmul.f32 %v18735_v17, %v18789_v14  ;;  %v1000_v22 = vadd.f32 %v968_v31, %v921_v0 }
  0xeb   : > { %1623 = vperm.xlu1 %17577, %v18547_v16   ;;  %v1653_v16 = vmul.f32 %v18735_v17, %v18741_v61  ;;  %v1263_v61 = vadd.f32 %v1231_v34, %v998_v45  ;;  %v18862_v24 = vpop.permute.xlu0 %1518  ;;  %v1390_v18 = vmul.f32 %v18721_v59, %v18829_v33  ;;  %v22650_v34 = vld [vmem:[#allocation12_spill] sm:$0xff] }
  0xec   : > { %v1810_v21 = vmul.f32 %v18780_v54, %v18862_v24  ;;  %v1946_v7 = vld [vmem:[#allocation3 + $0x18] sm:$0xff]  ;;  %v1343_v47 = vadd.f32 %v1311_v35, %v1264_v55  ;;  %v1733_v41 = vmul.f32 %v18756_v5, %v18862_v24 }
  0xed   : > { %v1685_v36 = vadd.f32 %v1653_v16, %v1420_v1  ;;  %v1342_v12 = vadd.f32 %v1310_v44, %v1263_v61  ;;  %v1654_v16 = vmul.f32 %v18735_v17, %v18782_v9  ;;  %v969_v44 = vmul.f32 %v18684_v37, %v18811_v4 }
  0xee   : > { %v18847_v20 = vpop.permute.xlu1 %707  ;;  %v1842_v50 = vadd.f32 %v1810_v21, %v1763_v63  ;;  %v1422_v3 = vadd.f32 %v1390_v18, %v1343_v47  ;;  %v922_v9 = vadd.f32 %v890_v6, %v843_v58  ;;  %v22651_v63 = vld [vmem:[#allocation11_spill] sm:$0xff]  ;;  %v812_v47 = vmul.f32 %v18661_v23, %v18695_v2  ;;  %v637_v58 = vld [vmem:[#allocation2 + $0x198] sm:$0xff] }
  0xef   : > { %1220 = vperm.xlu1 %17577, %v18592_v30   ;;  %v22648_v30 = vld [vmem:[#allocation9_spill] sm:$0xff]  ;;  %v1764_v57 = vadd.f32 %v1732_v49, %v1685_v36  ;;  %v1421_v13 = vadd.f32 %v1389_v60, %v1342_v12  ;;  %v18886_v1 = vpop.permute.xlu0 %1115  ;;  %v1313_v2 = vmul.f32 %v18712_v38, %v18829_v33 }
  0xf0   : > { %v1947_v52 = vld [vmem:[#allocation3 + $0x20] sm:$0xff]  ;;  %1628 = vperm.xlu0 %17576, %v22648_v30   ;;  %v1874_v51 = vmax.f32 %v1842_v50, 0.0  ;;  %v1687_v55 = vadd.f32 %v1655_v40, %v1422_v3  ;;  %v1001_v14 = vadd.f32 %v969_v44, %v922_v9  ;;  %v1391_v6 = vmul.f32 %v18721_v59, %v18886_v1 }
  0xf1   : > { %v18874_v46 = vpack.c.bf16 %v1947_v52, %v1946_v7  ;;  %v1686_v36 = vadd.f32 %v1654_v16, %v1421_v13  ;;  %v1233_v52 = vmul.f32 %v18706_v11, %v18762_v39  ;;  %v1312_v7 = vmul.f32 %v18712_v38, %v18822_v32 }
  0xf2   : > { %v18872_v8 = vpop.permute.xlu1 %1523  ;;  %1907 = vst.msk [vmem:[#allocation3 + $0x31] sm:$0xff] %vm435_vm2, %v1874_v51  ;;  %v844_v51 = vadd.f32 %v18669_v25, %v812_v47  ;;  %v814_v47 = vmul.f32 %v18661_v23, %v18800_v27 }
  0xf3   : > { %1633 = vperm.xlu1 %17577, %v22649_v48   ;;  %v1811_v45 = vmul.f32 %v18780_v54, %v18872_v8  ;;  %15271 = vmatmul.mubr.msk.bf16.vlgmr.msra.gmra.mrb[0].mxu0 %vm435_vm2, %v18874_v46  ;;  %v18905_v60 = vpop.permute.xlu0 %1528  ;;  %v1765_v18 = vadd.f32 %v1733_v41, %v1686_v36  ;;  %v813_v48 = vmul.f32 %v18661_v23, %v18701_v10 }
  0xf4   : > { %1294 = vperm.xlu0 %17576, %v22650_v34   ;;  %15303 = vmatpush3.bf16.msra.mxu0 %v18746_v62  ;;  %v1734_v62 = vmul.f32 %v18756_v5, %v18872_v8  ;;  %v1812_v21 = vmul.f32 %v18780_v54, %v18905_v60  ;;  %v892_v10 = vmul.f32 %v18674_v26, %v18811_v4 }
  0xf5   : > { %v1843_v35 = vadd.f32 %v1811_v45, %v1764_v57  ;;  %15304 = vmatprep.subr.bf16.mxu0 %v17583_v19  ;;  %v891_v57 = vmul.f32 %v18674_v26, %v18800_v27  ;;  %v970_v34 = vmul.f32 %v18684_v37, %v18834_v29  ;;  %v845_v41 = vadd.f32 %v18669_v25, %v813_v48 }
  0xf6   : > { %v18897_v61 = vpop.permute.xlu1 %1120  ;;  %v1766_v12 = vadd.f32 %v1734_v62, %v1687_v55  ;;  %v1844_v31 = vadd.f32 %v1812_v21, %v1765_v18  ;;  %v893_v27 = vmul.f32 %v18674_v26, %v18834_v29 }
  0xf7   : > { %1299 = vperm.xlu1 %17577, %v18600_v53   ;;  %v1875_v49 = vmax.f32 %v1843_v35, 0.0  ;;  %v1265_v53 = vadd.f32 %v1233_v52, %v1000_v22  ;;  %v18927_v50 = vpop.permute.xlu0 %712  ;;  %v1392_v16 = vmul.f32 %v18721_v59, %v18897_v61  ;;  %v971_v35 = vmul.f32 %v18684_v37, %v18847_v20  ;;  %v1060_v52 = vld [vmem:[#allocation2 + $0x199] sm:$0xff] }
  0xf8   : > { %1638 = vperm.xlu0 %17576, %v22651_v63   ;;  %15305 = vmatpush3.bf16.msra.mxu0 %v17583_v19  ;;  %v1234_v19 = vmul.f32 %v18706_v11, %v18772_v28  ;;  %v1876_v28 = vmax.f32 %v1844_v31, 0.0  ;;  %v923_v62 = vadd.f32 %v891_v57, %v844_v51  ;;  %v924_v55 = vadd.f32 %v892_v10, %v845_v41  ;;  %v6985_v51 = vld [vmem:[#allocation2] sm:$0xff] }
  0xf9   : > { %1908 = vst.msk [vmem:[#allocation3 + $0x39] sm:$0xff] %vm435_vm2, %v1875_v49  ;;  %15306 = vmatprep.subr.bf16.mxu0 %v17584_v15  ;;  %v1344_v0 = vadd.f32 %v1312_v7, %v1265_v53  ;;  %v1948_v40 = vld [vmem:[#allocation3 + $0x30] sm:$0xff]  ;;  %v1656_v63 = vmul.f32 %v18735_v17, %v18862_v24  ;;  %v1235_v24 = vmul.f32 %v18706_v11, %v18822_v32 }
  0xfa   : > { %v18913_v30 = vpop.permute.xlu1 %1533  ;;  %v1266_v13 = vadd.f32 %v1234_v19, %v1001_v14  ;;  %1909 = vst.msk [vmem:[#allocation3 + $0x49] sm:$0xff] %vm435_vm2, %v1876_v28  ;;  %v1061_v14 = vld [vmem:[#allocation2 + $0x1a1] sm:$0xff]  ;;  %v1002_v18 = vadd.f32 %v970_v34, %v923_v62  ;;  %v1003_v7 = vadd.f32 %v971_v35, %v924_v55  ;;  %v1657_v19 = vmul.f32 %v18735_v17, %v18872_v8 }
  0xfb   : > { %v1813_v39 = vmul.f32 %v18780_v54, %v18913_v30  ;;  %1643 = vperm.xlu1 %17577, %v18596_v56   ;;  %v18949_v44 = vpop.permute.xlu0 %1125  ;;  %v1314_v31 = vmul.f32 %v18712_v38, %v18886_v1  ;;  %v1315_v32 = vmul.f32 %v18712_v38, %v18897_v61  ;;  %v846_v35 = vadd.f32 %v18669_v25, %v814_v47  ;;  %v6986_v62 = vld [vmem:[#allocation2 + $0x8] sm:$0xff] }
  0xfc   : > { %1717 = vperm.xlu0 %17576, %v18598_v43   ;;  %v638_v43 = vld [vmem:[#allocation2 + $0x1a0] sm:$0xff]  ;;  %15307 = vmatpush3.bf16.msra.mxu0 %v17584_v15  ;;  %v1345_v9 = vadd.f32 %v1313_v2, %v1266_v13  ;;  %v1267_v57 = vadd.f32 %v1235_v24, %v1002_v18  ;;  %v1736_v13 = vmul.f32 %v18756_v5, %v18913_v30 }
  0xfd   : > { %v1845_v56 = vadd.f32 %v1813_v39, %v1766_v12  ;;  %v1735_v39 = vmul.f32 %v18756_v5, %v18905_v60  ;;  %v1483_v15 = vld [vmem:[#allocation2 + $0x19a] sm:$0xff]  ;;  %v1393_v2 = vmul.f32 %v18721_v59, %v18949_v44  ;;  %v1658_v47 = vmul.f32 %v18735_v17, %v18905_v60 }
  0xfe   : > { %v18938_v45 = vpop.permute.xlu1 %717  ;;  %v1424_v21 = vadd.f32 %v1392_v16, %v1345_v9  ;;  %v1346_v34 = vadd.f32 %v1314_v31, %v1267_v57  ;;  %v894_v9 = vmul.f32 %v18674_v26, %v18847_v20 }
  0xff   : > { %v1877_v3 = vmax.f32 %v1845_v56, 0.0  ;;  %1722 = vperm.xlu1 %17577, %v18607_v42   ;;  %v1423_v42 = vadd.f32 %v1391_v6, %v1344_v0  ;;  %v18963_v53 = vpop.permute.xlu0 %722  ;;  %v815_v6 = vmul.f32 %v18661_v23, %v18811_v4  ;;  %v1236_v56 = vmul.f32 %v18706_v11, %v18829_v33  ;;  %v1484_v4 = vld [vmem:[#allocation2 + $0x1a2] sm:$0xff] }
 0x100   : > { %950 = vperm.xlu0 %17576, %v637_v58   ;;  %v1949_v22 = vld [vmem:[#allocation3 + $0x38] sm:$0xff]  ;;  %v1689_v8 = vadd.f32 %v1657_v19, %v1424_v21  ;;  %v1425_v55 = vadd.f32 %v1393_v2, %v1346_v34  ;;  %v925_v21 = vadd.f32 %v893_v27, %v846_v35  ;;  %v973_v24 = vmul.f32 %v18684_v37, %v18938_v45  ;;  %v6988_v2 = vld [vmem:[#allocation2 + $0x20] sm:$0xff]  ;;  %v6990_v35 = vld [vmem:[#allocation2 + $0x38] sm:$0xff] }
 0x101   : > { %1910 = vst.msk [vmem:[#allocation3 + $0x51] sm:$0xff] %vm435_vm2, %v1877_v3  ;;  %v18957_v49 = vpack.c.bf16 %v1949_v22, %v1948_v40  ;;  %v1688_v12 = vadd.f32 %v1656_v63, %v1423_v42  ;;  %v1268_v33 = vadd.f32 %v1236_v56, %v1003_v7  ;;  %v972_v40 = vmul.f32 %v18684_v37, %v18927_v50 }
 0x102   : > { %v18955_v36 = vpop.permute.xlu1 %1130  ;;  %v847_v18 = vadd.f32 %v18669_v25, %v815_v6  ;;  %v1659_v56 = vmul.f32 %v18735_v17, %v18913_v30  ;;  %v1690_v57 = vadd.f32 %v1658_v47, %v1425_v55  ;;  %v6989_v30 = vld [vmem:[#allocation2 + $0x30] sm:$0xff] }
 0x103   : > { %955 = vperm.xlu1 %17577, %v638_v43   ;;  %15274 = vmatprep.mubr.msk.bf16.mxu0 %vm435_vm2, %v18957_v49  ;;  %v18989_v28 = vpop.permute.xlu0 %1538  ;;  %v1767_v10 = vadd.f32 %v1735_v39, %v1688_v12  ;;  %v1394_v0 = vmul.f32 %v18721_v59, %v18955_v36  ;;  %v1950_v43 = vld [vmem:[#allocation3 + $0x48] sm:$0xff]  ;;  %v1347_v42 = vadd.f32 %v1315_v32, %v1268_v33 }
 0x104   : > { %1373 = vperm.xlu0 %17576, %v1060_v52   ;;  %v1814_v3 = vmul.f32 %v18780_v54, %v18989_v28  ;;  %v1768_v52 = vadd.f32 %v1736_v13, %v1689_v8  ;;  %v6987_v39 = vld [vmem:[#allocation2 + $0x18] sm:$0xff]  ;;  %v1737_v19 = vmul.f32 %v18756_v5, %v18989_v28  ;;  %v1004_v27 = vadd.f32 %v972_v40, %v925_v21 }
 0x105   : > { %v1426_v7 = vadd.f32 %v1394_v0, %v1347_v42  ;;  %v926_v60 = vadd.f32 %v894_v9, %v847_v18  ;;  %v816_v42 = vmul.f32 %v18661_v23, %v18834_v29  ;;  %v1238_v40 = vmul.f32 %v18706_v11, %v18897_v61 }
 0x106   : > { %v18975_v48 = vpop.permute.xlu1 %727  ;;  %v1846_v22 = vadd.f32 %v1814_v3, %v1767_v10  ;;  %v1769_v10 = vadd.f32 %v1737_v19, %v1690_v57  ;;  %v817_v9 = vmul.f32 %v18661_v23, %v18847_v20  ;;  %v1317_v29 = vmul.f32 %v18712_v38, %v18955_v36 }
 0x107   : > { %1378 = vperm.xlu1 %17577, %v1061_v14   ;;  %v19008_v14 = vpop.permute.xlu0 %1135  ;;  %v1005_v33 = vadd.f32 %v973_v24, %v926_v60  ;;  %v848_v47 = vadd.f32 %v18669_v25, %v816_v42  ;;  %v974_v24 = vmul.f32 %v18684_v37, %v18963_v53  ;;  %v975_v25 = vmul.f32 %v18684_v37, %v18975_v48  ;;  %v7411_v37 = vld [vmem:[#allocation2 + $0x21] sm:$0xff] }
 0x108   : > { %v1951_v58 = vld [vmem:[#allocation3 + $0x50] sm:$0xff]  ;;  %1796 = vperm.xlu0 %17576, %v1483_v15   ;;  %v1878_v12 = vmax.f32 %v1846_v22, 0.0  ;;  %v17585_v15 = vld [vmem:[%s22635_s4 + $0x78] sm:$0xff]  }
 0x109   : > { %v18997_v41 = vpack.c.bf16 %v1951_v58, %v1950_v43  ;;  %15308 = vmatprep.subr.bf16.mxu0 %v17585_v15  ;;  %v1691_v58 = vadd.f32 %v1659_v56, %v1426_v7  ;;  %v1270_v18 = vadd.f32 %v1238_v40, %v1005_v33  ;;  %v7408_v7 = vld [vmem:[#allocation2 + $0x1] sm:$0xff]  ;;  %v1660_v33 = vmul.f32 %v18735_v17, %v18989_v28  ;;  %v19093_v28 = vld [vmem:[%s22633_s2] ss:$0 sm:$0xff] }
 0x10a   : > { %v18995_v16 = vpop.permute.xlu1 %1543  ;;  %1911 = vst.msk [vmem:[#allocation3 + $0x61] sm:$0xff] %vm435_vm2, %v1878_v12  ;;  %15309 = vmatpush3.bf16.msra.mxu0 %v17585_v15  ;;  %v896_v12 = vmul.f32 %v18674_v26, %v18938_v45  ;;  %v17586_v15 = vld [vmem:[%s22635_s4 + $0xc0] sm:$0xff]   ;;  %v818_v42 = vmul.f32 %v19093_v28, %v18927_v50  ;;  %v1239_v40 = vmul.f32 %v18706_v11, %v18949_v44 }
 0x10b   : > { %1801 = vperm.xlu1 %17577, %v1484_v4   ;;  %v1815_v63 = vmul.f32 %v18780_v54, %v18995_v16  ;;  %15275 = vmatmul.mubr.msk.bf16.gmra.mrb[4].mxu0 %vm435_vm2, %v18997_v41  ;;  %v1738_v32 = vmul.f32 %v18756_v5, %v18995_v16  ;;  %v19027_v13 = vpop.permute.xlu0 %1548  ;;  %v1237_v4 = vmul.f32 %v18706_v11, %v18886_v1  ;;  %v19117_v11 = vld [vmem:[%s22633_s2 + $0x3] ss:$0 sm:$0xff] }
 0x10c   : > { %7024 = vperm.xlu0 %17576, %v6985_v51   ;;  %v1816_v0 = vmul.f32 %v18780_v54, %v19027_v13  ;;  %v1316_v51 = vmul.f32 %v18712_v38, %v18949_v44  ;;  %15342 = vmatprep.subr.bf16.mxu0 %v17586_v15  ;;  %v7412_v15 = vld [vmem:[#allocation2 + $0x31] sm:$0xff] }
 0x10d   : > { %v1847_v31 = vadd.f32 %v1815_v63, %v1768_v52  ;;  %v1269_v43 = vadd.f32 %v1237_v4, %v1004_v27  ;;  %v1770_v34 = vadd.f32 %v1738_v32, %v1691_v58  ;;  %v1395_v52 = vmul.f32 %v18721_v59, %v19008_v14  ;;  %v7410_v58 = vld [vmem:[#allocation2 + $0x19] sm:$0xff] }
 0x10e   : > { %v19020_v6 = vpop.permute.xlu1 %1140  ;;  %v1848_v22 = vadd.f32 %v1816_v0, %v1769_v10  ;;  %v895_v63 = vmul.f32 %v18674_v26, %v18927_v50  ;;  %v19072_v26 = vld [vmem:[%s22634_s3] ss:$0 sm:$0xff] }
 0x10f   : > { %7029 = vperm.xlu1 %17577, %v6986_v62   ;;  %v1879_v8 = vmax.f32 %v1847_v31, 0.0  ;;  %v19044_v62 = vpop.permute.xlu0 %732  ;;  %v1348_v23 = vadd.f32 %v1316_v51, %v1269_v43  ;;  %v1396_v19 = vmul.f32 %v18721_v59, %v19020_v6  ;;  %v849_v56 = vadd.f32 %v19072_v26, %v817_v9 }
 0x110   : > { %7034 = vperm.xlu0 %17576, %v6987_v39   ;;  %v1880_v21 = vmax.f32 %v1848_v22, 0.0  ;;  %v7409_v39 = vld [vmem:[#allocation2 + $0x9] sm:$0xff]  ;;  %v927_v57 = vadd.f32 %v895_v63, %v848_v47  ;;  %v1661_v22 = vmul.f32 %v18735_v17, %v18995_v16  ;;  %v1318_v9 = vmul.f32 %v18712_v38, %v19008_v14  ;;  %v19110_v63 = vld [vmem:[%s22633_s2 + $0x1] ss:$0 sm:$0xff] }
 0x111   : > { %1912 = vst.msk [vmem:[#allocation3 + $0x69] sm:$0xff] %vm435_vm2, %v1879_v8  ;;  %v1427_v27 = vadd.f32 %v1395_v52, %v1348_v23  ;;  %v1952_v32 = vld [vmem:[#allocation3 + $0x60] sm:$0xff]  ;;  %v1349_v8 = vadd.f32 %v1317_v29, %v1270_v18  ;;  %v1240_v50 = vmul.f32 %v19110_v63, %v18955_v36  ;;  %v897_v17 = vmul.f32 %v19117_v11, %v18963_v53 }
 0x112   : > { %v19034_v3 = vpop.permute.xlu1 %1553  ;;  %1913 = vst.msk [vmem:[#allocation3 + $0x79] sm:$0xff] %vm435_vm2, %v1880_v21  ;;  %v1006_v10 = vadd.f32 %v974_v24, %v927_v57  ;;  %v1319_v44 = vmul.f32 %v18712_v38, %v19020_v6 }
 0x113   : > { %v1817_v1 = vmul.f32 %v18780_v54, %v19034_v3  ;;  %7039 = vperm.xlu1 %17577, %v6988_v2   ;;  %v19067_v31 = vpop.permute.xlu0 %1145  ;;  %v1428_v0 = vadd.f32 %v1396_v19, %v1349_v8  ;;  %v1740_v18 = vmul.f32 %v18756_v5, %v19034_v3  ;;  %v850_v19 = vadd.f32 %v19072_v26, %v818_v42 }
 0x114   : > { %7044 = vperm.xlu0 %17576, %v6989_v30   ;;  %v928_v30 = vadd.f32 %v896_v12, %v849_v56  ;;  %v1397_v36 = vmul.f32 %v18721_v59, %v19067_v31 }
 0x115   : > { %v1849_v55 = vadd.f32 %v1817_v1, %v1770_v34  ;;  %v1692_v34 = vadd.f32 %v1660_v33, %v1427_v27  ;;  %v1739_v1 = vmul.f32 %v18756_v5, %v19027_v13  ;;  %v1693_v16 = vadd.f32 %v1661_v22, %v1428_v0 }
 0x116   : > { %v19054_v61 = vpop.permute.xlu1 %737  ;;  %v1007_v51 = vadd.f32 %v975_v25, %v928_v30  ;;  %v19141_v25 = vld [vmem:[%s22633_s2 + $0x6] ss:$0 sm:$0xff] }
 0x117   : > { %v1881_v20 = vmax.f32 %v1849_v55, 0.0  ;;  %7049 = vperm.xlu1 %17577, %v6990_v35   ;;  %v19086_v43 = vpop.permute.xlu0 %742  ;;  %v6991_v35 = vld [vmem:[#allocation2 + $0x48] sm:$0xff]  ;;  %v819_v55 = vmul.f32 %v19093_v28, %v18938_v45  ;;  %v1271_v45 = vadd.f32 %v1239_v40, %v1006_v10  ;;  %v1771_v23 = vadd.f32 %v1739_v1, %v1692_v34  ;;  %v19157_v34 = vld [vmem:[%s22633_s2 + $0x2] ss:$0 sm:$0xff] }
 0x118   : > { %7447 = vperm.xlu0 %17576, %v7408_v7   ;;  %v1953_v60 = vld [vmem:[#allocation3 + $0x68] sm:$0xff]  ;;  %v6992_v7 = vld [vmem:[#allocation2 + $0x50] sm:$0xff]  ;;  %v1272_v12 = vadd.f32 %v1240_v50, %v1007_v51  ;;  %v1772_v57 = vadd.f32 %v1740_v18, %v1693_v16  ;;  %v6993_v51 = vld [vmem:[#allocation2 + $0x60] sm:$0xff]  ;;  %v977_v1 = vmul.f32 %v19141_v25, %v19054_v61  ;;  %v1241_v18 = vmul.f32 %v19110_v63, %v19008_v14 }
 0x119   : > { %1914 = vst.msk [vmem:[#allocation3 + $0x81] sm:$0xff] %vm435_vm2, %v1881_v20  ;;  %v19080_v4 = vpack.c.bf16 %v1953_v60, %v1952_v32  ;;  %v1350_v47 = vadd.f32 %v1318_v9, %v1271_v45  ;;  %v7413_v32 = vld [vmem:[#allocation2 + $0x39] sm:$0xff]  ;;  %v898_v60 = vmul.f32 %v19117_v11, %v18975_v48  ;;  %v851_v33 = vadd.f32 %v19072_v26, %v819_v55  ;;  %v6994_v16 = vld [vmem:[#allocation2 + $0x68] sm:$0xff]  ;;  %v19194_v14 = vld [vmem:[%s22633_s2 + $0x4] ss:$0 sm:$0xff] }
 0x11a   : > { %v19078_v2 = vpop.permute.xlu1 %1150  ;;  %v1351_v56 = vadd.f32 %v1319_v44, %v1272_v12  ;;  %v1663_v9 = vmul.f32 %v19157_v34, %v19034_v3 }
 0x11b   : > { %7452 = vperm.xlu1 %17577, %v7409_v39   ;;  %15278 = vmatprep.mubr.msk.bf16.mxu0 %vm435_vm2, %v19080_v4  ;;  %v19127_v29 = vpop.permute.xlu0 %1558  ;;  %v1398_v20 = vmul.f32 %v18721_v59, %v19078_v2  ;;  %v1954_v39 = vld [vmem:[#allocation3 + $0x78] sm:$0xff]  ;;  %v976_v59 = vmul.f32 %v19141_v25, %v19044_v62  ;;  %v1429_v8 = vadd.f32 %v1397_v36, %v1350_v47 }
 0x11c   : > { %7457 = vperm.xlu0 %17576, %v7410_v58   ;;  %v1818_v38 = vmul.f32 %v18780_v54, %v19127_v29  ;;  %v930_v50 = vadd.f32 %v898_v60, %v851_v33  ;;  %v821_v60 = vmul.f32 %v19093_v28, %v18975_v48  ;;  %v1321_v33 = vmul.f32 %v19194_v14, %v19078_v2  ;;  %v7833_v48 = vld [vmem:[#allocation2 + $0x1a] sm:$0xff] }
 0x11d   : > { %v1430_v10 = vadd.f32 %v1398_v20, %v1351_v56  ;;  %v7831_v20 = vld [vmem:[#allocation2 + $0x2] sm:$0xff]  ;;  %v820_v56 = vmul.f32 %v19093_v28, %v18963_v53  ;;  %v899_v53 = vmul.f32 %v19117_v11, %v19044_v62 }
 0x11e   : > { %v19103_v52 = vpop.permute.xlu1 %747  ;;  %v1850_v27 = vadd.f32 %v1818_v38, %v1771_v23 }
 0x11f   : > { %7462 = vperm.xlu1 %17577, %v7411_v37   ;;  %v19151_v30 = vpop.permute.xlu0 %1155  ;;  %v929_v37 = vadd.f32 %v897_v17, %v850_v19  ;;  %v1695_v36 = vadd.f32 %v1663_v9, %v1430_v10  ;;  %v7832_v19 = vld [vmem:[#allocation2 + $0xa] sm:$0xff] }
 0x120   : > { %v1955_v21 = vld [vmem:[#allocation3 + $0x80] sm:$0xff]  ;;  %7054 = vperm.xlu0 %17576, %v6991_v35   ;;  %v1882_v0 = vmax.f32 %v1850_v27, 0.0  ;;  %v19166_v35 = vld [vmem:[%s22633_s2 + $0x5] ss:$0 sm:$0xff] }
 0x121   : > { %v19135_v24 = vpack.c.bf16 %v1955_v21, %v1954_v39  ;;  %v1741_v42 = vmul.f32 %v19166_v35, %v19127_v29  ;;  %v1008_v55 = vadd.f32 %v976_v59, %v929_v37  ;;  %v1009_v21 = vadd.f32 %v977_v1, %v930_v50  ;;  %v7834_v1 = vld [vmem:[#allocation2 + $0x22] sm:$0xff] }
 0x122   : > { %v19133_v5 = vpop.permute.xlu1 %1563  ;;  %1915 = vst.msk [vmem:[#allocation3 + $0x91] sm:$0xff] %vm435_vm2, %v1882_v0  ;;  %v1320_v39 = vmul.f32 %v19194_v14, %v19067_v31  ;;  %v1242_v59 = vmul.f32 %v19110_v63, %v19020_v6  ;;  %v900_v0 = vmul.f32 %v19117_v11, %v19054_v61  ;;  %v979_v50 = vmul.f32 %v19141_v25, %v19103_v52 }
 0x123   : > { %7059 = vperm.xlu1 %17577, %v6992_v7   ;;  %v1819_v58 = vmul.f32 %v18780_v54, %v19133_v5  ;;  %15279 = vmatmul.mubr.msk.bf16.gmra.mrb[8].mxu0 %vm435_vm2, %v19135_v24  ;;  %v1662_v54 = vmul.f32 %v19157_v34, %v19027_v13  ;;  %v1742_v13 = vmul.f32 %v19166_v35, %v19133_v5  ;;  %v19177_v45 = vpop.permute.xlu0 %1568  ;;  %v19185_v7 = vld [vmem:[%s22633_s2 + $0x8] ss:$0 sm:$0xff] }
 0x124   : > { %7467 = vperm.xlu0 %17576, %v7412_v15   ;;  %v1820_v12 = vmul.f32 %v19185_v7, %v19177_v45  ;;  %v1273_v38 = vadd.f32 %v1241_v18, %v1008_v55  ;;  %v1274_v6 = vadd.f32 %v1242_v59, %v1009_v21 }
 0x125   : > { %v1851_v40 = vadd.f32 %v1819_v58, %v1772_v57  ;;  %v1694_v17 = vadd.f32 %v1662_v54, %v1429_v8  ;;  %v1774_v15 = vadd.f32 %v1742_v13, %v1695_v36  ;;  %v19211_v57 = vld [vmem:[%s22633_s2 + $0x7] ss:$0 sm:$0xff]  ;;  %v853_v13 = vadd.f32 %v19072_v26, %v821_v60  ;;  %v7835_v60 = vld [vmem:[#allocation2 + $0x32] sm:$0xff] }
 0x126   : > { %v19170_v22 = vpop.permute.xlu1 %1160  ;;  %v1399_v8 = vmul.f32 %v19211_v57, %v19151_v30  ;;  %v1353_v36 = vadd.f32 %v1321_v33, %v1274_v6  ;;  %v823_v33 = vmul.f32 %v19093_v28, %v19054_v61 }
 0x127   : > { %7472 = vperm.xlu1 %17577, %v7413_v32   ;;  %v1883_v44 = vmax.f32 %v1851_v40, 0.0  ;;  %v1773_v3 = vadd.f32 %v1741_v42, %v1694_v17  ;;  %v19204_v32 = vpop.permute.xlu0 %752  ;;  %v852_v42 = vadd.f32 %v19072_v26, %v820_v56  ;;  %v978_v40 = vmul.f32 %v19141_v25, %v19086_v43 }
 0x128   : > { %7064 = vperm.xlu0 %17576, %v6993_v51   ;;  %v1352_v51 = vadd.f32 %v1320_v39, %v1273_v38  ;;  %v1400_v9 = vmul.f32 %v19211_v57, %v19170_v22  ;;  %v1664_v38 = vmul.f32 %v19157_v34, %v19127_v29  ;;  %v7415_v39 = vld [vmem:[#allocation2 + $0x51] sm:$0xff]  ;;  %v1243_v29 = vmul.f32 %v19110_v63, %v19067_v31 }
 0x129   : > { %1916 = vst.msk [vmem:[#allocation3 + $0x99] sm:$0xff] %vm435_vm2, %v1883_v44  ;;  %v1852_v27 = vadd.f32 %v1820_v12, %v1773_v3  ;;  %v1956_v44 = vld [vmem:[#allocation3 + $0x90] sm:$0xff]  ;;  %v931_v18 = vadd.f32 %v899_v53, %v852_v42  ;;  %v7414_v12 = vld [vmem:[#allocation2 + $0x49] sm:$0xff]  ;;  %v1322_v53 = vmul.f32 %v19194_v14, %v19151_v30  ;;  %v1323_v31 = vmul.f32 %v19194_v14, %v19170_v22 }
 0x12a   : > { %v19189_v23 = vpop.permute.xlu1 %1573  ;;  %v1431_v17 = vadd.f32 %v1399_v8, %v1352_v51  ;;  %v822_v8 = vmul.f32 %v19093_v28, %v19044_v62  ;;  %v901_v62 = vmul.f32 %v19117_v11, %v19086_v43 }
 0x12b   : > { %v1821_v47 = vmul.f32 %v19185_v7, %v19189_v23  ;;  %7069 = vperm.xlu1 %17577, %v6994_v16   ;;  %v1884_v37 = vmax.f32 %v1852_v27, 0.0  ;;  %v19229_v55 = vpop.permute.xlu0 %1165  ;;  %v1743_v27 = vmul.f32 %v19166_v35, %v19177_v45 }
 0x12c   : > { %7870 = vperm.xlu0 %17576, %v7831_v20   ;;  %v932_v20 = vadd.f32 %v900_v0, %v853_v13  ;;  %v1696_v59 = vadd.f32 %v1664_v38, %v1431_v17  ;;  %v1744_v0 = vmul.f32 %v19166_v35, %v19189_v23  ;;  %v1401_v51 = vmul.f32 %v19211_v57, %v19229_v55  ;;  %v6996_v38 = vld [vmem:[#allocation2 + $0x80] sm:$0xff] }
 0x12d   : > { %v1853_v58 = vadd.f32 %v1821_v47, %v1774_v15  ;;  %1917 = vst.msk [vmem:[#allocation3 + $0xa9] sm:$0xff] %vm435_vm2, %v1884_v37  ;;  %v1010_v15 = vadd.f32 %v978_v40, %v931_v18  ;;  %v1432_v47 = vadd.f32 %v1400_v9, %v1353_v36  ;;  %v1244_v37 = vmul.f32 %v19110_v63, %v19078_v2 }
 0x12e   : > { %v19219_v10 = vpop.permute.xlu1 %757  ;;  %v1011_v56 = vadd.f32 %v979_v50, %v932_v20  ;;  %v1775_v42 = vadd.f32 %v1743_v27, %v1696_v59  ;;  %v854_v18 = vadd.f32 %v19072_v26, %v822_v8  ;;  %v855_v27 = vadd.f32 %v19072_v26, %v823_v33 }
 0x12f   : > { %v1885_v54 = vmax.f32 %v1853_v58, 0.0  ;;  %7875 = vperm.xlu1 %17577, %v7832_v19   ;;  %v19243_v19 = vpop.permute.xlu0 %762  ;;  %v1665_v58 = vmul.f32 %v19157_v34, %v19133_v5  ;;  %v1667_v33 = vmul.f32 %v19157_v34, %v19189_v23 }
 0x130   : > { %7880 = vperm.xlu0 %17576, %v7833_v48   ;;  %v1957_v16 = vld [vmem:[#allocation3 + $0x98] sm:$0xff]  ;;  %v1275_v48 = vadd.f32 %v1243_v29, %v1010_v15  ;;  %v1276_v2 = vadd.f32 %v1244_v37, %v1011_v56  ;;  %v981_v37 = vmul.f32 %v19141_v25, %v19219_v10 }
 0x131   : > { %1918 = vst.msk [vmem:[#allocation3 + $0xb1] sm:$0xff] %vm435_vm2, %v1885_v54  ;;  %v19237_v3 = vpack.c.bf16 %v1957_v16, %v1956_v44  ;;  %v1697_v5 = vadd.f32 %v1665_v58, %v1432_v47  ;;  %v6995_v16 = vld [vmem:[#allocation2 + $0x78] sm:$0xff]  ;;  %v7416_v58 = vld [vmem:[#allocation2 + $0x61] sm:$0xff] }
 0x132   : > { %v19235_v21 = vpop.permute.xlu1 %1170  ;;  %v1354_v50 = vadd.f32 %v1322_v53, %v1275_v48  ;;  %v1355_v36 = vadd.f32 %v1323_v31, %v1276_v2  ;;  %v1666_v53 = vmul.f32 %v19157_v34, %v19177_v45  ;;  %v7417_v2 = vld [vmem:[#allocation2 + $0x69] sm:$0xff] }
 0x133   : > { %7885 = vperm.xlu1 %17577, %v7834_v1   ;;  %15282 = vmatprep.mubr.msk.bf16.mxu0 %vm435_vm2, %v19237_v3  ;;  %v19269_v54 = vpop.permute.xlu0 %1578  ;;  %v7836_v1 = vld [vmem:[#allocation2 + $0x3a] sm:$0xff]  ;;  %v1402_v40 = vmul.f32 %v19211_v57, %v19235_v21  ;;  %v1776_v15 = vadd.f32 %v1744_v0, %v1697_v5 }
 0x134   : > { %7477 = vperm.xlu0 %17576, %v7414_v12   ;;  %v1822_v9 = vmul.f32 %v19185_v7, %v19269_v54  ;;  %v1958_v13 = vld [vmem:[#allocation3 + $0xa8] sm:$0xff]  ;;  %v980_v12 = vmul.f32 %v19141_v25, %v19204_v32  ;;  %v1433_v47 = vadd.f32 %v1401_v51, %v1354_v50  ;;  %v1745_v31 = vmul.f32 %v19166_v35, %v19269_v54 }
 0x135   : > { %v1434_v8 = vadd.f32 %v1402_v40, %v1355_v36  ;;  %v1324_v36 = vmul.f32 %v19194_v14, %v19229_v55 }
 0x136   : > { %v19255_v6 = vpop.permute.xlu1 %767  ;;  %v1854_v20 = vadd.f32 %v1822_v9, %v1775_v42  ;;  %v1698_v51 = vadd.f32 %v1666_v53, %v1433_v47  ;;  %v1245_v42 = vmul.f32 %v19110_v63, %v19151_v30  ;;  %v6997_v9 = vld [vmem:[#allocation2 + $0x90] sm:$0xff] }
 0x137   : > { %7482 = vperm.xlu1 %17577, %v7415_v39   ;;  %v902_v39 = vmul.f32 %v19117_v11, %v19103_v52  ;;  %v19288_v59 = vpop.permute.xlu0 %1175  ;;  %v1699_v40 = vadd.f32 %v1667_v33, %v1434_v8  ;;  %v903_v8 = vmul.f32 %v19117_v11, %v19204_v32  ;;  %v7837_v53 = vld [vmem:[#allocation2 + $0x4a] sm:$0xff] }
 0x138   : > { %v1959_v61 = vld [vmem:[#allocation3 + $0xb0] sm:$0xff]  ;;  %7890 = vperm.xlu0 %17576, %v7835_v60   ;;  %v933_v60 = vadd.f32 %v901_v62, %v854_v18  ;;  %v1886_v29 = vmax.f32 %v1854_v20, 0.0  ;;  %v6998_v20 = vld [vmem:[#allocation2 + $0x98] sm:$0xff] }
 0x139   : > { %v19277_v44 = vpack.c.bf16 %v1959_v61, %v1958_v13  ;;  %v934_v45 = vadd.f32 %v902_v39, %v855_v27  ;;  %v1777_v13 = vadd.f32 %v1745_v31, %v1698_v51  ;;  %v1246_v39 = vmul.f32 %v19110_v63, %v19170_v22 }
 0x13a   : > { %v19275_v17 = vpop.permute.xlu1 %1583  ;;  %v1012_v62 = vadd.f32 %v980_v12, %v933_v60  ;;  %1919 = vst.msk [vmem:[#allocation3 + $0xc1] sm:$0xff] %vm435_vm2, %v1886_v29  ;;  %v1403_v27 = vmul.f32 %v19211_v57, %v19288_v59 }
 0x13b   : > { %7895 = vperm.xlu1 %17577, %v7836_v1   ;;  %v1823_v56 = vmul.f32 %v19185_v7, %v19275_v17  ;;  %15283 = vmatmul.mubr.msk.bf16.gmra.mrb[12].mxu0 %vm435_vm2, %v19277_v44  ;;  %v1746_v0 = vmul.f32 %v19166_v35, %v19275_v17  ;;  %v19304_v1 = vpop.permute.xlu0 %1588  ;;  %v1013_v23 = vadd.f32 %v981_v37, %v934_v45 }
 0x13c   : > { %7074 = vperm.xlu0 %17576, %v6995_v16   ;;  %v1824_v50 = vmul.f32 %v19185_v7, %v19304_v1  ;;  %v1277_v18 = vadd.f32 %v1245_v42, %v1012_v62  ;;  %v904_v37 = vmul.f32 %v19117_v11, %v19219_v10  ;;  %v982_v62 = vmul.f32 %v19141_v25, %v19243_v19 }
 0x13d   : > { %v1855_v48 = vadd.f32 %v1823_v56, %v1776_v15  ;;  %v1778_v12 = vadd.f32 %v1746_v0, %v1699_v40  ;;  %v825_v56 = vmul.f32 %v19093_v28, %v19103_v52  ;;  %v1278_v29 = vadd.f32 %v1246_v39, %v1013_v23 }
 0x13e   : > { %v19297_v5 = vpop.permute.xlu1 %1180  ;;  %v1856_v15 = vadd.f32 %v1824_v50, %v1777_v13  ;;  %v1356_v52 = vadd.f32 %v1324_v36, %v1277_v18  ;;  %v7418_v36 = vld [vmem:[#allocation2 + $0x79] sm:$0xff] }
 0x13f   : > { %7079 = vperm.xlu1 %17577, %v6996_v38   ;;  %v1887_v61 = vmax.f32 %v1855_v48, 0.0  ;;  %v824_v38 = vmul.f32 %v19093_v28, %v19086_v43  ;;  %v19321_v47 = vpop.permute.xlu0 %772  ;;  %v1325_v43 = vmul.f32 %v19194_v14, %v19235_v21  ;;  %v7838_v48 = vld [vmem:[#allocation2 + $0x52] sm:$0xff]  ;;  %v1404_v0 = vmul.f32 %v19211_v57, %v19297_v5 }
 0x140   : > { %7487 = vperm.xlu0 %17576, %v7416_v58   ;;  %v1888_v58 = vmax.f32 %v1856_v15, 0.0  ;;  %v857_v51 = vadd.f32 %v19072_v26, %v825_v56  ;;  %v1435_v42 = vadd.f32 %v1403_v27, %v1356_v52  ;;  %v905_v52 = vmul.f32 %v19117_v11, %v19243_v19 }
 0x141   : > { %1920 = vst.msk [vmem:[#allocation3 + $0xc9] sm:$0xff] %vm435_vm2, %v1887_v61  ;;  %v856_v33 = vadd.f32 %v19072_v26, %v824_v38  ;;  %v826_v61 = vmul.f32 %v19093_v28, %v19204_v32  ;;  %v1960_v40 = vld [vmem:[#allocation3 + $0xc0] sm:$0xff]  ;;  %v1357_v13 = vadd.f32 %v1325_v43, %v1278_v29  ;;  %v1668_v32 = vmul.f32 %v19157_v34, %v19269_v54 }
 0x142   : > { %v19311_v16 = vpop.permute.xlu1 %1593  ;;  %1921 = vst.msk [vmem:[#allocation3 + $0xd9] sm:$0xff] %vm435_vm2, %v1888_v58  ;;  %v827_v54 = vmul.f32 %v19093_v28, %v19219_v10  ;;  %v1247_v29 = vmul.f32 %v19110_v63, %v19229_v55  ;;  %v1669_v43 = vmul.f32 %v19157_v34, %v19275_v17  ;;  %v1326_v58 = vmul.f32 %v19194_v14, %v19288_v59 }
 0x143   : > { %v1825_v30 = vmul.f32 %v19185_v7, %v19311_v16  ;;  %7492 = vperm.xlu1 %17577, %v7417_v2   ;;  %v19341_v45 = vpop.permute.xlu0 %1185  ;;  %v983_v2 = vmul.f32 %v19141_v25, %v19255_v6  ;;  %v935_v23 = vadd.f32 %v903_v8, %v856_v33  ;;  %v1436_v38 = vadd.f32 %v1404_v0, %v1357_v13  ;;  %v7839_v8 = vld [vmem:[#allocation2 + $0x62] sm:$0xff]  ;;  %v7840_v0 = vld [vmem:[#allocation2 + $0x6a] sm:$0xff] }
 0x144   : > { %7084 = vperm.xlu0 %17576, %v6997_v9   ;;  %v858_v15 = vadd.f32 %v19072_v26, %v826_v61  ;;  %v1700_v27 = vadd.f32 %v1668_v32, %v1435_v42  ;;  %v906_v10 = vmul.f32 %v19117_v11, %v19255_v6  ;;  %v1327_v55 = vmul.f32 %v19194_v14, %v19297_v5 }
 0x145   : > { %v1857_v60 = vadd.f32 %v1825_v30, %v1778_v12  ;;  %v936_v12 = vadd.f32 %v904_v37, %v857_v51  ;;  %v7419_v30 = vld [vmem:[#allocation2 + $0x81] sm:$0xff]  ;;  %v1248_v37 = vmul.f32 %v19110_v63, %v19235_v21  ;;  %v1701_v17 = vadd.f32 %v1669_v43, %v1436_v38 }
 0x146   : > { %v19331_v22 = vpop.permute.xlu1 %777  ;;  %v1405_v33 = vmul.f32 %v19211_v57, %v19341_v45 }
 0x147   : > { %v1889_v31 = vmax.f32 %v1857_v60, 0.0  ;;  %7089 = vperm.xlu1 %17577, %v6998_v20   ;;  %v1014_v20 = vadd.f32 %v982_v62, %v935_v23  ;;  %v19357_v39 = vpop.permute.xlu0 %782  ;;  %v1015_v56 = vadd.f32 %v983_v2, %v936_v12  ;;  %v1747_v60 = vmul.f32 %v19166_v35, %v19304_v1 }
 0x148   : > { %7900 = vperm.xlu0 %17576, %v7837_v53   ;;  %v1961_v9 = vld [vmem:[#allocation3 + $0xc8] sm:$0xff]  ;;  %v859_v23 = vadd.f32 %v19072_v26, %v827_v54  ;;  %v985_v38 = vmul.f32 %v19141_v25, %v19331_v22 }
 0x149   : > { %1922 = vst.msk [vmem:[#allocation3 + $0xe1] sm:$0xff] %vm435_vm2, %v1889_v31  ;;  %v19351_v18 = vpack.c.bf16 %v1961_v9, %v1960_v40  ;;  %v1279_v31 = vadd.f32 %v1247_v29, %v1014_v20  ;;  %v1280_v51 = vadd.f32 %v1248_v37, %v1015_v56  ;;  %v1779_v61 = vadd.f32 %v1747_v60, %v1700_v27  ;;  %v1962_v40 = vld [vmem:[#allocation3 + $0xd8] sm:$0xff]  ;;  %v7000_v27 = vld [vmem:[#allocation2 + $0xb0] sm:$0xff] }
 0x14a   : > { %v19349_v50 = vpop.permute.xlu1 %1190  ;;  %v6999_v9 = vld [vmem:[#allocation2 + $0xa8] sm:$0xff]  ;;  %v937_v60 = vadd.f32 %v905_v52, %v858_v15 }
 0x14b   : > { %7905 = vperm.xlu1 %17577, %v7838_v48   ;;  %15286 = vmatprep.mubr.msk.bf16.mxu0 %vm435_vm2, %v19351_v18  ;;  %v1748_v48 = vmul.f32 %v19166_v35, %v19311_v16  ;;  %v19384_v62 = vpop.permute.xlu0 %1598  ;;  %v1406_v2 = vmul.f32 %v19211_v57, %v19349_v50  ;;  %v1358_v13 = vadd.f32 %v1326_v58, %v1279_v31 }
 0x14c   : > { %7497 = vperm.xlu0 %17576, %v7418_v36   ;;  %v1826_v42 = vmul.f32 %v19185_v7, %v19384_v62  ;;  %v984_v36 = vmul.f32 %v19141_v25, %v19321_v47  ;;  %v1359_v20 = vadd.f32 %v1327_v55, %v1280_v51  ;;  %v938_v58 = vadd.f32 %v906_v10, %v859_v23  ;;  %v7420_v55 = vld [vmem:[#allocation2 + $0x91] sm:$0xff] }
 0x14d   : > { %v1437_v54 = vadd.f32 %v1405_v33, %v1358_v13  ;;  %v1670_v31 = vmul.f32 %v19157_v34, %v19304_v1  ;;  %v1749_v15 = vmul.f32 %v19166_v35, %v19384_v62  ;;  %v1671_v33 = vmul.f32 %v19157_v34, %v19311_v16 }
 0x14e   : > { %v19370_v53 = vpop.permute.xlu1 %787  ;;  %v1858_v56 = vadd.f32 %v1826_v42, %v1779_v61  ;;  %v1017_v10 = vadd.f32 %v985_v38, %v938_v58  ;;  %v829_v1 = vmul.f32 %v19093_v28, %v19255_v6  ;;  %v1249_v51 = vmul.f32 %v19110_v63, %v19288_v59 }
 0x14f   : > { %7502 = vperm.xlu1 %17577, %v7419_v30   ;;  %v828_v30 = vmul.f32 %v19093_v28, %v19243_v19  ;;  %v19405_v43 = vpop.permute.xlu0 %1195  ;;  %v1438_v19 = vadd.f32 %v1406_v2, %v1359_v20  ;;  %v1702_v61 = vadd.f32 %v1670_v31, %v1437_v54  ;;  %v1250_v16 = vmul.f32 %v19110_v63, %v19297_v5  ;;  %v7001_v5 = vld [vmem:[#allocation2 + $0xc0] sm:$0xff] }
 0x150   : > { %v1963_v21 = vld [vmem:[#allocation3 + $0xe0] sm:$0xff]  ;;  %7910 = vperm.xlu0 %17576, %v7839_v8   ;;  %v1780_v8 = vadd.f32 %v1748_v48, %v1701_v17  ;;  %v1890_v37 = vmax.f32 %v1858_v56, 0.0  ;;  %v907_v23 = vmul.f32 %v19117_v11, %v19321_v47  ;;  %v1328_v59 = vmul.f32 %v19194_v14, %v19341_v45 }
 0x151   : > { %v19395_v32 = vpack.c.bf16 %v1963_v21, %v1962_v40  ;;  %v1016_v21 = vadd.f32 %v984_v36, %v937_v60  ;;  %v860_v48 = vadd.f32 %v19072_v26, %v828_v30  ;;  %v7421_v40 = vld [vmem:[#allocation2 + $0x99] sm:$0xff]  ;;  %v1703_v13 = vadd.f32 %v1671_v33, %v1438_v19  ;;  %v7002_v60 = vld [vmem:[#allocation2 + $0xc8] sm:$0xff] }
 0x152   : > { %v19393_v12 = vpop.permute.xlu1 %1603  ;;  %1923 = vst.msk [vmem:[#allocation3 + $0xf1] sm:$0xff] %vm435_vm2, %v1890_v37  ;;  %v1781_v36 = vadd.f32 %v1749_v15, %v1702_v61  ;;  %v1282_v38 = vadd.f32 %v1250_v16, %v1017_v10  ;;  %v1329_v56 = vmul.f32 %v19194_v14, %v19349_v50  ;;  %v908_v54 = vmul.f32 %v19117_v11, %v19331_v22 }
 0x153   : > { %7915 = vperm.xlu1 %17577, %v7840_v0   ;;  %v1827_v29 = vmul.f32 %v19185_v7, %v19393_v12  ;;  %15287 = vmatmul.mubr.msk.bf16.gmra.mrb[16].mxu0 %vm435_vm2, %v19395_v32  ;;  %v1750_v0 = vmul.f32 %v19166_v35, %v19393_v12  ;;  %v19423_v42 = vpop.permute.xlu0 %1608  ;;  %v1281_v6 = vadd.f32 %v1249_v51, %v1016_v21 }
 0x154   : > { %7094 = vperm.xlu0 %17576, %v6999_v9   ;;  %v830_v9 = vmul.f32 %v19093_v28, %v19321_v47  ;;  %v1828_v30 = vmul.f32 %v19185_v7, %v19423_v42  ;;  %v861_v37 = vadd.f32 %v19072_v26, %v829_v1  ;;  %v1361_v1 = vadd.f32 %v1329_v56, %v1282_v38 }
 0x155   : > { %v1859_v52 = vadd.f32 %v1827_v29, %v1780_v8  ;;  %v1782_v47 = vadd.f32 %v1750_v0, %v1703_v13  ;;  %v831_v8 = vmul.f32 %v19093_v28, %v19331_v22  ;;  %v986_v29 = vmul.f32 %v19141_v25, %v19357_v39  ;;  %v7841_v0 = vld [vmem:[#allocation2 + $0x7a] sm:$0xff] }
 0x156   : > { %v19411_v17 = vpop.permute.xlu1 %1200  ;;  %v1860_v58 = vadd.f32 %v1828_v30, %v1781_v36  ;;  %v862_v15 = vadd.f32 %v19072_v26, %v830_v9  ;;  %v987_v22 = vmul.f32 %v19141_v25, %v19370_v53  ;;  %v1360_v51 = vadd.f32 %v1328_v59, %v1281_v6 }
 0x157   : > { %7099 = vperm.xlu1 %17577, %v7000_v27   ;;  %v1891_v2 = vmax.f32 %v1859_v52, 0.0  ;;  %v19448_v19 = vpop.permute.xlu0 %792  ;;  %v1408_v31 = vmul.f32 %v19211_v57, %v19411_v17  ;;  %v939_v52 = vadd.f32 %v907_v23, %v860_v48  ;;  %v832_v61 = vmul.f32 %v19093_v28, %v19357_v39 }
 0x158   : > { %7507 = vperm.xlu0 %17576, %v7420_v55   ;;  %v1407_v55 = vmul.f32 %v19211_v57, %v19405_v43  ;;  %v1892_v33 = vmax.f32 %v1860_v58, 0.0  ;;  %v863_v16 = vadd.f32 %v19072_v26, %v831_v8  ;;  %v940_v13 = vadd.f32 %v908_v54, %v861_v37 }
 0x159   : > { %1924 = vst.msk [vmem:[#allocation3 + $0xf9] sm:$0xff] %vm435_vm2, %v1891_v2  ;;  %v1251_v48 = vmul.f32 %v19110_v63, %v19341_v45  ;;  %v1018_v9 = vadd.f32 %v986_v29, %v939_v52  ;;  %v1252_v6 = vmul.f32 %v19110_v63, %v19349_v50  ;;  %v909_v59 = vmul.f32 %v19117_v11, %v19357_v39  ;;  %v1964_v26 = vld [vmem:[#allocation3 + $0xf0] sm:$0xff]  ;;  %v7422_v50 = vld [vmem:[#allocation2 + $0xa9] sm:$0xff] }
 0x15a   : > { %v19436_v20 = vpop.permute.xlu1 %1613  ;;  %1925 = vst.msk [vmem:[#allocation3 + $0x109] sm:$0xff] %vm435_vm2, %v1892_v33  ;;  %v1439_v36 = vadd.f32 %v1407_v55, %v1360_v51  ;;  %v1440_v30 = vadd.f32 %v1408_v31, %v1361_v1  ;;  %v833_v45 = vmul.f32 %v19093_v28, %v19370_v53  ;;  %v910_v38 = vmul.f32 %v19117_v11, %v19370_v53  ;;  %v19484_v39 = vld [vmem:[%s22634_s3] ss:$0 sm:$0xff]  ;;  %v7423_v53 = vld [vmem:[#allocation2 + $0xb1] sm:$0xff]  ;;  %v19513_v1 = vld [vmem:[%s22633_s2 + $0x1] ss:$0 sm:$0xff] }
 0x15b   : > { %v1829_v27 = vmul.f32 %v19185_v7, %v19436_v20  ;;  %7512 = vperm.xlu1 %17577, %v7421_v40   ;;  %v7842_v40 = vld [vmem:[#allocation2 + $0x82] sm:$0xff]  ;;  %v19466_v23 = vpop.permute.xlu0 %1205  ;;  %v1019_v56 = vadd.f32 %v987_v22, %v940_v13  ;;  %v1673_v28 = vmul.f32 %v19157_v34, %v19393_v12  ;;  %v1330_v11 = vmul.f32 %v19194_v14, %v19405_v43  ;;  %v7843_v12 = vld [vmem:[#allocation2 + $0x92] sm:$0xff] }
 0x15c   : > { %7104 = vperm.xlu0 %17576, %v7001_v5   ;;  %v1283_v8 = vadd.f32 %v1251_v48, %v1018_v9  ;;  %v1331_v54 = vmul.f32 %v19194_v14, %v19411_v17  ;;  %v1751_v29 = vmul.f32 %v19166_v35, %v19423_v42  ;;  %v988_v58 = vmul.f32 %v19141_v25, %v19448_v19 }
 0x15d   : > { %v1861_v21 = vadd.f32 %v1829_v27, %v1782_v47  ;;  %v864_v27 = vadd.f32 %v19484_v39, %v832_v61  ;;  %v1705_v55 = vadd.f32 %v1673_v28, %v1440_v30  ;;  %v1752_v31 = vmul.f32 %v19166_v35, %v19436_v20 }
 0x15e   : > { %v19458_v10 = vpop.permute.xlu1 %797  ;;  %v941_v52 = vadd.f32 %v909_v59, %v862_v15  ;;  %v865_v22 = vadd.f32 %v19484_v39, %v833_v45  ;;  %v942_v33 = vadd.f32 %v910_v38, %v863_v16  ;;  %v1253_v61 = vmul.f32 %v19513_v1, %v19405_v43  ;;  %v7003_v45 = vld [vmem:[#allocation2 + $0xd8] sm:$0xff] }
 0x15f   : > { %v1893_v2 = vmax.f32 %v1861_v21, 0.0  ;;  %7109 = vperm.xlu1 %17577, %v7002_v60   ;;  %v1672_v60 = vmul.f32 %v19157_v34, %v19384_v62  ;;  %v19501_v62 = vpop.permute.xlu0 %871  ;;  %v989_v21 = vmul.f32 %v19141_v25, %v19458_v10  ;;  %v1362_v35 = vadd.f32 %v1330_v11, %v1283_v8  ;;  %v19520_v25 = vld [vmem:[%s22633_s2 + $0x3] ss:$0 sm:$0xff] }
 0x160   : > { %7920 = vperm.xlu0 %17576, %v7841_v0   ;;  %v1965_v5 = vld [vmem:[#allocation3 + $0xf8] sm:$0xff]  ;;  %v1284_v0 = vadd.f32 %v1252_v6, %v1019_v56  ;;  %v911_v15 = vmul.f32 %v19520_v25, %v19448_v19  ;;  %v1674_v43 = vmul.f32 %v19157_v34, %v19423_v42  ;;  %v1020_v13 = vadd.f32 %v988_v58, %v941_v52  ;;  %v7844_v6 = vld [vmem:[#allocation2 + $0x9a] sm:$0xff] }
 0x161   : > { %1926 = vst.msk [vmem:[#allocation3 + $0x111] sm:$0xff] %vm435_vm2, %v1893_v2  ;;  %v19479_v63 = vpack.c.bf16 %v1965_v5, %v1964_v26  ;;  %v1704_v37 = vadd.f32 %v1672_v60, %v1439_v36  ;;  %v1409_v2 = vmul.f32 %v19211_v57, %v19466_v23  ;;  %v1675_v36 = vmul.f32 %v19157_v34, %v19436_v20  ;;  %v1966_v5 = vld [vmem:[#allocation3 + $0x108] sm:$0xff]  ;;  %v7004_v60 = vld [vmem:[#allocation2 + $0xe0] sm:$0xff] }
 0x162   : > { %v19477_v47 = vpop.permute.xlu1 %1210  ;;  %v1363_v16 = vadd.f32 %v1331_v54, %v1284_v0  ;;  %v1784_v30 = vadd.f32 %v1752_v31, %v1705_v55  ;;  %v1021_v26 = vadd.f32 %v989_v21, %v942_v33  ;;  %v943_v34 = vadd.f32 %v911_v15, %v864_v27  ;;  %v19545_v20 = vld [vmem:[%s22633_s2 + $0x6] ss:$0 sm:$0xff] }
 0x163   : > { %7925 = vperm.xlu1 %17577, %v7842_v40   ;;  %15290 = vmatprep.mubr.msk.bf16.mxu0 %vm435_vm2, %v19479_v63  ;;  %v1254_v40 = vmul.f32 %v19513_v1, %v19411_v17  ;;  %v19530_v48 = vpop.permute.xlu0 %1618  ;;  %v1783_v59 = vadd.f32 %v1751_v29, %v1704_v37  ;;  %v912_v17 = vmul.f32 %v19520_v25, %v19458_v10 }
 0x164   : > { %7517 = vperm.xlu0 %17576, %v7422_v50   ;;  %v1410_v42 = vmul.f32 %v19211_v57, %v19477_v47  ;;  %v1830_v38 = vmul.f32 %v19185_v7, %v19530_v48  ;;  %v1441_v28 = vadd.f32 %v1409_v2, %v1362_v35  ;;  %v990_v11 = vmul.f32 %v19545_v20, %v19501_v62  ;;  %v7424_v35 = vld [vmem:[#allocation2 + $0xc1] sm:$0xff] }
 0x165   : > { %v1285_v8 = vadd.f32 %v1253_v61, %v1020_v13  ;;  %v1332_v54 = vmul.f32 %v19194_v14, %v19466_v23  ;;  %v1333_v37 = vmul.f32 %v19194_v14, %v19477_v47  ;;  %v944_v52 = vadd.f32 %v912_v17, %v865_v22 }
 0x166   : > { %v19508_v51 = vpop.permute.xlu1 %876  ;;  %v1862_v58 = vadd.f32 %v1830_v38, %v1783_v59  ;;  %v1442_v21 = vadd.f32 %v1410_v42, %v1363_v16  ;;  %v1022_v14 = vadd.f32 %v990_v11, %v943_v34  ;;  %v1706_v15 = vadd.f32 %v1674_v43, %v1441_v28  ;;  %v7425_v59 = vld [vmem:[#allocation2 + $0xc9] sm:$0xff]  ;;  %v19588_v43 = vld [vmem:[%s22633_s2 + $0x8] ss:$0 sm:$0xff]  ;;  %v19598_v11 = vld [vmem:[%s22633_s2 + $0x2] ss:$0 sm:$0xff] }
 0x167   : > { %7522 = vperm.xlu1 %17577, %v7423_v53   ;;  %v991_v29 = vmul.f32 %v19545_v20, %v19508_v51  ;;  %v19556_v27 = vpop.permute.xlu0 %1215  ;;  %v1255_v13 = vmul.f32 %v19513_v1, %v19466_v23  ;;  %v7005_v28 = vld [vmem:[#allocation2 + $0xf0] sm:$0xff] }
 0x168   : > { %v1967_v9 = vld [vmem:[#allocation3 + $0x110] sm:$0xff]  ;;  %7930 = vperm.xlu0 %17576, %v7843_v12   ;;  %v1286_v12 = vadd.f32 %v1254_v40, %v1021_v26  ;;  %v1894_v33 = vmax.f32 %v1862_v58, 0.0  ;;  %v1411_v0 = vmul.f32 %v19211_v57, %v19556_v27  ;;  %v1707_v17 = vadd.f32 %v1675_v36, %v1442_v21 }
 0x169   : > { %v19540_v50 = vpack.c.bf16 %v1967_v9, %v1966_v5  ;;  %v1364_v9 = vadd.f32 %v1332_v54, %v1285_v8  ;;  %v1023_v16 = vadd.f32 %v991_v29, %v944_v52  ;;  %v1287_v34 = vadd.f32 %v1255_v13, %v1022_v14 }
 0x16a   : > { %v1624_v56 = vpop.permute.xlu1 %1623  ;;  %1927 = vst.msk [vmem:[#allocation3 + $0x121] sm:$0xff] %vm435_vm2, %v1894_v33 }
 0x16b   : > { %v1831_v53 = vmul.f32 %v19185_v7, %v1624_v56  ;;  %7935 = vperm.xlu1 %17577, %v7844_v6   ;;  %15291 = vmatmul.mubr.msk.bf16.gmra.mrb[20].mxu0 %vm435_vm2, %v19540_v50  ;;  %v19563_v7 = vld [vmem:[%s22633_s2 + $0x5] ss:$0 sm:$0xff]  ;;  %v1443_v42 = vadd.f32 %v1411_v0, %v1364_v9  ;;  %v1677_v36 = vmul.f32 %v19598_v11, %v1624_v56 }
 0x16c   : > { %v1753_v55 = vmul.f32 %v19563_v7, %v19530_v48  ;;  %7114 = vperm.xlu0 %17576, %v7003_v45   ;;  %v1754_v22 = vmul.f32 %v19563_v7, %v1624_v56  ;;  %v1256_v45 = vmul.f32 %v19513_v1, %v19477_v47 }
 0x16d   : > { %v1863_v31 = vadd.f32 %v1831_v53, %v1784_v30  ;;  %v1365_v30 = vadd.f32 %v1333_v37, %v1286_v12  ;;  %v1676_v53 = vmul.f32 %v19598_v11, %v19530_v48  ;;  %v7006_v37 = vld [vmem:[#allocation2 + $0xf8] sm:$0xff]  ;;  %v19610_v48 = vld [vmem:[%s22633_s2 + $0x7] ss:$0 sm:$0xff] }
 0x16e   : > { %v19569_v61 = vpop.permute.xlu1 %1220  ;;  %v1785_v26 = vadd.f32 %v1753_v55, %v1706_v15  ;;  %v1288_v47 = vadd.f32 %v1256_v45, %v1023_v16  ;;  %v1786_v29 = vadd.f32 %v1754_v22, %v1707_v17  ;;  %v7845_v15 = vld [vmem:[#allocation2 + $0xaa] sm:$0xff]  ;;  %v17885_v17 = vld [vmem:[%s22633_s2] ss:$0 sm:$0xff] }
 0x16f   : > { %v1895_v2 = vmax.f32 %v1863_v31, 0.0  ;;  %v1412_v40 = vmul.f32 %v19211_v57, %v19569_v61  ;;  %7119 = vperm.xlu1 %17577, %v7004_v60   ;;  %v1629_v6 = vpop.permute.xlu0 %1628  ;;  %v19581_v57 = vld [vmem:[%s22633_s2 + $0x4] ss:$0 sm:$0xff]  ;;  %v1708_v56 = vadd.f32 %v1676_v53, %v1443_v42  ;;  %v834_v42 = vmul.f32 %v17885_v17, %v19448_v19  ;;  %v7426_v53 = vld [vmem:[#allocation2 + $0xd9] sm:$0xff] }
 0x170   : > { %v1334_v23 = vmul.f32 %v19581_v57, %v19556_v27  ;;  %v1832_v5 = vmul.f32 %v19588_v43, %v1629_v6  ;;  %7527 = vperm.xlu0 %17576, %v7424_v35   ;;  %v1335_v38 = vmul.f32 %v19581_v57, %v19569_v61  ;;  %v1678_v55 = vmul.f32 %v19598_v11, %v1629_v6 }
 0x171   : > { %1928 = vst.msk [vmem:[#allocation3 + $0x129] sm:$0xff] %vm435_vm2, %v1895_v2  ;;  %v1444_v8 = vadd.f32 %v1412_v40, %v1365_v30  ;;  %v1755_v33 = vmul.f32 %v19563_v7, %v1629_v6  ;;  %v7846_v6 = vld [vmem:[#allocation2 + $0xb2] sm:$0xff]  ;;  %v835_v19 = vmul.f32 %v17885_v17, %v19458_v10  ;;  %v914_v10 = vmul.f32 %v19520_v25, %v19508_v51  ;;  %v7007_v17 = vld [vmem:[#allocation2 + $0x108] sm:$0xff] }
 0x172   : > { %v1634_v60 = vpop.permute.xlu1 %1633  ;;  %v1864_v54 = vadd.f32 %v1832_v5, %v1785_v26  ;;  %v1366_v21 = vadd.f32 %v1334_v23, %v1287_v34  ;;  %v1367_v35 = vadd.f32 %v1335_v38, %v1288_v47  ;;  %v1968_v45 = vld [vmem:[#allocation3 + $0x120] sm:$0xff] }
 0x173   : > { %7532 = vperm.xlu1 %17577, %v7425_v59   ;;  %v1833_v58 = vmul.f32 %v19588_v43, %v1634_v60  ;;  %v19604_v12 = vpop.permute.xlu0 %1294  ;;  %v1709_v2 = vadd.f32 %v1677_v36, %v1444_v8  ;;  %v1756_v40 = vmul.f32 %v19563_v7, %v1634_v60  ;;  %v1679_v30 = vmul.f32 %v19598_v11, %v1634_v60 }
 0x174   : > { %v1896_v31 = vmax.f32 %v1864_v54, 0.0  ;;  %v1413_v52 = vmul.f32 %v19610_v48, %v19604_v12  ;;  %7124 = vperm.xlu0 %17576, %v7005_v28   ;;  %v1787_v38 = vadd.f32 %v1755_v33, %v1708_v56  ;;  %v866_v56 = vadd.f32 %v19484_v39, %v834_v42 }
 0x175   : > { %v1865_v0 = vadd.f32 %v1833_v58, %v1786_v29  ;;  %v1788_v8 = vadd.f32 %v1756_v40, %v1709_v2 }
 0x176   : > { %v19615_v14 = vpop.permute.xlu1 %1299  ;;  %1929 = vst.msk [vmem:[#allocation3 + $0x139] sm:$0xff] %vm435_vm2, %v1896_v31  ;;  %v1445_v13 = vadd.f32 %v1413_v52, %v1366_v21 }
 0x177   : > { %v1414_v9 = vmul.f32 %v19610_v48, %v19615_v14  ;;  %7129 = vperm.xlu1 %17577, %v7006_v37   ;;  %v1897_v16 = vmax.f32 %v1865_v0, 0.0  ;;  %v19621_v22 = vpop.permute.xlu0 %1638  ;;  %v7427_v37 = vld [vmem:[#allocation2 + $0xe1] sm:$0xff] }
 0x178   : > { %v1969_v59 = vld [vmem:[#allocation3 + $0x128] sm:$0xff]  ;;  %v1710_v26 = vadd.f32 %v1678_v55, %v1445_v13  ;;  %v1757_v5 = vmul.f32 %v19563_v7, %v19621_v22  ;;  %7940 = vperm.xlu0 %17576, %v7845_v15   ;;  %v1834_v28 = vmul.f32 %v19588_v43, %v19621_v22  ;;  %v913_v55 = vmul.f32 %v19520_v25, %v19501_v62 }
 0x179   : > { %v1446_v23 = vadd.f32 %v1414_v9, %v1367_v35  ;;  %1930 = vst.msk [vmem:[#allocation3 + $0x141] sm:$0xff] %vm435_vm2, %v1897_v16  ;;  %v19635_v34 = vpack.c.bf16 %v1969_v59, %v1968_v45  ;;  %v7847_v35 = vld [vmem:[#allocation2 + $0xc2] sm:$0xff]  ;;  %v867_v13 = vadd.f32 %v19484_v39, %v835_v19  ;;  %v7848_v16 = vld [vmem:[#allocation2 + $0xca] sm:$0xff]  ;;  %v1257_v39 = vmul.f32 %v19513_v1, %v19556_v27 }
 0x17a   : > { %v19633_v60 = vpop.permute.xlu1 %1643  ;;  %v1866_v29 = vadd.f32 %v1834_v28, %v1787_v38  ;;  %v1789_v21 = vadd.f32 %v1757_v5, %v1710_v26  ;;  %v945_v59 = vadd.f32 %v913_v55, %v866_v56 }
 0x17b   : > { %v1711_v54 = vadd.f32 %v1679_v30, %v1446_v23  ;;  %v1758_v47 = vmul.f32 %v19563_v7, %v19633_v60  ;;  %v1835_v36 = vmul.f32 %v19588_v43, %v19633_v60  ;;  %7945 = vperm.xlu1 %17577, %v7846_v6   ;;  %15294 = vmatprep.mubr.msk.bf16.mxu0 %vm435_vm2, %v19635_v34  ;;  %v19644_v58 = vpop.permute.xlu0 %1717 }
 0x17c   : > { %v1836_v52 = vmul.f32 %v19588_v43, %v19644_v58  ;;  %7537 = vperm.xlu0 %17576, %v7426_v53   ;;  %v1898_v33 = vmax.f32 %v1866_v29, 0.0  ;;  %v946_v23 = vadd.f32 %v914_v10, %v867_v13  ;;  %v7428_v29 = vld [vmem:[#allocation2 + $0xf1] sm:$0xff] }
 0x17d   : > { %v1867_v31 = vadd.f32 %v1835_v36, %v1788_v8  ;;  %v1790_v40 = vadd.f32 %v1758_v47, %v1711_v54  ;;  %v1970_v30 = vld [vmem:[#allocation3 + $0x138] sm:$0xff]  ;;  %v7008_v8 = vld [vmem:[#allocation2 + $0x110] sm:$0xff]  ;;  %v1258_v54 = vmul.f32 %v19513_v1, %v19569_v61  ;;  %v1336_v47 = vmul.f32 %v19581_v57, %v19604_v12 }
 0x17e   : > { %v19653_v0 = vpop.permute.xlu1 %1722  ;;  %v1868_v2 = vadd.f32 %v1836_v52, %v1789_v21  ;;  %1931 = vst.msk [vmem:[#allocation3 + $0x151] sm:$0xff] %vm435_vm2, %v1898_v33  ;;  %v1680_v1 = vmul.f32 %v19598_v11, %v19621_v22  ;;  %v7429_v52 = vld [vmem:[#allocation2 + $0xf9] sm:$0xff] }
 0x17f   : > { %v1899_v15 = vmax.f32 %v1867_v31, 0.0  ;;  %v1837_v62 = vmul.f32 %v19588_v43, %v19653_v0  ;;  %7542 = vperm.xlu1 %17577, %v7427_v37   ;;  %v951_v9 = vpop.permute.xlu0 %950 }
 0x180   : > { %v1900_v51 = vmax.f32 %v1868_v2, 0.0  ;;  %v992_v6 = vmul.f32 %v19545_v20, %v951_v9  ;;  %7950 = vperm.xlu0 %17576, %v7847_v35   ;;  %v1971_v26 = vld [vmem:[#allocation3 + $0x140] sm:$0xff]  ;;  %v1759_v2 = vmul.f32 %v19563_v7, %v19644_v58  ;;  %v7010_v58 = vld [vmem:[#allocation2 + $0x128] sm:$0xff] }
 0x181   : > { %1932 = vst.msk [vmem:[#allocation3 + $0x159] sm:$0xff] %vm435_vm2, %v1899_v15  ;;  %v1869_v25 = vadd.f32 %v1837_v62, %v1790_v40  ;;  %v19661_v45 = vpack.c.bf16 %v1971_v26, %v1970_v30  ;;  %v7009_v15 = vld [vmem:[#allocation2 + $0x120] sm:$0xff] }
 0x182   : > { %v956_v5 = vpop.permute.xlu1 %955  ;;  %1933 = vst.msk [vmem:[#allocation3 + $0x169] sm:$0xff] %vm435_vm2, %v1900_v51  ;;  %v1024_v38 = vadd.f32 %v992_v6, %v945_v59 }
 0x183   : > { %v1901_v42 = vmax.f32 %v1869_v25, 0.0  ;;  %v993_v28 = vmul.f32 %v19545_v20, %v956_v5  ;;  %7955 = vperm.xlu1 %17577, %v7848_v16   ;;  %15295 = vmatmul.mubr.msk.bf16.gmra.mrb[24].mxu0 %vm435_vm2, %v19661_v45  ;;  %v1374_v53 = vpop.permute.xlu0 %1373  ;;  %v1337_v20 = vmul.f32 %v19581_v57, %v19615_v14  ;;  %v1681_v57 = vmul.f32 %v19598_v11, %v19633_v60  ;;  %v7849_v25 = vld [vmem:[#allocation2 + $0xda] sm:$0xff]  ;;  %v7850_v5 = vld [vmem:[#allocation2 + $0xe2] sm:$0xff] }
 0x184   : > { %v1289_v27 = vadd.f32 %v1257_v39, %v1024_v38  ;;  %7134 = vperm.xlu0 %17576, %v7007_v17   ;;  %v1415_v31 = vmul.f32 %v19610_v48, %v1374_v53  ;;  %v7430_v39 = vld [vmem:[#allocation2 + $0x109] sm:$0xff]  ;;  %v7431_v38 = vld [vmem:[#allocation2 + $0x111] sm:$0xff] }
 0x185   : > { %1934 = vst.msk [vmem:[#allocation3 + $0x171] sm:$0xff] %vm435_vm2, %v1901_v42  ;;  %v1025_v36 = vadd.f32 %v993_v28, %v946_v23  ;;  %v1972_v12 = vld [vmem:[#allocation3 + $0x150] sm:$0xff]  ;;  %v7851_v28 = vld [vmem:[#allocation2 + $0xf2] sm:$0xff]  ;;  %v17587_v53 = vld [vmem:[%s22635_s4 + $0xc8] sm:$0xff]  }
 0x186   : > { %v1379_v19 = vpop.permute.xlu1 %1378  ;;  %v1368_v55 = vadd.f32 %v1336_v47, %v1289_v27  ;;  %v7852_v47 = vld [vmem:[#allocation2 + $0xfa] sm:$0xff] }
 0x187   : > { %v1290_v37 = vadd.f32 %v1258_v54, %v1025_v36  ;;  %7139 = vperm.xlu1 %17577, %v7008_v8   ;;  %v1797_v61 = vpop.permute.xlu0 %1796  ;;  %v1416_v33 = vmul.f32 %v19610_v48, %v1379_v19  ;;  %v1760_v48 = vmul.f32 %v19563_v7, %v19653_v0  ;;  %v17886_v54 = vld [vmem:[%s22635_s4 + $0xc0] sm:$0xff]   ;;  %v7011_v36 = vld [vmem:[#allocation2 + $0x138] sm:$0xff]  ;;  %v17588_v19 = vld [vmem:[%s22635_s4 + $0xd0] sm:$0xff]  }
 0x188   : > { %v1973_v21 = vld [vmem:[#allocation3 + $0x158] sm:$0xff]  ;;  %v1447_v56 = vadd.f32 %v1415_v31, %v1368_v55  ;;  %7547 = vperm.xlu0 %17576, %v7428_v29   ;;  %v1838_v60 = vmul.f32 %v19588_v43, %v1797_v61  ;;  %v17589_v31 = vld [vmem:[%s22635_s4 + $0xd8] sm:$0xff]  }
 0x189   : > { %v1369_v10 = vadd.f32 %v1337_v20, %v1290_v37  ;;  %v19680_v35 = vpack.c.bf16 %v1973_v21, %v1972_v12  ;;  %v1974_v13 = vld [vmem:[#allocation3 + $0x168] sm:$0xff]  ;;  %v7012_v20 = vld [vmem:[#allocation2 + $0x140] sm:$0xff]  ;;  %v7433_v61 = vld [vmem:[#allocation2 + $0x129] sm:$0xff] }
 0x18a   : > { %v1802_v14 = vpop.permute.xlu1 %1801  ;;  %v1712_v22 = vadd.f32 %v1680_v1, %v1447_v56  ;;  %v7432_v55 = vld [vmem:[#allocation2 + $0x121] sm:$0xff]  ;;  %v7013_v21 = vld [vmem:[#allocation2 + $0x150] sm:$0xff]  ;;  %v19749_v56 = vld [vmem:[%s22633_s2] ss:$0 sm:$0xff] }
 0x18b   : > { %v1448_v40 = vadd.f32 %v1416_v33, %v1369_v10  ;;  %15298 = vmatprep.mubr.msk.bf16.mxu0 %vm435_vm2, %v19680_v35  ;;  %7552 = vperm.xlu1 %17577, %v7429_v52   ;;  %v19690_v62 = vpop.permute.xlu0 %7024  ;;  %v1839_v26 = vmul.f32 %v19588_v43, %v1802_v14  ;;  %v7014_v10 = vld [vmem:[#allocation2 + $0x158] sm:$0xff]  ;;  %v19756_v14 = vld [vmem:[%s22635_s4 + $0x20] sm:$0xff]  }
 0x18c   : > { %v1975_v9 = vld [vmem:[#allocation3 + $0x170] sm:$0xff]  ;;  %v1791_v11 = vadd.f32 %v1759_v2, %v1712_v22  ;;  %7144 = vperm.xlu0 %17576, %v7009_v15   ;;  %v7186_v2 = vmul.f32 %v19749_v56, %v19690_v62  ;;  %v7854_v62 = vld [vmem:[#allocation2 + $0x112] sm:$0xff] }
 0x18d   : > { %v1713_v16 = vadd.f32 %v1681_v57, %v1448_v40  ;;  %v19693_v59 = vpack.c.bf16 %v1975_v9, %v1974_v13  ;;  %v7853_v57 = vld [vmem:[#allocation2 + $0x10a] sm:$0xff]  ;;  %v19761_v15 = vld [vmem:[%s22633_s2 + $0x3] ss:$0 sm:$0xff]  ;;  %v19774_v40 = vld [vmem:[%s22634_s3] ss:$0 sm:$0xff] }
 0x18e   : > { %v19695_v51 = vpop.permute.xlu1 %7029  ;;  %v1870_v6 = vadd.f32 %v1838_v60, %v1791_v11  ;;  %v19781_v13 = vld [vmem:[%s22633_s2 + $0x6] ss:$0 sm:$0xff]  ;;  %v7434_v11 = vld [vmem:[#allocation2 + $0x139] sm:$0xff] }
 0x18f   : > { %22652 = vst [vmem:[#allocation9_spill] sm:$0xff] %v19693_v59  ;;  %v1792_v30 = vadd.f32 %v1760_v48, %v1713_v16  ;;  %15299 = vmatmul.mubr.msk.bf16.gmra.mrb[28].mxu0 %vm435_vm2, %v19693_v59  ;;  %7149 = vperm.xlu1 %17577, %v7010_v58   ;;  %v19702_v7 = vpop.permute.xlu0 %7034  ;;  %v7187_v48 = vmul.f32 %v19749_v56, %v19695_v51  ;;  %v19793_v58 = vld [vmem:[%s22633_s2 + $0x1] ss:$0 sm:$0xff] }
 0x190   : > { %15310 = vmatprep.mubr.msk.bf16.mxu0 %vm435_vm2, %v18874_v46  ;;  %v1902_v0 = vmax.f32 %v1870_v6, 0.0  ;;  %7960 = vperm.xlu0 %17576, %v7849_v25   ;;  %v7265_v9 = vmul.f32 %v19761_v15, %v19702_v7  ;;  %v7218_v51 = vadd.f32 %v19774_v40, %v7186_v2  ;;  %v7015_v2 = vld [vmem:[#allocation2 + $0x168] sm:$0xff] }
 0x191   : > { %v1871_v23 = vadd.f32 %v1839_v26, %v1792_v30  ;;  %v7219_v30 = vadd.f32 %v19774_v40, %v7187_v48 }
 0x192   : > { %v19704_v17 = vpop.permute.xlu1 %7039  ;;  %1935 = vst.msk [vmem:[#allocation3 + $0x181] sm:$0xff] %vm435_vm2, %v1902_v0  ;;  %v19804_v0 = vld [vmem:[%s22633_s2 + $0x4] ss:$0 sm:$0xff] }
 0x193   : > { %v1903_v42 = vmax.f32 %v1871_v23, 0.0  ;;  %7965 = vperm.xlu1 %17577, %v7850_v5   ;;  %v19707_v43 = vpop.permute.xlu0 %7044  ;;  %v7266_v60 = vmul.f32 %v19761_v15, %v19704_v17  ;;  %v7435_v23 = vld [vmem:[#allocation2 + $0x141] sm:$0xff]  ;;  %v7297_v5 = vadd.f32 %v7265_v9, %v7218_v51 }
 0x194   : > { %7557 = vperm.xlu0 %17576, %v7430_v39   ;;  %v7344_v25 = vmul.f32 %v19781_v13, %v19707_v43 }
 0x195   : > { %1936 = vst.msk [vmem:[#allocation3 + $0x189] sm:$0xff] %vm435_vm2, %v1903_v42 }
 0x196   : > { %v19710_v46 = vpop.permute.xlu1 %7049 }
 0x197   : > { %15311 = vmatmul.mubr.msk.bf16.vlgmr.msra.gmra.mrb[0].mxu0 %vm435_vm2, %v18957_v49  ;;  %7562 = vperm.xlu1 %17577, %v7431_v38   ;;  %v19719_v8 = vpop.permute.xlu0 %7447  ;;  %v7345_v26 = vmul.f32 %v19781_v13, %v19710_v46  ;;  %v7855_v38 = vld [vmem:[#allocation2 + $0x122] sm:$0xff] }
 0x198   : > { %15314 = vmatprep.mubr.msk.bf16.mxu0 %vm435_vm2, %v18997_v41  ;;  %15343 = vmatpush3.bf16.msra.mxu0 %v17886_v54  ;;  %v7609_v39 = vmul.f32 %v19793_v58, %v19719_v8 }
 0x199   : > { %7970 = vperm.xlu0 %17576, %v7851_v28   ;;  %15344 = vmatprep.subr.bf16.mxu0 %v17587_v53  ;;  %v7188_v28 = vmul.f32 %v19749_v56, %v19702_v7 }
 0x19a   : > { %v19724_v27 = vpop.permute.xlu1 %7452 }
 0x19b   : > { %7975 = vperm.xlu1 %17577, %v7852_v47   ;;  %v19729_v29 = vpop.permute.xlu0 %7457  ;;  %v7610_v54 = vmul.f32 %v19793_v58, %v19724_v27  ;;  %v19815_v47 = vld [vmem:[%s22633_s2 + $0x7] ss:$0 sm:$0xff]  ;;  %v7267_v27 = vmul.f32 %v19761_v15, %v19707_v43  ;;  %v7220_v48 = vadd.f32 %v19774_v40, %v7188_v28 }
 0x19c   : > { %15345 = vmatpush3.bf16.msra.mxu0 %v17587_v53  ;;  %v7298_v53 = vadd.f32 %v7266_v60, %v7219_v30  ;;  %v7688_v8 = vmul.f32 %v19804_v0, %v19729_v29  ;;  %v7268_v60 = vmul.f32 %v19761_v15, %v19710_v46 }
 0x19d   : > { %7154 = vperm.xlu0 %17576, %v7011_v36   ;;  %15346 = vmatprep.subr.bf16.mxu0 %v17588_v19  ;;  %v7376_v36 = vadd.f32 %v7344_v25, %v7297_v5 }
 0x19e   : > { %v19731_v37 = vpop.permute.xlu1 %7462 }
 0x19f   : > { %15315 = vmatmul.mubr.msk.bf16.gmra.mrb[4].mxu0 %vm435_vm2, %v19080_v4  ;;  %7159 = vperm.xlu1 %17577, %v7012_v20   ;;  %v19740_v1 = vpop.permute.xlu0 %7054  ;;  %v7689_v20 = vmul.f32 %v19804_v0, %v19731_v37 }
 0x1a0   : > { %15318 = vmatprep.mubr.msk.bf16.mxu0 %vm435_vm2, %v19135_v24  ;;  %15347 = vmatpush3.bf16.msra.mxu0 %v17588_v19  ;;  %v7377_v19 = vadd.f32 %v7345_v26, %v7298_v53  ;;  %v7346_v9 = vmul.f32 %v19781_v13, %v19740_v1 }
 0x1a1   : > { %7567 = vperm.xlu0 %17576, %v7432_v55   ;;  %15348 = vmatprep.subr.bf16.mxu0 %v17589_v31  ;;  %v19832_v55 = vld [vmem:[%s22633_s2 + $0x2] ss:$0 sm:$0xff] }
 0x1a2   : > { %v19742_v12 = vpop.permute.xlu1 %7059 }
 0x1a3   : > { %7572 = vperm.xlu1 %17577, %v7433_v61   ;;  %v19744_v52 = vpop.permute.xlu0 %7467  ;;  %v7189_v61 = vmul.f32 %v19749_v56, %v19704_v17  ;;  %v19848_v17 = vld [vmem:[%s22633_s2 + $0x5] ss:$0 sm:$0xff]  ;;  %v7347_v28 = vmul.f32 %v19781_v13, %v19742_v12 }
 0x1a4   : > { %15349 = vmatpush3.bf16.msra.mxu0 %v17589_v31  ;;  %v7856_v31 = vld [vmem:[#allocation2 + $0x12a] sm:$0xff] }
 0x1a5   : > { %7164 = vperm.xlu0 %17576, %v7013_v21   ;;  %15382 = vmatprep.subr.bf16.mxu0 %v19756_v14  ;;  %v7641_v21 = vadd.f32 %v7609_v39, %v7376_v36  ;;  %v7016_v39 = vld [vmem:[#allocation2 + $0x170] sm:$0xff] }
 0x1a6   : > { %v19751_v33 = vpop.permute.xlu1 %7472 }
 0x1a7   : > { %15319 = vmatmul.mubr.msk.bf16.gmra.mrb[8].mxu0 %vm435_vm2, %v19237_v3  ;;  %7169 = vperm.xlu1 %17577, %v7014_v10   ;;  %v19769_v22 = vpop.permute.xlu0 %7064  ;;  %v7767_v10 = vmul.f32 %v19815_v47, %v19744_v52  ;;  %v7720_v51 = vadd.f32 %v7688_v8, %v7641_v21  ;;  %v7611_v21 = vmul.f32 %v19793_v58, %v19729_v29 }
 0x1a8   : > { %15322 = vmatprep.mubr.msk.bf16.mxu0 %vm435_vm2, %v19277_v44 }
 0x1a9   : > { %7980 = vperm.xlu0 %17576, %v7853_v57   ;;  %v7799_v53 = vadd.f32 %v7767_v10, %v7720_v51  ;;  %v7017_v51 = vld [vmem:[#allocation2 + $0x180] sm:$0xff] }
 0x1aa   : > { %v19785_v16 = vpop.permute.xlu1 %7069 }
 0x1ab   : > { %7985 = vperm.xlu1 %17577, %v7854_v62   ;;  %v7871_v6 = vpop.permute.xlu0 %7870  ;;  %v7642_v62 = vadd.f32 %v7610_v54, %v7377_v19 }
 0x1ac   : > { %v8032_v25 = vmul.f32 %v19832_v55, %v7871_v6  ;;  %v7436_v6 = vld [vmem:[#allocation2 + $0x151] sm:$0xff] }
 0x1ad   : > { %7577 = vperm.xlu0 %17576, %v7434_v11   ;;  %v7768_v11 = vmul.f32 %v19815_v47, %v19751_v33  ;;  %v7721_v26 = vadd.f32 %v7689_v20, %v7642_v62 }
 0x1ae   : > { %v7876_v42 = vpop.permute.xlu1 %7875 }
 0x1af   : > { %15323 = vmatmul.mubr.msk.bf16.gmra.mrb[12].mxu0 %vm435_vm2, %v19351_v18  ;;  %7582 = vperm.xlu1 %17577, %v7435_v23   ;;  %v19823_v7 = vpop.permute.xlu0 %7880  ;;  %v7299_v23 = vadd.f32 %v7267_v27, %v7220_v48  ;;  %v8033_v5 = vmul.f32 %v19832_v55, %v7876_v42  ;;  %v7800_v19 = vadd.f32 %v7768_v11, %v7721_v26  ;;  %v19870_v42 = vld [vmem:[%s22633_s2 + $0x8] ss:$0 sm:$0xff] }
 0x1b0   : > { %15326 = vmatprep.mubr.msk.bf16.mxu0 %vm435_vm2, %v19395_v32  ;;  %v8111_v54 = vmul.f32 %v19848_v17, %v19823_v7  ;;  %v7190_v48 = vmul.f32 %v19749_v56, %v19707_v43  ;;  %v7690_v26 = vmul.f32 %v19804_v0, %v19744_v52 }
 0x1b1   : > { %7990 = vperm.xlu0 %17576, %v7855_v38   ;;  %v7221_v38 = vadd.f32 %v19774_v40, %v7189_v61  ;;  %v7378_v8 = vadd.f32 %v7346_v9, %v7299_v23  ;;  %v8065_v10 = vadd.f32 %v8033_v5, %v7800_v19  ;;  %v7612_v5 = vmul.f32 %v19793_v58, %v19731_v37 }
 0x1b2   : > { %v19838_v57 = vpop.permute.xlu1 %7885  ;;  %v7691_v37 = vmul.f32 %v19804_v0, %v19751_v33 }
 0x1b3   : > { %7995 = vperm.xlu1 %17577, %v7856_v31   ;;  %v19853_v30 = vpop.permute.xlu0 %7477  ;;  %v8112_v27 = vmul.f32 %v19848_v17, %v19838_v57  ;;  %v7300_v20 = vadd.f32 %v7268_v60, %v7221_v38  ;;  %v8064_v31 = vadd.f32 %v8032_v25, %v7799_v53  ;;  %v7643_v25 = vadd.f32 %v7611_v21, %v7378_v8 }
 0x1b4   : > { %v7191_v38 = vmul.f32 %v19749_v56, %v19710_v46  ;;  %v7769_v53 = vmul.f32 %v19815_v47, %v19853_v30  ;;  %v7222_v8 = vadd.f32 %v19774_v40, %v7190_v48  ;;  %v7270_v46 = vmul.f32 %v19761_v15, %v19742_v12  ;;  %v19909_v48 = vld [vmem:[#allocation3 + $0x19] sm:$0xff] }
 0x1b5   : > { %7174 = vperm.xlu0 %17576, %v7015_v2   ;;  %v7437_v2 = vld [vmem:[#allocation2 + $0x159] sm:$0xff]  ;;  %v7379_v62 = vadd.f32 %v7347_v28, %v7300_v20  ;;  %v8143_v9 = vadd.f32 %v8111_v54, %v8064_v31  ;;  %v8144_v23 = vadd.f32 %v8112_v27, %v8065_v10  ;;  %v7269_v28 = vmul.f32 %v19761_v15, %v19740_v1 }
 0x1b6   : > { %v19861_v36 = vpop.permute.xlu1 %7482  ;;  %v7857_v31 = vld [vmem:[#allocation2 + $0x13a] sm:$0xff]  ;;  %v7722_v21 = vadd.f32 %v7690_v26, %v7643_v25  ;;  %v7348_v10 = vmul.f32 %v19781_v13, %v19769_v22  ;;  %22653 = vst [vmem:[#allocation10_spill] sm:$0xff] %v19909_v48  ;;  %v19921_v25 = vld [vmem:[#allocation3 + $0x22] sm:$0xff] }
 0x1b7   : > { %15327 = vmatmul.mubr.msk.bf16.gmra.mrb[16].mxu0 %vm435_vm2, %v19479_v63  ;;  %7179 = vperm.xlu1 %17577, %v7016_v39   ;;  %v19874_v61 = vpop.permute.xlu0 %7890  ;;  %v7644_v19 = vadd.f32 %v7612_v5, %v7379_v62  ;;  %v19911_v62 = vld [vmem:[#allocation3 + $0x1a] sm:$0xff]  ;;  %22656 = vst [vmem:[#allocation13_spill] sm:$0xff] %v19921_v25  ;;  %v7301_v26 = vadd.f32 %v7269_v28, %v7222_v8 }
 0x1b8   : > { %15330 = vmatprep.mubr.msk.bf16.mxu0 %vm435_vm2, %v19540_v50  ;;  %v8190_v11 = vmul.f32 %v19870_v42, %v19874_v61  ;;  %22654 = vst [vmem:[#allocation12_spill] sm:$0xff] %v19911_v62  ;;  %v7801_v5 = vadd.f32 %v7769_v53, %v7722_v21  ;;  %v7438_v62 = vld [vmem:[#allocation2 + $0x169] sm:$0xff]  ;;  %v7613_v53 = vmul.f32 %v19793_v58, %v19744_v52 }
 0x1b9   : > { %7587 = vperm.xlu0 %17576, %v7436_v6   ;;  %v7018_v6 = vld [vmem:[#allocation2 + $0x188] sm:$0xff]  ;;  %v7380_v48 = vadd.f32 %v7348_v10, %v7301_v26  ;;  %v8035_v21 = vmul.f32 %v19832_v55, %v19838_v57  ;;  %v7692_v10 = vmul.f32 %v19804_v0, %v19853_v30 }
 0x1ba   : > { %v19882_v60 = vpop.permute.xlu1 %7895  ;;  %v8222_v43 = vadd.f32 %v8190_v11, %v8143_v9  ;;  %v7770_v9 = vmul.f32 %v19815_v47, %v19861_v36 }
 0x1bb   : > { %v8191_v29 = vmul.f32 %v19870_v42, %v19882_v60  ;;  %7592 = vperm.xlu1 %17577, %v7437_v2   ;;  %v19890_v39 = vpop.permute.xlu0 %7074  ;;  %v8114_v26 = vmul.f32 %v19848_v17, %v19882_v60 }
 0x1bc   : > { %v8254_v27 = vmax.f32 %v8222_v43, 0.0  ;;  %v7858_v43 = vld [vmem:[#allocation2 + $0x142] sm:$0xff] }
 0x1bd   : > { %v8223_v54 = vadd.f32 %v8191_v29, %v8144_v23  ;;  %7253 = vperm.xlu0 %17576, %v7017_v51   ;;  %v19919_v51 = vld [vmem:[#allocation3 + $0x21] sm:$0xff]  ;;  %v7223_v23 = vadd.f32 %v19774_v40, %v7191_v38  ;;  %v7349_v29 = vmul.f32 %v19781_v13, %v19785_v16 }
 0x1be   : > { %v19901_v20 = vpop.permute.xlu1 %7079  ;;  %22655 = vst [vmem:[#allocation11_spill] sm:$0xff] %v19919_v51  ;;  %8286 = vst.msk [vmem:[#allocation3 + $0x19] sm:$0xff] %vm435_vm2, %v8254_v27  ;;  %v8034_v27 = vmul.f32 %v19832_v55, %v19823_v7  ;;  %v7193_v7 = vmul.f32 %v19749_v56, %v19742_v12  ;;  %v1977_v12 = vld [vmem:[#allocation3 + $0x188] sm:$0xff] }
 0x1bf   : > { %v8255_v2 = vmax.f32 %v8223_v54, 0.0  ;;  %15331 = vmatmul.mubr.msk.bf16.gmra.mrb[20].mxu0 %vm435_vm2, %v19635_v34  ;;  %7258 = vperm.xlu1 %17577, %v7018_v6   ;;  %v19917_v11 = vpop.permute.xlu0 %7487  ;;  %v7723_v54 = vadd.f32 %v7691_v37, %v7644_v19  ;;  %v7302_v51 = vadd.f32 %v7270_v46, %v7223_v23  ;;  %v8113_v19 = vmul.f32 %v19848_v17, %v19874_v61  ;;  %v7439_v37 = vld [vmem:[#allocation2 + $0x171] sm:$0xff] }
 0x1c0   : > { %15334 = vmatprep.mubr.msk.bf16.mxu0 %vm435_vm2, %v19661_v45  ;;  %v7192_v46 = vmul.f32 %v19749_v56, %v19740_v1  ;;  %v7693_v1 = vmul.f32 %v19804_v0, %v19861_v36  ;;  %v7771_v23 = vmul.f32 %v19815_v47, %v19917_v11 }
 0x1c1   : > { %8000 = vperm.xlu0 %17576, %v7857_v31   ;;  %8287 = vst.msk [vmem:[#allocation3 + $0x21] sm:$0xff] %vm435_vm2, %v8255_v2  ;;  %v7802_v28 = vadd.f32 %v7770_v9, %v7723_v54  ;;  %v7381_v8 = vadd.f32 %v7349_v29, %v7302_v51  ;;  %v8066_v31 = vadd.f32 %v8034_v27, %v7801_v5  ;;  %v7859_v2 = vld [vmem:[#allocation2 + $0x152] sm:$0xff]  ;;  %v7860_v54 = vld [vmem:[#allocation2 + $0x15a] sm:$0xff] }
 0x1c2   : > { %v19928_v6 = vpop.permute.xlu1 %7492  ;;  %v7614_v9 = vmul.f32 %v19793_v58, %v19751_v33  ;;  %v7645_v51 = vadd.f32 %v7613_v53, %v7380_v48  ;;  %v1976_v27 = vld [vmem:[#allocation3 + $0x180] sm:$0xff]  ;;  %v7224_v25 = vadd.f32 %v19774_v40, %v7192_v46 }
 0x1c3   : > { %8005 = vperm.xlu1 %17577, %v7858_v43   ;;  %v19932_v38 = vpop.permute.xlu0 %7084  ;;  %v8067_v57 = vadd.f32 %v8035_v21, %v7802_v28  ;;  %v8145_v29 = vadd.f32 %v8113_v19, %v8066_v31  ;;  %v7772_v5 = vmul.f32 %v19815_v47, %v19928_v6  ;;  %v19970_v21 = vpack.c.bf16 %v1977_v12, %v1976_v27 }
 0x1c4   : > { %v7646_v48 = vadd.f32 %v7614_v9, %v7381_v8  ;;  %v7724_v28 = vadd.f32 %v7692_v10, %v7645_v51  ;;  %v7350_v8 = vmul.f32 %v19781_v13, %v19890_v39  ;;  %v7272_v19 = vmul.f32 %v19761_v15, %v19785_v16 }
 0x1c5   : > { %7597 = vperm.xlu0 %17576, %v7438_v62   ;;  %v7271_v62 = vmul.f32 %v19761_v15, %v19769_v22  ;;  %v8146_v9 = vadd.f32 %v8114_v26, %v8067_v57  ;;  %v7225_v12 = vadd.f32 %v19774_v40, %v7193_v7  ;;  %v7351_v57 = vmul.f32 %v19781_v13, %v19901_v20 }
 0x1c6   : > { %v19946_v52 = vpop.permute.xlu1 %7089 }
 0x1c7   : > { %15335 = vmatmul.mubr.msk.bf16.gmra.mrb[24].mxu0 %vm435_vm2, %v19680_v35  ;;  %7602 = vperm.xlu1 %17577, %v7439_v37   ;;  %v19962_v33 = vpop.permute.xlu0 %7900  ;;  %v7440_v37 = vld [vmem:[#allocation2 + $0x181] sm:$0xff]  ;;  %v7303_v27 = vadd.f32 %v7271_v62, %v7224_v25  ;;  %v7304_v62 = vadd.f32 %v7272_v19, %v7225_v12  ;;  %v7194_v19 = vmul.f32 %v19749_v56, %v19769_v22 }
 0x1c8   : > { %15338 = vmatprep.mubr.msk.bf16.mxu0 %vm435_vm2, %v19693_v59  ;;  %v8192_v43 = vmul.f32 %v19870_v42, %v19962_v33  ;;  %v7725_v59 = vadd.f32 %v7693_v1, %v7646_v48  ;;  %v7441_v48 = vld [vmem:[#allocation2 + $0x189] sm:$0xff]  ;;  %v8115_v26 = vmul.f32 %v19848_v17, %v19962_v33  ;;  %v7616_v22 = vmul.f32 %v19793_v58, %v19861_v36 }
 0x1c9   : > { %8010 = vperm.xlu0 %17576, %v7859_v2   ;;  %v7803_v2 = vadd.f32 %v7771_v23, %v7724_v28  ;;  %v19990_v28 = vld [vmem:[#allocation3 + $0x31] sm:$0xff]  ;;  %v7382_v7 = vadd.f32 %v7350_v8, %v7303_v27  ;;  %v20009_v27 = vld [vmem:[#allocation3 + $0x3a] sm:$0xff]  ;;  %v7695_v36 = vmul.f32 %v19804_v0, %v19928_v6 }
 0x1ca   : > { %v19968_v53 = vpop.permute.xlu1 %7905  ;;  %v8224_v31 = vadd.f32 %v8192_v43, %v8145_v29  ;;  %v7804_v46 = vadd.f32 %v7772_v5, %v7725_v59  ;;  %v8036_v29 = vmul.f32 %v19832_v55, %v19874_v61  ;;  %v19992_v25 = vld [vmem:[#allocation3 + $0x32] sm:$0xff]  ;;  %v8037_v59 = vmul.f32 %v19832_v55, %v19882_v60  ;;  %22658 = vst [vmem:[#allocation15_spill] sm:$0xff] %v20009_v27 }
 0x1cb   : > { %v8193_v10 = vmul.f32 %v19870_v42, %v19968_v53  ;;  %8015 = vperm.xlu1 %17577, %v7860_v54   ;;  %v19979_v51 = vpop.permute.xlu0 %7497  ;;  %v7861_v54 = vld [vmem:[#allocation2 + $0x16a] sm:$0xff]  ;;  %22657 = vst [vmem:[#allocation14_spill] sm:$0xff] %v19992_v25  ;;  %v8116_v61 = vmul.f32 %v19848_v17, %v19968_v53  ;;  %v7615_v60 = vmul.f32 %v19793_v58, %v19853_v30 }
 0x1cc   : > { %v8256_v1 = vmax.f32 %v8224_v31, 0.0  ;;  %v8068_v5 = vadd.f32 %v8036_v29, %v7803_v2  ;;  %v8069_v8 = vadd.f32 %v8037_v59, %v7804_v46  ;;  %v7383_v2 = vadd.f32 %v7351_v57, %v7304_v62  ;;  %v7864_v62 = vld [vmem:[#allocation2 + $0x18a] sm:$0xff] }
 0x1cd   : > { %7676 = vperm.xlu0 %17576, %v7440_v37   ;;  %v8225_v23 = vadd.f32 %v8193_v10, %v8146_v9  ;;  %v7862_v9 = vld [vmem:[#allocation2 + $0x172] sm:$0xff]  ;;  %v20007_v10 = vld [vmem:[#allocation3 + $0x39] sm:$0xff]  ;;  %v7647_v30 = vadd.f32 %v7615_v60, %v7382_v7  ;;  %v7694_v46 = vmul.f32 %v19804_v0, %v19917_v11  ;;  %v7273_v59 = vmul.f32 %v19761_v15, %v19890_v39 }
 0x1ce   : > { %v19988_v43 = vpop.permute.xlu1 %7502  ;;  %8288 = vst.msk [vmem:[#allocation3 + $0x31] sm:$0xff] %vm435_vm2, %v8256_v1  ;;  %v8147_v12 = vadd.f32 %v8115_v26, %v8068_v5  ;;  %v8148_v29 = vadd.f32 %v8116_v61, %v8069_v8  ;;  %v7773_v7 = vmul.f32 %v19815_v47, %v19979_v51  ;;  %v7226_v5 = vadd.f32 %v19774_v40, %v7194_v19  ;;  %v7019_v19 = vld [vmem:[#allocation2 + $0x198] sm:$0xff] }
 0x1cf   : > { %15339 = vmatmul.mubr.msk.bf16.gmra.mrb[28].mxu0 %vm435_vm2, %v19970_v21  ;;  %v8257_v37 = vmax.f32 %v8225_v23, 0.0  ;;  %7681 = vperm.xlu1 %17577, %v7441_v48   ;;  %v20003_v31 = vpop.permute.xlu0 %7910  ;;  %v7863_v48 = vld [vmem:[#allocation2 + $0x182] sm:$0xff] }
 0x1d0   : > { %15350 = vmatprep.mubr.msk.bf16.mxu0 %vm435_vm2, %v18957_v49  ;;  %v8194_v49 = vmul.f32 %v19870_v42, %v20003_v31 }
 0x1d1   : > { %8020 = vperm.xlu0 %17576, %v7861_v54   ;;  %8289 = vst.msk [vmem:[#allocation3 + $0x39] sm:$0xff] %vm435_vm2, %v8257_v37  ;;  %v7195_v54 = vmul.f32 %v19749_v56, %v19785_v16  ;;  %v7648_v37 = vadd.f32 %v7616_v22, %v7383_v2  ;;  %v17591_v16 = vld [vmem:[%s22635_s4 + $0x28] sm:$0xff]   ;;  %v20046_v2 = vld [vmem:[#allocation3 + $0x49] sm:$0xff] }
 0x1d2   : > { %v20015_v1 = vpop.permute.xlu1 %7915  ;;  %v8226_v57 = vadd.f32 %v8194_v49, %v8147_v12  ;;  %v7726_v12 = vadd.f32 %v7694_v46, %v7647_v30  ;;  %v7352_v49 = vmul.f32 %v19781_v13, %v19932_v38  ;;  %v20056_v46 = vld [vmem:[#allocation3 + $0x51] sm:$0xff] }
 0x1d3   : > { %v8195_v23 = vmul.f32 %v19870_v42, %v20015_v1  ;;  %8025 = vperm.xlu1 %17577, %v7862_v9   ;;  %v20024_v26 = vpop.permute.xlu0 %7094  ;;  %v7274_v9 = vmul.f32 %v19761_v15, %v19901_v20  ;;  %v20058_v22 = vld [vmem:[#allocation3 + $0x52] sm:$0xff] }
 0x1d4   : > { %v8258_v60 = vmax.f32 %v8226_v57, 0.0  ;;  %22660 = vst [vmem:[#allocation17_spill] sm:$0xff] %v20058_v22  ;;  %v7305_v57 = vadd.f32 %v7273_v59, %v7226_v5  ;;  %v8038_v5 = vmul.f32 %v19832_v55, %v19962_v33  ;;  %v7197_v33 = vmul.f32 %v19749_v56, %v19901_v20 }
 0x1d5   : > { %v8227_v61 = vadd.f32 %v8195_v23, %v8148_v29  ;;  %8099 = vperm.xlu0 %17576, %v7863_v48   ;;  %v20048_v29 = vld [vmem:[#allocation3 + $0x4a] sm:$0xff]  ;;  %v7774_v23 = vmul.f32 %v19815_v47, %v19988_v43  ;;  %v7275_v20 = vmul.f32 %v19761_v15, %v19932_v38 }
 0x1d6   : > { %v20035_v8 = vpop.permute.xlu1 %7099  ;;  %22659 = vst [vmem:[#allocation16_spill] sm:$0xff] %v20048_v29  ;;  %8290 = vst.msk [vmem:[#allocation3 + $0x49] sm:$0xff] %vm435_vm2, %v8258_v60  ;;  %v7805_v29 = vadd.f32 %v7773_v7, %v7726_v12  ;;  %v17592_v60 = vld [vmem:[%s22635_s4 + $0x30] sm:$0xff]   ;;  %v7384_v59 = vadd.f32 %v7352_v49, %v7305_v57  ;;  %v7442_v7 = vld [vmem:[#allocation2 + $0x199] sm:$0xff] }
 0x1d7   : > { %v8259_v48 = vmax.f32 %v8227_v61, 0.0  ;;  %15351 = vmatmul.mubr.msk.bf16.vlgmr.msra.gmra.mrb[0].mxu0 %vm435_vm2, %v18997_v41  ;;  %8104 = vperm.xlu1 %17577, %v7864_v62   ;;  %v20054_v30 = vpop.permute.xlu0 %7507  ;;  %v7227_v41 = vadd.f32 %v19774_v40, %v7195_v54  ;;  %v7353_v61 = vmul.f32 %v19781_v13, %v19946_v52  ;;  %v7020_v62 = vld [vmem:[#allocation2 + $0x1a0] sm:$0xff] }
 0x1d8   : > { %15354 = vmatprep.mubr.msk.bf16.mxu0 %vm435_vm2, %v19080_v4  ;;  %15383 = vmatpush3.bf16.msra.mxu0 %v19756_v14  ;;  %v7727_v4 = vadd.f32 %v7695_v36, %v7648_v37  ;;  %v7196_v14 = vmul.f32 %v19749_v56, %v19890_v39  ;;  %v7617_v36 = vmul.f32 %v19793_v58, %v19917_v11  ;;  %v7443_v49 = vld [vmem:[#allocation2 + $0x1a1] sm:$0xff]  ;;  %v17593_v11 = vld [vmem:[%s22635_s4 + $0x38] sm:$0xff]  }
 0x1d9   : > { %8291 = vst.msk [vmem:[#allocation3 + $0x51] sm:$0xff] %vm435_vm2, %v8259_v48  ;;  %7332 = vperm.xlu0 %17576, %v7019_v19   ;;  %15384 = vmatprep.subr.bf16.mxu0 %v17591_v16  ;;  %v7306_v54 = vadd.f32 %v7274_v9, %v7227_v41  ;;  %v8070_v19 = vadd.f32 %v8038_v5, %v7805_v29  ;;  %v7865_v57 = vld [vmem:[#allocation2 + $0x19a] sm:$0xff] }
 0x1da   : > { %v20066_v27 = vpop.permute.xlu1 %7512  ;;  %v7806_v12 = vadd.f32 %v7774_v23, %v7727_v4  ;;  %v8117_v9 = vmul.f32 %v19848_v17, %v20003_v31  ;;  %v8039_v39 = vmul.f32 %v19832_v55, %v19968_v53  ;;  %v7696_v23 = vmul.f32 %v19804_v0, %v19979_v51 }
 0x1db   : > { %7337 = vperm.xlu1 %17577, %v7020_v62   ;;  %v20075_v37 = vpop.permute.xlu0 %7104  ;;  %v7385_v48 = vadd.f32 %v7353_v61, %v7306_v54  ;;  %v7649_v29 = vadd.f32 %v7617_v36, %v7384_v59  ;;  %v7697_v53 = vmul.f32 %v19804_v0, %v19988_v43  ;;  %v8118_v62 = vmul.f32 %v19848_v17, %v20015_v1 }
 0x1dc   : > { %15385 = vmatpush3.bf16.msra.mxu0 %v17591_v16  ;;  %v7618_v16 = vmul.f32 %v19793_v58, %v19928_v6  ;;  %v8071_v61 = vadd.f32 %v8039_v39, %v7806_v12  ;;  %v7775_v4 = vmul.f32 %v19815_v47, %v20054_v30  ;;  %v8149_v59 = vadd.f32 %v8117_v9, %v8070_v19 }
 0x1dd   : > { %7755 = vperm.xlu0 %17576, %v7442_v7   ;;  %15386 = vmatprep.subr.bf16.mxu0 %v17592_v60  ;;  %v7776_v5 = vmul.f32 %v19815_v47, %v20066_v27  ;;  %v7866_v7 = vld [vmem:[#allocation2 + $0x1a2] sm:$0xff]  ;;  %v7728_v12 = vadd.f32 %v7696_v23, %v7649_v29  ;;  %v7354_v9 = vmul.f32 %v19781_v13, %v20024_v26 }
 0x1de   : > { %v20087_v41 = vpop.permute.xlu1 %7109  ;;  %v7650_v54 = vadd.f32 %v7618_v16, %v7385_v48  ;;  %v7228_v48 = vadd.f32 %v19774_v40, %v7196_v14  ;;  %v8150_v39 = vadd.f32 %v8118_v62, %v8071_v61 }
 0x1df   : > { %15355 = vmatmul.mubr.msk.bf16.gmra.mrb[4].mxu0 %vm435_vm2, %v19135_v24  ;;  %7760 = vperm.xlu1 %17577, %v7443_v49   ;;  %v20106_v6 = vpop.permute.xlu0 %7920  ;;  %v7807_v23 = vadd.f32 %v7775_v4, %v7728_v12 }
 0x1e0   : > { %15358 = vmatprep.mubr.msk.bf16.mxu0 %vm435_vm2, %v19237_v3  ;;  %v8196_v24 = vmul.f32 %v19870_v42, %v20106_v6  ;;  %15387 = vmatpush3.bf16.msra.mxu0 %v17592_v60  ;;  %v20117_v3 = vld [vmem:[%s22635_s4 + $0x80] sm:$0xff]   ;;  %v7729_v19 = vadd.f32 %v7697_v53, %v7650_v54  ;;  %v7276_v60 = vmul.f32 %v19761_v15, %v19946_v52 }
 0x1e1   : > { %8178 = vperm.xlu0 %17576, %v7865_v57   ;;  %15388 = vmatprep.subr.bf16.mxu0 %v17593_v11  ;;  %v7229_v57 = vadd.f32 %v19774_v40, %v7197_v33  ;;  %v7307_v22 = vadd.f32 %v7275_v20, %v7228_v48  ;;  %v8040_v54 = vmul.f32 %v19832_v55, %v20003_v31  ;;  %v20140_v33 = vld [vmem:[#allocation3 + $0x62] sm:$0xff] }
 0x1e2   : > { %v20112_v36 = vpop.permute.xlu1 %7925  ;;  %v8228_v49 = vadd.f32 %v8196_v24, %v8149_v59  ;;  %v7808_v14 = vadd.f32 %v7776_v5, %v7729_v19  ;;  %v7355_v59 = vmul.f32 %v19781_v13, %v20035_v8  ;;  %v8119_v61 = vmul.f32 %v19848_v17, %v20106_v6  ;;  %v20138_v24 = vld [vmem:[#allocation3 + $0x61] sm:$0xff]  ;;  %22661 = vst [vmem:[#allocation18_spill] sm:$0xff] %v20140_v33  ;;  %v20155_v19 = vld [vmem:[#allocation3 + $0x69] sm:$0xff] }
 0x1e3   : > { %v8197_v16 = vmul.f32 %v19870_v42, %v20112_v36  ;;  %8183 = vperm.xlu1 %17577, %v7866_v7   ;;  %v20126_v29 = vpop.permute.xlu0 %7517  ;;  %v7386_v20 = vadd.f32 %v7354_v9, %v7307_v22  ;;  %v8120_v31 = vmul.f32 %v19848_v17, %v20112_v36  ;;  %v7308_v5 = vadd.f32 %v7276_v60, %v7229_v57  ;;  %v20157_v9 = vld [vmem:[#allocation3 + $0x6a] sm:$0xff] }
 0x1e4   : > { %v8260_v53 = vmax.f32 %v8228_v49, 0.0  ;;  %15389 = vmatpush3.bf16.msra.mxu0 %v17593_v11  ;;  %v8041_v11 = vmul.f32 %v19832_v55, %v20015_v1  ;;  %v8072_v7 = vadd.f32 %v8040_v54, %v7807_v23  ;;  %v7619_v1 = vmul.f32 %v19793_v58, %v19979_v51  ;;  %22662 = vst [vmem:[#allocation19_spill] sm:$0xff] %v20157_v9 }
 0x1e5   : > { %v8229_v62 = vadd.f32 %v8197_v16, %v8150_v39  ;;  %15422 = vmatprep.subr.bf16.mxu0 %v20117_v3  ;;  %v7387_v49 = vadd.f32 %v7355_v59, %v7308_v5  ;;  %v7698_v23 = vmul.f32 %v19804_v0, %v20054_v30  ;;  %v7198_v57 = vmul.f32 %v19749_v56, %v19932_v38 }
 0x1e6   : > { %v20135_v4 = vpop.permute.xlu1 %7522  ;;  %8292 = vst.msk [vmem:[#allocation3 + $0x61] sm:$0xff] %vm435_vm2, %v8260_v53  ;;  %v8073_v22 = vadd.f32 %v8041_v11, %v7808_v14  ;;  %v7620_v14 = vmul.f32 %v19793_v58, %v19988_v43  ;;  %v7199_v59 = vmul.f32 %v19749_v56, %v19946_v52  ;;  %v7277_v11 = vmul.f32 %v19761_v15, %v20024_v26  ;;  %v20188_v52 = vld [vmem:[#allocation3 + $0x79] sm:$0xff] }
 0x1e7   : > { %15359 = vmatmul.mubr.msk.bf16.gmra.mrb[8].mxu0 %vm435_vm2, %v19277_v44  ;;  %v8261_v12 = vmax.f32 %v8229_v62, 0.0  ;;  %v20151_v48 = vpop.permute.xlu0 %7930  ;;  %v8151_v44 = vadd.f32 %v8119_v61, %v8072_v7  ;;  %v7777_v61 = vmul.f32 %v19815_v47, %v20126_v29  ;;  %v7699_v38 = vmul.f32 %v19804_v0, %v20066_v27 }
 0x1e8   : > { %15362 = vmatprep.mubr.msk.bf16.mxu0 %vm435_vm2, %v19351_v18  ;;  %v8198_v60 = vmul.f32 %v19870_v42, %v20151_v48  ;;  %v7651_v18 = vadd.f32 %v7619_v1, %v7386_v20  ;;  %v8152_v16 = vadd.f32 %v8120_v31, %v8073_v22  ;;  %v7652_v20 = vadd.f32 %v7620_v14, %v7387_v49  ;;  %v20190_v1 = vld [vmem:[#allocation3 + $0x7a] sm:$0xff] }
 0x1e9   : > { %8293 = vst.msk [vmem:[#allocation3 + $0x69] sm:$0xff] %vm435_vm2, %v8261_v12  ;;  %v7278_v43 = vmul.f32 %v19761_v15, %v20035_v8  ;;  %22663 = vst [vmem:[#allocation20_spill] sm:$0xff] %v20190_v1  ;;  %v7230_v22 = vadd.f32 %v19774_v40, %v7198_v57  ;;  %v7356_v49 = vmul.f32 %v19781_v13, %v20075_v37 }
 0x1ea   : > { %v20161_v39 = vpop.permute.xlu1 %7935  ;;  %v8230_v53 = vadd.f32 %v8198_v60, %v8151_v44  ;;  %v7730_v7 = vadd.f32 %v7698_v23, %v7651_v18  ;;  %v7778_v44 = vmul.f32 %v19815_v47, %v20135_v4  ;;  %v20201_v18 = vld [vmem:[#allocation3 + $0x81] sm:$0xff]  ;;  %v7231_v23 = vadd.f32 %v19774_v40, %v7199_v59 }
 0x1eb   : > { %v8199_v51 = vmul.f32 %v19870_v42, %v20161_v39  ;;  %v20172_v54 = vpop.permute.xlu0 %7114  ;;  %v7309_v57 = vadd.f32 %v7277_v11, %v7230_v22  ;;  %v7731_v14 = vadd.f32 %v7699_v38, %v7652_v20  ;;  %v8121_v33 = vmul.f32 %v19848_v17, %v20151_v48 }
 0x1ec   : > { %v8262_v31 = vmax.f32 %v8230_v53, 0.0  ;;  %v7621_v11 = vmul.f32 %v19793_v58, %v20054_v30  ;;  %v8043_v20 = vmul.f32 %v19832_v55, %v20112_v36  ;;  %v7701_v30 = vmul.f32 %v19804_v0, %v20135_v4 }
 0x1ed   : > { %v8231_v62 = vadd.f32 %v8199_v51, %v8152_v16  ;;  %v7357_v16 = vmul.f32 %v19781_v13, %v20087_v41  ;;  %v7809_v51 = vadd.f32 %v7777_v61, %v7730_v7  ;;  %v7388_v1 = vadd.f32 %v7356_v49, %v7309_v57 }
 0x1ee   : > { %v20182_v5 = vpop.permute.xlu1 %7119  ;;  %8294 = vst.msk [vmem:[#allocation3 + $0x79] sm:$0xff] %vm435_vm2, %v8262_v31  ;;  %v7200_v61 = vmul.f32 %v19749_v56, %v20024_v26  ;;  %v7622_v7 = vmul.f32 %v19793_v58, %v20066_v27  ;;  %v7279_v26 = vmul.f32 %v19761_v15, %v20075_v37  ;;  %v8122_v22 = vmul.f32 %v19848_v17, %v20161_v39 }
 0x1ef   : > { %v8263_v12 = vmax.f32 %v8231_v62, 0.0  ;;  %15363 = vmatmul.mubr.msk.bf16.gmra.mrb[12].mxu0 %vm435_vm2, %v19395_v32  ;;  %v20199_v60 = vpop.permute.xlu0 %7527  ;;  %v20203_v32 = vld [vmem:[#allocation3 + $0x82] sm:$0xff]  ;;  %v8042_v62 = vmul.f32 %v19832_v55, %v20106_v6  ;;  %v7700_v6 = vmul.f32 %v19804_v0, %v20126_v29  ;;  %v7653_v36 = vadd.f32 %v7621_v11, %v7388_v1 }
 0x1f0   : > { %15366 = vmatprep.mubr.msk.bf16.mxu0 %vm435_vm2, %v19479_v63  ;;  %22664 = vst [vmem:[#allocation21_spill] sm:$0xff] %v20203_v32  ;;  %v7310_v63 = vadd.f32 %v7278_v43, %v7231_v23  ;;  %v7810_v32 = vadd.f32 %v7778_v44, %v7731_v14  ;;  %v7201_v43 = vmul.f32 %v19749_v56, %v20035_v8 }
 0x1f1   : > { %8295 = vst.msk [vmem:[#allocation3 + $0x81] sm:$0xff] %vm435_vm2, %v8263_v12  ;;  %v8074_v59 = vadd.f32 %v8042_v62, %v7809_v51  ;;  %v7779_v8 = vmul.f32 %v19815_v47, %v20199_v60  ;;  %v7732_v1 = vadd.f32 %v7700_v6, %v7653_v36  ;;  %v7358_v57 = vmul.f32 %v19781_v13, %v20172_v54 }
 0x1f2   : > { %v20210_v53 = vpop.permute.xlu1 %7532  ;;  %v7389_v31 = vadd.f32 %v7357_v16, %v7310_v63  ;;  %v8075_v12 = vadd.f32 %v8043_v20, %v7810_v32  ;;  %v7232_v16 = vadd.f32 %v19774_v40, %v7200_v61  ;;  %v7280_v14 = vmul.f32 %v19761_v15, %v20087_v41 }
 0x1f3   : > { %v20214_v9 = vpop.permute.xlu0 %7124  ;;  %v8153_v44 = vadd.f32 %v8121_v33, %v8074_v59  ;;  %v7780_v23 = vmul.f32 %v19815_v47, %v20210_v53  ;;  %v7811_v63 = vadd.f32 %v7779_v8, %v7732_v1  ;;  %v7233_v59 = vadd.f32 %v19774_v40, %v7201_v43  ;;  %v20272_v8 = vld [vmem:[#allocation3 + $0x92] sm:$0xff] }
 0x1f4   : > { %v7654_v49 = vadd.f32 %v7622_v7, %v7389_v31  ;;  %v8154_v33 = vadd.f32 %v8122_v22, %v8075_v12  ;;  %v7311_v11 = vadd.f32 %v7279_v26, %v7232_v16  ;;  %v8044_v6 = vmul.f32 %v19832_v55, %v20151_v48  ;;  %v20270_v22 = vld [vmem:[#allocation3 + $0x91] sm:$0xff]  ;;  %22665 = vst [vmem:[#allocation22_spill] sm:$0xff] %v20272_v8  ;;  %v20287_v16 = vld [vmem:[#allocation3 + $0x99] sm:$0xff] }
 0x1f5   : > { %v7359_v7 = vmul.f32 %v19781_v13, %v20182_v5  ;;  %v8045_v43 = vmul.f32 %v19832_v55, %v20161_v39  ;;  %v7623_v39 = vmul.f32 %v19793_v58, %v20126_v29  ;;  %v7702_v29 = vmul.f32 %v19804_v0, %v20199_v60 }
 0x1f6   : > { %v20226_v38 = vpop.permute.xlu1 %7129  ;;  %v7733_v51 = vadd.f32 %v7701_v30, %v7654_v49  ;;  %v7390_v26 = vadd.f32 %v7358_v57, %v7311_v11  ;;  %v7312_v49 = vadd.f32 %v7280_v14, %v7233_v59 }
 0x1f7   : > { %15367 = vmatmul.mubr.msk.bf16.gmra.mrb[16].mxu0 %vm435_vm2, %v19540_v50  ;;  %v20244_v27 = vpop.permute.xlu0 %7940 }
 0x1f8   : > { %15370 = vmatprep.mubr.msk.bf16.mxu0 %vm435_vm2, %v19635_v34  ;;  %v8200_v50 = vmul.f32 %v19870_v42, %v20244_v27  ;;  %v7812_v20 = vadd.f32 %v7780_v23, %v7733_v51  ;;  %v8123_v30 = vmul.f32 %v19848_v17, %v20244_v27  ;;  %v20289_v51 = vld [vmem:[#allocation3 + $0x9a] sm:$0xff]  ;;  %v7391_v57 = vadd.f32 %v7359_v7, %v7312_v49 }
 0x1f9   : > { %22666 = vst [vmem:[#allocation23_spill] sm:$0xff] %v20289_v51  ;;  %v7203_v7 = vmul.f32 %v19749_v56, %v20087_v41  ;;  %v7360_v49 = vmul.f32 %v19781_v13, %v20214_v9  ;;  %v20325_v41 = vld [vmem:[#allocation3 + $0xaa] sm:$0xff] }
 0x1fa   : > { %v20250_v32 = vpop.permute.xlu1 %7945  ;;  %v8232_v34 = vadd.f32 %v8200_v50, %v8153_v44  ;;  %v8076_v44 = vadd.f32 %v8044_v6, %v7811_v63  ;;  %v8077_v1 = vadd.f32 %v8045_v43, %v7812_v20  ;;  %v7281_v20 = vmul.f32 %v19761_v15, %v20172_v54 }
 0x1fb   : > { %v8201_v62 = vmul.f32 %v19870_v42, %v20250_v32  ;;  %v20259_v31 = vpop.permute.xlu0 %7537  ;;  %v8124_v48 = vmul.f32 %v19848_v17, %v20250_v32 }
 0x1fc   : > { %v8264_v61 = vmax.f32 %v8232_v34, 0.0  ;;  %v8155_v34 = vadd.f32 %v8123_v30, %v8076_v44 }
 0x1fd   : > { %v8233_v36 = vadd.f32 %v8201_v62, %v8154_v33  ;;  %v8156_v63 = vadd.f32 %v8124_v48, %v8077_v1  ;;  %v7282_v1 = vmul.f32 %v19761_v15, %v20182_v5  ;;  %v7235_v15 = vadd.f32 %v19774_v40, %v7203_v7 }
 0x1fe   : > { %v20268_v12 = vpop.permute.xlu1 %7542  ;;  %8296 = vst.msk [vmem:[#allocation3 + $0x91] sm:$0xff] %vm435_vm2, %v8264_v61  ;;  %v7781_v61 = vmul.f32 %v19815_v47, %v20259_v31 }
 0x1ff   : > { %15371 = vmatmul.mubr.msk.bf16.gmra.mrb[20].mxu0 %vm435_vm2, %v19661_v45  ;;  %v8265_v23 = vmax.f32 %v8233_v36, 0.0  ;;  %v20283_v50 = vpop.permute.xlu0 %7950  ;;  %v7202_v45 = vmul.f32 %v19749_v56, %v20075_v37  ;;  %v7624_v37 = vmul.f32 %v19793_v58, %v20135_v4  ;;  %v7703_v36 = vmul.f32 %v19804_v0, %v20210_v53  ;;  %v20323_v56 = vld [vmem:[#allocation3 + $0xb1] sm:$0xff] }
 0x200   : > { %15374 = vmatprep.mubr.msk.bf16.mxu0 %vm435_vm2, %v19680_v35  ;;  %v8202_v14 = vmul.f32 %v19870_v42, %v20283_v50  ;;  %v7655_v35 = vadd.f32 %v7623_v39, %v7390_v26  ;;  %v20321_v39 = vld [vmem:[#allocation3 + $0xa9] sm:$0xff] }
 0x201   : > { %8297 = vst.msk [vmem:[#allocation3 + $0x99] sm:$0xff] %vm435_vm2, %v8265_v23  ;;  %v7656_v30 = vadd.f32 %v7624_v37, %v7391_v57  ;;  %v7234_v4 = vadd.f32 %v19774_v40, %v7202_v45  ;;  %v22667_v23 = vld [vmem:[#allocation9_spill] sm:$0xff]  ;;  %v7782_v45 = vmul.f32 %v19815_v47, %v20268_v12  ;;  %v7704_v40 = vmul.f32 %v19804_v0, %v20259_v31 }
 0x202   : > { %v20295_v33 = vpop.permute.xlu1 %7955  ;;  %v8234_v59 = vadd.f32 %v8202_v14, %v8155_v34  ;;  %v7734_v48 = vadd.f32 %v7702_v29, %v7655_v35  ;;  %22668 = vst [vmem:[#allocation9_spill] sm:$0xff] %v20325_v41  ;;  %v1978_v34 = vld [vmem:[#allocation3 + $0x198] sm:$0xff]  ;;  %v1979_v14 = vld [vmem:[#allocation3 + $0x1a0] sm:$0xff]  ;;  %v2730_v37 = vld [vmem:[#allocation3 + $0x9] sm:$0xff] }
 0x203   : > { %v8203_v62 = vmul.f32 %v19870_v42, %v20295_v33  ;;  %v20304_v11 = vpop.permute.xlu0 %7134  ;;  %v20335_v35 = vld [vmem:[#allocation3 + $0xb2] sm:$0xff]  ;;  %v7313_v29 = vadd.f32 %v7281_v20, %v7234_v4  ;;  %v2499_v41 = vpack.c.bf16 %v1979_v14, %v1978_v34  ;;  %v22671_v34 = vld [vmem:[#allocation11_spill] sm:$0xff] }
 0x204   : > { %v8266_v43 = vmax.f32 %v8234_v59, 0.0  ;;  %22669 = vst [vmem:[#allocation24_spill] sm:$0xff] %v20335_v35  ;;  %v7735_v59 = vadd.f32 %v7703_v36, %v7656_v30  ;;  %v8046_v35 = vmul.f32 %v19832_v55, %v20244_v27  ;;  %v8047_v27 = vmul.f32 %v19832_v55, %v20250_v32  ;;  %v20359_v36 = vld [vmem:[%s22633_s2] ss:$0 sm:$0xff] }
 0x205   : > { %v8235_v6 = vadd.f32 %v8203_v62, %v8156_v63  ;;  %v7813_v63 = vadd.f32 %v7781_v61, %v7734_v48  ;;  %v2729_v62 = vld [vmem:[#allocation3 + $0x1] sm:$0xff]  ;;  %v7625_v48 = vmul.f32 %v19793_v58, %v20199_v60  ;;  %v7626_v32 = vmul.f32 %v19793_v58, %v20210_v53 }
 0x206   : > { %v20314_v26 = vpop.permute.xlu1 %7139  ;;  %8298 = vst.msk [vmem:[#allocation3 + $0xa9] sm:$0xff] %vm435_vm2, %v8266_v43  ;;  %v7314_v43 = vadd.f32 %v7282_v1, %v7235_v15  ;;  %v7814_v20 = vadd.f32 %v7782_v45, %v7735_v59  ;;  %v2765_v4 = vpack.c.bf16 %v2730_v37, %v2729_v62  ;;  %v22670_v45 = vld [vmem:[#allocation10_spill] sm:$0xff]  ;;  %v7205_v37 = vmul.f32 %v20359_v36, %v20182_v5 }
 0x207   : > { %v8267_v44 = vmax.f32 %v8235_v6, 0.0  ;;  %15375 = vmatmul.mubr.msk.bf16.gmra.mrb[24].mxu0 %vm435_vm2, %v22667_v23  ;;  %v20333_v57 = vpop.permute.xlu0 %7547  ;;  %v7392_v23 = vadd.f32 %v7360_v49, %v7313_v29  ;;  %v8078_v7 = vadd.f32 %v8046_v35, %v7813_v63  ;;  %v7204_v49 = vmul.f32 %v20359_v36, %v20172_v54 }
 0x208   : > { %15378 = vmatprep.mubr.msk.bf16.mxu0 %vm435_vm2, %v19970_v21  ;;  %v7361_v21 = vmul.f32 %v19781_v13, %v20226_v38  ;;  %v8125_v13 = vmul.f32 %v19848_v17, %v20283_v50  ;;  %v20370_v14 = vpack.c.bf16 %v22671_v34, %v22670_v45  ;;  %v7705_v35 = vmul.f32 %v19804_v0, %v20268_v12 }
 0x209   : > { %8299 = vst.msk [vmem:[#allocation3 + $0xb1] sm:$0xff] %vm435_vm2, %v8267_v44  ;;  %v7657_v60 = vadd.f32 %v7625_v48, %v7392_v23  ;;  %v7783_v44 = vmul.f32 %v19815_v47, %v20333_v57  ;;  %v8079_v29 = vadd.f32 %v8047_v27, %v7814_v20  ;;  %v8126_v54 = vmul.f32 %v19848_v17, %v20295_v33  ;;  %v20401_v23 = vld [vmem:[%s22634_s3] ss:$0 sm:$0xff]  ;;  %v20407_v20 = vld [vmem:[%s22633_s2 + $0x6] ss:$0 sm:$0xff] }
 0x20a   : > { %v20342_v6 = vpop.permute.xlu1 %7552  ;;  %v7393_v30 = vadd.f32 %v7361_v21, %v7314_v43  ;;  %v8157_v53 = vadd.f32 %v8125_v13, %v8078_v7  ;;  %v20396_v21 = vpack.c.bf16 %v20007_v10, %v19990_v28  ;;  %v7236_v43 = vadd.f32 %v20401_v23, %v7204_v49 }
 0x20b   : > { %v20346_v61 = vpop.permute.xlu0 %7144  ;;  %v7736_v58 = vadd.f32 %v7704_v40, %v7657_v60  ;;  %v7784_v59 = vmul.f32 %v19815_v47, %v20342_v6  ;;  %v7362_v5 = vmul.f32 %v20407_v20, %v20304_v11  ;;  %v8158_v40 = vadd.f32 %v8126_v54, %v8079_v29  ;;  %v20429_v29 = vld [vmem:[#allocation3 + $0xc1] sm:$0xff] }
 0x20c   : > { %v7658_v15 = vadd.f32 %v7626_v32, %v7393_v30  ;;  %v8048_v27 = vmul.f32 %v19832_v55, %v20283_v50  ;;  %v7237_v45 = vadd.f32 %v20401_v23, %v7205_v37  ;;  %v7363_v34 = vmul.f32 %v20407_v20, %v20314_v26  ;;  %v20431_v54 = vld [vmem:[#allocation3 + $0xc2] sm:$0xff] }
 0x20d   : > { %v7815_v47 = vadd.f32 %v7783_v44, %v7736_v58  ;;  %v17595_v44 = vld [vmem:[%s22635_s4 + $0x88] sm:$0xff]   ;;  %22672 = vst [vmem:[#allocation10_spill] sm:$0xff] %v20431_v54 }
 0x20e   : > { %v20365_v1 = vpop.permute.xlu1 %7149  ;;  %v7737_v10 = vadd.f32 %v7705_v35, %v7658_v15 }
 0x20f   : > { %15379 = vmatmul.mubr.msk.bf16.gmra.mrb[28].mxu0 %vm435_vm2, %v2499_v41  ;;  %v20378_v63 = vpop.permute.xlu0 %7960  ;;  %v20384_v41 = vld [vmem:[%s22633_s2 + $0x3] ss:$0 sm:$0xff]  ;;  %v8080_v50 = vadd.f32 %v8048_v27, %v7815_v47  ;;  %v2746_v47 = vld [vmem:[#allocation3 + $0xc9] sm:$0xff] }
 0x210   : > { %15390 = vmatprep.mubr.msk.bf16.mxu0 %vm435_vm2, %v2765_v4  ;;  %v7283_v62 = vmul.f32 %v20384_v41, %v20214_v9  ;;  %v8204_v0 = vmul.f32 %v19870_v42, %v20378_v63  ;;  %v7284_v28 = vmul.f32 %v20384_v41, %v20226_v38  ;;  %v8127_v49 = vmul.f32 %v19848_v17, %v20378_v63 }
 0x211   : > { %v7816_v32 = vadd.f32 %v7784_v59, %v7737_v10 }
 0x212   : > { %v8236_v4 = vadd.f32 %v8204_v0, %v8157_v53  ;;  %v20411_v48 = vpop.permute.xlu1 %7965  ;;  %v7315_v30 = vadd.f32 %v7283_v62, %v7236_v43  ;;  %v7316_v58 = vadd.f32 %v7284_v28, %v7237_v45  ;;  %v20441_v53 = vld [vmem:[%s22633_s2 + $0x2] ss:$0 sm:$0xff]  ;;  %v20455_v43 = vld [vmem:[%s22633_s2 + $0x1] ss:$0 sm:$0xff] }
 0x213   : > { %v8205_v7 = vmul.f32 %v19870_v42, %v20411_v48  ;;  %v20417_v13 = vpop.permute.xlu0 %7557  ;;  %v8049_v0 = vmul.f32 %v20441_v53, %v20295_v33  ;;  %v8128_v37 = vmul.f32 %v19848_v17, %v20411_v48  ;;  %v8159_v33 = vadd.f32 %v8127_v49, %v8080_v50 }
 0x214   : > { %v8268_v60 = vmax.f32 %v8236_v4, 0.0  ;;  %v7394_v55 = vadd.f32 %v7362_v5, %v7315_v30  ;;  %v7627_v5 = vmul.f32 %v20455_v43, %v20259_v31  ;;  %v20464_v4 = vld [vmem:[#allocation3 + $0xca] sm:$0xff]  ;;  %v7395_v28 = vadd.f32 %v7363_v34, %v7316_v58 }
 0x215   : > { %v8237_v35 = vadd.f32 %v8205_v7, %v8158_v40  ;;  %22673 = vst [vmem:[#allocation11_spill] sm:$0xff] %v20464_v4  ;;  %v8081_v10 = vadd.f32 %v8049_v0, %v7816_v32  ;;  %v7206_v40 = vmul.f32 %v20359_v36, %v20214_v9  ;;  %v7628_v49 = vmul.f32 %v20455_v43, %v20268_v12  ;;  %v20483_v9 = vld [vmem:[%s22633_s2 + $0x8] ss:$0 sm:$0xff]  ;;  %v20498_v12 = vld [vmem:[%s22633_s2 + $0x7] ss:$0 sm:$0xff]  ;;  %v2754_v4 = vld [vmem:[#allocation3 + $0x129] sm:$0xff] }
 0x216   : > { %v20433_v62 = vpop.permute.xlu1 %7562  ;;  %8300 = vst.msk [vmem:[#allocation3 + $0xc1] sm:$0xff] %vm435_vm2, %v8268_v60  ;;  %v7659_v31 = vadd.f32 %v7627_v5, %v7394_v55  ;;  %v20491_v32 = vpack.c.bf16 %v20056_v46, %v20046_v2  ;;  %v7785_v55 = vmul.f32 %v20498_v12, %v20417_v13  ;;  %v20504_v58 = vpack.c.bf16 %v20155_v19, %v20138_v24  ;;  %v17597_v2 = vld [vmem:[%s22635_s4 + $0x98] sm:$0xff]   ;;  %v20513_v5 = vld [vmem:[#allocation3 + $0xda] sm:$0xff] }
 0x217   : > { %15391 = vmatmul.mubr.msk.bf16.vlgmr.msra.gmra.mrb[0].mxu0 %vm435_vm2, %v20370_v14  ;;  %v8269_v15 = vmax.f32 %v8237_v35, 0.0  ;;  %v8160_v60 = vadd.f32 %v8128_v37, %v8081_v10  ;;  %v7285_v35 = vmul.f32 %v20384_v41, %v20304_v11  ;;  %v7207_v46 = vmul.f32 %v20359_v36, %v20226_v38  ;;  %22674 = vst [vmem:[#allocation25_spill] sm:$0xff] %v20513_v5  ;;  %v2752_v5 = vld [vmem:[#allocation3 + $0x111] sm:$0xff] }
 0x218   : > { %15394 = vmatprep.mubr.msk.bf16.mxu0 %vm435_vm2, %v20396_v21  ;;  %15423 = vmatpush3.bf16.msra.mxu0 %v20117_v3  ;;  %v20450_v59 = vpop.permute.xlu0 %7970  ;;  %v17596_v3 = vld [vmem:[%s22635_s4 + $0x90] sm:$0xff]   ;;  %v7364_v19 = vmul.f32 %v20407_v20, %v20346_v61  ;;  %v7286_v38 = vmul.f32 %v20384_v41, %v20314_v26 }
 0x219   : > { %v8206_v17 = vmul.f32 %v19870_v42, %v20450_v59  ;;  %15424 = vmatprep.subr.bf16.mxu0 %v17595_v44  ;;  %8301 = vst.msk [vmem:[#allocation3 + $0xc9] sm:$0xff] %vm435_vm2, %v8269_v15  ;;  %v20472_v42 = vld [vmem:[%s22633_s2 + $0x4] ss:$0 sm:$0xff]  ;;  %v2747_v15 = vld [vmem:[#allocation3 + $0xd9] sm:$0xff]  ;;  %v8052_v51 = vmul.f32 %v20441_v53, %v20450_v59 }
 0x21a   : > { %v7706_v7 = vmul.f32 %v20472_v42, %v20333_v57  ;;  %v20476_v27 = vpop.permute.xlu1 %7975  ;;  %v7707_v0 = vmul.f32 %v20472_v42, %v20342_v6 }
 0x21b   : > { %v8238_v30 = vadd.f32 %v8206_v17, %v8159_v33  ;;  %v8207_v45 = vmul.f32 %v20483_v9, %v20476_v27  ;;  %v7238_v33 = vadd.f32 %v20401_v23, %v7206_v40 }
 0x21c   : > { %v20487_v34 = vpop.permute.xlu0 %7154  ;;  %15425 = vmatpush3.bf16.msra.mxu0 %v17595_v44  ;;  %v7660_v44 = vadd.f32 %v7628_v49, %v7395_v28  ;;  %v7738_v24 = vadd.f32 %v7706_v7, %v7659_v31  ;;  %v7786_v28 = vmul.f32 %v20498_v12, %v20433_v62  ;;  %v20533_v31 = vpack.c.bf16 %v20201_v18, %v20188_v52  ;;  %v2748_v7 = vld [vmem:[#allocation3 + $0xe1] sm:$0xff]  ;;  %v20548_v52 = vld [vmem:[%s22635_s4 + $0xe0] sm:$0xff]  }
 0x21d   : > { %v8270_v50 = vmax.f32 %v8238_v30, 0.0  ;;  %15426 = vmatprep.subr.bf16.mxu0 %v17596_v3  ;;  %v8239_v37 = vadd.f32 %v8207_v45, %v8160_v60  ;;  %v2750_v30 = vld [vmem:[#allocation3 + $0xf9] sm:$0xff]  ;;  %v20535_v49 = vld [vmem:[#allocation3 + $0xe2] sm:$0xff]  ;;  %v7317_v60 = vadd.f32 %v7285_v35, %v7238_v33  ;;  %v7239_v18 = vadd.f32 %v20401_v23, %v7207_v46 }
 0x21e   : > { %v20518_v17 = vpop.permute.xlu1 %7159  ;;  %22675 = vst [vmem:[#allocation26_spill] sm:$0xff] %v20535_v49  ;;  %v7817_v45 = vadd.f32 %v7785_v55, %v7738_v24  ;;  %v7365_v35 = vmul.f32 %v20407_v20, %v20365_v1  ;;  %v20561_v33 = vpack.c.bf16 %v2748_v7, %v2747_v15  ;;  %v2751_v46 = vld [vmem:[#allocation3 + $0x109] sm:$0xff]  ;;  %v7708_v15 = vmul.f32 %v20472_v42, %v20417_v13 }
 0x21f   : > { %15395 = vmatmul.mubr.msk.bf16.gmra.mrb[4].mxu0 %vm435_vm2, %v20491_v32  ;;  %8302 = vst.msk [vmem:[#allocation3 + $0xd9] sm:$0xff] %vm435_vm2, %v8270_v50  ;;  %v8271_v10 = vmax.f32 %v8239_v37, 0.0  ;;  %v20539_v50 = vpack.c.bf16 %v20287_v16, %v20270_v22  ;;  %v20543_v37 = vpack.c.bf16 %v20323_v56, %v20321_v39  ;;  %v20554_v22 = vpack.c.bf16 %v2746_v47, %v20429_v29  ;;  %v2749_v16 = vld [vmem:[#allocation3 + $0xf1] sm:$0xff] }
 0x220   : > { %15398 = vmatprep.mubr.msk.bf16.mxu0 %vm435_vm2, %v20504_v58  ;;  %v20529_v40 = vpop.permute.xlu0 %7567  ;;  %15427 = vmatpush3.bf16.msra.mxu0 %v17596_v3  ;;  %v7739_v3 = vadd.f32 %v7707_v0, %v7660_v44  ;;  %v7396_v39 = vadd.f32 %v7364_v19, %v7317_v60  ;;  %v8050_v56 = vmul.f32 %v20441_v53, %v20378_v63  ;;  %v2753_v44 = vld [vmem:[#allocation3 + $0x121] sm:$0xff]  ;;  %v2758_v19 = vld [vmem:[#allocation3 + $0x159] sm:$0xff]  ;;  %v2757_v60 = vld [vmem:[#allocation3 + $0x151] sm:$0xff] }
 0x221   : > { %15428 = vmatprep.subr.bf16.mxu0 %v17597_v2  ;;  %8303 = vst.msk [vmem:[#allocation3 + $0xe1] sm:$0xff] %vm435_vm2, %v8271_v10  ;;  %v20563_v24 = vpack.c.bf16 %v2750_v30, %v2749_v16  ;;  %v2756_v0 = vld [vmem:[#allocation3 + $0x141] sm:$0xff]  ;;  %v7318_v49 = vadd.f32 %v7286_v38, %v7239_v18  ;;  %v20567_v47 = vpack.c.bf16 %v2752_v5, %v2751_v46  ;;  %v20578_v38 = vld [vmem:[%s22633_s2 + $0x5] ss:$0 sm:$0xff] }
 0x222   : > { %v20559_v55 = vpop.permute.xlu1 %7572  ;;  %v7818_v54 = vadd.f32 %v7786_v28, %v7739_v3  ;;  %v20569_v10 = vpack.c.bf16 %v2754_v4, %v2753_v44  ;;  %v7629_v63 = vmul.f32 %v20455_v43, %v20333_v57  ;;  %v8082_v7 = vadd.f32 %v8050_v56, %v7817_v45  ;;  %v2755_v28 = vld [vmem:[#allocation3 + $0x139] sm:$0xff] }
 0x223   : > { %v8129_v5 = vmul.f32 %v20578_v38, %v20450_v59  ;;  %v7208_v4 = vmul.f32 %v20359_v36, %v20304_v11  ;;  %v8051_v57 = vmul.f32 %v20441_v53, %v20411_v48  ;;  %v20587_v30 = vpack.c.bf16 %v2756_v0, %v2755_v28 }
 0x224   : > { %v20565_v29 = vpop.permute.xlu0 %7164  ;;  %15429 = vmatpush3.bf16.msra.mxu0 %v17597_v2  ;;  %v7397_v2 = vadd.f32 %v7365_v35, %v7318_v49  ;;  %v7209_v45 = vmul.f32 %v20359_v36, %v20314_v26  ;;  %v7661_v18 = vadd.f32 %v7629_v63, %v7396_v39  ;;  %v7787_v3 = vmul.f32 %v20498_v12, %v20529_v40 }
 0x225   : > { %15462 = vmatprep.subr.bf16.mxu0 %v20548_v52  ;;  %v20597_v11 = vpack.c.bf16 %v2758_v19, %v2757_v60  ;;  %v7630_v48 = vmul.f32 %v20455_v43, %v20342_v6  ;;  %v7709_v49 = vmul.f32 %v20472_v42, %v20433_v62  ;;  %v8083_v35 = vadd.f32 %v8051_v57, %v7818_v54 }
 0x226   : > { %v20593_v16 = vpop.permute.xlu1 %7169  ;;  %v8130_v26 = vmul.f32 %v20578_v38, %v20476_v27  ;;  %v7287_v56 = vmul.f32 %v20384_v41, %v20346_v61  ;;  %v7740_v46 = vadd.f32 %v7708_v15, %v7661_v18  ;;  %v8161_v44 = vadd.f32 %v8129_v5, %v8082_v7 }
 0x227   : > { %15399 = vmatmul.mubr.msk.bf16.gmra.mrb[8].mxu0 %vm435_vm2, %v20533_v31  ;;  %v7240_v0 = vadd.f32 %v20401_v23, %v7208_v4  ;;  %v7210_v54 = vmul.f32 %v20359_v36, %v20346_v61  ;;  %v7662_v19 = vadd.f32 %v7630_v48, %v7397_v2  ;;  %v7788_v63 = vmul.f32 %v20498_v12, %v20559_v55 }
 0x228   : > { %15402 = vmatprep.mubr.msk.bf16.mxu0 %vm435_vm2, %v20539_v50  ;;  %v20607_v39 = vpop.permute.xlu0 %7980  ;;  %v7288_v28 = vmul.f32 %v20384_v41, %v20365_v1  ;;  %v7366_v57 = vmul.f32 %v20407_v20, %v20487_v34  ;;  %v7819_v15 = vadd.f32 %v7787_v3, %v7740_v46  ;;  %v7241_v60 = vadd.f32 %v20401_v23, %v7209_v45 }
 0x229   : > { %v8208_v6 = vmul.f32 %v20483_v9, %v20607_v39  ;;  %v7741_v4 = vadd.f32 %v7709_v49, %v7662_v19  ;;  %v8162_v18 = vadd.f32 %v8130_v26, %v8083_v35  ;;  %v7319_v48 = vadd.f32 %v7287_v56, %v7240_v0  ;;  %v20637_v26 = vld [vmem:[#allocation3 + $0xf2] sm:$0xff] }
 0x22a   : > { %v20622_v5 = vpop.permute.xlu1 %7985  ;;  %v8131_v8 = vmul.f32 %v20578_v38, %v20607_v39  ;;  %v7211_v46 = vmul.f32 %v20359_v36, %v20365_v1  ;;  %v7367_v45 = vmul.f32 %v20407_v20, %v20518_v17  ;;  %22676 = vst [vmem:[#allocation27_spill] sm:$0xff] %v20637_v26  ;;  %v7320_v56 = vadd.f32 %v7288_v28, %v7241_v60 }
 0x22b   : > { %v8240_v7 = vadd.f32 %v8208_v6, %v8161_v44  ;;  %v8209_v61 = vmul.f32 %v20483_v9, %v20622_v5  ;;  %v7820_v49 = vadd.f32 %v7788_v63, %v7741_v4  ;;  %v7242_v44 = vadd.f32 %v20401_v23, %v7210_v54 }
 0x22c   : > { %v20627_v2 = vpop.permute.xlu0 %7577  ;;  %v7398_v6 = vadd.f32 %v7366_v57, %v7319_v48  ;;  %v8084_v0 = vadd.f32 %v8052_v51, %v7819_v15  ;;  %v8053_v1 = vmul.f32 %v20441_v53, %v20476_v27  ;;  %v7289_v19 = vmul.f32 %v20384_v41, %v20487_v34 }
 0x22d   : > { %v8272_v3 = vmax.f32 %v8240_v7, 0.0  ;;  %v8241_v35 = vadd.f32 %v8209_v61, %v8162_v18  ;;  %v8132_v63 = vmul.f32 %v20578_v38, %v20622_v5  ;;  %v7631_v28 = vmul.f32 %v20455_v43, %v20417_v13  ;;  %v20661_v7 = vld [vmem:[#allocation3 + $0xfa] sm:$0xff] }
 0x22e   : > { %v20640_v59 = vpop.permute.xlu1 %7582  ;;  %v7290_v57 = vmul.f32 %v20384_v41, %v20518_v17  ;;  %v8163_v15 = vadd.f32 %v8131_v8, %v8084_v0  ;;  %22677 = vst [vmem:[#allocation28_spill] sm:$0xff] %v20661_v7  ;;  %v7243_v60 = vadd.f32 %v20401_v23, %v7211_v46  ;;  %v7632_v4 = vmul.f32 %v20455_v43, %v20433_v62 }
 0x22f   : > { %15403 = vmatmul.mubr.msk.bf16.gmra.mrb[12].mxu0 %vm435_vm2, %v20543_v37  ;;  %8304 = vst.msk [vmem:[#allocation3 + $0xf1] sm:$0xff] %vm435_vm2, %v8272_v3  ;;  %v8273_v54 = vmax.f32 %v8241_v35, 0.0  ;;  %v7399_v18 = vadd.f32 %v7367_v45, %v7320_v56  ;;  %v8085_v61 = vadd.f32 %v8053_v1, %v7820_v49  ;;  %v7663_v48 = vadd.f32 %v7631_v28, %v7398_v6 }
 0x230   : > { %15406 = vmatprep.mubr.msk.bf16.mxu0 %vm435_vm2, %v20554_v22  ;;  %v20653_v51 = vpop.permute.xlu0 %7990  ;;  %v7710_v13 = vmul.f32 %v20472_v42, %v20529_v40  ;;  %v7368_v8 = vmul.f32 %v20407_v20, %v20565_v29  ;;  %v7212_v46 = vmul.f32 %v20359_v36, %v20487_v34  ;;  %v7321_v0 = vadd.f32 %v7289_v19, %v7242_v44  ;;  %v20687_v19 = vld [vmem:[#allocation3 + $0x10a] sm:$0xff] }
 0x231   : > { %v8210_v27 = vmul.f32 %v20483_v9, %v20653_v51  ;;  %8305 = vst.msk [vmem:[#allocation3 + $0xf9] sm:$0xff] %vm435_vm2, %v8273_v54  ;;  %v8164_v7 = vadd.f32 %v8132_v63, %v8085_v61  ;;  %v7213_v49 = vmul.f32 %v20359_v36, %v20518_v17  ;;  %v7322_v56 = vadd.f32 %v7290_v57, %v7243_v60 }
 0x232   : > { %v20671_v35 = vpop.permute.xlu1 %7995  ;;  %v7789_v6 = vmul.f32 %v20498_v12, %v20627_v2  ;;  %v7664_v54 = vadd.f32 %v7632_v4, %v7399_v18  ;;  %v7711_v28 = vmul.f32 %v20472_v42, %v20559_v55  ;;  %v7369_v34 = vmul.f32 %v20407_v20, %v20593_v16  ;;  %22678 = vst [vmem:[#allocation29_spill] sm:$0xff] %v20687_v19 }
 0x233   : > { %v8242_v3 = vadd.f32 %v8210_v27, %v8163_v15  ;;  %v8211_v62 = vmul.f32 %v20483_v9, %v20671_v35  ;;  %v7742_v63 = vadd.f32 %v7710_v13, %v7663_v48  ;;  %v7214_v15 = vmul.f32 %v20359_v36, %v20565_v29 }
 0x234   : > { %v20677_v45 = vpop.permute.xlu0 %7174  ;;  %v7291_v17 = vmul.f32 %v20384_v41, %v20565_v29  ;;  %v7400_v57 = vadd.f32 %v7368_v8, %v7321_v0  ;;  %v7292_v60 = vmul.f32 %v20384_v41, %v20593_v16  ;;  %v7790_v4 = vmul.f32 %v20498_v12, %v20640_v59 }
 0x235   : > { %v8274_v1 = vmax.f32 %v8242_v3, 0.0  ;;  %v8243_v44 = vadd.f32 %v8211_v62, %v8164_v7  ;;  %v7215_v7 = vmul.f32 %v20359_v36, %v20593_v16  ;;  %v7244_v61 = vadd.f32 %v20401_v23, %v7212_v46  ;;  %v20712_v3 = vld [vmem:[#allocation3 + $0x112] sm:$0xff] }
 0x236   : > { %v20693_v27 = vpop.permute.xlu1 %7179  ;;  %v7245_v48 = vadd.f32 %v20401_v23, %v7213_v49  ;;  %v7633_v13 = vmul.f32 %v20455_v43, %v20529_v40  ;;  %v7821_v8 = vadd.f32 %v7789_v6, %v7742_v63  ;;  %22679 = vst [vmem:[#allocation30_spill] sm:$0xff] %v20712_v3  ;;  %v7634_v16 = vmul.f32 %v20455_v43, %v20559_v55 }
 0x237   : > { %15407 = vmatmul.mubr.msk.bf16.gmra.mrb[16].mxu0 %vm435_vm2, %v20561_v33  ;;  %8306 = vst.msk [vmem:[#allocation3 + $0x109] sm:$0xff] %vm435_vm2, %v8274_v1  ;;  %v8275_v18 = vmax.f32 %v8243_v44, 0.0  ;;  %v7743_v0 = vadd.f32 %v7711_v28, %v7664_v54  ;;  %v7401_v62 = vadd.f32 %v7369_v34, %v7322_v56  ;;  %v7370_v1 = vmul.f32 %v20407_v20, %v20677_v45 }
 0x238   : > { %15410 = vmatprep.mubr.msk.bf16.mxu0 %vm435_vm2, %v20563_v24  ;;  %v20706_v29 = vpop.permute.xlu0 %7587  ;;  %v7246_v46 = vadd.f32 %v20401_v23, %v7214_v15  ;;  %v7323_v44 = vadd.f32 %v7291_v17, %v7244_v61  ;;  %v8054_v49 = vmul.f32 %v20441_v53, %v20607_v39  ;;  %v7712_v40 = vmul.f32 %v20472_v42, %v20627_v2 }
 0x239   : > { %8307 = vst.msk [vmem:[#allocation3 + $0x111] sm:$0xff] %vm435_vm2, %v8275_v18  ;;  %v7247_v55 = vadd.f32 %v20401_v23, %v7215_v7  ;;  %v7324_v54 = vadd.f32 %v7292_v60, %v7245_v48  ;;  %v7665_v56 = vadd.f32 %v7633_v13, %v7400_v57  ;;  %v7822_v28 = vadd.f32 %v7790_v4, %v7743_v0 }
 0x23a   : > { %v20724_v6 = vpop.permute.xlu1 %7592  ;;  %v7713_v63 = vmul.f32 %v20472_v42, %v20640_v59  ;;  %v8086_v15 = vadd.f32 %v8054_v49, %v7821_v8  ;;  %v8133_v17 = vmul.f32 %v20578_v38, %v20653_v51  ;;  %v7371_v39 = vmul.f32 %v20407_v20, %v20693_v27 }
 0x23b   : > { %v8055_v18 = vmul.f32 %v20441_v53, %v20622_v5  ;;  %v7635_v7 = vmul.f32 %v20455_v43, %v20627_v2  ;;  %v7666_v57 = vadd.f32 %v7634_v16, %v7401_v62  ;;  %v7402_v60 = vadd.f32 %v7370_v1, %v7323_v44 }
 0x23c   : > { %v20727_v34 = vpop.permute.xlu0 %7253  ;;  %v7744_v4 = vadd.f32 %v7712_v40, %v7665_v56  ;;  %v7636_v61 = vmul.f32 %v20455_v43, %v20640_v59  ;;  %v8056_v48 = vmul.f32 %v20441_v53, %v20653_v51  ;;  %v7791_v13 = vmul.f32 %v20498_v12, %v20706_v29 }
 0x23d   : > { %v8087_v5 = vadd.f32 %v8055_v18, %v7822_v28  ;;  %v8134_v2 = vmul.f32 %v20578_v38, %v20671_v35  ;;  %v7293_v16 = vmul.f32 %v20384_v41, %v20677_v45  ;;  %v7294_v59 = vmul.f32 %v20384_v41, %v20693_v27 }
 0x23e   : > { %v20745_v8 = vpop.permute.xlu1 %7258  ;;  %v7745_v0 = vadd.f32 %v7713_v63, %v7666_v57  ;;  %v8165_v62 = vadd.f32 %v8133_v17, %v8086_v15  ;;  %v7403_v1 = vadd.f32 %v7371_v39, %v7324_v54  ;;  %v8057_v49 = vmul.f32 %v20441_v53, %v20671_v35 }
 0x23f   : > { %15411 = vmatmul.mubr.msk.bf16.gmra.mrb[20].mxu0 %vm435_vm2, %v20567_v47  ;;  %v7667_v40 = vadd.f32 %v7635_v7, %v7402_v60  ;;  %v7792_v56 = vmul.f32 %v20498_v12, %v20724_v6  ;;  %v7372_v28 = vmul.f32 %v20407_v20, %v20727_v34  ;;  %v7714_v18 = vmul.f32 %v20472_v42, %v20706_v29 }
 0x240   : > { %15414 = vmatprep.mubr.msk.bf16.mxu0 %vm435_vm2, %v20569_v10  ;;  %v8001_v51 = vpop.permute.xlu0 %8000  ;;  %v7823_v3 = vadd.f32 %v7791_v13, %v7744_v4  ;;  %v7373_v63 = vmul.f32 %v20407_v20, %v20745_v8  ;;  %v8166_v17 = vadd.f32 %v8134_v2, %v8087_v5  ;;  %v7325_v39 = vadd.f32 %v7293_v16, %v7246_v46  ;;  %v20776_v5 = vld [vmem:[#allocation3 + $0x122] sm:$0xff] }
 0x241   : > { %v8212_v44 = vmul.f32 %v20483_v9, %v8001_v51  ;;  %v7326_v57 = vadd.f32 %v7294_v59, %v7247_v55  ;;  %v7668_v60 = vadd.f32 %v7636_v61, %v7403_v1  ;;  %v8135_v19 = vmul.f32 %v20578_v38, %v8001_v51  ;;  %22680 = vst [vmem:[#allocation31_spill] sm:$0xff] %v20776_v5  ;;  %v2760_v59 = vld [vmem:[#allocation3 + $0x171] sm:$0xff] }
 0x242   : > { %v8006_v15 = vpop.permute.xlu1 %8005  ;;  %v7715_v4 = vmul.f32 %v20472_v42, %v20724_v6  ;;  %v7824_v13 = vadd.f32 %v7792_v56, %v7745_v0  ;;  %v7637_v46 = vmul.f32 %v20455_v43, %v20706_v29  ;;  %v7746_v55 = vadd.f32 %v7714_v18, %v7667_v40  ;;  %v2759_v18 = vld [vmem:[#allocation3 + $0x169] sm:$0xff] }
 0x243   : > { %v8244_v54 = vadd.f32 %v8212_v44, %v8165_v62  ;;  %v8213_v35 = vmul.f32 %v20483_v9, %v8006_v15  ;;  %v7404_v62 = vadd.f32 %v7372_v28, %v7325_v39  ;;  %v7405_v2 = vadd.f32 %v7373_v63, %v7326_v57  ;;  %v20795_v63 = vld [vmem:[#allocation3 + $0x12a] sm:$0xff] }
 0x244   : > { %v20769_v7 = vpop.permute.xlu0 %7597  ;;  %v8088_v61 = vadd.f32 %v8056_v48, %v7823_v3  ;;  %v8136_v0 = vmul.f32 %v20578_v38, %v8006_v15  ;;  %v7638_v48 = vmul.f32 %v20455_v43, %v20724_v6  ;;  %22681 = vst [vmem:[#allocation32_spill] sm:$0xff] %v20795_v63  ;;  %v8089_v39 = vadd.f32 %v8057_v49, %v7824_v13 }
 0x245   : > { %v8276_v26 = vmax.f32 %v8244_v54, 0.0  ;;  %v7793_v25 = vmul.f32 %v20498_v12, %v20769_v7  ;;  %v8245_v44 = vadd.f32 %v8213_v35, %v8166_v17  ;;  %v7716_v56 = vmul.f32 %v20472_v42, %v20769_v7 }
 0x246   : > { %v20780_v16 = vpop.permute.xlu1 %7602  ;;  %v8167_v40 = vadd.f32 %v8135_v19, %v8088_v61  ;;  %v7747_v54 = vadd.f32 %v7715_v4, %v7668_v60  ;;  %v7669_v17 = vadd.f32 %v7637_v46, %v7404_v62  ;;  %v20797_v57 = vpack.c.bf16 %v2760_v59, %v2759_v18 }
 0x247   : > { %15415 = vmatmul.mubr.msk.bf16.gmra.mrb[24].mxu0 %vm435_vm2, %v20587_v30  ;;  %8308 = vst.msk [vmem:[#allocation3 + $0x121] sm:$0xff] %vm435_vm2, %v8276_v26  ;;  %v8277_v1 = vmax.f32 %v8245_v44, 0.0  ;;  %v7794_v29 = vmul.f32 %v20498_v12, %v20780_v16  ;;  %v7825_v28 = vadd.f32 %v7793_v25, %v7746_v55  ;;  %v7670_v35 = vadd.f32 %v7638_v48, %v7405_v2  ;;  %v20810_v2 = vld [vmem:[#allocation3 + $0x13a] sm:$0xff] }
 0x248   : > { %15418 = vmatprep.mubr.msk.bf16.mxu0 %vm435_vm2, %v20597_v11  ;;  %v8011_v3 = vpop.permute.xlu0 %8010  ;;  %v8058_v44 = vmul.f32 %v20441_v53, %v8001_v51  ;;  %v7717_v6 = vmul.f32 %v20472_v42, %v20780_v16  ;;  %v8168_v55 = vadd.f32 %v8136_v0, %v8089_v39  ;;  %v7748_v61 = vadd.f32 %v7716_v56, %v7669_v17 }
 0x249   : > { %v8214_v26 = vmul.f32 %v20483_v9, %v8011_v3  ;;  %8309 = vst.msk [vmem:[#allocation3 + $0x129] sm:$0xff] %vm435_vm2, %v8277_v1  ;;  %v7826_v5 = vadd.f32 %v7794_v29, %v7747_v54  ;;  %v8137_v4 = vmul.f32 %v20578_v38, %v8011_v3  ;;  %v8059_v51 = vmul.f32 %v20441_v53, %v8006_v15 }
 0x24a   : > { %v8016_v25 = vpop.permute.xlu1 %8015  ;;  %v8090_v49 = vadd.f32 %v8058_v44, %v7825_v28  ;;  %v7749_v59 = vadd.f32 %v7717_v6, %v7670_v35  ;;  %v8060_v0 = vmul.f32 %v20441_v53, %v8011_v3 }
 0x24b   : > { %v8246_v19 = vadd.f32 %v8214_v26, %v8167_v40  ;;  %v8215_v63 = vmul.f32 %v20483_v9, %v8016_v25  ;;  %v8091_v29 = vadd.f32 %v8059_v51, %v7826_v5  ;;  %v8138_v48 = vmul.f32 %v20578_v38, %v8016_v25  ;;  %v20829_v5 = vld [vmem:[#allocation3 + $0x142] sm:$0xff] }
 0x24c   : > { %v20804_v60 = vpop.permute.xlu0 %7676  ;;  %v8169_v3 = vadd.f32 %v8137_v4, %v8090_v49  ;;  %v8061_v54 = vmul.f32 %v20441_v53, %v8016_v25  ;;  %v7217_v25 = vmul.f32 %v20359_v36, %v20693_v27 }
 0x24d   : > { %v8278_v13 = vmax.f32 %v8246_v19, 0.0  ;;  %v7795_v62 = vmul.f32 %v20498_v12, %v20804_v60  ;;  %v8247_v46 = vadd.f32 %v8215_v63, %v8168_v55  ;;  %v8170_v44 = vadd.f32 %v8138_v48, %v8091_v29 }
 0x24e   : > { %v20813_v56 = vpop.permute.xlu1 %7681 }
 0x24f   : > { %v7827_v1 = vadd.f32 %v7795_v62, %v7748_v61  ;;  %15419 = vmatmul.mubr.msk.bf16.gmra.mrb[28].mxu0 %vm435_vm2, %v20797_v57  ;;  %8310 = vst.msk [vmem:[#allocation3 + $0x139] sm:$0xff] %vm435_vm2, %v8278_v13  ;;  %v8279_v40 = vmax.f32 %v8247_v46, 0.0  ;;  %v7796_v15 = vmul.f32 %v20498_v12, %v20813_v56  ;;  %v17599_v13 = vld [vmem:[%s22635_s4 + $0xe8] sm:$0xff]   ;;  %v7295_v62 = vmul.f32 %v20384_v41, %v20727_v34 }
 0x250   : > { %15430 = vmatprep.mubr.msk.bf16.mxu0 %vm435_vm2, %v20370_v14  ;;  %v20823_v28 = vpop.permute.xlu0 %8020  ;;  %v7216_v14 = vmul.f32 %v20359_v36, %v20677_v45  ;;  %v20852_v46 = vld [vmem:[#allocation3 + $0x152] sm:$0xff] }
 0x251   : > { %v8092_v26 = vadd.f32 %v8060_v0, %v7827_v1  ;;  %v8139_v18 = vmul.f32 %v20578_v38, %v20823_v28  ;;  %v8216_v63 = vmul.f32 %v20483_v9, %v20823_v28  ;;  %v7828_v17 = vadd.f32 %v7796_v15, %v7749_v59  ;;  %8311 = vst.msk [vmem:[#allocation3 + $0x141] sm:$0xff] %vm435_vm2, %v8279_v40  ;;  %v17600_v40 = vld [vmem:[%s22635_s4 + $0xf0] sm:$0xff]  }
 0x252   : > { %v20835_v35 = vpop.permute.xlu1 %8025  ;;  %v7296_v59 = vmul.f32 %v20384_v41, %v20745_v8  ;;  %v7248_v27 = vadd.f32 %v20401_v23, %v7216_v14  ;;  %v7249_v41 = vadd.f32 %v20401_v23, %v7217_v25  ;;  %v20868_v15 = vld [vmem:[#allocation3 + $0x15a] sm:$0xff]  ;;  %v7639_v23 = vmul.f32 %v20455_v43, %v20769_v7 }
 0x253   : > { %v8248_v39 = vadd.f32 %v8216_v63, %v8169_v3  ;;  %v8093_v6 = vadd.f32 %v8061_v54, %v7828_v17  ;;  %v8140_v19 = vmul.f32 %v20578_v38, %v20835_v35  ;;  %v8217_v55 = vmul.f32 %v20483_v9, %v20835_v35  ;;  %v20872_v63 = vld [vmem:[#allocation3 + $0x16a] sm:$0xff] }
 0x254   : > { %v20841_v61 = vpop.permute.xlu0 %8099  ;;  %v8171_v49 = vadd.f32 %v8139_v18, %v8092_v26  ;;  %v7327_v3 = vadd.f32 %v7295_v62, %v7248_v27  ;;  %v7718_v25 = vmul.f32 %v20472_v42, %v20804_v60 }
 0x255   : > { %v8280_v4 = vmax.f32 %v8248_v39, 0.0  ;;  %v8218_v45 = vmul.f32 %v20483_v9, %v20841_v61  ;;  %v8249_v51 = vadd.f32 %v8217_v55, %v8170_v44  ;;  %v8172_v1 = vadd.f32 %v8140_v19, %v8093_v6  ;;  %v17601_v6 = vld [vmem:[%s22635_s4 + $0xf8] sm:$0xff]   ;;  %v20881_v19 = vld [vmem:[#allocation3 + $0x172] sm:$0xff] }
 0x256   : > { %v8105_v36 = vpop.permute.xlu1 %8104  ;;  %v7640_v55 = vmul.f32 %v20455_v43, %v20780_v16  ;;  %v17602_v43 = vld [vmem:[%s22635_s4 + $0x40] sm:$0xff]  }
 0x257   : > { %v8250_v0 = vadd.f32 %v8218_v45, %v8171_v49  ;;  %15431 = vmatmul.mubr.msk.bf16.vlgmr.msra.gmra.mrb[0].mxu0 %vm435_vm2, %v20396_v21  ;;  %8312 = vst.msk [vmem:[#allocation3 + $0x151] sm:$0xff] %vm435_vm2, %v8280_v4  ;;  %v8281_v29 = vmax.f32 %v8249_v51, 0.0  ;;  %v8219_v48 = vmul.f32 %v20483_v9, %v8105_v36 }
 0x258   : > { %15434 = vmatprep.mubr.msk.bf16.mxu0 %vm435_vm2, %v20491_v32  ;;  %15463 = vmatpush3.bf16.msra.mxu0 %v20548_v52  ;;  %v7333_v8 = vpop.permute.xlu0 %7332  ;;  %v7328_v52 = vadd.f32 %v7296_v59, %v7249_v41  ;;  %v8063_v59 = vmul.f32 %v20441_v53, %v20835_v35 }
 0x259   : > { %v8282_v34 = vmax.f32 %v8250_v0, 0.0  ;;  %15464 = vmatprep.subr.bf16.mxu0 %v17599_v13  ;;  %v8251_v26 = vadd.f32 %v8219_v48, %v8172_v1  ;;  %v7374_v18 = vmul.f32 %v20407_v20, %v7333_v8  ;;  %8313 = vst.msk [vmem:[#allocation3 + $0x159] sm:$0xff] %vm435_vm2, %v8281_v29  ;;  %v8141_v0 = vmul.f32 %v20578_v38, %v20841_v61 }
 0x25a   : > { %v7338_v54 = vpop.permute.xlu1 %7337  ;;  %v8142_v48 = vmul.f32 %v20578_v38, %v8105_v36  ;;  %v2762_v36 = vld [vmem:[#allocation3 + $0x189] sm:$0xff] }
 0x25b   : > { %8314 = vst.msk [vmem:[#allocation3 + $0x169] sm:$0xff] %vm435_vm2, %v8282_v34  ;;  %v8283_v17 = vmax.f32 %v8251_v26, 0.0  ;;  %v7406_v14 = vadd.f32 %v7374_v18, %v7327_v3  ;;  %v7375_v39 = vmul.f32 %v20407_v20, %v7338_v54  ;;  %v7719_v20 = vmul.f32 %v20472_v42, %v20813_v56  ;;  %v20912_v3 = vld [vmem:[#allocation3 + $0x182] sm:$0xff]  ;;  %v20915_v26 = vld [vmem:[#allocation3 + $0x18a] sm:$0xff]  ;;  %v17603_v18 = vld [vmem:[%s22635_s4 + $0x48] sm:$0xff]  }
 0x25c   : > { %15465 = vmatpush3.bf16.msra.mxu0 %v17599_v13  ;;  %v7756_v44 = vpop.permute.xlu0 %7755  ;;  %v8062_v42 = vmul.f32 %v20441_v53, %v20823_v28 }
 0x25d   : > { %15466 = vmatprep.subr.bf16.mxu0 %v17600_v40  ;;  %v7671_v7 = vadd.f32 %v7639_v23, %v7406_v14  ;;  %v7407_v49 = vadd.f32 %v7375_v39, %v7328_v52  ;;  %8315 = vst.msk [vmem:[#allocation3 + $0x171] sm:$0xff] %vm435_vm2, %v8283_v17  ;;  %v7797_v62 = vmul.f32 %v20498_v12, %v7756_v44  ;;  %v17604_v52 = vld [vmem:[%s22635_s4 + $0x50] sm:$0xff]   ;;  %v22686_v17 = vld [vmem:[#allocation16_spill] sm:$0xff]  ;;  %v22687_v14 = vld [vmem:[#allocation17_spill] sm:$0xff] }
 0x25e   : > { %v7761_v4 = vpop.permute.xlu1 %7760  ;;  %v17608_v23 = vld [vmem:[%s22635_s4 + $0xb0] sm:$0xff]   ;;  %v3554_v39 = vpack.c.bf16 %v22687_v14, %v22686_v17  ;;  %v17609_v44 = vld [vmem:[%s22635_s4 + $0xb8] sm:$0xff]  }
 0x25f   : > { %15435 = vmatmul.mubr.msk.bf16.gmra.mrb[4].mxu0 %vm435_vm2, %v20504_v58  ;;  %v7672_v45 = vadd.f32 %v7640_v55, %v7407_v49  ;;  %v7750_v13 = vadd.f32 %v7718_v25, %v7671_v7  ;;  %v7798_v56 = vmul.f32 %v20498_v12, %v7761_v4  ;;  %v22689_v55 = vld [vmem:[#allocation19_spill] sm:$0xff]  ;;  %v17610_v7 = vld [vmem:[%s22635_s4 + $0x100] sm:$0xff]   ;;  %v22690_v49 = vld [vmem:[#allocation20_spill] sm:$0xff] }
 0x260   : > { %15438 = vmatprep.mubr.msk.bf16.mxu0 %vm435_vm2, %v20533_v31  ;;  %15467 = vmatpush3.bf16.msra.mxu0 %v17600_v40  ;;  %v8179_v51 = vpop.permute.xlu0 %8178  ;;  %v2761_v40 = vld [vmem:[#allocation3 + $0x181] sm:$0xff] }
 0x261   : > { %15468 = vmatprep.subr.bf16.mxu0 %v17601_v6  ;;  %v7829_v16 = vadd.f32 %v7797_v62, %v7750_v13  ;;  %v7751_v60 = vadd.f32 %v7719_v20, %v7672_v45  ;;  %v8220_v34 = vmul.f32 %v20483_v9, %v8179_v51  ;;  %v22691_v20 = vld [vmem:[#allocation21_spill] sm:$0xff]  ;;  %v22692_v45 = vld [vmem:[#allocation22_spill] sm:$0xff]  ;;  %v22693_v13 = vld [vmem:[#allocation23_spill] sm:$0xff] }
 0x262   : > { %v8184_v29 = vpop.permute.xlu1 %8183  ;;  %v3556_v4 = vpack.c.bf16 %v22691_v20, %v22690_v49  ;;  %v3557_v62 = vpack.c.bf16 %v22693_v13, %v22692_v45 }
 0x263   : > { %v8094_v27 = vadd.f32 %v8062_v42, %v7829_v16  ;;  %v7830_v1 = vadd.f32 %v7798_v56, %v7751_v60  ;;  %v8221_v53 = vmul.f32 %v20483_v9, %v8184_v29  ;;  %v3055_v9 = vpack.c.bf16 %v2762_v36, %v2761_v40  ;;  %v22695_v42 = vld [vmem:[#allocation24_spill] sm:$0xff]  ;;  %v22696_v60 = vld [vmem:[#allocation10_spill] sm:$0xff]  ;;  %v22697_v56 = vld [vmem:[#allocation11_spill] sm:$0xff] }
 0x264   : > { %15469 = vmatpush3.bf16.msra.mxu0 %v17601_v6  ;;  %v22688_v6 = vld [vmem:[#allocation18_spill] sm:$0xff]  ;;  %v3559_v51 = vpack.c.bf16 %v22697_v56, %v22696_v60  ;;  %v22701_v29 = vld [vmem:[#allocation28_spill] sm:$0xff]  ;;  %v3566_v40 = vpack.c.bf16 %v20881_v19, %v20872_v63 }
 0x265   : > { %15502 = vmatprep.subr.bf16.mxu0 %v17602_v43  ;;  %v8095_v41 = vadd.f32 %v8063_v59, %v7830_v1  ;;  %v8173_v28 = vadd.f32 %v8141_v0, %v8094_v27  ;;  %v3555_v25 = vpack.c.bf16 %v22689_v55, %v22688_v6  ;;  %v22698_v59 = vld [vmem:[#allocation25_spill] sm:$0xff]  ;;  %v22699_v0 = vld [vmem:[#allocation26_spill] sm:$0xff]  ;;  %v22700_v1 = vld [vmem:[#allocation27_spill] sm:$0xff] }
 0x266   : > { %v3560_v27 = vpack.c.bf16 %v22699_v0, %v22698_v59  ;;  %v3550_v63 = vld [vmem:[#allocation3 + $0x1a2] sm:$0xff]  ;;  %v17615_v36 = vld [vmem:[%s22637_s6 + $0x8] sm:$0xff]  }
 0x267   : > { %15439 = vmatmul.mubr.msk.bf16.gmra.mrb[8].mxu0 %vm435_vm2, %v20539_v50  ;;  %v8252_v12 = vadd.f32 %v8220_v34, %v8173_v28  ;;  %v8174_v8 = vadd.f32 %v8142_v48, %v8095_v41  ;;  %v3561_v48 = vpack.c.bf16 %v22701_v29, %v22700_v1  ;;  %v22702_v41 = vld [vmem:[#allocation29_spill] sm:$0xff]  ;;  %v22703_v28 = vld [vmem:[#allocation30_spill] sm:$0xff] }
 0x268   : > { %15442 = vmatprep.mubr.msk.bf16.mxu0 %vm435_vm2, %v20543_v37  ;;  %v3562_v34 = vpack.c.bf16 %v22703_v28, %v22702_v41 }
 0x269   : > { %v8284_v35 = vmax.f32 %v8252_v12, 0.0  ;;  %v8253_v61 = vadd.f32 %v8221_v53, %v8174_v8  ;;  %v22704_v12 = vld [vmem:[#allocation31_spill] sm:$0xff]  ;;  %v22705_v8 = vld [vmem:[#allocation32_spill] sm:$0xff] }
 0x26a   : > { %v3563_v53 = vpack.c.bf16 %v22705_v8, %v22704_v12 }
 0x26b   : > { %v8285_v38 = vmax.f32 %v8253_v61, 0.0  ;;  %8316 = vst.msk [vmem:[#allocation3 + $0x181] sm:$0xff] %vm435_vm2, %v8284_v35  ;;  %v3564_v35 = vpack.c.bf16 %v20829_v5, %v20810_v2  ;;  %v3565_v61 = vpack.c.bf16 %v20868_v15, %v20852_v46  ;;  %v17612_v2 = vld [vmem:[%s22635_s4 + $0x110] sm:$0xff]   ;;  %v17613_v5 = vld [vmem:[%s22635_s4 + $0x118] sm:$0xff]   ;;  %v3841_v46 = vpack.c.bf16 %v20915_v26, %v20912_v3  ;;  %v17614_v3 = vld [vmem:[%s22637_s6] sm:$0xff]  }
 0x26c   : > { %v3549_v15 = vld [vmem:[#allocation3 + $0x19a] sm:$0xff]  ;;  %15622 = vmatprep.subr.bf16.mxu1 %v17614_v3 }
 0x26d   : > { %8317 = vst.msk [vmem:[#allocation3 + $0x189] sm:$0xff] %vm435_vm2, %v8285_v38  ;;  %v17611_v38 = vld [vmem:[%s22635_s4 + $0x108] sm:$0xff]   ;;  %v4071_v19 = vpack.c.bf16 %v3550_v63, %v3549_v15  ;;  %15623 = vmatpush3.bf16.msra.mxu1 %v17614_v3  ;;  %v17616_v26 = vld [vmem:[%s22637_s6 + $0x10] sm:$0xff]  }
 0x26e   : > { %15624 = vmatprep.subr.bf16.mxu1 %v17615_v36 }
 0x26f   : > { %15443 = vmatmul.mubr.msk.bf16.gmra.mrb[12].mxu0 %vm435_vm2, %v20554_v22 }
 0x270   : > { %15446 = vmatprep.mubr.msk.bf16.mxu0 %vm435_vm2, %v20561_v33 }
 0x271   : > { %15625 = vmatpush3.bf16.msra.mxu1 %v17615_v36 }
 0x272   : > { %15626 = vmatprep.subr.bf16.mxu1 %v17616_v26 }
 0x275   : > { %15627 = vmatpush3.bf16.msra.mxu1 %v17616_v26 }
 0x277   : > { %15447 = vmatmul.mubr.msk.bf16.gmra.mrb[16].mxu0 %vm435_vm2, %v20563_v24 }
 0x278   : > { %15450 = vmatprep.mubr.msk.bf16.mxu0 %vm435_vm2, %v20567_v47 }
 0x27f   : > { %15451 = vmatmul.mubr.msk.bf16.gmra.mrb[20].mxu0 %vm435_vm2, %v20569_v10 }
 0x280   : > { %15454 = vmatprep.mubr.msk.bf16.mxu0 %vm435_vm2, %v20587_v30 }
 0x287   : > { %15455 = vmatmul.mubr.msk.bf16.gmra.mrb[24].mxu0 %vm435_vm2, %v20597_v11 }
 0x288   : > { %15458 = vmatprep.mubr.msk.bf16.mxu0 %vm435_vm2, %v20797_v57 }
 0x28f   : > { %15459 = vmatmul.mubr.msk.bf16.gmra.mrb[28].mxu0 %vm435_vm2, %v3055_v9 }
 0x290   : > { %15470 = vmatprep.mubr.msk.bf16.mxu0 %vm435_vm2, %v20396_v21  ;;  %v17605_v21 = vld [vmem:[%s22635_s4 + $0x58] sm:$0xff]  }
 0x297   : > { %15471 = vmatmul.mubr.msk.bf16.vlgmr.msra.gmra.mrb[0].mxu0 %vm435_vm2, %v20491_v32  ;;  %v17606_v32 = vld [vmem:[%s22635_s4 + $0xa0] sm:$0xff]  }
 0x298   : > { %15474 = vmatprep.mubr.msk.bf16.mxu0 %vm435_vm2, %v20504_v58  ;;  %15503 = vmatpush3.bf16.msra.mxu0 %v17602_v43  ;;  %v2763_v58 = vld [vmem:[#allocation3 + $0x199] sm:$0xff]  ;;  %v22694_v43 = vld [vmem:[#allocation9_spill] sm:$0xff] }
 0x299   : > { %15504 = vmatprep.subr.bf16.mxu0 %v17603_v18  ;;  %v3558_v16 = vpack.c.bf16 %v22695_v42, %v22694_v43 }
 0x29c   : > { %15505 = vmatpush3.bf16.msra.mxu0 %v17603_v18  ;;  %v21098_v18 = vld [vmem:[%s22637_s6 + $0x60] sm:$0xff]  }
 0x29d   : > { %15506 = vmatprep.subr.bf16.mxu0 %v17604_v52 }
 0x29f   : > { %15475 = vmatmul.mubr.msk.bf16.gmra.mrb[4].mxu0 %vm435_vm2, %v20533_v31  ;;  %v2764_v31 = vld [vmem:[#allocation3 + $0x1a1] sm:$0xff] }
 0x2a0   : > { %15478 = vmatprep.mubr.msk.bf16.mxu0 %vm435_vm2, %v20539_v50  ;;  %15507 = vmatpush3.bf16.msra.mxu0 %v17604_v52  ;;  %v3515_v50 = vld [vmem:[#allocation3 + $0x2] sm:$0xff]  ;;  %v21104_v52 = vld [vmem:[%s22636_s5] ss:$0 sm:$0xff] }
 0x2a1   : > { %15508 = vmatprep.subr.bf16.mxu0 %v17605_v21 }
 0x2a4   : > { %15509 = vmatpush3.bf16.msra.mxu0 %v17605_v21 }
 0x2a5   : > { %15542 = vmatprep.subr.bf16.mxu0 %v17606_v32 }
 0x2a7   : > { %15479 = vmatmul.mubr.msk.bf16.gmra.mrb[8].mxu0 %vm435_vm2, %v20543_v37  ;;  %v3516_v37 = vld [vmem:[#allocation3 + $0xa] sm:$0xff] }
 0x2a8   : > { %15482 = vmatprep.mubr.msk.bf16.mxu0 %vm435_vm2, %v20554_v22  ;;  %v3285_v22 = vpack.c.bf16 %v2764_v31, %v2763_v58 }
 0x2af   : > { %15483 = vmatmul.mubr.msk.bf16.gmra.mrb[12].mxu0 %vm435_vm2, %v20561_v33  ;;  %v3551_v33 = vpack.c.bf16 %v3516_v37, %v3515_v50 }
 0x2b0   : > { %15486 = vmatprep.mubr.msk.bf16.mxu0 %vm435_vm2, %v20563_v24  ;;  %v22682_v24 = vld [vmem:[#allocation12_spill] sm:$0xff] }
 0x2b7   : > { %15487 = vmatmul.mubr.msk.bf16.gmra.mrb[16].mxu0 %vm435_vm2, %v20567_v47  ;;  %v22683_v47 = vld [vmem:[#allocation13_spill] sm:$0xff] }
 0x2b8   : > { %15490 = vmatprep.mubr.msk.bf16.mxu0 %vm435_vm2, %v20569_v10  ;;  %v3552_v10 = vpack.c.bf16 %v22683_v47, %v22682_v24 }
 0x2bf   : > { %15491 = vmatmul.mubr.msk.bf16.gmra.mrb[20].mxu0 %vm435_vm2, %v20587_v30  ;;  %v17607_v30 = vld [vmem:[%s22635_s4 + $0xa8] sm:$0xff]  }
 0x2c0   : > { %15494 = vmatprep.mubr.msk.bf16.mxu0 %vm435_vm2, %v20597_v11  ;;  %v22684_v11 = vld [vmem:[#allocation14_spill] sm:$0xff] }
 0x2c7   : > { %15495 = vmatmul.mubr.msk.bf16.gmra.mrb[24].mxu0 %vm435_vm2, %v20797_v57  ;;  %v22685_v57 = vld [vmem:[#allocation15_spill] sm:$0xff] }
 0x2c8   : > { %15498 = vmatprep.mubr.msk.bf16.mxu0 %vm435_vm2, %v3055_v9  ;;  %v20985_v54 = vpack.c.bf16 %v22685_v57, %v22684_v11  ;;  %v17617_v9 = vld [vmem:[%s22637_s6 + $0x18] sm:$0xff]  }
 0x2c9   : > { %15628 = vmatprep.subr.bf16.mxu1 %v17617_v9 }
 0x2ca   : > { %15629 = vmatpush3.bf16.msra.mxu1 %v17617_v9 }
 0x2cb   : > { %15638 = vmatprep.subr.bf16.mxu1 %v21098_v18 }
 0x2cf   : > { %15499 = vmatmul.mubr.msk.bf16.gmra.mrb[28].mxu0 %vm435_vm2, %v3285_v22 }
 0x2d0   : > { %15510 = vmatprep.mubr.msk.bf16.mxu0 %vm435_vm2, %v3551_v33 }
 0x2d7   : > { %15511 = vmatmul.mubr.msk.bf16.vlgmr.msra.gmra.mrb[0].mxu0 %vm435_vm2, %v3552_v10 }
 0x2d8   : > { %15514 = vmatprep.mubr.msk.bf16.mxu0 %vm435_vm2, %v20985_v54  ;;  %15543 = vmatpush3.bf16.msra.mxu0 %v17606_v32 }
 0x2d9   : > { %15544 = vmatprep.subr.bf16.mxu0 %v17607_v30 }
 0x2dc   : > { %15545 = vmatpush3.bf16.msra.mxu0 %v17607_v30 }
 0x2dd   : > { %15546 = vmatprep.subr.bf16.mxu0 %v17608_v23 }
 0x2df   : > { %15515 = vmatmul.mubr.msk.bf16.gmra.mrb[4].mxu0 %vm435_vm2, %v3554_v39 }
 0x2e0   : > { %15518 = vmatprep.mubr.msk.bf16.mxu0 %vm435_vm2, %v3555_v25  ;;  %15547 = vmatpush3.bf16.msra.mxu0 %v17608_v23 }
 0x2e1   : > { %15548 = vmatprep.subr.bf16.mxu0 %v17609_v44 }
 0x2e4   : > { %15549 = vmatpush3.bf16.msra.mxu0 %v17609_v44 }
 0x2e5   : > { %15582 = vmatprep.subr.bf16.mxu0 %v17610_v7 }
 0x2e7   : > { %15519 = vmatmul.mubr.msk.bf16.gmra.mrb[8].mxu0 %vm435_vm2, %v3556_v4 }
 0x2e8   : > { %15522 = vmatprep.mubr.msk.bf16.mxu0 %vm435_vm2, %v3557_v62 }
 0x2ef   : > { %15523 = vmatmul.mubr.msk.bf16.gmra.mrb[12].mxu0 %vm435_vm2, %v3558_v16 }
 0x2f0   : > { %15526 = vmatprep.mubr.msk.bf16.mxu0 %vm435_vm2, %v3559_v51 }
 0x2f7   : > { %15527 = vmatmul.mubr.msk.bf16.gmra.mrb[16].mxu0 %vm435_vm2, %v3560_v27 }
 0x2f8   : > { %15530 = vmatprep.mubr.msk.bf16.mxu0 %vm435_vm2, %v3561_v48 }
 0x2ff   : > { %15531 = vmatmul.mubr.msk.bf16.gmra.mrb[20].mxu0 %vm435_vm2, %v3562_v34 }
 0x300   : > { %15534 = vmatprep.mubr.msk.bf16.mxu0 %vm435_vm2, %v3563_v53 }
 0x307   : > { %15535 = vmatmul.mubr.msk.bf16.gmra.mrb[24].mxu0 %vm435_vm2, %v3564_v35 }
 0x308   : > { %15538 = vmatprep.mubr.msk.bf16.mxu0 %vm435_vm2, %v3565_v61 }
 0x30f   : > { %15539 = vmatmul.mubr.msk.bf16.gmra.mrb[28].mxu0 %vm435_vm2, %v3566_v40 }
 0x310   : > { %15550 = vmatprep.mubr.msk.bf16.mxu0 %vm435_vm2, %v3552_v10 }
 0x317   : > { %15551 = vmatmul.mubr.msk.bf16.vlgmr.msra.gmra.mrb[0].mxu0 %vm435_vm2, %v20985_v54 }
 0x318   : > { %15554 = vmatprep.mubr.msk.bf16.mxu0 %vm435_vm2, %v3554_v39  ;;  %15583 = vmatpush3.bf16.msra.mxu0 %v17610_v7 }
 0x319   : > { %15584 = vmatprep.subr.bf16.mxu0 %v17611_v38 }
 0x31c   : > { %15585 = vmatpush3.bf16.msra.mxu0 %v17611_v38 }
 0x31d   : > { %15586 = vmatprep.subr.bf16.mxu0 %v17612_v2 }
 0x31f   : > { %15555 = vmatmul.mubr.msk.bf16.gmra.mrb[4].mxu0 %vm435_vm2, %v3555_v25 }
 0x320   : > { %15558 = vmatprep.mubr.msk.bf16.mxu0 %vm435_vm2, %v3556_v4  ;;  %15587 = vmatpush3.bf16.msra.mxu0 %v17612_v2 }
 0x321   : > { %15588 = vmatprep.subr.bf16.mxu0 %v17613_v5 }
 0x324   : > { %15589 = vmatpush3.bf16.msra.mxu0 %v17613_v5 }
 0x327   : > { %15559 = vmatmul.mubr.msk.bf16.gmra.mrb[8].mxu0 %vm435_vm2, %v3557_v62 }
 0x328   : > { %15562 = vmatprep.mubr.msk.bf16.mxu0 %vm435_vm2, %v3558_v16 }
 0x32f   : > { %15563 = vmatmul.mubr.msk.bf16.gmra.mrb[12].mxu0 %vm435_vm2, %v3559_v51 }
 0x330   : > { %15566 = vmatprep.mubr.msk.bf16.mxu0 %vm435_vm2, %v3560_v27 }
 0x337   : > { %15567 = vmatmul.mubr.msk.bf16.gmra.mrb[16].mxu0 %vm435_vm2, %v3561_v48 }
 0x338   : > { %15570 = vmatprep.mubr.msk.bf16.mxu0 %vm435_vm2, %v3562_v34 }
 0x33f   : > { %15571 = vmatmul.mubr.msk.bf16.gmra.mrb[20].mxu0 %vm435_vm2, %v3563_v53 }
 0x340   : > { %15574 = vmatprep.mubr.msk.bf16.mxu0 %vm435_vm2, %v3564_v35 }
 0x347   : > { %15575 = vmatmul.mubr.msk.bf16.gmra.mrb[24].mxu0 %vm435_vm2, %v3565_v61 }
 0x348   : > { %15578 = vmatprep.mubr.msk.bf16.mxu0 %vm435_vm2, %v3566_v40 }
 0x34f   : > { %15579 = vmatmul.mubr.msk.bf16.gmra.mrb[28].mxu0 %vm435_vm2, %v3841_v46 }
 0x350   : > { %15590 = vmatprep.mubr.msk.bf16.mxu0 %vm435_vm2, %v20985_v54 }
 0x357   : > { %15591 = vmatmul.mubr.msk.bf16.vlgmr.msra.gmra.mrb[0].mxu0 %vm435_vm2, %v3554_v39 }
 0x358   : > { %15594 = vmatprep.mubr.msk.bf16.mxu0 %vm435_vm2, %v3555_v25 }
 0x35f   : > { %15595 = vmatmul.mubr.msk.bf16.gmra.mrb[4].mxu0 %vm435_vm2, %v3556_v4 }
 0x360   : > { %15598 = vmatprep.mubr.msk.bf16.mxu0 %vm435_vm2, %v3557_v62 }
 0x367   : > { %15599 = vmatmul.mubr.msk.bf16.gmra.mrb[8].mxu0 %vm435_vm2, %v3558_v16 }
 0x368   : > { %15602 = vmatprep.mubr.msk.bf16.mxu0 %vm435_vm2, %v3559_v51 }
 0x36f   : > { %15603 = vmatmul.mubr.msk.bf16.gmra.mrb[12].mxu0 %vm435_vm2, %v3560_v27 }
 0x370   : > { %15606 = vmatprep.mubr.msk.bf16.mxu0 %vm435_vm2, %v3561_v48 }
 0x377   : > { %15607 = vmatmul.mubr.msk.bf16.gmra.mrb[16].mxu0 %vm435_vm2, %v3562_v34 }
 0x378   : > { %15610 = vmatprep.mubr.msk.bf16.mxu0 %vm435_vm2, %v3563_v53 }
 0x37f   : > { %15611 = vmatmul.mubr.msk.bf16.gmra.mrb[20].mxu0 %vm435_vm2, %v3564_v35 }
 0x380   : > { %15614 = vmatprep.mubr.msk.bf16.mxu0 %vm435_vm2, %v3565_v61 }
 0x387   : > { %15615 = vmatmul.mubr.msk.bf16.gmra.mrb[24].mxu0 %vm435_vm2, %v3566_v40 }
 0x388   : > { %15618 = vmatprep.mubr.msk.bf16.mxu0 %vm435_vm2, %v3841_v46 }
 0x38f   : > { %15619 = vmatmul.mubr.msk.bf16.gmra.mrb[28].mxu0 %vm435_vm2, %v4071_v19 }
 0x42a   : > { %v15592_v21 = vpop.f32.mrb[0].mxu0 }
 0x42b   : > { %v16702_v32 = vadd.f32 %v15592_v21, %v21104_v52  ;;  %v4142_v58 = vpop.f32.mrb[1].mxu0 }
 0x42c   : > { %v16703_v31 = vadd.f32 %v21104_v52, %v4142_v58  ;;  %v15593_v50 = vpop.f32.mrb[2].mxu0 }
 0x42d   : > { %v4303_v37 = vmax.f32 %v16702_v32, 0.0  ;;  %v16704_v22 = vadd.f32 %v15593_v50, %v21104_v52  ;;  %v4145_v33 = vpop.f32.mrb[3].mxu0 }
 0x42e   : > { %v4301_v24 = vmax.f32 %v16703_v31, 0.0  ;;  %v16705_v47 = vadd.f32 %v21104_v52, %v4145_v33 }
 0x42f   : > { %4335 = vst.msk [vmem:[#allocation4 + $0x10] sm:$0xff] %vm435_vm2, %v4303_v37  ;;  %v4304_v10 = vmax.f32 %v16704_v22, 0.0 }
 0x430   : > { %4333 = vst.msk [vmem:[#allocation4] sm:$0xff] %vm435_vm2, %v4301_v24  ;;  %v4302_v30 = vmax.f32 %v16705_v47, 0.0 }
 0x431   : > { %4336 = vst.msk [vmem:[#allocation4 + $0x18] sm:$0xff] %vm435_vm2, %v4304_v10 }
 0x432   : > { %4334 = vst.msk [vmem:[#allocation4 + $0x8] sm:$0xff] %vm435_vm2, %v4302_v30  ;;  %v15596_v11 = vpop.f32.mrb[4].mxu0 }
 0x433   : > { %v16706_v57 = vadd.f32 %v15596_v11, %v21104_v52  ;;  %v4158_v54 = vpop.f32.mrb[5].mxu0  ;;  %v4485_v11 = vld [vmem:[#allocation6] sm:$0xff] }
 0x434   : > { %v16707_v23 = vadd.f32 %v21104_v52, %v4158_v54  ;;  %v15597_v17 = vpop.f32.mrb[6].mxu0 }
 0x435   : > { %v4307_v14 = vmax.f32 %v16706_v57, 0.0  ;;  %v16708_v39 = vadd.f32 %v15597_v17, %v21104_v52  ;;  %v4161_v44 = vpop.f32.mrb[7].mxu0 }
 0x436   : > { %v4382_v6 = vld [vmem:[#allocation4 + $0x10] sm:$0xff]  ;;  %v4305_v55 = vmax.f32 %v16707_v23, 0.0  ;;  %v16709_v25 = vadd.f32 %v21104_v52, %v4161_v44 }
 0x437   : > { %v4365_v7 = vld [vmem:[#allocation4] sm:$0xff]  ;;  %4339 = vst.msk [vmem:[#allocation4 + $0x30] sm:$0xff] %vm435_vm2, %v4307_v14  ;;  %v4308_v49 = vmax.f32 %v16708_v39, 0.0 }
 0x438   : > { %v4398_v20 = vmax.f32 %v4365_v7, %v4382_v6  ;;  %v4383_v4 = vld [vmem:[#allocation4 + $0x18] sm:$0xff]  ;;  %4337 = vst.msk [vmem:[#allocation4 + $0x20] sm:$0xff] %vm435_vm2, %v4305_v55  ;;  %v4306_v45 = vmax.f32 %v16709_v25, 0.0 }
 0x439   : > { %v4366_v13 = vld [vmem:[#allocation4 + $0x8] sm:$0xff]  ;;  %4340 = vst.msk [vmem:[#allocation4 + $0x38] sm:$0xff] %vm435_vm2, %v4308_v49 }
 0x43a   : > { %4414 = vst.msk [vmem:[#allocation5] sm:$0xff] %vm435_vm2, %v4398_v20  ;;  %v4399_v62 = vmax.f32 %v4366_v13, %v4383_v4  ;;  %4338 = vst.msk [vmem:[#allocation4 + $0x28] sm:$0xff] %vm435_vm2, %v4306_v45  ;;  %v15600_v43 = vpop.f32.mrb[8].mxu0 }
 0x43b   : > { %v16710_v42 = vadd.f32 %v15600_v43, %v21104_v52  ;;  %v4174_v16 = vpop.f32.mrb[9].mxu0 }
 0x43c   : > { %4415 = vst.msk [vmem:[#allocation5 + $0x8] sm:$0xff] %vm435_vm2, %v4399_v62  ;;  %v16711_v60 = vadd.f32 %v21104_v52, %v4174_v16  ;;  %v15601_v56 = vpop.f32.mrb[10].mxu0 }
 0x43d   : > { %v4311_v51 = vmax.f32 %v16710_v42, 0.0  ;;  %v16712_v59 = vadd.f32 %v15601_v56, %v21104_v52  ;;  %v4177_v0 = vpop.f32.mrb[11].mxu0 }
 0x43e   : > { %v4384_v27 = vld [vmem:[#allocation4 + $0x30] sm:$0xff]  ;;  %v4309_v1 = vmax.f32 %v16711_v60, 0.0  ;;  %v16713_v29 = vadd.f32 %v21104_v52, %v4177_v0 }
 0x43f   : > { %v4367_v48 = vld [vmem:[#allocation4 + $0x20] sm:$0xff]  ;;  %4343 = vst.msk [vmem:[#allocation4 + $0x50] sm:$0xff] %vm435_vm2, %v4311_v51  ;;  %v4312_v41 = vmax.f32 %v16712_v59, 0.0 }
 0x440   : > { %v4400_v28 = vmax.f32 %v4367_v48, %v4384_v27  ;;  %v4385_v34 = vld [vmem:[#allocation4 + $0x38] sm:$0xff]  ;;  %4341 = vst.msk [vmem:[#allocation4 + $0x40] sm:$0xff] %vm435_vm2, %v4309_v1  ;;  %v4310_v12 = vmax.f32 %v16713_v29, 0.0 }
 0x441   : > { %v4368_v8 = vld [vmem:[#allocation4 + $0x28] sm:$0xff]  ;;  %4344 = vst.msk [vmem:[#allocation4 + $0x58] sm:$0xff] %vm435_vm2, %v4312_v41 }
 0x442   : > { %4416 = vst.msk [vmem:[#allocation5 + $0x10] sm:$0xff] %vm435_vm2, %v4400_v28  ;;  %v4401_v53 = vmax.f32 %v4368_v8, %v4385_v34  ;;  %4342 = vst.msk [vmem:[#allocation4 + $0x48] sm:$0xff] %vm435_vm2, %v4310_v12  ;;  %v15604_v35 = vpop.f32.mrb[12].mxu0 }
 0x443   : > { %v16714_v61 = vadd.f32 %v15604_v35, %v21104_v52  ;;  %v4190_v40 = vpop.f32.mrb[13].mxu0  ;;  %v4430_v38 = vld [vmem:[#allocation5] ss:$2 sm:$0xff]  ;;  %v4446_v2 = vld [vmem:[#allocation5 + $0x1] ss:$2 sm:$0xff] }
 0x444   : > { %4417 = vst.msk [vmem:[#allocation5 + $0x18] sm:$0xff] %vm435_vm2, %v4401_v53  ;;  %v16715_v5 = vadd.f32 %v21104_v52, %v4190_v40  ;;  %v15605_v46 = vpop.f32.mrb[14].mxu0  ;;  %v4461_v15 = vmax.f32 %v4430_v38, %v4446_v2 }
 0x445   : > { %v4315_v63 = vmax.f32 %v16714_v61, 0.0  ;;  %v16716_v19 = vadd.f32 %v15605_v46, %v21104_v52  ;;  %v4193_v3 = vpop.f32.mrb[15].mxu0 }
 0x446   : > { %v4386_v36 = vld [vmem:[#allocation4 + $0x50] sm:$0xff]  ;;  %v4313_v26 = vmax.f32 %v16715_v5, 0.0  ;;  %v16717_v9 = vadd.f32 %v21104_v52, %v4193_v3  ;;  %4470 = vst.msk [vmem:[#allocation6 + $0x11] sm:$0xff] %vm435_vm2, %v4461_v15 }
 0x447   : > { %v4369_v21 = vld [vmem:[#allocation4 + $0x40] sm:$0xff]  ;;  %4347 = vst.msk [vmem:[#allocation4 + $0x70] sm:$0xff] %vm435_vm2, %v4315_v63  ;;  %v4316_v32 = vmax.f32 %v16716_v19, 0.0 }
 0x448   : > { %v4402_v58 = vmax.f32 %v4369_v21, %v4386_v36  ;;  %v4387_v31 = vld [vmem:[#allocation4 + $0x58] sm:$0xff]  ;;  %4345 = vst.msk [vmem:[#allocation4 + $0x60] sm:$0xff] %vm435_vm2, %v4313_v26  ;;  %v4314_v50 = vmax.f32 %v16717_v9, 0.0 }
 0x449   : > { %v4370_v37 = vld [vmem:[#allocation4 + $0x48] sm:$0xff]  ;;  %4348 = vst.msk [vmem:[#allocation4 + $0x78] sm:$0xff] %vm435_vm2, %v4316_v32 }
 0x44a   : > { %4418 = vst.msk [vmem:[#allocation5 + $0x20] sm:$0xff] %vm435_vm2, %v4402_v58  ;;  %v4403_v22 = vmax.f32 %v4370_v37, %v4387_v31  ;;  %4346 = vst.msk [vmem:[#allocation4 + $0x68] sm:$0xff] %vm435_vm2, %v4314_v50  ;;  %v15608_v33 = vpop.f32.mrb[16].mxu0 }
 0x44b   : > { %v16718_v24 = vadd.f32 %v15608_v33, %v21104_v52  ;;  %v4206_v47 = vpop.f32.mrb[17].mxu0  ;;  %v4432_v10 = vld [vmem:[#allocation5 + $0x10] ss:$2 sm:$0xff]  ;;  %v4448_v30 = vld [vmem:[#allocation5 + $0x11] ss:$2 sm:$0xff]  ;;  %v17619_v33 = vld [vmem:[%s22637_s6 + $0x68] sm:$0xff]  }
 0x44c   : > { %4419 = vst.msk [vmem:[#allocation5 + $0x28] sm:$0xff] %vm435_vm2, %v4403_v22  ;;  %v16719_v57 = vadd.f32 %v21104_v52, %v4206_v47  ;;  %v15609_v54 = vpop.f32.mrb[18].mxu0  ;;  %v4462_v23 = vmax.f32 %v4432_v10, %v4448_v30 }
 0x44d   : > { %v4319_v17 = vmax.f32 %v16718_v24, 0.0  ;;  %v16720_v14 = vadd.f32 %v15609_v54, %v21104_v52  ;;  %v4209_v39 = vpop.f32.mrb[19].mxu0  ;;  %v21148_v44 = vld [vmem:[#allocation6 + $0x10] sm:$0xff] }
 0x44e   : > { %v4388_v6 = vld [vmem:[#allocation4 + $0x70] sm:$0xff]  ;;  %v4317_v55 = vmax.f32 %v16719_v57, 0.0  ;;  %v16721_v25 = vadd.f32 %v21104_v52, %v4209_v39  ;;  %4471 = vst.msk [vmem:[#allocation6 + $0x21] sm:$0xff] %vm435_vm2, %v4462_v23  ;;  %v4495_v7 = vpack.c.bf16 %v21148_v44, %v4485_v11 }
 0x44f   : > { %v4371_v49 = vld [vmem:[#allocation4 + $0x60] sm:$0xff]  ;;  %4351 = vst.msk [vmem:[#allocation4 + $0x90] sm:$0xff] %vm435_vm2, %v4319_v17  ;;  %v4320_v20 = vmax.f32 %v16720_v14, 0.0  ;;  %v17620_v17 = vld [vmem:[%s22637_s6 + $0x70] sm:$0xff]  }
 0x450   : > { %v4404_v4 = vmax.f32 %v4371_v49, %v4388_v6  ;;  %v4389_v45 = vld [vmem:[#allocation4 + $0x78] sm:$0xff]  ;;  %4349 = vst.msk [vmem:[#allocation4 + $0x80] sm:$0xff] %vm435_vm2, %v4317_v55  ;;  %v4318_v13 = vmax.f32 %v16721_v25, 0.0  ;;  %15630 = vmatprep.mubr.msk.bf16.mxu1 %vm435_vm2, %v4495_v7 }
 0x451   : > { %v4372_v62 = vld [vmem:[#allocation4 + $0x68] sm:$0xff]  ;;  %4352 = vst.msk [vmem:[#allocation4 + $0x98] sm:$0xff] %vm435_vm2, %v4320_v20 }
 0x452   : > { %4420 = vst.msk [vmem:[#allocation5 + $0x30] sm:$0xff] %vm435_vm2, %v4404_v4  ;;  %v4405_v43 = vmax.f32 %v4372_v62, %v4389_v45  ;;  %4350 = vst.msk [vmem:[#allocation4 + $0x88] sm:$0xff] %vm435_vm2, %v4318_v13  ;;  %v15612_v42 = vpop.f32.mrb[20].mxu0 }
 0x453   : > { %v16722_v16 = vadd.f32 %v15612_v42, %v21104_v52  ;;  %v4222_v60 = vpop.f32.mrb[21].mxu0  ;;  %v4434_v56 = vld [vmem:[#allocation5 + $0x20] ss:$2 sm:$0xff]  ;;  %v4450_v51 = vld [vmem:[#allocation5 + $0x21] ss:$2 sm:$0xff] }
 0x454   : > { %4421 = vst.msk [vmem:[#allocation5 + $0x38] sm:$0xff] %vm435_vm2, %v4405_v43  ;;  %v16723_v59 = vadd.f32 %v21104_v52, %v4222_v60  ;;  %v15613_v0 = vpop.f32.mrb[22].mxu0  ;;  %v4463_v27 = vmax.f32 %v4434_v56, %v4450_v51  ;;  %v17621_v43 = vld [vmem:[%s22637_s6 + $0x78] sm:$0xff]  }
 0x455   : > { %v4323_v1 = vmax.f32 %v16722_v16, 0.0  ;;  %v16724_v29 = vadd.f32 %v15613_v0, %v21104_v52  ;;  %v4225_v48 = vpop.f32.mrb[23].mxu0  ;;  %v21173_v26 = vld [vmem:[#allocation6 + $0x20] sm:$0xff] }
 0x456   : > { %v4390_v41 = vld [vmem:[#allocation4 + $0x90] sm:$0xff]  ;;  %v4321_v28 = vmax.f32 %v16723_v59, 0.0  ;;  %v16725_v34 = vadd.f32 %v21104_v52, %v4225_v48  ;;  %4472 = vst.msk [vmem:[#allocation6 + $0x31] sm:$0xff] %vm435_vm2, %v4463_v27  ;;  %v17622_v0 = vld [vmem:[%s22637_s6 + $0xc0] sm:$0xff]  }
 0x457   : > { %v4373_v12 = vld [vmem:[#allocation4 + $0x80] sm:$0xff]  ;;  %4355 = vst.msk [vmem:[#allocation4 + $0xb0] sm:$0xff] %vm435_vm2, %v4323_v1  ;;  %v4324_v8 = vmax.f32 %v16724_v29, 0.0 }
 0x458   : > { %v4406_v53 = vmax.f32 %v4373_v12, %v4390_v41  ;;  %v4391_v35 = vld [vmem:[#allocation4 + $0x98] sm:$0xff]  ;;  %4353 = vst.msk [vmem:[#allocation4 + $0xa0] sm:$0xff] %vm435_vm2, %v4321_v28  ;;  %v4322_v61 = vmax.f32 %v16725_v34, 0.0 }
 0x459   : > { %v4374_v40 = vld [vmem:[#allocation4 + $0x88] sm:$0xff]  ;;  %4356 = vst.msk [vmem:[#allocation4 + $0xb8] sm:$0xff] %vm435_vm2, %v4324_v8 }
 0x45a   : > { %4422 = vst.msk [vmem:[#allocation5 + $0x40] sm:$0xff] %vm435_vm2, %v4406_v53  ;;  %v4407_v38 = vmax.f32 %v4374_v40, %v4391_v35  ;;  %4354 = vst.msk [vmem:[#allocation4 + $0xa8] sm:$0xff] %vm435_vm2, %v4322_v61  ;;  %v15616_v2 = vpop.f32.mrb[24].mxu0 }
 0x45b   : > { %v16726_v5 = vadd.f32 %v15616_v2, %v21104_v52  ;;  %v4238_v46 = vpop.f32.mrb[25].mxu0  ;;  %v4436_v15 = vld [vmem:[#allocation5 + $0x30] ss:$2 sm:$0xff]  ;;  %v4452_v63 = vld [vmem:[#allocation5 + $0x31] ss:$2 sm:$0xff] }
 0x45c   : > { %4423 = vst.msk [vmem:[#allocation5 + $0x48] sm:$0xff] %vm435_vm2, %v4407_v38  ;;  %v16727_v19 = vadd.f32 %v21104_v52, %v4238_v46  ;;  %v15617_v3 = vpop.f32.mrb[26].mxu0  ;;  %v4464_v36 = vmax.f32 %v4436_v15, %v4452_v63 }
 0x45d   : > { %v4327_v9 = vmax.f32 %v16726_v5, 0.0  ;;  %v16728_v21 = vadd.f32 %v15617_v3, %v21104_v52  ;;  %v4241_v32 = vpop.f32.mrb[27].mxu0  ;;  %v21176_v58 = vld [vmem:[#allocation6 + $0x30] sm:$0xff] }
 0x45e   : > { %v4392_v31 = vld [vmem:[#allocation4 + $0xb0] sm:$0xff]  ;;  %v4325_v50 = vmax.f32 %v16727_v19, 0.0  ;;  %v16729_v37 = vadd.f32 %v21104_v52, %v4241_v32  ;;  %v21181_v22 = vpack.c.bf16 %v21176_v58, %v21173_v26  ;;  %4473 = vst.msk [vmem:[#allocation6 + $0x41] sm:$0xff] %vm435_vm2, %v4464_v36  ;;  %v4616_v36 = vpack.c.bf16 %v21173_v26, %v21148_v44 }
 0x45f   : > { %v4375_v24 = vld [vmem:[#allocation4 + $0xa0] sm:$0xff]  ;;  %4359 = vst.msk [vmem:[#allocation4 + $0xd0] sm:$0xff] %vm435_vm2, %v4327_v9  ;;  %v4328_v47 = vmax.f32 %v16728_v21, 0.0  ;;  %v17623_v21 = vld [vmem:[%s22637_s6 + $0xc8] sm:$0xff]   ;;  %v17624_v44 = vld [vmem:[%s22637_s6 + $0xd0] sm:$0xff]  }
 0x460   : > { %v4408_v10 = vmax.f32 %v4375_v24, %v4392_v31  ;;  %v4393_v30 = vld [vmem:[#allocation4 + $0xb8] sm:$0xff]  ;;  %4357 = vst.msk [vmem:[#allocation4 + $0xc0] sm:$0xff] %vm435_vm2, %v4325_v50  ;;  %v4326_v11 = vmax.f32 %v16729_v37, 0.0  ;;  %15631 = vmatmul.mubr.msk.bf16.vlgmr.msra.gmra.mrb[0].mxu1 %vm435_vm2, %v21181_v22  ;;  %v17626_v50 = vld [vmem:[%s22637_s6 + $0x20] sm:$0xff]   ;;  %v17627_v37 = vld [vmem:[%s22637_s6 + $0x28] sm:$0xff]  }
 0x461   : > { %v4376_v57 = vld [vmem:[#allocation4 + $0xa8] sm:$0xff]  ;;  %4360 = vst.msk [vmem:[#allocation4 + $0xd8] sm:$0xff] %vm435_vm2, %v4328_v47  ;;  %15639 = vmatpush3.bf16.msra.mxu1 %v21098_v18  ;;  %v4849_v47 = vld [vmem:[#allocation6 + $0x11] sm:$0xff] }
 0x462   : > { %4424 = vst.msk [vmem:[#allocation5 + $0x50] sm:$0xff] %vm435_vm2, %v4408_v10  ;;  %v4409_v54 = vmax.f32 %v4376_v57, %v4393_v30  ;;  %4358 = vst.msk [vmem:[#allocation4 + $0xc8] sm:$0xff] %vm435_vm2, %v4326_v11  ;;  %v15620_v23 = vpop.f32.mrb[28].mxu0  ;;  %15640 = vmatprep.subr.bf16.mxu1 %v17619_v33  ;;  %v4848_v24 = vld [vmem:[#allocation6 + $0x1] sm:$0xff]  ;;  %v17629_v30 = vld [vmem:[%s22637_s6 + $0x38] sm:$0xff]  }
 0x463   : > { %v16730_v14 = vadd.f32 %v15620_v23, %v21104_v52  ;;  %v4254_v39 = vpop.f32.mrb[29].mxu0  ;;  %v4438_v6 = vld [vmem:[#allocation5 + $0x40] ss:$2 sm:$0xff]  ;;  %v4454_v55 = vld [vmem:[#allocation5 + $0x41] ss:$2 sm:$0xff]  ;;  %v4858_v11 = vpack.c.bf16 %v4849_v47, %v4848_v24 }
 0x464   : > { %4425 = vst.msk [vmem:[#allocation5 + $0x58] sm:$0xff] %vm435_vm2, %v4409_v54  ;;  %v16731_v18 = vadd.f32 %v21104_v52, %v4254_v39  ;;  %v15621_v25 = vpop.f32.mrb[30].mxu0  ;;  %v4465_v7 = vmax.f32 %v4438_v6, %v4454_v55  ;;  %v17630_v57 = vld [vmem:[%s22637_s6 + $0x80] sm:$0xff]   ;;  %v4851_v54 = vld [vmem:[#allocation6 + $0x31] sm:$0xff]  ;;  %v17631_v6 = vld [vmem:[%s22637_s6 + $0x88] sm:$0xff]  }
 0x465   : > { %v4331_v49 = vmax.f32 %v16730_v14, 0.0  ;;  %v16732_v20 = vadd.f32 %v15621_v25, %v21104_v52  ;;  %v4257_v4 = vpop.f32.mrb[31].mxu0  ;;  %15641 = vmatpush3.bf16.msra.mxu1 %v17619_v33  ;;  %v4489_v48 = vld [vmem:[#allocation6 + $0x40] sm:$0xff]  ;;  %v4494_v33 = vld [vmem:[#allocation6 + $0x90] sm:$0xff] }
 0x466   : > { %v4394_v45 = vld [vmem:[#allocation4 + $0xd0] sm:$0xff]  ;;  %v4329_v13 = vmax.f32 %v16731_v18, 0.0  ;;  %v16733_v62 = vadd.f32 %v21104_v52, %v4257_v4  ;;  %4474 = vst.msk [vmem:[#allocation6 + $0x51] sm:$0xff] %vm435_vm2, %v4465_v7  ;;  %15642 = vmatprep.subr.bf16.mxu1 %v17620_v17  ;;  %v4617_v9 = vpack.c.bf16 %v4489_v48, %v21176_v58  ;;  %v17625_v58 = vld [vmem:[%s22637_s6 + $0xd8] sm:$0xff]   ;;  %v4852_v39 = vld [vmem:[#allocation6 + $0x41] sm:$0xff] }
 0x467   : > { %v4377_v42 = vld [vmem:[#allocation4 + $0xc0] sm:$0xff]  ;;  %4363 = vst.msk [vmem:[#allocation4 + $0xf0] sm:$0xff] %vm435_vm2, %v4331_v49  ;;  %v4332_v16 = vmax.f32 %v16732_v20, 0.0  ;;  %v17632_v18 = vld [vmem:[%s22637_s6 + $0x90] sm:$0xff]   ;;  %v17633_v20 = vld [vmem:[%s22637_s6 + $0x98] sm:$0xff]  }
 0x468   : > { %v4410_v60 = vmax.f32 %v4377_v42, %v4394_v45  ;;  %v4395_v56 = vld [vmem:[#allocation4 + $0xd8] sm:$0xff]  ;;  %4361 = vst.msk [vmem:[#allocation4 + $0xe0] sm:$0xff] %vm435_vm2, %v4329_v13  ;;  %v4330_v51 = vmax.f32 %v16733_v62, 0.0  ;;  %v17634_v45 = vld [vmem:[%s22637_s6 + $0xe0] sm:$0xff]   ;;  %v4981_v13 = vpack.c.bf16 %v4852_v39, %v4851_v54  ;;  %v17635_v62 = vld [vmem:[%s22637_s6 + $0xe8] sm:$0xff]  }
 0x469   : > { %v4378_v59 = vld [vmem:[#allocation4 + $0xc8] sm:$0xff]  ;;  %4364 = vst.msk [vmem:[#allocation4 + $0xf8] sm:$0xff] %vm435_vm2, %v4332_v16  ;;  %15643 = vmatpush3.bf16.msra.mxu1 %v17620_v17  ;;  %v17636_v42 = vld [vmem:[%s22637_s6 + $0xf0] sm:$0xff]   ;;  %v17654_v24 = vld [vmem:[%s22639_s8 + $0x20] sm:$0xff]  }
 0x46a   : > { %4426 = vst.msk [vmem:[#allocation5 + $0x60] sm:$0xff] %vm435_vm2, %v4410_v60  ;;  %v4411_v52 = vmax.f32 %v4378_v59, %v4395_v56  ;;  %4362 = vst.msk [vmem:[#allocation4 + $0xe8] sm:$0xff] %vm435_vm2, %v4330_v51  ;;  %15644 = vmatprep.subr.bf16.mxu1 %v17621_v43  ;;  %v4850_v17 = vld [vmem:[#allocation6 + $0x21] sm:$0xff]  ;;  %v17637_v56 = vld [vmem:[%s22637_s6 + $0xf8] sm:$0xff]  }
 0x46b   : > { %v4440_v27 = vld [vmem:[#allocation5 + $0x50] ss:$2 sm:$0xff]  ;;  %v4456_v1 = vld [vmem:[#allocation5 + $0x51] ss:$2 sm:$0xff]  ;;  %v4859_v14 = vpack.c.bf16 %v4851_v54, %v4850_v17  ;;  %v4980_v4 = vpack.c.bf16 %v4850_v17, %v4849_v47  ;;  %v17638_v51 = vld [vmem:[%s22637_s6 + $0x40] sm:$0xff]  }
 0x46c   : > { %4427 = vst.msk [vmem:[#allocation5 + $0x68] sm:$0xff] %vm435_vm2, %v4411_v52  ;;  %v4466_v29 = vmax.f32 %v4440_v27, %v4456_v1  ;;  %v17639_v59 = vld [vmem:[%s22637_s6 + $0x48] sm:$0xff]   ;;  %v17640_v52 = vld [vmem:[%s22637_s6 + $0x50] sm:$0xff]  }
 0x46d   : > { %v4490_v41 = vld [vmem:[#allocation6 + $0x50] sm:$0xff]  ;;  %15645 = vmatpush3.bf16.msra.mxu1 %v17621_v43  ;;  %v5212_v27 = vld [vmem:[#allocation6 + $0x2] sm:$0xff] }
 0x46e   : > { %v4396_v28 = vld [vmem:[#allocation4 + $0xf0] sm:$0xff]  ;;  %v4497_v34 = vpack.c.bf16 %v4490_v41, %v4489_v48  ;;  %4475 = vst.msk [vmem:[#allocation6 + $0x61] sm:$0xff] %vm435_vm2, %v4466_v29  ;;  %15654 = vmatprep.subr.bf16.mxu1 %v17622_v0  ;;  %v17641_v48 = vld [vmem:[%s22637_s6 + $0x58] sm:$0xff]   ;;  %v17655_v47 = vld [vmem:[%s22639_s8 + $0x28] sm:$0xff]  }
 0x46f   : > { %v4379_v12 = vld [vmem:[#allocation4 + $0xe0] sm:$0xff]  ;;  %v4853_v23 = vld [vmem:[#allocation6 + $0x51] sm:$0xff] }
 0x470   : > { %v4412_v8 = vmax.f32 %v4379_v12, %v4396_v28  ;;  %v4397_v53 = vld [vmem:[#allocation4 + $0xf8] sm:$0xff]  ;;  %15634 = vmatprep.mubr.msk.bf16.mxu1 %vm435_vm2, %v4497_v34  ;;  %v4860_v55 = vpack.c.bf16 %v4853_v23, %v4852_v39  ;;  %v17642_v28 = vld [vmem:[%s22637_s6 + $0xa0] sm:$0xff]  }
 0x471   : > { %v4380_v35 = vld [vmem:[#allocation4 + $0xe8] sm:$0xff]  ;;  %v5213_v1 = vld [vmem:[#allocation6 + $0x12] sm:$0xff] }
 0x472   : > { %4428 = vst.msk [vmem:[#allocation5 + $0x70] sm:$0xff] %vm435_vm2, %v4412_v8  ;;  %v4413_v61 = vmax.f32 %v4380_v35, %v4397_v53  ;;  %v5217_v12 = vld [vmem:[#allocation6 + $0x52] sm:$0xff]  ;;  %v5214_v8 = vld [vmem:[#allocation6 + $0x22] sm:$0xff] }
 0x473   : > { %v4442_v40 = vld [vmem:[#allocation5 + $0x60] ss:$2 sm:$0xff]  ;;  %v4458_v38 = vld [vmem:[#allocation5 + $0x61] ss:$2 sm:$0xff] }
 0x474   : > { %4429 = vst.msk [vmem:[#allocation5 + $0x78] sm:$0xff] %vm435_vm2, %v4413_v61  ;;  %v4467_v2 = vmax.f32 %v4442_v40, %v4458_v38  ;;  %v5216_v35 = vld [vmem:[#allocation6 + $0x42] sm:$0xff]  ;;  %v17644_v38 = vld [vmem:[%s22637_s6 + $0xb0] sm:$0xff]  }
 0x475   : > { %v4491_v63 = vld [vmem:[#allocation6 + $0x60] sm:$0xff]  ;;  %v17643_v61 = vld [vmem:[%s22637_s6 + $0xa8] sm:$0xff]   ;;  %v5224_v40 = vpack.c.bf16 %v5217_v12, %v5216_v35 }
 0x476   : > { %4476 = vst.msk [vmem:[#allocation6 + $0x71] sm:$0xff] %vm435_vm2, %v4467_v2  ;;  %v4618_v32 = vpack.c.bf16 %v4491_v63, %v4490_v41  ;;  %v4854_v7 = vld [vmem:[#allocation6 + $0x61] sm:$0xff]  ;;  %v5222_v41 = vpack.c.bf16 %v5213_v1, %v5212_v27 }
 0x477   : > { %v4982_v43 = vpack.c.bf16 %v4854_v7, %v4853_v23 }
 0x47b   : > { %v4444_v5 = vld [vmem:[#allocation5 + $0x70] ss:$2 sm:$0xff]  ;;  %v4460_v46 = vld [vmem:[#allocation5 + $0x71] ss:$2 sm:$0xff] }
 0x47c   : > { %v4468_v15 = vmax.f32 %v4444_v5, %v4460_v46  ;;  %v5218_v5 = vld [vmem:[#allocation6 + $0x62] sm:$0xff] }
 0x47d   : > { %v4492_v19 = vld [vmem:[#allocation6 + $0x70] sm:$0xff] }
 0x47e   : > { %v4498_v3 = vpack.c.bf16 %v4492_v19, %v4491_v63  ;;  %4477 = vst.msk [vmem:[#allocation6 + $0x81] sm:$0xff] %vm435_vm2, %v4468_v15  ;;  %v4855_v25 = vld [vmem:[#allocation6 + $0x71] sm:$0xff]  ;;  %v5344_v63 = vpack.c.bf16 %v5214_v8, %v5213_v1 }
 0x47f   : > { %v4861_v49 = vpack.c.bf16 %v4855_v25, %v4854_v7  ;;  %v5219_v2 = vld [vmem:[#allocation6 + $0x72] sm:$0xff] }
 0x480   : > { %15635 = vmatmul.mubr.msk.bf16.gmra.mrb[4].mxu1 %vm435_vm2, %v4498_v3  ;;  %v5225_v46 = vpack.c.bf16 %v5219_v2, %v5218_v5  ;;  %v17645_v15 = vld [vmem:[%s22637_s6 + $0xb8] sm:$0xff]  }
 0x481   : > { %15646 = vmatprep.mubr.msk.bf16.mxu1 %vm435_vm2, %v4616_v36  ;;  %v17647_v36 = vld [vmem:[%s22637_s6 + $0x108] sm:$0xff]  }
 0x485   : > { %v4493_v26 = vld [vmem:[#allocation6 + $0x80] sm:$0xff] }
 0x486   : > { %v4619_v31 = vpack.c.bf16 %v4493_v26, %v4492_v19  ;;  %v4738_v10 = vpack.c.bf16 %v4494_v33, %v4493_v26  ;;  %v4856_v16 = vld [vmem:[#allocation6 + $0x81] sm:$0xff]  ;;  %v17649_v26 = vld [vmem:[%s22637_s6 + $0x118] sm:$0xff]  }
 0x487   : > { %v4983_v60 = vpack.c.bf16 %v4856_v16, %v4855_v25  ;;  %v17646_v19 = vld [vmem:[%s22637_s6 + $0x100] sm:$0xff]   ;;  %v17653_v33 = vld [vmem:[%s22639_s8 + $0x18] sm:$0xff]  }
 0x488   : > { %15647 = vmatmul.mubr.msk.bf16.vlgmr.msra.gmra.mrb[0].mxu1 %vm435_vm2, %v4617_v9  ;;  %v5346_v9 = vpack.c.bf16 %v5218_v5, %v5217_v12 }
 0x489   : > { %15650 = vmatprep.mubr.msk.bf16.mxu1 %vm435_vm2, %v4618_v32  ;;  %15655 = vmatpush3.bf16.msra.mxu1 %v17622_v0  ;;  %v4857_v0 = vld [vmem:[#allocation6 + $0x91] sm:$0xff]  ;;  %v5220_v32 = vld [vmem:[#allocation6 + $0x82] sm:$0xff] }
 0x48a   : > { %15656 = vmatprep.subr.bf16.mxu1 %v17623_v21  ;;  %v5102_v29 = vpack.c.bf16 %v4857_v0, %v4856_v16 }
 0x48d   : > { %15657 = vmatpush3.bf16.msra.mxu1 %v17623_v21  ;;  %v17648_v21 = vld [vmem:[%s22637_s6 + $0x110] sm:$0xff]  }
 0x48e   : > { %15658 = vmatprep.subr.bf16.mxu1 %v17624_v44 }
 0x490   : > { %15651 = vmatmul.mubr.msk.bf16.gmra.mrb[4].mxu1 %vm435_vm2, %v4619_v31  ;;  %v17650_v31 = vld [vmem:[%s22639_s8] sm:$0xff]  }
 0x491   : > { %15659 = vmatpush3.bf16.msra.mxu1 %v17624_v44  ;;  %15662 = vmatprep.mubr.msk.bf16.mxu1 %vm435_vm2, %v21181_v22  ;;  %v17628_v22 = vld [vmem:[%s22637_s6 + $0x30] sm:$0xff]   ;;  %v5347_v44 = vpack.c.bf16 %v5220_v32, %v5219_v2 }
 0x492   : > { %15660 = vmatprep.subr.bf16.mxu1 %v17625_v58 }
 0x495   : > { %15661 = vmatpush3.bf16.msra.mxu1 %v17625_v58  ;;  %v17651_v58 = vld [vmem:[%s22639_s8 + $0x8] sm:$0xff]  }
 0x496   : > { %15670 = vmatprep.subr.bf16.mxu1 %v17626_v50 }
 0x498   : > { %15663 = vmatmul.mubr.msk.bf16.vlgmr.msra.gmra.mrb[0].mxu1 %vm435_vm2, %v4497_v34  ;;  %v5215_v34 = vld [vmem:[#allocation6 + $0x32] sm:$0xff] }
 0x499   : > { %15666 = vmatprep.mubr.msk.bf16.mxu1 %vm435_vm2, %v4498_v3  ;;  %15671 = vmatpush3.bf16.msra.mxu1 %v17626_v50  ;;  %v5223_v53 = vpack.c.bf16 %v5215_v34, %v5214_v8  ;;  %v5345_v3 = vpack.c.bf16 %v5216_v35, %v5215_v34  ;;  %v17652_v50 = vld [vmem:[%s22639_s8 + $0x10] sm:$0xff]   ;;  %v17659_v35 = vld [vmem:[%s22639_s8 + $0xc8] sm:$0xff]  }
 0x49a   : > { %15672 = vmatprep.subr.bf16.mxu1 %v17627_v37 }
 0x49d   : > { %15673 = vmatpush3.bf16.msra.mxu1 %v17627_v37  ;;  %v5221_v37 = vld [vmem:[#allocation6 + $0x92] sm:$0xff] }
 0x49e   : > { %15674 = vmatprep.subr.bf16.mxu1 %v17628_v22 }
 0x4a0   : > { %15667 = vmatmul.mubr.msk.bf16.gmra.mrb[4].mxu1 %vm435_vm2, %v4738_v10  ;;  %v17656_v10 = vld [vmem:[%s22639_s8 + $0x30] sm:$0xff]  }
 0x4a1   : > { %15675 = vmatpush3.bf16.msra.mxu1 %v17628_v22  ;;  %15678 = vmatprep.mubr.msk.bf16.mxu1 %vm435_vm2, %v4858_v11  ;;  %v5466_v22 = vpack.c.bf16 %v5221_v37, %v5220_v32  ;;  %v17658_v11 = vld [vmem:[%s22639_s8 + $0xc0] sm:$0xff]   ;;  %v17664_v32 = vld [vmem:[%s22639_s8 + $0xf0] sm:$0xff]  }
 0x4a2   : > { %15676 = vmatprep.subr.bf16.mxu1 %v17629_v30  ;;  %v17668_v37 = vld [vmem:[%s22639_s8 + $0x190] sm:$0xff]  }
 0x4a5   : > { %15677 = vmatpush3.bf16.msra.mxu1 %v17629_v30  ;;  %v17657_v30 = vld [vmem:[%s22639_s8 + $0x38] sm:$0xff]  }
 0x4a6   : > { %15686 = vmatprep.subr.bf16.mxu1 %v17630_v57 }
 0x4a8   : > { %15679 = vmatmul.mubr.msk.bf16.vlgmr.msra.gmra.mrb[0].mxu1 %vm435_vm2, %v4859_v14 }
 0x4a9   : > { %15682 = vmatprep.mubr.msk.bf16.mxu1 %vm435_vm2, %v4860_v55  ;;  %15687 = vmatpush3.bf16.msra.mxu1 %v17630_v57  ;;  %v13607_v57 = vld [vmem:[%s22638_s7] ss:$0 sm:$0xff] }
 0x4aa   : > { %15688 = vmatprep.subr.bf16.mxu1 %v17631_v6 }
 0x4ad   : > { %15689 = vmatpush3.bf16.msra.mxu1 %v17631_v6 }
 0x4ae   : > { %15690 = vmatprep.subr.bf16.mxu1 %v17632_v18 }
 0x4b0   : > { %15683 = vmatmul.mubr.msk.bf16.gmra.mrb[4].mxu1 %vm435_vm2, %v4861_v49 }
 0x4b1   : > { %15691 = vmatpush3.bf16.msra.mxu1 %v17632_v18  ;;  %15694 = vmatprep.mubr.msk.bf16.mxu1 %vm435_vm2, %v4980_v4 }
 0x4b2   : > { %15692 = vmatprep.subr.bf16.mxu1 %v17633_v20 }
 0x4b5   : > { %15693 = vmatpush3.bf16.msra.mxu1 %v17633_v20 }
 0x4b6   : > { %15702 = vmatprep.subr.bf16.mxu1 %v17634_v45 }
 0x4b8   : > { %15695 = vmatmul.mubr.msk.bf16.vlgmr.msra.gmra.mrb[0].mxu1 %vm435_vm2, %v4981_v13 }
 0x4b9   : > { %15698 = vmatprep.mubr.msk.bf16.mxu1 %vm435_vm2, %v4982_v43  ;;  %15703 = vmatpush3.bf16.msra.mxu1 %v17634_v45 }
 0x4ba   : > { %15704 = vmatprep.subr.bf16.mxu1 %v17635_v62 }
 0x4bd   : > { %15705 = vmatpush3.bf16.msra.mxu1 %v17635_v62 }
 0x4be   : > { %15706 = vmatprep.subr.bf16.mxu1 %v17636_v42 }
 0x4c0   : > { %15699 = vmatmul.mubr.msk.bf16.gmra.mrb[4].mxu1 %vm435_vm2, %v4983_v60 }
 0x4c1   : > { %15707 = vmatpush3.bf16.msra.mxu1 %v17636_v42  ;;  %15710 = vmatprep.mubr.msk.bf16.mxu1 %vm435_vm2, %v4859_v14 }
 0x4c2   : > { %15708 = vmatprep.subr.bf16.mxu1 %v17637_v56 }
 0x4c5   : > { %15709 = vmatpush3.bf16.msra.mxu1 %v17637_v56 }
 0x4c6   : > { %15718 = vmatprep.subr.bf16.mxu1 %v17638_v51 }
 0x4c8   : > { %15711 = vmatmul.mubr.msk.bf16.vlgmr.msra.gmra.mrb[0].mxu1 %vm435_vm2, %v4860_v55 }
 0x4c9   : > { %15714 = vmatprep.mubr.msk.bf16.mxu1 %vm435_vm2, %v4861_v49  ;;  %15719 = vmatpush3.bf16.msra.mxu1 %v17638_v51 }
 0x4ca   : > { %15720 = vmatprep.subr.bf16.mxu1 %v17639_v59 }
 0x4cd   : > { %15721 = vmatpush3.bf16.msra.mxu1 %v17639_v59 }
 0x4ce   : > { %15722 = vmatprep.subr.bf16.mxu1 %v17640_v52 }
 0x4d0   : > { %15715 = vmatmul.mubr.msk.bf16.gmra.mrb[4].mxu1 %vm435_vm2, %v5102_v29 }
 0x4d1   : > { %15723 = vmatpush3.bf16.msra.mxu1 %v17640_v52  ;;  %15726 = vmatprep.mubr.msk.bf16.mxu1 %vm435_vm2, %v5222_v41 }
 0x4d2   : > { %15724 = vmatprep.subr.bf16.mxu1 %v17641_v48 }
 0x4d5   : > { %15725 = vmatpush3.bf16.msra.mxu1 %v17641_v48  ;;  %v21400_v48 = vld [vmem:[#allocation7] sm:$0xff] }
 0x4d6   : > { %15734 = vmatprep.subr.bf16.mxu1 %v17642_v28 }
 0x4d8   : > { %15727 = vmatmul.mubr.msk.bf16.vlgmr.msra.gmra.mrb[0].mxu1 %vm435_vm2, %v5223_v53 }
 0x4d9   : > { %15730 = vmatprep.mubr.msk.bf16.mxu1 %vm435_vm2, %v5224_v40  ;;  %15735 = vmatpush3.bf16.msra.mxu1 %v17642_v28 }
 0x4da   : > { %15736 = vmatprep.subr.bf16.mxu1 %v17643_v61 }
 0x4dd   : > { %15737 = vmatpush3.bf16.msra.mxu1 %v17643_v61 }
 0x4de   : > { %15738 = vmatprep.subr.bf16.mxu1 %v17644_v38 }
 0x4e0   : > { %15731 = vmatmul.mubr.msk.bf16.gmra.mrb[4].mxu1 %vm435_vm2, %v5225_v46 }
 0x4e1   : > { %15739 = vmatpush3.bf16.msra.mxu1 %v17644_v38  ;;  %15742 = vmatprep.mubr.msk.bf16.mxu1 %vm435_vm2, %v5344_v63  ;;  %v17660_v38 = vld [vmem:[%s22639_s8 + $0xd0] sm:$0xff]  }
 0x4e2   : > { %15740 = vmatprep.subr.bf16.mxu1 %v17645_v15 }
 0x4e5   : > { %15741 = vmatpush3.bf16.msra.mxu1 %v17645_v15 }
 0x4e6   : > { %15750 = vmatprep.subr.bf16.mxu1 %v17646_v19 }
 0x4e8   : > { %15743 = vmatmul.mubr.msk.bf16.vlgmr.msra.gmra.mrb[0].mxu1 %vm435_vm2, %v5345_v3  ;;  %v17661_v3 = vld [vmem:[%s22639_s8 + $0xd8] sm:$0xff]  }
 0x4e9   : > { %15746 = vmatprep.mubr.msk.bf16.mxu1 %vm435_vm2, %v5346_v9  ;;  %15751 = vmatpush3.bf16.msra.mxu1 %v17646_v19  ;;  %v17662_v9 = vld [vmem:[%s22639_s8 + $0xe0] sm:$0xff]  }
 0x4ea   : > { %15752 = vmatprep.subr.bf16.mxu1 %v17647_v36 }
 0x4ed   : > { %15753 = vmatpush3.bf16.msra.mxu1 %v17647_v36 }
 0x4ee   : > { %15754 = vmatprep.subr.bf16.mxu1 %v17648_v21 }
 0x4f0   : > { %15747 = vmatmul.mubr.msk.bf16.gmra.mrb[4].mxu1 %vm435_vm2, %v5347_v44  ;;  %v17665_v44 = vld [vmem:[%s22639_s8 + $0xf8] sm:$0xff]  }
 0x4f1   : > { %15755 = vmatpush3.bf16.msra.mxu1 %v17648_v21  ;;  %15758 = vmatprep.mubr.msk.bf16.mxu1 %vm435_vm2, %v5223_v53  ;;  %v17663_v21 = vld [vmem:[%s22639_s8 + $0xe8] sm:$0xff]  }
 0x4f2   : > { %15756 = vmatprep.subr.bf16.mxu1 %v17649_v26 }
 0x4f5   : > { %15757 = vmatpush3.bf16.msra.mxu1 %v17649_v26  ;;  %v17666_v26 = vld [vmem:[%s22639_s8 + $0x180] sm:$0xff]  }
 0x4f6   : > { %15766 = vmatprep.subr.bf16.mxu1 %v17650_v31 }
 0x4f8   : > { %15759 = vmatmul.mubr.msk.bf16.vlgmr.msra.gmra.mrb[0].mxu1 %vm435_vm2, %v5224_v40 }
 0x4f9   : > { %15762 = vmatprep.mubr.msk.bf16.mxu1 %vm435_vm2, %v5225_v46  ;;  %15767 = vmatpush3.bf16.msra.mxu1 %v17650_v31 }
 0x4fa   : > { %15768 = vmatprep.subr.bf16.mxu1 %v17651_v58 }
 0x4fd   : > { %15769 = vmatpush3.bf16.msra.mxu1 %v17651_v58  ;;  %v17667_v58 = vld [vmem:[%s22639_s8 + $0x188] sm:$0xff]  }
 0x4fe   : > { %15770 = vmatprep.subr.bf16.mxu1 %v17652_v50 }
 0x500   : > { %15763 = vmatmul.mubr.msk.bf16.gmra.mrb[4].mxu1 %vm435_vm2, %v5466_v22 }
 0x501   : > { %15771 = vmatpush3.bf16.msra.mxu1 %v17652_v50 }
 0x502   : > { %15772 = vmatprep.subr.bf16.mxu1 %v17653_v33 }
 0x505   : > { %15773 = vmatpush3.bf16.msra.mxu1 %v17653_v33 }
 0x506   : > { %15774 = vmatprep.subr.bf16.mxu1 %v17654_v24 }
 0x509   : > { %15775 = vmatpush3.bf16.msra.mxu1 %v17654_v24  ;;  %v17669_v24 = vld [vmem:[%s22639_s8 + $0x198] sm:$0xff]  }
 0x50a   : > { %15776 = vmatprep.subr.bf16.mxu1 %v17655_v47 }
 0x50d   : > { %15777 = vmatpush3.bf16.msra.mxu1 %v17655_v47  ;;  %v17670_v47 = vld [vmem:[%s22639_s8 + $0x1a0] sm:$0xff]  }
 0x50e   : > { %15778 = vmatprep.subr.bf16.mxu1 %v17656_v10 }
 0x511   : > { %15779 = vmatpush3.bf16.msra.mxu1 %v17656_v10  ;;  %v17671_v10 = vld [vmem:[%s22639_s8 + $0x1a8] sm:$0xff]  }
 0x512   : > { %15780 = vmatprep.subr.bf16.mxu1 %v17657_v30 }
 0x515   : > { %15781 = vmatpush3.bf16.msra.mxu1 %v17657_v30  ;;  %v17672_v30 = vld [vmem:[%s22639_s8 + $0x1b0] sm:$0xff]  }
 0x516   : > { %15790 = vmatprep.subr.bf16.mxu1 %v17658_v11 }
 0x5cb   : > { %v15760_v54 = vpop.f32.mrb[0].mxu1 }
 0x5cc   : > { %v16734_v23 = vadd.f32 %v15760_v54, %v13607_v57  ;;  %v5537_v17 = vpop.f32.mrb[1].mxu1  ;;  %v17675_v54 = vld [vmem:[%s22639_s8 + $0x48] sm:$0xff]  }
 0x5cd   : > { %v16735_v14 = vadd.f32 %v13607_v57, %v5537_v17  ;;  %v15761_v39 = vpop.f32.mrb[2].mxu1  ;;  %v6032_v17 = vld [vmem:[#allocation7 + $0x1] sm:$0xff] }
 0x5ce   : > { %v21370_v6 = vmax.f32 %v16734_v23, 0.0  ;;  %v16736_v55 = vadd.f32 %v15761_v39, %v13607_v57  ;;  %v5540_v18 = vpop.f32.mrb[3].mxu1  ;;  %v17676_v23 = vld [vmem:[%s22639_s8 + $0x50] sm:$0xff]   ;;  %v17677_v39 = vld [vmem:[%s22639_s8 + $0x58] sm:$0xff]  }
 0x5cf   : > { %v21372_v25 = vmax.f32 %v16735_v14, 0.0  ;;  %v16737_v7 = vadd.f32 %v13607_v57, %v5540_v18  ;;  %v17678_v18 = vld [vmem:[%s22639_s8 + $0x60] sm:$0xff]  }
 0x5d0   : > { %5587 = vst [vmem:[#allocation7 + $0x31] sm:$0xff] %v21370_v6  ;;  %v21375_v49 = vmax.f32 %v16736_v55, 0.0 }
 0x5d1   : > { %5585 = vst [vmem:[#allocation7 + $0x11] sm:$0xff] %v21372_v25  ;;  %v21378_v20 = vmax.f32 %v16737_v7, 0.0  ;;  %v6042_v55 = vpack.c.bf16 %v21372_v25, %v6032_v17  ;;  %v17679_v7 = vld [vmem:[%s22639_s8 + $0x68] sm:$0xff]  }
 0x5d2   : > { %5588 = vst [vmem:[#allocation7 + $0x41] sm:$0xff] %v21375_v49  ;;  %v6185_v4 = vpack.c.bf16 %v21375_v49, %v21370_v6  ;;  %v17719_v17 = vld [vmem:[%s22639_s8 + $0x228] sm:$0xff]  }
 0x5d3   : > { %5586 = vst [vmem:[#allocation7 + $0x21] sm:$0xff] %v21378_v20  ;;  %v15764_v45 = vpop.f32.mrb[4].mxu1  ;;  %v21386_v13 = vpack.c.bf16 %v21370_v6, %v21378_v20  ;;  %v6184_v62 = vpack.c.bf16 %v21378_v20, %v21372_v25  ;;  %v17689_v25 = vld [vmem:[%s22639_s8 + $0x138] sm:$0xff]   ;;  %v17690_v20 = vld [vmem:[%s22639_s8 + $0x1c0] sm:$0xff]  }
 0x5d4   : > { %v16738_v43 = vadd.f32 %v15764_v45, %v13607_v57  ;;  %v5553_v42 = vpop.f32.mrb[5].mxu1  ;;  %v17680_v45 = vld [vmem:[%s22639_s8 + $0x70] sm:$0xff]   ;;  %v17694_v6 = vld [vmem:[%s22639_s8 + $0x1e0] sm:$0xff]  }
 0x5d5   : > { %v16739_v16 = vadd.f32 %v13607_v57, %v5553_v42  ;;  %v15765_v60 = vpop.f32.mrb[6].mxu1  ;;  %v17682_v42 = vld [vmem:[%s22639_s8 + $0x100] sm:$0xff]  }
 0x5d6   : > { %v21390_v56 = vmax.f32 %v16738_v43, 0.0  ;;  %v16740_v51 = vadd.f32 %v15765_v60, %v13607_v57  ;;  %v5556_v59 = vpop.f32.mrb[7].mxu1  ;;  %v17681_v43 = vld [vmem:[%s22639_s8 + $0x78] sm:$0xff]   ;;  %v17684_v60 = vld [vmem:[%s22639_s8 + $0x110] sm:$0xff]  }
 0x5d7   : > { %v21392_v52 = vmax.f32 %v16739_v16, 0.0  ;;  %v16741_v0 = vadd.f32 %v13607_v57, %v5556_v59  ;;  %v5603_v12 = vld [vmem:[#allocation7 + $0x30] sm:$0xff]  ;;  %v17674_v57 = vld [vmem:[%s22639_s8 + $0x40] sm:$0xff]   ;;  %v17683_v16 = vld [vmem:[%s22639_s8 + $0x108] sm:$0xff]  }
 0x5d8   : > { %5591 = vst [vmem:[#allocation7 + $0x71] sm:$0xff] %v21390_v56  ;;  %v21395_v27 = vmax.f32 %v16740_v51, 0.0  ;;  %v5601_v1 = vld [vmem:[#allocation7 + $0x10] sm:$0xff]  ;;  %v17685_v51 = vld [vmem:[%s22639_s8 + $0x118] sm:$0xff]   ;;  %v17686_v59 = vld [vmem:[%s22639_s8 + $0x120] sm:$0xff]  }
 0x5d9   : > { %5589 = vst [vmem:[#allocation7 + $0x51] sm:$0xff] %v21392_v52  ;;  %v21398_v29 = vmax.f32 %v16741_v0, 0.0  ;;  %v5610_v41 = vpack.c.bf16 %v5601_v1, %v21400_v48  ;;  %v21405_v28 = vpack.c.bf16 %v21392_v52, %v21375_v49  ;;  %v5604_v2 = vld [vmem:[#allocation7 + $0x40] sm:$0xff]  ;;  %v17687_v0 = vld [vmem:[%s22639_s8 + $0x128] sm:$0xff]  }
 0x5da   : > { %5592 = vst [vmem:[#allocation7 + $0x81] sm:$0xff] %v21395_v27  ;;  %v5602_v34 = vld [vmem:[#allocation7 + $0x20] sm:$0xff]  ;;  %v6187_v8 = vpack.c.bf16 %v21395_v27, %v21390_v56  ;;  %v5752_v31 = vpack.c.bf16 %v5604_v2, %v5603_v12  ;;  %v17695_v49 = vld [vmem:[%s22639_s8 + $0x1e8] sm:$0xff]  }
 0x5db   : > { %5590 = vst [vmem:[#allocation7 + $0x61] sm:$0xff] %v21398_v29  ;;  %15782 = vmatprep.mubr.bf16.mxu1 %v5610_v41  ;;  %v5611_v53 = vpack.c.bf16 %v5603_v12, %v5602_v34  ;;  %v21416_v61 = vpack.c.bf16 %v21390_v56, %v21398_v29  ;;  %v6186_v40 = vpack.c.bf16 %v21398_v29, %v21392_v52  ;;  %v17693_v41 = vld [vmem:[%s22639_s8 + $0x1d8] sm:$0xff]   ;;  %v17698_v56 = vld [vmem:[%s22639_s8 + $0x80] sm:$0xff]   ;;  %v17699_v52 = vld [vmem:[%s22639_s8 + $0x88] sm:$0xff]  }
 0x5dc   : > { %v5751_v36 = vpack.c.bf16 %v5602_v34, %v5601_v1  ;;  %v17688_v1 = vld [vmem:[%s22639_s8 + $0x130] sm:$0xff]   ;;  %v6465_v12 = vld [vmem:[#allocation7 + $0x2] sm:$0xff] }
 0x5dd   : > { %15783 = vmatmul.mubr.bf16.vlgmr.msra.gmra.mrb[8].mxu1 %v5611_v53  ;;  %v17700_v29 = vld [vmem:[%s22639_s8 + $0x90] sm:$0xff]  }
 0x5de   : > { %15791 = vmatpush3.bf16.msra.mxu1 %v17658_v11  ;;  %v17673_v11 = vld [vmem:[%s22639_s8 + $0x1b8] sm:$0xff]  }
 0x5df   : > { %15792 = vmatprep.subr.bf16.mxu1 %v17659_v35  ;;  %v5607_v63 = vld [vmem:[#allocation7 + $0x70] sm:$0xff] }
 0x5e0   : > { %v5605_v5 = vld [vmem:[#allocation7 + $0x50] sm:$0xff] }
 0x5e1   : > { %v5612_v46 = vpack.c.bf16 %v5605_v5, %v5604_v2  ;;  %v5608_v22 = vld [vmem:[#allocation7 + $0x80] sm:$0xff]  ;;  %v6041_v34 = vld [vmem:[#allocation7 + $0x91] sm:$0xff] }
 0x5e2   : > { %15793 = vmatpush3.bf16.msra.mxu1 %v17659_v35  ;;  %v5606_v15 = vld [vmem:[#allocation7 + $0x60] sm:$0xff]  ;;  %v5754_v33 = vpack.c.bf16 %v5608_v22, %v5607_v63  ;;  %v5893_v14 = vpack.c.bf16 %v21400_v48, %v5608_v22  ;;  %v17692_v48 = vld [vmem:[%s22639_s8 + $0x1d0] sm:$0xff]   ;;  %v17701_v35 = vld [vmem:[%s22639_s8 + $0x98] sm:$0xff]  }
 0x5e3   : > { %15786 = vmatprep.mubr.bf16.mxu1 %v5612_v46  ;;  %15794 = vmatprep.subr.bf16.mxu1 %v17660_v38  ;;  %v5613_v19 = vpack.c.bf16 %v5607_v63, %v5606_v15  ;;  %v5753_v50 = vpack.c.bf16 %v5606_v15, %v5605_v5  ;;  %v17706_v2 = vld [vmem:[%s22639_s8 + $0x140] sm:$0xff]   ;;  %v6468_v15 = vld [vmem:[#allocation7 + $0x32] sm:$0xff] }
 0x5e4   : > { %v6467_v5 = vld [vmem:[#allocation7 + $0x22] sm:$0xff]  ;;  %v17713_v22 = vld [vmem:[%s22639_s8 + $0x178] sm:$0xff]  }
 0x5e5   : > { %15787 = vmatmul.mubr.bf16.gmra.mrb[12].mxu1 %v5613_v19  ;;  %v6476_v63 = vpack.c.bf16 %v6468_v15, %v6467_v5 }
 0x5e6   : > { %15795 = vmatpush3.bf16.msra.mxu1 %v17660_v38  ;;  %15806 = vmatprep.mubr.bf16.mxu1 %v5751_v36  ;;  %v17705_v38 = vld [vmem:[%s22639_s8 + $0xb8] sm:$0xff]  }
 0x5e7   : > { %15796 = vmatprep.subr.bf16.mxu1 %v17661_v3 }
 0x5ea   : > { %15797 = vmatpush3.bf16.msra.mxu1 %v17661_v3  ;;  %v17707_v3 = vld [vmem:[%s22639_s8 + $0x148] sm:$0xff]  }
 0x5eb   : > { %15798 = vmatprep.subr.bf16.mxu1 %v17662_v9 }
 0x5ee   : > { %15799 = vmatpush3.bf16.msra.mxu1 %v17662_v9  ;;  %v17708_v9 = vld [vmem:[%s22639_s8 + $0x150] sm:$0xff]  }
 0x5ef   : > { %15800 = vmatprep.subr.bf16.mxu1 %v17663_v21 }
 0x5f2   : > { %15801 = vmatpush3.bf16.msra.mxu1 %v17663_v21  ;;  %v6471_v21 = vld [vmem:[#allocation7 + $0x62] sm:$0xff] }
 0x5f3   : > { %15802 = vmatprep.subr.bf16.mxu1 %v17664_v32 }
 0x5f6   : > { %15803 = vmatpush3.bf16.msra.mxu1 %v17664_v32  ;;  %v6472_v32 = vld [vmem:[#allocation7 + $0x72] sm:$0xff] }
 0x5f7   : > { %15804 = vmatprep.subr.bf16.mxu1 %v17665_v44 }
 0x5fa   : > { %15805 = vmatpush3.bf16.msra.mxu1 %v17665_v44  ;;  %v6478_v44 = vpack.c.bf16 %v6472_v32, %v6471_v21 }
 0x5fb   : > { %15814 = vmatprep.subr.bf16.mxu1 %v17666_v26 }
 0x5fd   : > { %15807 = vmatmul.mubr.bf16.vlgmr.msra.gmra.mrb[8].mxu1 %v5752_v31 }
 0x5fe   : > { %15810 = vmatprep.mubr.bf16.mxu1 %v5753_v50  ;;  %15815 = vmatpush3.bf16.msra.mxu1 %v17666_v26  ;;  %v17709_v26 = vld [vmem:[%s22639_s8 + $0x158] sm:$0xff]   ;;  %v17711_v50 = vld [vmem:[%s22639_s8 + $0x168] sm:$0xff]  }
 0x5ff   : > { %15816 = vmatprep.subr.bf16.mxu1 %v17667_v58 }
 0x602   : > { %15817 = vmatpush3.bf16.msra.mxu1 %v17667_v58  ;;  %v17710_v58 = vld [vmem:[%s22639_s8 + $0x160] sm:$0xff]  }
 0x603   : > { %15818 = vmatprep.subr.bf16.mxu1 %v17668_v37 }
 0x605   : > { %15811 = vmatmul.mubr.bf16.gmra.mrb[12].mxu1 %v5754_v33  ;;  %v17714_v33 = vld [vmem:[%s22639_s8 + $0x200] sm:$0xff]  }
 0x606   : > { %15819 = vmatpush3.bf16.msra.mxu1 %v17668_v37  ;;  %15830 = vmatprep.mubr.bf16.mxu1 %v5611_v53  ;;  %v6326_v53 = vpack.c.bf16 %v6041_v34, %v21395_v27  ;;  %v17703_v27 = vld [vmem:[%s22639_s8 + $0xa8] sm:$0xff]   ;;  %v17712_v37 = vld [vmem:[%s22639_s8 + $0x170] sm:$0xff]  }
 0x607   : > { %15820 = vmatprep.subr.bf16.mxu1 %v17669_v24 }
 0x60a   : > { %15821 = vmatpush3.bf16.msra.mxu1 %v17669_v24 }
 0x60b   : > { %15822 = vmatprep.subr.bf16.mxu1 %v17670_v47 }
 0x60e   : > { %15823 = vmatpush3.bf16.msra.mxu1 %v17670_v47  ;;  %v17715_v47 = vld [vmem:[%s22639_s8 + $0x208] sm:$0xff]  }
 0x60f   : > { %15824 = vmatprep.subr.bf16.mxu1 %v17671_v10 }
 0x612   : > { %15825 = vmatpush3.bf16.msra.mxu1 %v17671_v10 }
 0x613   : > { %15826 = vmatprep.subr.bf16.mxu1 %v17672_v30 }
 0x616   : > { %15827 = vmatpush3.bf16.msra.mxu1 %v17672_v30  ;;  %v17716_v30 = vld [vmem:[%s22639_s8 + $0x210] sm:$0xff]  }
 0x617   : > { %15828 = vmatprep.subr.bf16.mxu1 %v17673_v11 }
 0x61a   : > { %15829 = vmatpush3.bf16.msra.mxu1 %v17673_v11  ;;  %v6473_v11 = vld [vmem:[#allocation7 + $0x82] sm:$0xff] }
 0x61b   : > { %15838 = vmatprep.subr.bf16.mxu1 %v17674_v57 }
 0x61d   : > { %15831 = vmatmul.mubr.bf16.vlgmr.msra.gmra.mrb[8].mxu1 %v5612_v46  ;;  %v6470_v46 = vld [vmem:[#allocation7 + $0x52] sm:$0xff] }
 0x61e   : > { %15834 = vmatprep.mubr.bf16.mxu1 %v5613_v19  ;;  %15839 = vmatpush3.bf16.msra.mxu1 %v17674_v57  ;;  %v6469_v19 = vld [vmem:[#allocation7 + $0x42] sm:$0xff]  ;;  %v6619_v10 = vpack.c.bf16 %v6471_v21, %v6470_v46  ;;  %v6620_v57 = vpack.c.bf16 %v6473_v11, %v6472_v32 }
 0x61f   : > { %15840 = vmatprep.subr.bf16.mxu1 %v17675_v54  ;;  %v21585_v36 = vpack.c.bf16 %v6470_v46, %v6469_v19  ;;  %v6618_v24 = vpack.c.bf16 %v6469_v19, %v6468_v15  ;;  %v8341_v46 = vld [vmem:[#allocation3 + $0xc0] sm:$0xff]  ;;  %v8346_v19 = vld [vmem:[#allocation3 + $0xf8] sm:$0xff]  ;;  %v8348_v32 = vld [vmem:[#allocation3 + $0x110] sm:$0xff] }
 0x622   : > { %15841 = vmatpush3.bf16.msra.mxu1 %v17675_v54  ;;  %v17717_v54 = vld [vmem:[%s22639_s8 + $0x218] sm:$0xff]  }
 0x623   : > { %15842 = vmatprep.subr.bf16.mxu1 %v17676_v23 }
 0x625   : > { %15835 = vmatmul.mubr.bf16.gmra.mrb[12].mxu1 %v5893_v14  ;;  %v17720_v14 = vld [vmem:[%s22639_s8 + $0x230] sm:$0xff]  }
 0x626   : > { %15843 = vmatpush3.bf16.msra.mxu1 %v17676_v23  ;;  %15854 = vmatprep.mubr.bf16.mxu1 %v6042_v55  ;;  %v17718_v23 = vld [vmem:[%s22639_s8 + $0x220] sm:$0xff]  }
 0x627   : > { %15844 = vmatprep.subr.bf16.mxu1 %v17677_v39  ;;  %v17722_v55 = vld [vmem:[%s22635_s4] sm:$0xff]  }
 0x62a   : > { %15845 = vmatpush3.bf16.msra.mxu1 %v17677_v39  ;;  %v17721_v39 = vld [vmem:[%s22639_s8 + $0x238] sm:$0xff]  }
 0x62b   : > { %15846 = vmatprep.subr.bf16.mxu1 %v17678_v18 }
 0x62e   : > { %15847 = vmatpush3.bf16.msra.mxu1 %v17678_v18  ;;  %v17723_v18 = vld [vmem:[%s22635_s4 + $0x8] sm:$0xff]  }
 0x62f   : > { %15848 = vmatprep.subr.bf16.mxu1 %v17679_v7 }
 0x632   : > { %15849 = vmatpush3.bf16.msra.mxu1 %v17679_v7  ;;  %v17724_v7 = vld [vmem:[%s22635_s4 + $0x10] sm:$0xff]  }
 0x633   : > { %15850 = vmatprep.subr.bf16.mxu1 %v17680_v45 }
 0x636   : > { %15851 = vmatpush3.bf16.msra.mxu1 %v17680_v45  ;;  %v8325_v45 = vld [vmem:[#allocation3] sm:$0xff] }
 0x637   : > { %15852 = vmatprep.subr.bf16.mxu1 %v17681_v43 }
 0x63a   : > { %15853 = vmatpush3.bf16.msra.mxu1 %v17681_v43  ;;  %v8326_v43 = vld [vmem:[#allocation3 + $0x8] sm:$0xff] }
 0x63b   : > { %15862 = vmatprep.subr.bf16.mxu1 %v17682_v42 }
 0x63d   : > { %15855 = vmatmul.mubr.bf16.vlgmr.msra.gmra.mrb[8].mxu1 %v21386_v13 }
 0x63e   : > { %15858 = vmatprep.mubr.bf16.mxu1 %v21405_v28  ;;  %15863 = vmatpush3.bf16.msra.mxu1 %v17682_v42  ;;  %v6474_v42 = vld [vmem:[#allocation7 + $0x92] sm:$0xff] }
 0x63f   : > { %15864 = vmatprep.subr.bf16.mxu1 %v17683_v16 }
 0x642   : > { %15865 = vmatpush3.bf16.msra.mxu1 %v17683_v16  ;;  %v8361_v16 = vpack.c.bf16 %v8326_v43, %v8325_v45  ;;  %v17736_v45 = vld [vmem:[%s22635_s4 + $0x30] sm:$0xff]   ;;  %v17737_v43 = vld [vmem:[%s22635_s4 + $0x38] sm:$0xff]  }
 0x643   : > { %15866 = vmatprep.subr.bf16.mxu1 %v17684_v60 }
 0x645   : > { %15859 = vmatmul.mubr.bf16.gmra.mrb[12].mxu1 %v21416_v61 }
 0x646   : > { %15867 = vmatpush3.bf16.msra.mxu1 %v17684_v60  ;;  %15878 = vmatprep.mubr.bf16.mxu1 %v6184_v62  ;;  %v17691_v62 = vld [vmem:[%s22639_s8 + $0x1c8] sm:$0xff]   ;;  %v6759_v60 = vpack.c.bf16 %v6474_v42, %v6473_v11  ;;  %v8355_v11 = vld [vmem:[#allocation3 + $0x168] sm:$0xff]  ;;  %v17738_v42 = vld [vmem:[%s22635_s4 + $0x80] sm:$0xff]  }
 0x647   : > { %15868 = vmatprep.subr.bf16.mxu1 %v17685_v51 }
 0x64a   : > { %15869 = vmatpush3.bf16.msra.mxu1 %v17685_v51  ;;  %v17725_v51 = vld [vmem:[%s22635_s4 + $0x18] sm:$0xff]  }
 0x64b   : > { %15870 = vmatprep.subr.bf16.mxu1 %v17686_v59 }
 0x64e   : > { %15871 = vmatpush3.bf16.msra.mxu1 %v17686_v59  ;;  %v17726_v59 = vld [vmem:[%s22635_s4 + $0x60] sm:$0xff]  }
 0x64f   : > { %15872 = vmatprep.subr.bf16.mxu1 %v17687_v0 }
 0x652   : > { %15873 = vmatpush3.bf16.msra.mxu1 %v17687_v0  ;;  %v8328_v0 = vld [vmem:[#allocation3 + $0x20] sm:$0xff] }
 0x653   : > { %15874 = vmatprep.subr.bf16.mxu1 %v17688_v1 }
 0x656   : > { %15875 = vmatpush3.bf16.msra.mxu1 %v17688_v1  ;;  %v8330_v1 = vld [vmem:[#allocation3 + $0x38] sm:$0xff] }
 0x657   : > { %15876 = vmatprep.subr.bf16.mxu1 %v17689_v25 }
 0x65a   : > { %15877 = vmatpush3.bf16.msra.mxu1 %v17689_v25  ;;  %v8327_v25 = vld [vmem:[#allocation3 + $0x18] sm:$0xff] }
 0x65b   : > { %15886 = vmatprep.subr.bf16.mxu1 %v17690_v20 }
 0x65d   : > { %15879 = vmatmul.mubr.bf16.vlgmr.msra.gmra.mrb[8].mxu1 %v6185_v4  ;;  %v17696_v4 = vld [vmem:[%s22639_s8 + $0x1f0] sm:$0xff]  }
 0x65e   : > { %15882 = vmatprep.mubr.bf16.mxu1 %v6186_v40  ;;  %15887 = vmatpush3.bf16.msra.mxu1 %v17690_v20  ;;  %v17704_v40 = vld [vmem:[%s22639_s8 + $0xb0] sm:$0xff]   ;;  %v21647_v20 = vpack.c.bf16 %v8328_v0, %v8327_v25 }
 0x65f   : > { %15888 = vmatprep.subr.bf16.mxu1 %v17691_v62  ;;  %v9111_v25 = vld [vmem:[#allocation3 + $0x21] sm:$0xff] }
 0x662   : > { %15889 = vmatpush3.bf16.msra.mxu1 %v17691_v62  ;;  %v8329_v62 = vld [vmem:[#allocation3 + $0x30] sm:$0xff] }
 0x663   : > { %15890 = vmatprep.subr.bf16.mxu1 %v17692_v48 }
 0x665   : > { %15883 = vmatmul.mubr.bf16.gmra.mrb[12].mxu1 %v6187_v8  ;;  %v6466_v8 = vld [vmem:[#allocation7 + $0x12] sm:$0xff] }
 0x666   : > { %15891 = vmatpush3.bf16.msra.mxu1 %v17692_v48  ;;  %15902 = vmatprep.mubr.bf16.mxu1 %v21386_v13  ;;  %v17697_v13 = vld [vmem:[%s22639_s8 + $0x1f8] sm:$0xff]   ;;  %v6617_v31 = vpack.c.bf16 %v6467_v5, %v6466_v8  ;;  %v17727_v48 = vld [vmem:[%s22635_s4 + $0x68] sm:$0xff]  }
 0x667   : > { %15892 = vmatprep.subr.bf16.mxu1 %v17693_v41 }
 0x66a   : > { %15893 = vmatpush3.bf16.msra.mxu1 %v17693_v41  ;;  %v21652_v41 = vpack.c.bf16 %v8330_v1, %v8329_v62  ;;  %v9110_v62 = vld [vmem:[#allocation3 + $0x19] sm:$0xff] }
 0x66b   : > { %15894 = vmatprep.subr.bf16.mxu1 %v17694_v6 }
 0x66e   : > { %15895 = vmatpush3.bf16.msra.mxu1 %v17694_v6  ;;  %v17728_v6 = vld [vmem:[%s22635_s4 + $0x70] sm:$0xff]  }
 0x66f   : > { %15896 = vmatprep.subr.bf16.mxu1 %v17695_v49 }
 0x672   : > { %15897 = vmatpush3.bf16.msra.mxu1 %v17695_v49  ;;  %v8332_v49 = vld [vmem:[#allocation3 + $0x50] sm:$0xff] }
 0x673   : > { %15898 = vmatprep.subr.bf16.mxu1 %v17696_v4 }
 0x676   : > { %15899 = vmatpush3.bf16.msra.mxu1 %v17696_v4  ;;  %v8334_v4 = vld [vmem:[#allocation3 + $0x68] sm:$0xff] }
 0x677   : > { %15900 = vmatprep.subr.bf16.mxu1 %v17697_v13 }
 0x67a   : > { %15901 = vmatpush3.bf16.msra.mxu1 %v17697_v13  ;;  %v8331_v13 = vld [vmem:[#allocation3 + $0x48] sm:$0xff] }
 0x67b   : > { %15910 = vmatprep.subr.bf16.mxu1 %v17698_v56 }
 0x67d   : > { %15903 = vmatmul.mubr.bf16.vlgmr.msra.gmra.mrb[8].mxu1 %v21405_v28  ;;  %v6475_v28 = vpack.c.bf16 %v6466_v8, %v6465_v12  ;;  %v17730_v12 = vld [vmem:[%s22635_s4 + $0xc0] sm:$0xff]   ;;  %v8336_v8 = vld [vmem:[#allocation3 + $0x80] sm:$0xff] }
 0x67e   : > { %15906 = vmatprep.mubr.bf16.mxu1 %v21416_v61  ;;  %15911 = vmatpush3.bf16.msra.mxu1 %v17698_v56  ;;  %v17702_v61 = vld [vmem:[%s22639_s8 + $0xa0] sm:$0xff]   ;;  %v21661_v56 = vpack.c.bf16 %v8332_v49, %v8331_v13 }
 0x67f   : > { %15912 = vmatprep.subr.bf16.mxu1 %v17699_v52 }
 0x682   : > { %15913 = vmatpush3.bf16.msra.mxu1 %v17699_v52  ;;  %v8333_v52 = vld [vmem:[#allocation3 + $0x60] sm:$0xff] }
 0x683   : > { %15914 = vmatprep.subr.bf16.mxu1 %v17700_v29  ;;  %v21666_v34 = vpack.c.bf16 %v8334_v4, %v8333_v52  ;;  %v17740_v4 = vld [vmem:[%s22635_s4 + $0x90] sm:$0xff]  }
 0x685   : > { %15907 = vmatmul.mubr.bf16.gmra.mrb[12].mxu1 %v6326_v53  ;;  %v8338_v53 = vld [vmem:[#allocation3 + $0x98] sm:$0xff] }
 0x686   : > { %15915 = vmatpush3.bf16.msra.mxu1 %v17700_v29  ;;  %15926 = vmatprep.mubr.bf16.mxu1 %v6475_v28  ;;  %v17729_v29 = vld [vmem:[%s22635_s4 + $0x78] sm:$0xff]  }
 0x687   : > { %15916 = vmatprep.subr.bf16.mxu1 %v17701_v35 }
 0x68a   : > { %15917 = vmatpush3.bf16.msra.mxu1 %v17701_v35  ;;  %v8335_v35 = vld [vmem:[#allocation3 + $0x78] sm:$0xff] }
 0x68b   : > { %15918 = vmatprep.subr.bf16.mxu1 %v17702_v61  ;;  %v21675_v28 = vpack.c.bf16 %v8336_v8, %v8335_v35  ;;  %v9116_v35 = vld [vmem:[#allocation3 + $0x61] sm:$0xff] }
 0x68e   : > { %15919 = vmatpush3.bf16.msra.mxu1 %v17702_v61  ;;  %v8337_v61 = vld [vmem:[#allocation3 + $0x90] sm:$0xff] }
 0x68f   : > { %15920 = vmatprep.subr.bf16.mxu1 %v17703_v27 }
 0x692   : > { %15921 = vmatpush3.bf16.msra.mxu1 %v17703_v27  ;;  %v21677_v27 = vpack.c.bf16 %v8338_v53, %v8337_v61 }
 0x693   : > { %15922 = vmatprep.subr.bf16.mxu1 %v17704_v40 }
 0x696   : > { %15923 = vmatpush3.bf16.msra.mxu1 %v17704_v40  ;;  %v8340_v40 = vld [vmem:[#allocation3 + $0xb0] sm:$0xff] }
 0x697   : > { %15924 = vmatprep.subr.bf16.mxu1 %v17705_v38 }
 0x69a   : > { %15925 = vmatpush3.bf16.msra.mxu1 %v17705_v38  ;;  %v8342_v38 = vld [vmem:[#allocation3 + $0xc8] sm:$0xff] }
 0x69b   : > { %15934 = vmatprep.subr.bf16.mxu1 %v17706_v2  ;;  %v21685_v15 = vpack.c.bf16 %v8342_v38, %v8341_v46  ;;  %v9119_v38 = vld [vmem:[#allocation3 + $0x81] sm:$0xff] }
 0x69d   : > { %15927 = vmatmul.mubr.bf16.vlgmr.msra.gmra.mrb[8].mxu1 %v6476_v63 }
 0x69e   : > { %15930 = vmatprep.mubr.bf16.mxu1 %v21585_v36  ;;  %15935 = vmatpush3.bf16.msra.mxu1 %v17706_v2  ;;  %v8339_v2 = vld [vmem:[#allocation3 + $0xa8] sm:$0xff] }
 0x69f   : > { %15936 = vmatprep.subr.bf16.mxu1 %v17707_v3  ;;  %v21683_v5 = vpack.c.bf16 %v8340_v40, %v8339_v2 }
 0x6a2   : > { %15937 = vmatpush3.bf16.msra.mxu1 %v17707_v3  ;;  %v8343_v3 = vld [vmem:[#allocation3 + $0xd8] sm:$0xff] }
 0x6a3   : > { %15938 = vmatprep.subr.bf16.mxu1 %v17708_v9 }
 0x6a5   : > { %15931 = vmatmul.mubr.bf16.gmra.mrb[12].mxu1 %v6478_v44 }
 0x6a6   : > { %15939 = vmatpush3.bf16.msra.mxu1 %v17708_v9  ;;  %15950 = vmatprep.mubr.bf16.mxu1 %v6617_v31  ;;  %v8345_v9 = vld [vmem:[#allocation3 + $0xf0] sm:$0xff] }
 0x6a7   : > { %15940 = vmatprep.subr.bf16.mxu1 %v17709_v26  ;;  %v21693_v21 = vpack.c.bf16 %v8346_v19, %v8345_v9  ;;  %v9123_v9 = vld [vmem:[#allocation3 + $0xb1] sm:$0xff] }
 0x6aa   : > { %15941 = vmatpush3.bf16.msra.mxu1 %v17709_v26  ;;  %v8347_v26 = vld [vmem:[#allocation3 + $0x108] sm:$0xff] }
 0x6ab   : > { %15942 = vmatprep.subr.bf16.mxu1 %v17710_v58  ;;  %v21699_v31 = vpack.c.bf16 %v8348_v32, %v8347_v26  ;;  %v9122_v32 = vld [vmem:[#allocation3 + $0xa9] sm:$0xff]  ;;  %v9124_v26 = vld [vmem:[#allocation3 + $0xc1] sm:$0xff] }
 0x6ae   : > { %15943 = vmatpush3.bf16.msra.mxu1 %v17710_v58  ;;  %v8349_v58 = vld [vmem:[#allocation3 + $0x120] sm:$0xff] }
 0x6af   : > { %15944 = vmatprep.subr.bf16.mxu1 %v17711_v50 }
 0x6b2   : > { %15945 = vmatpush3.bf16.msra.mxu1 %v17711_v50 }
 0x6b3   : > { %15946 = vmatprep.subr.bf16.mxu1 %v17712_v37 }
 0x6b6   : > { %15947 = vmatpush3.bf16.msra.mxu1 %v17712_v37  ;;  %v8352_v37 = vld [vmem:[#allocation3 + $0x140] sm:$0xff] }
 0x6b7   : > { %15948 = vmatprep.subr.bf16.mxu1 %v17713_v22 }
 0x6ba   : > { %15949 = vmatpush3.bf16.msra.mxu1 %v17713_v22  ;;  %v8354_v22 = vld [vmem:[#allocation3 + $0x158] sm:$0xff] }
 0x6bb   : > { %15958 = vmatprep.subr.bf16.mxu1 %v17714_v33 }
 0x6bd   : > { %15951 = vmatmul.mubr.bf16.vlgmr.msra.gmra.mrb[8].mxu1 %v6618_v24 }
 0x6be   : > { %15954 = vmatprep.mubr.bf16.mxu1 %v6619_v10  ;;  %15959 = vmatpush3.bf16.msra.mxu1 %v17714_v33  ;;  %v8351_v33 = vld [vmem:[#allocation3 + $0x138] sm:$0xff] }
 0x6bf   : > { %15960 = vmatprep.subr.bf16.mxu1 %v17715_v47  ;;  %v21707_v24 = vpack.c.bf16 %v8352_v37, %v8351_v33  ;;  %v9126_v37 = vld [vmem:[#allocation3 + $0xd9] sm:$0xff]  ;;  %v9128_v33 = vld [vmem:[#allocation3 + $0xf1] sm:$0xff] }
 0x6c2   : > { %15961 = vmatpush3.bf16.msra.mxu1 %v17715_v47  ;;  %v8353_v47 = vld [vmem:[#allocation3 + $0x150] sm:$0xff] }
 0x6c3   : > { %15962 = vmatprep.subr.bf16.mxu1 %v17716_v30  ;;  %v8375_v10 = vpack.c.bf16 %v8354_v22, %v8353_v47  ;;  %v9131_v47 = vld [vmem:[#allocation3 + $0x111] sm:$0xff] }
 0x6c5   : > { %15955 = vmatmul.mubr.bf16.gmra.mrb[12].mxu1 %v6620_v57 }
 0x6c6   : > { %15963 = vmatpush3.bf16.msra.mxu1 %v17716_v30  ;;  %15974 = vmatprep.mubr.bf16.mxu1 %v6476_v63  ;;  %v8344_v63 = vld [vmem:[#allocation3 + $0xe0] sm:$0xff]  ;;  %v8356_v30 = vld [vmem:[#allocation3 + $0x170] sm:$0xff] }
 0x6c7   : > { %15964 = vmatprep.subr.bf16.mxu1 %v17717_v54  ;;  %v8376_v57 = vpack.c.bf16 %v8356_v30, %v8355_v11  ;;  %v9130_v30 = vld [vmem:[#allocation3 + $0x109] sm:$0xff] }
 0x6c8   : > { %v21863_v11 = vpack.c.bf16 %v9131_v47, %v9130_v30  ;;  %v9907_v47 = vld [vmem:[#allocation3 + $0xc2] sm:$0xff] }
 0x6ca   : > { %15965 = vmatpush3.bf16.msra.mxu1 %v17717_v54  ;;  %v17731_v54 = vld [vmem:[%s22635_s4 + $0xc8] sm:$0xff]  }
 0x6cb   : > { %15966 = vmatprep.subr.bf16.mxu1 %v17718_v23 }
 0x6ce   : > { %15967 = vmatpush3.bf16.msra.mxu1 %v17718_v23  ;;  %v17732_v23 = vld [vmem:[%s22635_s4 + $0xd0] sm:$0xff]  }
 0x6cf   : > { %15968 = vmatprep.subr.bf16.mxu1 %v17719_v17 }
 0x6d2   : > { %15969 = vmatpush3.bf16.msra.mxu1 %v17719_v17  ;;  %v17733_v17 = vld [vmem:[%s22635_s4 + $0xd8] sm:$0xff]  }
 0x6d3   : > { %15970 = vmatprep.subr.bf16.mxu1 %v17720_v14 }
 0x6d6   : > { %15971 = vmatpush3.bf16.msra.mxu1 %v17720_v14  ;;  %v17734_v14 = vld [vmem:[%s22635_s4 + $0x20] sm:$0xff]  }
 0x6d7   : > { %15972 = vmatprep.subr.bf16.mxu1 %v17721_v39 }
 0x6da   : > { %15973 = vmatpush3.bf16.msra.mxu1 %v17721_v39  ;;  %v8358_v39 = vld [vmem:[#allocation3 + $0x188] sm:$0xff] }
 0x6db   : > { %15982 = vmatprep.subr.bf16.mxu1 %v17722_v55 }
 0x6dd   : > { %15975 = vmatmul.mubr.bf16.vlgmr.msra.gmra.mrb[8].mxu1 %v21585_v36  ;;  %v21691_v36 = vpack.c.bf16 %v8344_v63, %v8343_v3  ;;  %v9120_v3 = vld [vmem:[#allocation3 + $0x91] sm:$0xff] }
 0x6de   : > { %15978 = vmatprep.mubr.bf16.mxu1 %v6478_v44  ;;  %15983 = vmatpush3.bf16.msra.mxu1 %v17722_v55  ;;  %v8350_v44 = vld [vmem:[#allocation3 + $0x128] sm:$0xff]  ;;  %v8357_v55 = vld [vmem:[#allocation3 + $0x180] sm:$0xff] }
 0x6df   : > { %15984 = vmatprep.subr.bf16.mxu1 %v17723_v18  ;;  %v21701_v50 = vpack.c.bf16 %v8350_v44, %v8349_v58  ;;  %v21847_v44 = vpack.c.bf16 %v9123_v9, %v9122_v32  ;;  %v9127_v58 = vld [vmem:[#allocation3 + $0xe1] sm:$0xff] }
 0x6e0   : > { %v21855_v22 = vpack.c.bf16 %v9127_v58, %v9126_v37  ;;  %v9903_v58 = vld [vmem:[#allocation3 + $0x92] sm:$0xff] }
 0x6e2   : > { %15985 = vmatpush3.bf16.msra.mxu1 %v17723_v18  ;;  %v8650_v18 = vpack.c.bf16 %v8358_v39, %v8357_v55  ;;  %v9136_v55 = vld [vmem:[#allocation3 + $0x151] sm:$0xff] }
 0x6e3   : > { %15986 = vmatprep.subr.bf16.mxu1 %v17724_v7 }
 0x6e5   : > { %15979 = vmatmul.mubr.bf16.gmra.mrb[12].mxu1 %v6759_v60  ;;  %v8360_v60 = vld [vmem:[#allocation3 + $0x1a0] sm:$0xff] }
 0x6e6   : > { %15987 = vmatpush3.bf16.msra.mxu1 %v17724_v7  ;;  %15990 = vmatprep.mubr.msk.bf16.mxu1 %vm435_vm2, %v8361_v16  ;;  %v17735_v7 = vld [vmem:[%s22635_s4 + $0x28] sm:$0xff]  }
 0x6e7   : > { %15988 = vmatprep.subr.bf16.mxu1 %v17725_v51  ;;  %v8359_v16 = vld [vmem:[#allocation3 + $0x198] sm:$0xff] }
 0x6e8   : > { %v8879_v0 = vpack.c.bf16 %v8360_v60, %v8359_v16  ;;  %v17744_v16 = vld [vmem:[%s22635_s4 + $0xf0] sm:$0xff]   ;;  %v17745_v60 = vld [vmem:[%s22635_s4 + $0xf8] sm:$0xff]  }
 0x6ea   : > { %15989 = vmatpush3.bf16.msra.mxu1 %v17725_v51  ;;  %v9108_v51 = vld [vmem:[#allocation3 + $0x1] sm:$0xff] }
 0x6eb   : > { %16022 = vmatprep.subr.bf16.mxu1 %v17726_v59 }
 0x6ed   : > { %15991 = vmatmul.mubr.msk.bf16.vlgmr.msra.gmra.mrb[16].mxu1 %vm435_vm2, %v21647_v20 }
 0x6ee   : > { %15994 = vmatprep.mubr.msk.bf16.mxu1 %vm435_vm2, %v21652_v41  ;;  %16023 = vmatpush3.bf16.msra.mxu1 %v17726_v59  ;;  %v9109_v59 = vld [vmem:[#allocation3 + $0x9] sm:$0xff] }
 0x6ef   : > { %16024 = vmatprep.subr.bf16.mxu1 %v17727_v48  ;;  %v9144_v1 = vpack.c.bf16 %v9109_v59, %v9108_v51  ;;  %v17746_v51 = vld [vmem:[%s22635_s4 + $0x40] sm:$0xff]  }
 0x6f0   : > { %v9141_v59 = vld [vmem:[#allocation3 + $0x189] sm:$0xff] }
 0x6f2   : > { %16025 = vmatpush3.bf16.msra.mxu1 %v17727_v48  ;;  %v21795_v48 = vpack.c.bf16 %v9111_v25, %v9110_v62  ;;  %v17747_v25 = vld [vmem:[%s22635_s4 + $0x48] sm:$0xff]   ;;  %v17749_v62 = vld [vmem:[%s22635_s4 + $0x58] sm:$0xff]  }
 0x6f3   : > { %16026 = vmatprep.subr.bf16.mxu1 %v17728_v6 }
 0x6f5   : > { %15995 = vmatmul.mubr.msk.bf16.gmra.mrb[20].mxu1 %vm435_vm2, %v21661_v56 }
 0x6f6   : > { %15998 = vmatprep.mubr.msk.bf16.mxu1 %vm435_vm2, %v21666_v34  ;;  %16027 = vmatpush3.bf16.msra.mxu1 %v17728_v6  ;;  %v17739_v6 = vld [vmem:[%s22635_s4 + $0x88] sm:$0xff]  }
 0x6f7   : > { %16028 = vmatprep.subr.bf16.mxu1 %v17729_v29 }
 0x6fa   : > { %16029 = vmatpush3.bf16.msra.mxu1 %v17729_v29  ;;  %v9117_v29 = vld [vmem:[#allocation3 + $0x69] sm:$0xff] }
 0x6fb   : > { %16062 = vmatprep.subr.bf16.mxu1 %v17730_v12  ;;  %v21822_v61 = vpack.c.bf16 %v9117_v29, %v9116_v35  ;;  %v9895_v35 = vld [vmem:[#allocation3 + $0x32] sm:$0xff] }
 0x6fd   : > { %15999 = vmatmul.mubr.msk.bf16.gmra.mrb[24].mxu1 %vm435_vm2, %v21675_v28 }
 0x6fe   : > { %16002 = vmatprep.mubr.msk.bf16.mxu1 %vm435_vm2, %v21677_v27 }
 0x705   : > { %16003 = vmatmul.mubr.msk.bf16.gmra.mrb[28].mxu1 %vm435_vm2, %v21683_v5 }
 0x706   : > { %16006 = vmatprep.mubr.msk.bf16.mxu1 %vm435_vm2, %v21685_v15 }
 0x70d   : > { %16007 = vmatmul.mubr.msk.bf16.gmra.mrb[32].mxu1 %vm435_vm2, %v21691_v36 }
 0x70e   : > { %16010 = vmatprep.mubr.msk.bf16.mxu1 %vm435_vm2, %v21693_v21 }
 0x715   : > { %16011 = vmatmul.mubr.msk.bf16.gmra.mrb[36].mxu1 %vm435_vm2, %v21699_v31 }
 0x716   : > { %16014 = vmatprep.mubr.msk.bf16.mxu1 %vm435_vm2, %v21701_v50 }
 0x71d   : > { %16015 = vmatmul.mubr.msk.bf16.gmra.mrb[40].mxu1 %vm435_vm2, %v21707_v24 }
 0x71e   : > { %16018 = vmatprep.mubr.msk.bf16.mxu1 %vm435_vm2, %v8375_v10 }
 0x725   : > { %16019 = vmatmul.mubr.msk.bf16.gmra.mrb[44].mxu1 %vm435_vm2, %v8376_v57 }
 0x726   : > { %16030 = vmatprep.mubr.msk.bf16.mxu1 %vm435_vm2, %v21647_v20  ;;  %v9113_v20 = vld [vmem:[#allocation3 + $0x39] sm:$0xff] }
 0x72d   : > { %16031 = vmatmul.mubr.msk.bf16.vlgmr.msra.gmra.mrb[16].mxu1 %vm435_vm2, %v21652_v41 }
 0x72e   : > { %16034 = vmatprep.mubr.msk.bf16.mxu1 %vm435_vm2, %v21661_v56  ;;  %16063 = vmatpush3.bf16.msra.mxu1 %v17730_v12  ;;  %v9114_v12 = vld [vmem:[#allocation3 + $0x49] sm:$0xff] }
 0x72f   : > { %16064 = vmatprep.subr.bf16.mxu1 %v17731_v54 }
 0x732   : > { %16065 = vmatpush3.bf16.msra.mxu1 %v17731_v54 }
 0x733   : > { %16066 = vmatprep.subr.bf16.mxu1 %v17732_v23 }
 0x735   : > { %16035 = vmatmul.mubr.msk.bf16.gmra.mrb[20].mxu1 %vm435_vm2, %v21666_v34 }
 0x736   : > { %16038 = vmatprep.mubr.msk.bf16.mxu1 %vm435_vm2, %v21675_v28  ;;  %16067 = vmatpush3.bf16.msra.mxu1 %v17732_v23  ;;  %v9135_v23 = vld [vmem:[#allocation3 + $0x141] sm:$0xff] }
 0x737   : > { %16068 = vmatprep.subr.bf16.mxu1 %v17733_v17 }
 0x73a   : > { %16069 = vmatpush3.bf16.msra.mxu1 %v17733_v17  ;;  %v9137_v17 = vld [vmem:[#allocation3 + $0x159] sm:$0xff] }
 0x73b   : > { %16102 = vmatprep.subr.bf16.mxu1 %v17734_v14 }
 0x73d   : > { %16039 = vmatmul.mubr.msk.bf16.gmra.mrb[24].mxu1 %vm435_vm2, %v21677_v27 }
 0x73e   : > { %16042 = vmatprep.mubr.msk.bf16.mxu1 %vm435_vm2, %v21683_v5 }
 0x745   : > { %16043 = vmatmul.mubr.msk.bf16.gmra.mrb[28].mxu1 %vm435_vm2, %v21685_v15 }
 0x746   : > { %16046 = vmatprep.mubr.msk.bf16.mxu1 %vm435_vm2, %v21691_v36 }
 0x74d   : > { %16047 = vmatmul.mubr.msk.bf16.gmra.mrb[32].mxu1 %vm435_vm2, %v21693_v21 }
 0x74e   : > { %16050 = vmatprep.mubr.msk.bf16.mxu1 %vm435_vm2, %v21699_v31 }
 0x755   : > { %16051 = vmatmul.mubr.msk.bf16.gmra.mrb[36].mxu1 %vm435_vm2, %v21701_v50 }
 0x756   : > { %16054 = vmatprep.mubr.msk.bf16.mxu1 %vm435_vm2, %v21707_v24 }
 0x75d   : > { %16055 = vmatmul.mubr.msk.bf16.gmra.mrb[40].mxu1 %vm435_vm2, %v8375_v10 }
 0x75e   : > { %16058 = vmatprep.mubr.msk.bf16.mxu1 %vm435_vm2, %v8376_v57 }
 0x765   : > { %16059 = vmatmul.mubr.msk.bf16.gmra.mrb[44].mxu1 %vm435_vm2, %v8650_v18 }
 0x766   : > { %16070 = vmatprep.mubr.msk.bf16.mxu1 %vm435_vm2, %v21652_v41  ;;  %v9112_v41 = vld [vmem:[#allocation3 + $0x31] sm:$0xff] }
 0x767   : > { %v21800_v49 = vpack.c.bf16 %v9113_v20, %v9112_v41  ;;  %v17748_v20 = vld [vmem:[%s22635_s4 + $0x50] sm:$0xff]  }
 0x768   : > { %v9142_v41 = vld [vmem:[#allocation3 + $0x199] sm:$0xff] }
 0x76d   : > { %16071 = vmatmul.mubr.msk.bf16.vlgmr.msra.gmra.mrb[16].mxu1 %vm435_vm2, %v21661_v56  ;;  %v9115_v56 = vld [vmem:[#allocation3 + $0x51] sm:$0xff] }
 0x76e   : > { %16074 = vmatprep.mubr.msk.bf16.mxu1 %vm435_vm2, %v21666_v34  ;;  %16103 = vmatpush3.bf16.msra.mxu1 %v17734_v14  ;;  %v21817_v53 = vpack.c.bf16 %v9115_v56, %v9114_v12  ;;  %v9134_v14 = vld [vmem:[#allocation3 + $0x139] sm:$0xff] }
 0x76f   : > { %16104 = vmatprep.subr.bf16.mxu1 %v17735_v7  ;;  %v21871_v39 = vpack.c.bf16 %v9135_v23, %v9134_v14  ;;  %v9893_v12 = vld [vmem:[#allocation3 + $0x1a] sm:$0xff]  ;;  %v9911_v23 = vld [vmem:[#allocation3 + $0xf2] sm:$0xff] }
 0x772   : > { %16105 = vmatpush3.bf16.msra.mxu1 %v17735_v7  ;;  %v9139_v7 = vld [vmem:[#allocation3 + $0x171] sm:$0xff] }
 0x773   : > { %16106 = vmatprep.subr.bf16.mxu1 %v17736_v45 }
 0x775   : > { %16075 = vmatmul.mubr.msk.bf16.gmra.mrb[20].mxu1 %vm435_vm2, %v21675_v28  ;;  %v17741_v28 = vld [vmem:[%s22635_s4 + $0x98] sm:$0xff]  }
 0x776   : > { %16078 = vmatprep.mubr.msk.bf16.mxu1 %vm435_vm2, %v21677_v27  ;;  %16107 = vmatpush3.bf16.msra.mxu1 %v17736_v45  ;;  %v17742_v27 = vld [vmem:[%s22635_s4 + $0xe0] sm:$0xff]  }
 0x777   : > { %16108 = vmatprep.subr.bf16.mxu1 %v17737_v43  ;;  %v9138_v45 = vld [vmem:[#allocation3 + $0x169] sm:$0xff] }
 0x77a   : > { %16109 = vmatpush3.bf16.msra.mxu1 %v17737_v43  ;;  %v9159_v43 = vpack.c.bf16 %v9139_v7, %v9138_v45  ;;  %v9915_v7 = vld [vmem:[#allocation3 + $0x122] sm:$0xff]  ;;  %v9916_v45 = vld [vmem:[#allocation3 + $0x12a] sm:$0xff] }
 0x77b   : > { %16142 = vmatprep.subr.bf16.mxu1 %v17738_v42 }
 0x77d   : > { %16079 = vmatmul.mubr.msk.bf16.gmra.mrb[24].mxu1 %vm435_vm2, %v21683_v5  ;;  %v9121_v5 = vld [vmem:[#allocation3 + $0x99] sm:$0xff] }
 0x77e   : > { %16082 = vmatprep.mubr.msk.bf16.mxu1 %vm435_vm2, %v21685_v15  ;;  %v9118_v15 = vld [vmem:[#allocation3 + $0x79] sm:$0xff] }
 0x77f   : > { %v21839_v19 = vpack.c.bf16 %v9119_v38, %v9118_v15  ;;  %v9897_v15 = vld [vmem:[#allocation3 + $0x4a] sm:$0xff] }
 0x785   : > { %16083 = vmatmul.mubr.msk.bf16.gmra.mrb[28].mxu1 %vm435_vm2, %v21691_v36  ;;  %v21841_v36 = vpack.c.bf16 %v9121_v5, %v9120_v3  ;;  %v17752_v5 = vld [vmem:[%s22635_s4 + $0xb0] sm:$0xff]  }
 0x786   : > { %16086 = vmatprep.mubr.msk.bf16.mxu1 %vm435_vm2, %v21693_v21  ;;  %v9125_v21 = vld [vmem:[#allocation3 + $0xc9] sm:$0xff] }
 0x787   : > { %v9899_v3 = vld [vmem:[#allocation3 + $0x62] sm:$0xff] }
 0x78d   : > { %16087 = vmatmul.mubr.msk.bf16.gmra.mrb[32].mxu1 %vm435_vm2, %v21699_v31  ;;  %v21849_v31 = vpack.c.bf16 %v9125_v21, %v9124_v26  ;;  %v17753_v21 = vld [vmem:[%s22635_s4 + $0xb8] sm:$0xff]   ;;  %v9901_v26 = vld [vmem:[#allocation3 + $0x7a] sm:$0xff] }
 0x78e   : > { %16090 = vmatprep.mubr.msk.bf16.mxu1 %vm435_vm2, %v21701_v50  ;;  %v9129_v50 = vld [vmem:[#allocation3 + $0xf9] sm:$0xff] }
 0x795   : > { %16091 = vmatmul.mubr.msk.bf16.gmra.mrb[36].mxu1 %vm435_vm2, %v21707_v24  ;;  %v21857_v24 = vpack.c.bf16 %v9129_v50, %v9128_v33  ;;  %v9904_v50 = vld [vmem:[#allocation3 + $0x9a] sm:$0xff]  ;;  %v9905_v33 = vld [vmem:[#allocation3 + $0xaa] sm:$0xff] }
 0x796   : > { %16094 = vmatprep.mubr.msk.bf16.mxu1 %vm435_vm2, %v8375_v10  ;;  %v9133_v10 = vld [vmem:[#allocation3 + $0x129] sm:$0xff] }
 0x79d   : > { %16095 = vmatmul.mubr.msk.bf16.gmra.mrb[40].mxu1 %vm435_vm2, %v8376_v57  ;;  %v9132_v57 = vld [vmem:[#allocation3 + $0x121] sm:$0xff] }
 0x79e   : > { %16098 = vmatprep.mubr.msk.bf16.mxu1 %vm435_vm2, %v8650_v18  ;;  %v21865_v54 = vpack.c.bf16 %v9133_v10, %v9132_v57  ;;  %v9158_v18 = vpack.c.bf16 %v9137_v17, %v9136_v55  ;;  %v9908_v10 = vld [vmem:[#allocation3 + $0xca] sm:$0xff]  ;;  %v9909_v57 = vld [vmem:[#allocation3 + $0xda] sm:$0xff] }
 0x79f   : > { %v9912_v17 = vld [vmem:[#allocation3 + $0xfa] sm:$0xff]  ;;  %v9913_v55 = vld [vmem:[#allocation3 + $0x10a] sm:$0xff] }
 0x7a5   : > { %16099 = vmatmul.mubr.msk.bf16.gmra.mrb[44].mxu1 %vm435_vm2, %v8879_v0  ;;  %v9140_v0 = vld [vmem:[#allocation3 + $0x181] sm:$0xff] }
 0x7a6   : > { %16110 = vmatprep.mubr.msk.bf16.mxu1 %vm435_vm2, %v9144_v1  ;;  %v9433_v1 = vpack.c.bf16 %v9141_v59, %v9140_v0  ;;  %v9920_v59 = vld [vmem:[#allocation3 + $0x15a] sm:$0xff] }
 0x7ad   : > { %16111 = vmatmul.mubr.msk.bf16.vlgmr.msra.gmra.mrb[16].mxu1 %vm435_vm2, %v21795_v48 }
 0x7ae   : > { %16114 = vmatprep.mubr.msk.bf16.mxu1 %vm435_vm2, %v21800_v49  ;;  %16143 = vmatpush3.bf16.msra.mxu1 %v17738_v42  ;;  %v17743_v42 = vld [vmem:[%s22635_s4 + $0xe8] sm:$0xff]  }
 0x7af   : > { %16144 = vmatprep.subr.bf16.mxu1 %v17739_v6 }
 0x7b0   : > { %v21809_v13 = vpop.f32.mrb[8].mxu1 }
 0x7b1   : > { %v21811_v52 = vpop.f32.mrb[9].mxu1 }
 0x7b2   : > { %v21813_v34 = vpop.f32.mrb[10].mxu1  ;;  %16145 = vmatpush3.bf16.msra.mxu1 %v17739_v6  ;;  %v9143_v6 = vld [vmem:[#allocation3 + $0x1a1] sm:$0xff] }
 0x7b3   : > { %v21815_v8 = vpop.f32.mrb[11].mxu1  ;;  %16146 = vmatprep.subr.bf16.mxu1 %v17740_v4  ;;  %v9662_v56 = vpack.c.bf16 %v9143_v6, %v9142_v41  ;;  %v17756_v41 = vld [vmem:[%s22635_s4 + $0x110] sm:$0xff]   ;;  %v17757_v6 = vld [vmem:[%s22635_s4 + $0x118] sm:$0xff]  }
 0x7b5   : > { %16115 = vmatmul.mubr.msk.bf16.gmra.mrb[20].mxu1 %vm435_vm2, %v21817_v53 }
 0x7b6   : > { %16118 = vmatprep.mubr.msk.bf16.mxu1 %vm435_vm2, %v21822_v61  ;;  %16147 = vmatpush3.bf16.msra.mxu1 %v17740_v4  ;;  %v9892_v4 = vld [vmem:[#allocation3 + $0xa] sm:$0xff] }
 0x7b7   : > { %16148 = vmatprep.subr.bf16.mxu1 %v17741_v28 }
 0x7b8   : > { %v21831_v40 = vpop.f32.mrb[12].mxu1 }
 0x7b9   : > { %v21833_v2 = vpop.f32.mrb[13].mxu1 }
 0x7ba   : > { %v21835_v46 = vpop.f32.mrb[14].mxu1  ;;  %16149 = vmatpush3.bf16.msra.mxu1 %v17741_v28  ;;  %v9896_v28 = vld [vmem:[#allocation3 + $0x3a] sm:$0xff] }
 0x7bb   : > { %v21837_v63 = vpop.f32.mrb[15].mxu1  ;;  %16182 = vmatprep.subr.bf16.mxu1 %v17742_v27  ;;  %v21964_v38 = vpack.c.bf16 %v9896_v28, %v9895_v35  ;;  %v17758_v35 = vld [vmem:[%s22637_s6] sm:$0xff]   ;;  %v17759_v28 = vld [vmem:[%s22637_s6 + $0x8] sm:$0xff]  }
 0x7bc   : > { %16342 = vmatprep.subr.bf16.mxu0 %v17758_v35 }
 0x7bd   : > { %16119 = vmatmul.mubr.msk.bf16.gmra.mrb[24].mxu1 %vm435_vm2, %v21839_v19  ;;  %16343 = vmatpush3.bf16.msra.mxu0 %v17758_v35 }
 0x7be   : > { %16122 = vmatprep.mubr.msk.bf16.mxu1 %vm435_vm2, %v21841_v36  ;;  %16344 = vmatprep.subr.bf16.mxu0 %v17759_v28 }
 0x7c1   : > { %16345 = vmatpush3.bf16.msra.mxu0 %v17759_v28 }
 0x7c5   : > { %16123 = vmatmul.mubr.msk.bf16.gmra.mrb[28].mxu1 %vm435_vm2, %v21847_v44 }
 0x7c6   : > { %16126 = vmatprep.mubr.msk.bf16.mxu1 %vm435_vm2, %v21849_v31 }
 0x7cd   : > { %16127 = vmatmul.mubr.msk.bf16.gmra.mrb[32].mxu1 %vm435_vm2, %v21855_v22 }
 0x7ce   : > { %16130 = vmatprep.mubr.msk.bf16.mxu1 %vm435_vm2, %v21857_v24 }
 0x7d5   : > { %16131 = vmatmul.mubr.msk.bf16.gmra.mrb[36].mxu1 %vm435_vm2, %v21863_v11 }
 0x7d6   : > { %16134 = vmatprep.mubr.msk.bf16.mxu1 %vm435_vm2, %v21865_v54 }
 0x7dd   : > { %16135 = vmatmul.mubr.msk.bf16.gmra.mrb[40].mxu1 %vm435_vm2, %v21871_v39 }
 0x7de   : > { %16138 = vmatprep.mubr.msk.bf16.mxu1 %vm435_vm2, %v9158_v18 }
 0x7e5   : > { %16139 = vmatmul.mubr.msk.bf16.gmra.mrb[44].mxu1 %vm435_vm2, %v9159_v43 }
 0x7e6   : > { %16150 = vmatprep.mubr.msk.bf16.mxu1 %vm435_vm2, %v21795_v48  ;;  %v17750_v48 = vld [vmem:[%s22635_s4 + $0xa0] sm:$0xff]  }
 0x7ed   : > { %16151 = vmatmul.mubr.msk.bf16.vlgmr.msra.gmra.mrb[16].mxu1 %vm435_vm2, %v21800_v49 }
 0x7ee   : > { %16154 = vmatprep.mubr.msk.bf16.mxu1 %vm435_vm2, %v21817_v53  ;;  %16183 = vmatpush3.bf16.msra.mxu1 %v17742_v27  ;;  %v17751_v27 = vld [vmem:[%s22635_s4 + $0xa8] sm:$0xff]  }
 0x7ef   : > { %16184 = vmatprep.subr.bf16.mxu1 %v17743_v42 }
 0x7f2   : > { %16185 = vmatpush3.bf16.msra.mxu1 %v17743_v42  ;;  %v9939_v42 = vpack.c.bf16 %v9916_v45, %v9915_v7 }
 0x7f3   : > { %16186 = vmatprep.subr.bf16.mxu1 %v17744_v16 }
 0x7f5   : > { %16155 = vmatmul.mubr.msk.bf16.gmra.mrb[20].mxu1 %vm435_vm2, %v21822_v61 }
 0x7f6   : > { %16158 = vmatprep.mubr.msk.bf16.mxu1 %vm435_vm2, %v21839_v19  ;;  %16187 = vmatpush3.bf16.msra.mxu1 %v17744_v16  ;;  %v9917_v16 = vld [vmem:[#allocation3 + $0x13a] sm:$0xff] }
 0x7f7   : > { %16188 = vmatprep.subr.bf16.mxu1 %v17745_v60 }
 0x7fa   : > { %16189 = vmatpush3.bf16.msra.mxu1 %v17745_v60  ;;  %v9918_v60 = vld [vmem:[#allocation3 + $0x142] sm:$0xff] }
 0x7fb   : > { %16222 = vmatprep.subr.bf16.mxu1 %v17746_v51  ;;  %v9940_v0 = vpack.c.bf16 %v9918_v60, %v9917_v16 }
 0x7fd   : > { %16159 = vmatmul.mubr.msk.bf16.gmra.mrb[24].mxu1 %vm435_vm2, %v21841_v36 }
 0x7fe   : > { %16162 = vmatprep.mubr.msk.bf16.mxu1 %vm435_vm2, %v21847_v44 }
 0x805   : > { %16163 = vmatmul.mubr.msk.bf16.gmra.mrb[28].mxu1 %vm435_vm2, %v21849_v31 }
 0x806   : > { %16166 = vmatprep.mubr.msk.bf16.mxu1 %vm435_vm2, %v21855_v22 }
 0x80d   : > { %16167 = vmatmul.mubr.msk.bf16.gmra.mrb[32].mxu1 %vm435_vm2, %v21857_v24 }
 0x80e   : > { %16170 = vmatprep.mubr.msk.bf16.mxu1 %vm435_vm2, %v21863_v11 }
 0x815   : > { %16171 = vmatmul.mubr.msk.bf16.gmra.mrb[36].mxu1 %vm435_vm2, %v21865_v54 }
 0x816   : > { %16174 = vmatprep.mubr.msk.bf16.mxu1 %vm435_vm2, %v21871_v39 }
 0x81d   : > { %16175 = vmatmul.mubr.msk.bf16.gmra.mrb[40].mxu1 %vm435_vm2, %v9158_v18 }
 0x81e   : > { %16178 = vmatprep.mubr.msk.bf16.mxu1 %vm435_vm2, %v9159_v43 }
 0x825   : > { %16179 = vmatmul.mubr.msk.bf16.gmra.mrb[44].mxu1 %vm435_vm2, %v9433_v1 }
 0x826   : > { %16190 = vmatprep.mubr.msk.bf16.mxu1 %vm435_vm2, %v21800_v49  ;;  %v9891_v49 = vld [vmem:[#allocation3 + $0x2] sm:$0xff] }
 0x827   : > { %v9927_v29 = vpack.c.bf16 %v9892_v4, %v9891_v49  ;;  %v9923_v49 = vld [vmem:[#allocation3 + $0x182] sm:$0xff]  ;;  %v9924_v4 = vld [vmem:[#allocation3 + $0x18a] sm:$0xff] }
 0x82d   : > { %16191 = vmatmul.mubr.msk.bf16.vlgmr.msra.gmra.mrb[16].mxu1 %vm435_vm2, %v21817_v53  ;;  %v9894_v53 = vld [vmem:[#allocation3 + $0x22] sm:$0xff] }
 0x82e   : > { %16194 = vmatprep.mubr.msk.bf16.mxu1 %vm435_vm2, %v21822_v61  ;;  %16223 = vmatpush3.bf16.msra.mxu1 %v17746_v51  ;;  %v21959_v61 = vpack.c.bf16 %v9894_v53, %v9893_v12  ;;  %v9919_v51 = vld [vmem:[#allocation3 + $0x152] sm:$0xff]  ;;  %v9926_v12 = vld [vmem:[#allocation3 + $0x1a2] sm:$0xff] }
 0x82f   : > { %16224 = vmatprep.subr.bf16.mxu1 %v17747_v25 }
 0x832   : > { %16225 = vmatpush3.bf16.msra.mxu1 %v17747_v25  ;;  %v9921_v25 = vld [vmem:[#allocation3 + $0x16a] sm:$0xff] }
 0x833   : > { %16226 = vmatprep.subr.bf16.mxu1 %v17748_v20 }
 0x835   : > { %16195 = vmatmul.mubr.msk.bf16.gmra.mrb[20].mxu1 %vm435_vm2, %v21839_v19  ;;  %v9898_v19 = vld [vmem:[#allocation3 + $0x52] sm:$0xff] }
 0x836   : > { %16198 = vmatprep.mubr.msk.bf16.mxu1 %vm435_vm2, %v21841_v36  ;;  %16227 = vmatpush3.bf16.msra.mxu1 %v17748_v20  ;;  %v9900_v36 = vld [vmem:[#allocation3 + $0x6a] sm:$0xff]  ;;  %v21973_v9 = vpack.c.bf16 %v9898_v19, %v9897_v15  ;;  %v9922_v20 = vld [vmem:[#allocation3 + $0x172] sm:$0xff] }
 0x837   : > { %16228 = vmatprep.subr.bf16.mxu1 %v17749_v62  ;;  %v21978_v32 = vpack.c.bf16 %v9900_v36, %v9899_v3 }
 0x83a   : > { %16229 = vmatpush3.bf16.msra.mxu1 %v17749_v62  ;;  %v9942_v62 = vpack.c.bf16 %v9922_v20, %v9921_v25 }
 0x83b   : > { %16262 = vmatprep.subr.bf16.mxu1 %v17750_v48 }
 0x83d   : > { %16199 = vmatmul.mubr.msk.bf16.gmra.mrb[24].mxu1 %vm435_vm2, %v21847_v44  ;;  %v17754_v44 = vld [vmem:[%s22635_s4 + $0x100] sm:$0xff]  }
 0x83e   : > { %16202 = vmatprep.mubr.msk.bf16.mxu1 %vm435_vm2, %v21849_v31  ;;  %v9902_v31 = vld [vmem:[#allocation3 + $0x82] sm:$0xff] }
 0x83f   : > { %v21987_v37 = vpack.c.bf16 %v9902_v31, %v9901_v26 }
 0x845   : > { %16203 = vmatmul.mubr.msk.bf16.gmra.mrb[28].mxu1 %vm435_vm2, %v21855_v22  ;;  %v21989_v22 = vpack.c.bf16 %v9904_v50, %v9903_v58 }
 0x846   : > { %16206 = vmatprep.mubr.msk.bf16.mxu1 %vm435_vm2, %v21857_v24  ;;  %v9906_v24 = vld [vmem:[#allocation3 + $0xb2] sm:$0xff] }
 0x847   : > { %v21995_v30 = vpack.c.bf16 %v9906_v24, %v9905_v33 }
 0x84d   : > { %16207 = vmatmul.mubr.msk.bf16.gmra.mrb[32].mxu1 %vm435_vm2, %v21863_v11  ;;  %v21997_v11 = vpack.c.bf16 %v9908_v10, %v9907_v47 }
 0x84e   : > { %16210 = vmatprep.mubr.msk.bf16.mxu1 %vm435_vm2, %v21865_v54  ;;  %v9910_v54 = vld [vmem:[#allocation3 + $0xe2] sm:$0xff] }
 0x84f   : > { %v9936_v14 = vpack.c.bf16 %v9910_v54, %v9909_v57 }
 0x855   : > { %16211 = vmatmul.mubr.msk.bf16.gmra.mrb[36].mxu1 %vm435_vm2, %v21871_v39  ;;  %v9937_v39 = vpack.c.bf16 %v9912_v17, %v9911_v23 }
 0x856   : > { %16214 = vmatprep.mubr.msk.bf16.mxu1 %vm435_vm2, %v9158_v18  ;;  %v9914_v18 = vld [vmem:[#allocation3 + $0x112] sm:$0xff] }
 0x85d   : > { %16215 = vmatmul.mubr.msk.bf16.gmra.mrb[40].mxu1 %vm435_vm2, %v9159_v43  ;;  %v9938_v43 = vpack.c.bf16 %v9914_v18, %v9913_v55 }
 0x85e   : > { %16218 = vmatprep.mubr.msk.bf16.mxu1 %vm435_vm2, %v9433_v1  ;;  %v9941_v1 = vpack.c.bf16 %v9920_v59, %v9919_v51 }
 0x865   : > { %16219 = vmatmul.mubr.msk.bf16.gmra.mrb[44].mxu1 %vm435_vm2, %v9662_v56  ;;  %v10216_v56 = vpack.c.bf16 %v9924_v4, %v9923_v49 }
 0x866   : > { %16230 = vmatprep.mubr.msk.bf16.mxu1 %vm435_vm2, %v9927_v29  ;;  %v9925_v29 = vld [vmem:[#allocation3 + $0x19a] sm:$0xff] }
 0x867   : > { %v10445_v53 = vpack.c.bf16 %v9926_v12, %v9925_v29 }
 0x86d   : > { %16231 = vmatmul.mubr.msk.bf16.vlgmr.msra.gmra.mrb[16].mxu1 %vm435_vm2, %v21959_v61 }
 0x86e   : > { %16234 = vmatprep.mubr.msk.bf16.mxu1 %vm435_vm2, %v21964_v38  ;;  %16263 = vmatpush3.bf16.msra.mxu1 %v17750_v48  ;;  %v17755_v48 = vld [vmem:[%s22635_s4 + $0x108] sm:$0xff]  }
 0x86f   : > { %16264 = vmatprep.subr.bf16.mxu1 %v17751_v27 }
 0x872   : > { %16265 = vmatpush3.bf16.msra.mxu1 %v17751_v27  ;;  %v17761_v27 = vld [vmem:[%s22637_s6 + $0x18] sm:$0xff]  }
 0x873   : > { %16266 = vmatprep.subr.bf16.mxu1 %v17752_v5 }
 0x875   : > { %16235 = vmatmul.mubr.msk.bf16.gmra.mrb[20].mxu1 %vm435_vm2, %v21973_v9 }
 0x876   : > { %16238 = vmatprep.mubr.msk.bf16.mxu1 %vm435_vm2, %v21978_v32  ;;  %16267 = vmatpush3.bf16.msra.mxu1 %v17752_v5  ;;  %v22087_v5 = vld [vmem:[%s22636_s5] ss:$0 sm:$0xff] }
 0x877   : > { %16268 = vmatprep.subr.bf16.mxu1 %v17753_v21 }
 0x87a   : > { %16269 = vmatpush3.bf16.msra.mxu1 %v17753_v21 }
 0x87b   : > { %16302 = vmatprep.subr.bf16.mxu1 %v17754_v44 }
 0x87d   : > { %16239 = vmatmul.mubr.msk.bf16.gmra.mrb[24].mxu1 %vm435_vm2, %v21987_v37 }
 0x87e   : > { %16242 = vmatprep.mubr.msk.bf16.mxu1 %vm435_vm2, %v21989_v22 }
 0x885   : > { %16243 = vmatmul.mubr.msk.bf16.gmra.mrb[28].mxu1 %vm435_vm2, %v21995_v30 }
 0x886   : > { %16246 = vmatprep.mubr.msk.bf16.mxu1 %vm435_vm2, %v21997_v11 }
 0x88d   : > { %16247 = vmatmul.mubr.msk.bf16.gmra.mrb[32].mxu1 %vm435_vm2, %v9936_v14 }
 0x88e   : > { %16250 = vmatprep.mubr.msk.bf16.mxu1 %vm435_vm2, %v9937_v39 }
 0x895   : > { %16251 = vmatmul.mubr.msk.bf16.gmra.mrb[36].mxu1 %vm435_vm2, %v9938_v43 }
 0x896   : > { %16254 = vmatprep.mubr.msk.bf16.mxu1 %vm435_vm2, %v9939_v42 }
 0x89d   : > { %16255 = vmatmul.mubr.msk.bf16.gmra.mrb[40].mxu1 %vm435_vm2, %v9940_v0 }
 0x89e   : > { %16258 = vmatprep.mubr.msk.bf16.mxu1 %vm435_vm2, %v9941_v1 }
 0x8a5   : > { %16259 = vmatmul.mubr.msk.bf16.gmra.mrb[44].mxu1 %vm435_vm2, %v9942_v62 }
 0x8a6   : > { %16270 = vmatprep.mubr.msk.bf16.mxu1 %vm435_vm2, %v21959_v61  ;;  %v17760_v61 = vld [vmem:[%s22637_s6 + $0x10] sm:$0xff]  }
 0x8a7   : > { %16346 = vmatprep.subr.bf16.mxu0 %v17760_v61 }
 0x8a8   : > { %16347 = vmatpush3.bf16.msra.mxu0 %v17760_v61 }
 0x8a9   : > { %16348 = vmatprep.subr.bf16.mxu0 %v17761_v27 }
 0x8ac   : > { %16349 = vmatpush3.bf16.msra.mxu0 %v17761_v27 }
 0x8ad   : > { %16271 = vmatmul.mubr.msk.bf16.vlgmr.msra.gmra.mrb[16].mxu1 %vm435_vm2, %v21964_v38 }
 0x8ae   : > { %16274 = vmatprep.mubr.msk.bf16.mxu1 %vm435_vm2, %v21973_v9  ;;  %16303 = vmatpush3.bf16.msra.mxu1 %v17754_v44 }
 0x8af   : > { %16304 = vmatprep.subr.bf16.mxu1 %v17755_v48 }
 0x8b2   : > { %16305 = vmatpush3.bf16.msra.mxu1 %v17755_v48 }
 0x8b3   : > { %16306 = vmatprep.subr.bf16.mxu1 %v17756_v41 }
 0x8b5   : > { %16275 = vmatmul.mubr.msk.bf16.gmra.mrb[20].mxu1 %vm435_vm2, %v21978_v32 }
 0x8b6   : > { %16278 = vmatprep.mubr.msk.bf16.mxu1 %vm435_vm2, %v21987_v37  ;;  %16307 = vmatpush3.bf16.msra.mxu1 %v17756_v41 }
 0x8b7   : > { %16308 = vmatprep.subr.bf16.mxu1 %v17757_v6 }
 0x8ba   : > { %16309 = vmatpush3.bf16.msra.mxu1 %v17757_v6 }
 0x8bd   : > { %16279 = vmatmul.mubr.msk.bf16.gmra.mrb[24].mxu1 %vm435_vm2, %v21989_v22 }
 0x8be   : > { %16282 = vmatprep.mubr.msk.bf16.mxu1 %vm435_vm2, %v21995_v30 }
 0x8c5   : > { %16283 = vmatmul.mubr.msk.bf16.gmra.mrb[28].mxu1 %vm435_vm2, %v21997_v11 }
 0x8c6   : > { %16286 = vmatprep.mubr.msk.bf16.mxu1 %vm435_vm2, %v9936_v14 }
 0x8cd   : > { %16287 = vmatmul.mubr.msk.bf16.gmra.mrb[32].mxu1 %vm435_vm2, %v9937_v39 }
 0x8ce   : > { %16290 = vmatprep.mubr.msk.bf16.mxu1 %vm435_vm2, %v9938_v43 }
 0x8d5   : > { %16291 = vmatmul.mubr.msk.bf16.gmra.mrb[36].mxu1 %vm435_vm2, %v9939_v42 }
 0x8d6   : > { %16294 = vmatprep.mubr.msk.bf16.mxu1 %vm435_vm2, %v9940_v0 }
 0x8dd   : > { %16295 = vmatmul.mubr.msk.bf16.gmra.mrb[40].mxu1 %vm435_vm2, %v9941_v1 }
 0x8de   : > { %16298 = vmatprep.mubr.msk.bf16.mxu1 %vm435_vm2, %v9942_v62 }
 0x8e5   : > { %16299 = vmatmul.mubr.msk.bf16.gmra.mrb[44].mxu1 %vm435_vm2, %v10216_v56 }
 0x8e6   : > { %16310 = vmatprep.mubr.msk.bf16.mxu1 %vm435_vm2, %v21964_v38  ;;  %v22081_v38 = vld [vmem:[%s22637_s6 + $0x60] sm:$0xff]  }
 0x8e7   : > { %16358 = vmatprep.subr.bf16.mxu0 %v22081_v38 }
 0x8ed   : > { %16311 = vmatmul.mubr.msk.bf16.vlgmr.msra.gmra.mrb[16].mxu1 %vm435_vm2, %v21973_v9 }
 0x8ee   : > { %16314 = vmatprep.mubr.msk.bf16.mxu1 %vm435_vm2, %v21978_v32 }
 0x8f5   : > { %16315 = vmatmul.mubr.msk.bf16.gmra.mrb[20].mxu1 %vm435_vm2, %v21987_v37 }
 0x8f6   : > { %16318 = vmatprep.mubr.msk.bf16.mxu1 %vm435_vm2, %v21989_v22 }
 0x8fd   : > { %16319 = vmatmul.mubr.msk.bf16.gmra.mrb[24].mxu1 %vm435_vm2, %v21995_v30 }
 0x8fe   : > { %16322 = vmatprep.mubr.msk.bf16.mxu1 %vm435_vm2, %v21997_v11 }
 0x905   : > { %16323 = vmatmul.mubr.msk.bf16.gmra.mrb[28].mxu1 %vm435_vm2, %v9936_v14 }
 0x906   : > { %16326 = vmatprep.mubr.msk.bf16.mxu1 %vm435_vm2, %v9937_v39 }
 0x90d   : > { %16327 = vmatmul.mubr.msk.bf16.gmra.mrb[32].mxu1 %vm435_vm2, %v9938_v43 }
 0x90e   : > { %16330 = vmatprep.mubr.msk.bf16.mxu1 %vm435_vm2, %v9939_v42 }
 0x915   : > { %16331 = vmatmul.mubr.msk.bf16.gmra.mrb[36].mxu1 %vm435_vm2, %v9940_v0 }
 0x916   : > { %16334 = vmatprep.mubr.msk.bf16.mxu1 %vm435_vm2, %v9941_v1 }
 0x91d   : > { %16335 = vmatmul.mubr.msk.bf16.gmra.mrb[40].mxu1 %vm435_vm2, %v9942_v62 }
 0x91e   : > { %16338 = vmatprep.mubr.msk.bf16.mxu1 %vm435_vm2, %v10216_v56 }
 0x925   : > { %16339 = vmatmul.mubr.msk.bf16.gmra.mrb[44].mxu1 %vm435_vm2, %v10445_v53 }
 0x9c0   : > { %v16312_v15 = vpop.f32.mrb[16].mxu1 }
 0x9c1   : > { %v16750_v19 = vadd.f32 %v16312_v15, %v22087_v5  ;;  %v10515_v3 = vpop.f32.mrb[17].mxu1 }
 0x9c2   : > { %v16751_v36 = vadd.f32 %v22087_v5, %v10515_v3  ;;  %v16313_v9 = vpop.f32.mrb[18].mxu1 }
 0x9c3   : > { %v10676_v21 = vmax.f32 %v16750_v19, 0.0  ;;  %v16752_v32 = vadd.f32 %v16313_v9, %v22087_v5  ;;  %v10518_v44 = vpop.f32.mrb[19].mxu1 }
 0x9c4   : > { %v10674_v26 = vmax.f32 %v16751_v36, 0.0  ;;  %v16753_v31 = vadd.f32 %v22087_v5, %v10518_v44 }
 0x9c5   : > { %10708 = vst.msk [vmem:[#allocation4 + $0x10] sm:$0xff] %vm435_vm2, %v10676_v21  ;;  %v10677_v58 = vmax.f32 %v16752_v32, 0.0 }
 0x9c6   : > { %10706 = vst.msk [vmem:[#allocation4] sm:$0xff] %vm435_vm2, %v10674_v26  ;;  %v10675_v50 = vmax.f32 %v16753_v31, 0.0 }
 0x9c7   : > { %10709 = vst.msk [vmem:[#allocation4 + $0x18] sm:$0xff] %vm435_vm2, %v10677_v58 }
 0x9c8   : > { %10707 = vst.msk [vmem:[#allocation4 + $0x8] sm:$0xff] %vm435_vm2, %v10675_v50  ;;  %v16316_v37 = vpop.f32.mrb[20].mxu1 }
 0x9c9   : > { %v16754_v22 = vadd.f32 %v16316_v37, %v22087_v5  ;;  %v10531_v33 = vpop.f32.mrb[21].mxu1 }
 0x9ca   : > { %v16755_v24 = vadd.f32 %v22087_v5, %v10531_v33  ;;  %v16317_v47 = vpop.f32.mrb[22].mxu1 }
 0x9cb   : > { %v10680_v10 = vmax.f32 %v16754_v22, 0.0  ;;  %v16756_v30 = vadd.f32 %v16317_v47, %v22087_v5  ;;  %v10534_v11 = vpop.f32.mrb[23].mxu1 }
 0x9cc   : > { %v10754_v57 = vld [vmem:[#allocation4 + $0x10] sm:$0xff]  ;;  %v10678_v54 = vmax.f32 %v16755_v24, 0.0  ;;  %v16757_v23 = vadd.f32 %v22087_v5, %v10534_v11 }
 0x9cd   : > { %v10738_v17 = vld [vmem:[#allocation4] sm:$0xff]  ;;  %10712 = vst.msk [vmem:[#allocation4 + $0x30] sm:$0xff] %vm435_vm2, %v10680_v10  ;;  %v10681_v14 = vmax.f32 %v16756_v30, 0.0 }
 0x9ce   : > { %v10770_v39 = vmax.f32 %v10738_v17, %v10754_v57  ;;  %v10755_v55 = vld [vmem:[#allocation4 + $0x18] sm:$0xff]  ;;  %10710 = vst.msk [vmem:[#allocation4 + $0x20] sm:$0xff] %vm435_vm2, %v10678_v54  ;;  %v10679_v18 = vmax.f32 %v16757_v23, 0.0  ;;  %v10841_v30 = vld [vmem:[#allocation6] sm:$0xff] }
 0x9cf   : > { %v10739_v7 = vld [vmem:[#allocation4 + $0x8] sm:$0xff]  ;;  %10713 = vst.msk [vmem:[#allocation4 + $0x38] sm:$0xff] %vm435_vm2, %v10681_v14 }
 0x9d0   : > { %10786 = vst.msk [vmem:[#allocation5] sm:$0xff] %vm435_vm2, %v10770_v39  ;;  %v10771_v45 = vmax.f32 %v10739_v7, %v10755_v55  ;;  %10711 = vst.msk [vmem:[#allocation4 + $0x28] sm:$0xff] %vm435_vm2, %v10679_v18  ;;  %v16320_v43 = vpop.f32.mrb[24].mxu1 }
 0x9d1   : > { %v16758_v42 = vadd.f32 %v16320_v43, %v22087_v5  ;;  %v10547_v16 = vpop.f32.mrb[25].mxu1 }
 0x9d2   : > { %10787 = vst.msk [vmem:[#allocation5 + $0x8] sm:$0xff] %vm435_vm2, %v10771_v45  ;;  %v16759_v60 = vadd.f32 %v22087_v5, %v10547_v16  ;;  %v16321_v51 = vpop.f32.mrb[26].mxu1 }
 0x9d3   : > { %v10684_v59 = vmax.f32 %v16758_v42, 0.0  ;;  %v16760_v0 = vadd.f32 %v16321_v51, %v22087_v5  ;;  %v10550_v1 = vpop.f32.mrb[27].mxu1 }
 0x9d4   : > { %v10756_v25 = vld [vmem:[#allocation4 + $0x30] sm:$0xff]  ;;  %v10682_v20 = vmax.f32 %v16759_v60, 0.0  ;;  %v16761_v62 = vadd.f32 %v22087_v5, %v10550_v1 }
 0x9d5   : > { %v10740_v48 = vld [vmem:[#allocation4 + $0x20] sm:$0xff]  ;;  %10716 = vst.msk [vmem:[#allocation4 + $0x50] sm:$0xff] %vm435_vm2, %v10684_v59  ;;  %v10685_v41 = vmax.f32 %v16760_v0, 0.0 }
 0x9d6   : > { %v10772_v6 = vmax.f32 %v10740_v48, %v10756_v25  ;;  %v10757_v49 = vld [vmem:[#allocation4 + $0x38] sm:$0xff]  ;;  %10714 = vst.msk [vmem:[#allocation4 + $0x40] sm:$0xff] %vm435_vm2, %v10682_v20  ;;  %v10683_v4 = vmax.f32 %v16761_v62, 0.0 }
 0x9d7   : > { %v10741_v56 = vld [vmem:[#allocation4 + $0x28] sm:$0xff]  ;;  %10717 = vst.msk [vmem:[#allocation4 + $0x58] sm:$0xff] %vm435_vm2, %v10685_v41 }
 0x9d8   : > { %10788 = vst.msk [vmem:[#allocation5 + $0x10] sm:$0xff] %vm435_vm2, %v10772_v6  ;;  %v10773_v29 = vmax.f32 %v10741_v56, %v10757_v49  ;;  %10715 = vst.msk [vmem:[#allocation4 + $0x48] sm:$0xff] %vm435_vm2, %v10683_v4  ;;  %v16324_v12 = vpop.f32.mrb[28].mxu1 }
 0x9d9   : > { %v16762_v53 = vadd.f32 %v16324_v12, %v22087_v5  ;;  %v10563_v35 = vpop.f32.mrb[29].mxu1  ;;  %v10802_v28 = vld [vmem:[#allocation5] ss:$2 sm:$0xff]  ;;  %v10810_v61 = vld [vmem:[#allocation5 + $0x1] ss:$2 sm:$0xff] }
 0x9da   : > { %10789 = vst.msk [vmem:[#allocation5 + $0x18] sm:$0xff] %vm435_vm2, %v10773_v29  ;;  %v16763_v27 = vadd.f32 %v22087_v5, %v10563_v35  ;;  %v16325_v15 = vpop.f32.mrb[30].mxu1  ;;  %v10818_v19 = vmax.f32 %v10802_v28, %v10810_v61 }
 0x9db   : > { %v10688_v3 = vmax.f32 %v16762_v53, 0.0  ;;  %v16764_v36 = vadd.f32 %v16325_v15, %v22087_v5  ;;  %v10566_v9 = vpop.f32.mrb[31].mxu1 }
 0x9dc   : > { %v10758_v21 = vld [vmem:[#allocation4 + $0x50] sm:$0xff]  ;;  %v10686_v32 = vmax.f32 %v16763_v27, 0.0  ;;  %v16765_v44 = vadd.f32 %v22087_v5, %v10566_v9  ;;  %10826 = vst.msk [vmem:[#allocation6 + $0x11] sm:$0xff] %vm435_vm2, %v10818_v19 }
 0x9dd   : > { %v10742_v26 = vld [vmem:[#allocation4 + $0x40] sm:$0xff]  ;;  %10720 = vst.msk [vmem:[#allocation4 + $0x70] sm:$0xff] %vm435_vm2, %v10688_v3  ;;  %v10689_v31 = vmax.f32 %v16764_v36, 0.0 }
 0x9de   : > { %v10774_v58 = vmax.f32 %v10742_v26, %v10758_v21  ;;  %v10759_v50 = vld [vmem:[#allocation4 + $0x58] sm:$0xff]  ;;  %10718 = vst.msk [vmem:[#allocation4 + $0x60] sm:$0xff] %vm435_vm2, %v10686_v32  ;;  %v10687_v37 = vmax.f32 %v16765_v44, 0.0 }
 0x9df   : > { %v10743_v22 = vld [vmem:[#allocation4 + $0x48] sm:$0xff]  ;;  %10721 = vst.msk [vmem:[#allocation4 + $0x78] sm:$0xff] %vm435_vm2, %v10689_v31 }
 0x9e0   : > { %10790 = vst.msk [vmem:[#allocation5 + $0x20] sm:$0xff] %vm435_vm2, %v10774_v58  ;;  %v10775_v33 = vmax.f32 %v10743_v22, %v10759_v50  ;;  %10719 = vst.msk [vmem:[#allocation4 + $0x68] sm:$0xff] %vm435_vm2, %v10687_v37  ;;  %v16328_v24 = vpop.f32.mrb[32].mxu1 }
 0x9e1   : > { %v16766_v47 = vadd.f32 %v16328_v24, %v22087_v5  ;;  %v10579_v10 = vpop.f32.mrb[33].mxu1  ;;  %v10803_v11 = vld [vmem:[#allocation5 + $0x10] ss:$2 sm:$0xff]  ;;  %v10811_v57 = vld [vmem:[#allocation5 + $0x11] ss:$2 sm:$0xff] }
 0x9e2   : > { %10791 = vst.msk [vmem:[#allocation5 + $0x28] sm:$0xff] %vm435_vm2, %v10775_v33  ;;  %v16767_v54 = vadd.f32 %v22087_v5, %v10579_v10  ;;  %v16329_v23 = vpop.f32.mrb[34].mxu1  ;;  %v10819_v17 = vmax.f32 %v10803_v11, %v10811_v57 }
 0x9e3   : > { %v10692_v14 = vmax.f32 %v16766_v47, 0.0  ;;  %v16768_v39 = vadd.f32 %v16329_v23, %v22087_v5  ;;  %v10582_v55 = vpop.f32.mrb[35].mxu1  ;;  %v22131_v18 = vld [vmem:[#allocation6 + $0x10] sm:$0xff] }
 0x9e4   : > { %v10760_v7 = vld [vmem:[#allocation4 + $0x70] sm:$0xff]  ;;  %v10690_v45 = vmax.f32 %v16767_v54, 0.0  ;;  %v16769_v43 = vadd.f32 %v22087_v5, %v10582_v55  ;;  %v10851_v42 = vpack.c.bf16 %v22131_v18, %v10841_v30  ;;  %10827 = vst.msk [vmem:[#allocation6 + $0x21] sm:$0xff] %vm435_vm2, %v10819_v17  ;;  %v17763_v17 = vld [vmem:[%s22637_s6 + $0x68] sm:$0xff]  }
 0x9e5   : > { %v10744_v16 = vld [vmem:[#allocation4 + $0x60] sm:$0xff]  ;;  %10724 = vst.msk [vmem:[#allocation4 + $0x90] sm:$0xff] %vm435_vm2, %v10692_v14  ;;  %v10693_v60 = vmax.f32 %v16768_v39, 0.0 }
 0x9e6   : > { %v10776_v51 = vmax.f32 %v10744_v16, %v10760_v7  ;;  %v10761_v59 = vld [vmem:[#allocation4 + $0x78] sm:$0xff]  ;;  %10722 = vst.msk [vmem:[#allocation4 + $0x80] sm:$0xff] %vm435_vm2, %v10690_v45  ;;  %v10691_v0 = vmax.f32 %v16769_v43, 0.0  ;;  %16350 = vmatprep.mubr.msk.bf16.mxu0 %vm435_vm2, %v10851_v42 }
 0x9e7   : > { %v10745_v1 = vld [vmem:[#allocation4 + $0x68] sm:$0xff]  ;;  %10725 = vst.msk [vmem:[#allocation4 + $0x98] sm:$0xff] %vm435_vm2, %v10693_v60  ;;  %v17764_v60 = vld [vmem:[%s22637_s6 + $0x70] sm:$0xff]  }
 0x9e8   : > { %10792 = vst.msk [vmem:[#allocation5 + $0x30] sm:$0xff] %vm435_vm2, %v10776_v51  ;;  %v10777_v25 = vmax.f32 %v10745_v1, %v10761_v59  ;;  %10723 = vst.msk [vmem:[#allocation4 + $0x88] sm:$0xff] %vm435_vm2, %v10691_v0  ;;  %v16332_v20 = vpop.f32.mrb[36].mxu1 }
 0x9e9   : > { %v16770_v62 = vadd.f32 %v16332_v20, %v22087_v5  ;;  %v10595_v48 = vpop.f32.mrb[37].mxu1  ;;  %v10804_v41 = vld [vmem:[#allocation5 + $0x20] ss:$2 sm:$0xff]  ;;  %v10812_v6 = vld [vmem:[#allocation5 + $0x21] ss:$2 sm:$0xff] }
 0x9ea   : > { %10793 = vst.msk [vmem:[#allocation5 + $0x38] sm:$0xff] %vm435_vm2, %v10777_v25  ;;  %v16771_v49 = vadd.f32 %v22087_v5, %v10595_v48  ;;  %v16333_v4 = vpop.f32.mrb[38].mxu1  ;;  %v10820_v56 = vmax.f32 %v10804_v41, %v10812_v6 }
 0x9eb   : > { %v10696_v29 = vmax.f32 %v16770_v62, 0.0  ;;  %v16772_v12 = vadd.f32 %v16333_v4, %v22087_v5  ;;  %v10598_v53 = vpop.f32.mrb[39].mxu1  ;;  %v22157_v10 = vld [vmem:[#allocation6 + $0x20] sm:$0xff] }
 0x9ec   : > { %v10762_v35 = vld [vmem:[#allocation4 + $0x90] sm:$0xff]  ;;  %v10694_v28 = vmax.f32 %v16771_v49, 0.0  ;;  %v16773_v61 = vadd.f32 %v22087_v5, %v10598_v53  ;;  %10828 = vst.msk [vmem:[#allocation6 + $0x31] sm:$0xff] %vm435_vm2, %v10820_v56  ;;  %v17765_v56 = vld [vmem:[%s22637_s6 + $0x78] sm:$0xff]  }
 0x9ed   : > { %v10746_v27 = vld [vmem:[#allocation4 + $0x80] sm:$0xff]  ;;  %10728 = vst.msk [vmem:[#allocation4 + $0xb0] sm:$0xff] %vm435_vm2, %v10696_v29  ;;  %v10697_v15 = vmax.f32 %v16772_v12, 0.0 }
 0x9ee   : > { %v10778_v19 = vmax.f32 %v10746_v27, %v10762_v35  ;;  %v10763_v3 = vld [vmem:[#allocation4 + $0x98] sm:$0xff]  ;;  %10726 = vst.msk [vmem:[#allocation4 + $0xa0] sm:$0xff] %vm435_vm2, %v10694_v28  ;;  %v10695_v36 = vmax.f32 %v16773_v61, 0.0  ;;  %v17766_v27 = vld [vmem:[%s22637_s6 + $0xc0] sm:$0xff]  }
 0x9ef   : > { %v10747_v9 = vld [vmem:[#allocation4 + $0x88] sm:$0xff]  ;;  %10729 = vst.msk [vmem:[#allocation4 + $0xb8] sm:$0xff] %vm435_vm2, %v10697_v15 }
 0x9f0   : > { %10794 = vst.msk [vmem:[#allocation5 + $0x40] sm:$0xff] %vm435_vm2, %v10778_v19  ;;  %v10779_v21 = vmax.f32 %v10747_v9, %v10763_v3  ;;  %10727 = vst.msk [vmem:[#allocation4 + $0xa8] sm:$0xff] %vm435_vm2, %v10695_v36  ;;  %v16336_v32 = vpop.f32.mrb[40].mxu1 }
 0x9f1   : > { %v16774_v44 = vadd.f32 %v16336_v32, %v22087_v5  ;;  %v10611_v26 = vpop.f32.mrb[41].mxu1  ;;  %v10805_v31 = vld [vmem:[#allocation5 + $0x30] ss:$2 sm:$0xff]  ;;  %v10813_v58 = vld [vmem:[#allocation5 + $0x31] ss:$2 sm:$0xff] }
 0x9f2   : > { %10795 = vst.msk [vmem:[#allocation5 + $0x48] sm:$0xff] %vm435_vm2, %v10779_v21  ;;  %v16775_v50 = vadd.f32 %v22087_v5, %v10611_v26  ;;  %v16337_v37 = vpop.f32.mrb[42].mxu1  ;;  %v10821_v22 = vmax.f32 %v10805_v31, %v10813_v58 }
 0x9f3   : > { %v10700_v33 = vmax.f32 %v16774_v44, 0.0  ;;  %v16776_v24 = vadd.f32 %v16337_v37, %v22087_v5  ;;  %v10614_v47 = vpop.f32.mrb[43].mxu1  ;;  %v22159_v30 = vld [vmem:[#allocation6 + $0x30] sm:$0xff] }
 0x9f4   : > { %v10764_v11 = vld [vmem:[#allocation4 + $0xb0] sm:$0xff]  ;;  %v10698_v57 = vmax.f32 %v16775_v50, 0.0  ;;  %v16777_v54 = vadd.f32 %v22087_v5, %v10614_v47  ;;  %v22164_v23 = vpack.c.bf16 %v22159_v30, %v22157_v10  ;;  %10829 = vst.msk [vmem:[#allocation6 + $0x41] sm:$0xff] %vm435_vm2, %v10821_v22 }
 0x9f5   : > { %v10748_v14 = vld [vmem:[#allocation4 + $0xa0] sm:$0xff]  ;;  %10732 = vst.msk [vmem:[#allocation4 + $0xd0] sm:$0xff] %vm435_vm2, %v10700_v33  ;;  %v10701_v39 = vmax.f32 %v16776_v24, 0.0 }
 0x9f6   : > { %v10780_v55 = vmax.f32 %v10748_v14, %v10764_v11  ;;  %v10765_v7 = vld [vmem:[#allocation4 + $0xb8] sm:$0xff]  ;;  %10730 = vst.msk [vmem:[#allocation4 + $0xc0] sm:$0xff] %vm435_vm2, %v10698_v57  ;;  %v10699_v45 = vmax.f32 %v16777_v54, 0.0  ;;  %16351 = vmatmul.mubr.msk.bf16.vlgmr.msra.gmra.mrb[32].mxu0 %vm435_vm2, %v22164_v23  ;;  %v10972_v14 = vpack.c.bf16 %v22157_v10, %v22131_v18  ;;  %v17768_v18 = vld [vmem:[%s22637_s6 + $0xd0] sm:$0xff]  }
 0x9f7   : > { %v10749_v43 = vld [vmem:[#allocation4 + $0xa8] sm:$0xff]  ;;  %10733 = vst.msk [vmem:[#allocation4 + $0xd8] sm:$0xff] %vm435_vm2, %v10701_v39  ;;  %16359 = vmatpush3.bf16.msra.mxu0 %v22081_v38 }
 0x9f8   : > { %10796 = vst.msk [vmem:[#allocation5 + $0x50] sm:$0xff] %vm435_vm2, %v10780_v55  ;;  %v10781_v42 = vmax.f32 %v10749_v43, %v10765_v7  ;;  %10731 = vst.msk [vmem:[#allocation4 + $0xc8] sm:$0xff] %vm435_vm2, %v10699_v45  ;;  %v16340_v16 = vpop.f32.mrb[44].mxu1  ;;  %16360 = vmatprep.subr.bf16.mxu0 %v17763_v17  ;;  %v17767_v55 = vld [vmem:[%s22637_s6 + $0xc8] sm:$0xff]   ;;  %v17770_v43 = vld [vmem:[%s22637_s6 + $0x20] sm:$0xff]  }
 0x9f9   : > { %v16778_v51 = vadd.f32 %v16340_v16, %v22087_v5  ;;  %v10627_v59 = vpop.f32.mrb[45].mxu1  ;;  %v10806_v0 = vld [vmem:[#allocation5 + $0x40] ss:$2 sm:$0xff]  ;;  %v10814_v1 = vld [vmem:[#allocation5 + $0x41] ss:$2 sm:$0xff]  ;;  %v10850_v16 = vld [vmem:[#allocation6 + $0x90] sm:$0xff] }
 0x9fa   : > { %10797 = vst.msk [vmem:[#allocation5 + $0x58] sm:$0xff] %vm435_vm2, %v10781_v42  ;;  %v16779_v38 = vadd.f32 %v22087_v5, %v10627_v59  ;;  %v16341_v25 = vpop.f32.mrb[46].mxu1  ;;  %v10822_v20 = vmax.f32 %v10806_v0, %v10814_v1  ;;  %v17771_v42 = vld [vmem:[%s22637_s6 + $0x28] sm:$0xff]   ;;  %v17773_v0 = vld [vmem:[%s22637_s6 + $0x38] sm:$0xff]  }
 0x9fb   : > { %v10704_v62 = vmax.f32 %v16778_v51, 0.0  ;;  %v16780_v48 = vadd.f32 %v16341_v25, %v22087_v5  ;;  %v10630_v41 = vpop.f32.mrb[47].mxu1  ;;  %16361 = vmatpush3.bf16.msra.mxu0 %v17763_v17  ;;  %v10845_v36 = vld [vmem:[#allocation6 + $0x40] sm:$0xff]  ;;  %v11203_v51 = vld [vmem:[#allocation6 + $0x11] sm:$0xff] }
 0x9fc   : > { %v10766_v6 = vld [vmem:[#allocation4 + $0xd0] sm:$0xff]  ;;  %v10702_v49 = vmax.f32 %v16779_v38, 0.0  ;;  %v16781_v4 = vadd.f32 %v22087_v5, %v10630_v41  ;;  %10830 = vst.msk [vmem:[#allocation6 + $0x51] sm:$0xff] %vm435_vm2, %v10822_v20  ;;  %16362 = vmatprep.subr.bf16.mxu0 %v17764_v60  ;;  %v10973_v39 = vpack.c.bf16 %v10845_v36, %v22159_v30  ;;  %v17769_v30 = vld [vmem:[%s22637_s6 + $0xd8] sm:$0xff]   ;;  %v17774_v38 = vld [vmem:[%s22637_s6 + $0x80] sm:$0xff]  }
 0x9fd   : > { %v10750_v29 = vld [vmem:[#allocation4 + $0xc0] sm:$0xff]  ;;  %10736 = vst.msk [vmem:[#allocation4 + $0xf0] sm:$0xff] %vm435_vm2, %v10704_v62  ;;  %v10705_v12 = vmax.f32 %v16780_v48, 0.0  ;;  %v11205_v25 = vld [vmem:[#allocation6 + $0x31] sm:$0xff] }
 0x9fe   : > { %v10782_v53 = vmax.f32 %v10750_v29, %v10766_v6  ;;  %v10767_v35 = vld [vmem:[#allocation4 + $0xd8] sm:$0xff]  ;;  %10734 = vst.msk [vmem:[#allocation4 + $0xe0] sm:$0xff] %vm435_vm2, %v10702_v49  ;;  %v10703_v28 = vmax.f32 %v16781_v4, 0.0  ;;  %v11204_v62 = vld [vmem:[#allocation6 + $0x21] sm:$0xff]  ;;  %v17776_v4 = vld [vmem:[%s22637_s6 + $0x90] sm:$0xff]  }
 0x9ff   : > { %v10751_v61 = vld [vmem:[#allocation4 + $0xc8] sm:$0xff]  ;;  %10737 = vst.msk [vmem:[#allocation4 + $0xf8] sm:$0xff] %vm435_vm2, %v10705_v12  ;;  %16363 = vmatpush3.bf16.msra.mxu0 %v17764_v60  ;;  %v11213_v48 = vpack.c.bf16 %v11205_v25, %v11204_v62 }
 0xa00   : > { %10798 = vst.msk [vmem:[#allocation5 + $0x60] sm:$0xff] %vm435_vm2, %v10782_v53  ;;  %v10783_v5 = vmax.f32 %v10751_v61, %v10767_v35  ;;  %10735 = vst.msk [vmem:[#allocation4 + $0xe8] sm:$0xff] %vm435_vm2, %v10703_v28  ;;  %16364 = vmatprep.subr.bf16.mxu0 %v17765_v56  ;;  %v11202_v60 = vld [vmem:[#allocation6 + $0x1] sm:$0xff]  ;;  %v17777_v53 = vld [vmem:[%s22637_s6 + $0x98] sm:$0xff]   ;;  %v11333_v35 = vpack.c.bf16 %v11204_v62, %v11203_v51 }
 0xa01   : > { %v10807_v15 = vld [vmem:[#allocation5 + $0x50] ss:$2 sm:$0xff]  ;;  %v10815_v19 = vld [vmem:[#allocation5 + $0x51] ss:$2 sm:$0xff]  ;;  %v11212_v1 = vpack.c.bf16 %v11203_v51, %v11202_v60  ;;  %v11206_v41 = vld [vmem:[#allocation6 + $0x41] sm:$0xff] }
 0xa02   : > { %10799 = vst.msk [vmem:[#allocation5 + $0x68] sm:$0xff] %vm435_vm2, %v10783_v5  ;;  %v10823_v3 = vmax.f32 %v10807_v15, %v10815_v19  ;;  %v17775_v6 = vld [vmem:[%s22637_s6 + $0x88] sm:$0xff]   ;;  %v17778_v28 = vld [vmem:[%s22637_s6 + $0xe0] sm:$0xff]   ;;  %v11334_v61 = vpack.c.bf16 %v11206_v41, %v11205_v25  ;;  %v17780_v15 = vld [vmem:[%s22637_s6 + $0xf0] sm:$0xff]  }
 0xa03   : > { %v10846_v9 = vld [vmem:[#allocation6 + $0x50] sm:$0xff]  ;;  %16365 = vmatpush3.bf16.msra.mxu0 %v17765_v56  ;;  %v17779_v5 = vld [vmem:[%s22637_s6 + $0xe8] sm:$0xff]   ;;  %v17793_v51 = vld [vmem:[%s22637_s6 + $0x118] sm:$0xff]  }
 0xa04   : > { %v10768_v21 = vld [vmem:[#allocation4 + $0xf0] sm:$0xff]  ;;  %v10853_v32 = vpack.c.bf16 %v10846_v9, %v10845_v36  ;;  %10831 = vst.msk [vmem:[#allocation6 + $0x61] sm:$0xff] %vm435_vm2, %v10823_v3  ;;  %16374 = vmatprep.subr.bf16.mxu0 %v17766_v27  ;;  %v17781_v36 = vld [vmem:[%s22637_s6 + $0xf8] sm:$0xff]   ;;  %v17798_v62 = vld [vmem:[%s22639_s8 + $0x20] sm:$0xff]  }
 0xa05   : > { %v10752_v44 = vld [vmem:[#allocation4 + $0xe0] sm:$0xff]  ;;  %v11207_v20 = vld [vmem:[#allocation6 + $0x51] sm:$0xff] }
 0xa06   : > { %v10784_v26 = vmax.f32 %v10752_v44, %v10768_v21  ;;  %v10769_v31 = vld [vmem:[#allocation4 + $0xf8] sm:$0xff]  ;;  %16354 = vmatprep.mubr.msk.bf16.mxu0 %vm435_vm2, %v10853_v32  ;;  %v11214_v49 = vpack.c.bf16 %v11207_v20, %v11206_v41  ;;  %v17783_v21 = vld [vmem:[%s22637_s6 + $0x48] sm:$0xff]   ;;  %v17800_v41 = vld [vmem:[%s22639_s8 + $0x30] sm:$0xff]  }
 0xa07   : > { %v10753_v58 = vld [vmem:[#allocation4 + $0xe8] sm:$0xff]  ;;  %v11211_v44 = vld [vmem:[#allocation6 + $0x91] sm:$0xff] }
 0xa08   : > { %10800 = vst.msk [vmem:[#allocation5 + $0x70] sm:$0xff] %vm435_vm2, %v10784_v26  ;;  %v10785_v50 = vmax.f32 %v10753_v58, %v10769_v31  ;;  %v11563_v26 = vld [vmem:[#allocation6 + $0x2] sm:$0xff]  ;;  %v11564_v31 = vld [vmem:[#allocation6 + $0x12] sm:$0xff] }
 0xa09   : > { %v10808_v37 = vld [vmem:[#allocation5 + $0x60] ss:$2 sm:$0xff]  ;;  %v10816_v22 = vld [vmem:[#allocation5 + $0x61] ss:$2 sm:$0xff] }
 0xa0a   : > { %10801 = vst.msk [vmem:[#allocation5 + $0x78] sm:$0xff] %vm435_vm2, %v10785_v50  ;;  %v10824_v33 = vmax.f32 %v10808_v37, %v10816_v22  ;;  %v17785_v50 = vld [vmem:[%s22637_s6 + $0x58] sm:$0xff]   ;;  %v11573_v37 = vpack.c.bf16 %v11564_v31, %v11563_v26  ;;  %v17786_v22 = vld [vmem:[%s22637_s6 + $0xa0] sm:$0xff]  }
 0xa0b   : > { %v10847_v57 = vld [vmem:[#allocation6 + $0x60] sm:$0xff] }
 0xa0c   : > { %10832 = vst.msk [vmem:[#allocation6 + $0x71] sm:$0xff] %vm435_vm2, %v10824_v33  ;;  %v10974_v7 = vpack.c.bf16 %v10847_v57, %v10846_v9  ;;  %v11208_v29 = vld [vmem:[#allocation6 + $0x61] sm:$0xff]  ;;  %v11566_v33 = vld [vmem:[#allocation6 + $0x32] sm:$0xff] }
 0xa0d   : > { %v17782_v9 = vld [vmem:[%s22637_s6 + $0x40] sm:$0xff]  }
 0xa11   : > { %v10809_v24 = vld [vmem:[#allocation5 + $0x70] ss:$2 sm:$0xff]  ;;  %v10817_v47 = vld [vmem:[#allocation5 + $0x71] ss:$2 sm:$0xff] }
 0xa12   : > { %v10825_v11 = vmax.f32 %v10809_v24, %v10817_v47  ;;  %v11568_v24 = vld [vmem:[#allocation6 + $0x52] sm:$0xff]  ;;  %v11565_v47 = vld [vmem:[#allocation6 + $0x22] sm:$0xff] }
 0xa13   : > { %v10848_v54 = vld [vmem:[#allocation6 + $0x70] sm:$0xff] }
 0xa14   : > { %v10854_v17 = vpack.c.bf16 %v10848_v54, %v10847_v57  ;;  %10833 = vst.msk [vmem:[#allocation6 + $0x81] sm:$0xff] %vm435_vm2, %v10825_v11  ;;  %v11209_v56 = vld [vmem:[#allocation6 + $0x71] sm:$0xff]  ;;  %v11574_v11 = vpack.c.bf16 %v11566_v33, %v11565_v47  ;;  %v11567_v57 = vld [vmem:[#allocation6 + $0x42] sm:$0xff] }
 0xa15   : > { %v11215_v12 = vpack.c.bf16 %v11209_v56, %v11208_v29 }
 0xa16   : > { %16355 = vmatmul.mubr.msk.bf16.gmra.mrb[36].mxu0 %vm435_vm2, %v10854_v17 }
 0xa17   : > { %16366 = vmatprep.mubr.msk.bf16.mxu0 %vm435_vm2, %v10972_v14  ;;  %v17788_v14 = vld [vmem:[%s22637_s6 + $0xb0] sm:$0xff]  }
 0xa1b   : > { %v10849_v10 = vld [vmem:[#allocation6 + $0x80] sm:$0xff] }
 0xa1c   : > { %v10975_v45 = vpack.c.bf16 %v10849_v10, %v10848_v54  ;;  %v11093_v59 = vpack.c.bf16 %v10850_v16, %v10849_v10  ;;  %v11210_v19 = vld [vmem:[#allocation6 + $0x81] sm:$0xff]  ;;  %v11694_v10 = vpack.c.bf16 %v11565_v47, %v11564_v31 }
 0xa1d   : > { %v11336_v3 = vpack.c.bf16 %v11210_v19, %v11209_v56  ;;  %v11454_v58 = vpack.c.bf16 %v11211_v44, %v11210_v19  ;;  %v17787_v54 = vld [vmem:[%s22637_s6 + $0xa8] sm:$0xff]  }
 0xa1e   : > { %16367 = vmatmul.mubr.msk.bf16.vlgmr.msra.gmra.mrb[32].mxu0 %vm435_vm2, %v10973_v39  ;;  %v11570_v39 = vld [vmem:[#allocation6 + $0x72] sm:$0xff]  ;;  %v11571_v16 = vld [vmem:[#allocation6 + $0x82] sm:$0xff] }
 0xa1f   : > { %16370 = vmatprep.mubr.msk.bf16.mxu0 %vm435_vm2, %v10974_v7  ;;  %16375 = vmatpush3.bf16.msra.mxu0 %v17766_v27  ;;  %v11335_v27 = vpack.c.bf16 %v11208_v29, %v11207_v20  ;;  %v11697_v60 = vpack.c.bf16 %v11571_v16, %v11570_v39  ;;  %v17797_v20 = vld [vmem:[%s22639_s8 + $0x18] sm:$0xff]  }
 0xa20   : > { %16376 = vmatprep.subr.bf16.mxu0 %v17767_v55 }
 0xa23   : > { %16377 = vmatpush3.bf16.msra.mxu0 %v17767_v55  ;;  %v11569_v55 = vld [vmem:[#allocation6 + $0x62] sm:$0xff] }
 0xa24   : > { %16378 = vmatprep.subr.bf16.mxu0 %v17768_v18  ;;  %v11576_v7 = vpack.c.bf16 %v11570_v39, %v11569_v55 }
 0xa26   : > { %16371 = vmatmul.mubr.msk.bf16.gmra.mrb[36].mxu0 %vm435_vm2, %v10975_v45  ;;  %v17790_v45 = vld [vmem:[%s22637_s6 + $0x100] sm:$0xff]  }
 0xa27   : > { %16379 = vmatpush3.bf16.msra.mxu0 %v17768_v18  ;;  %16382 = vmatprep.mubr.msk.bf16.mxu0 %vm435_vm2, %v22164_v23  ;;  %v17772_v23 = vld [vmem:[%s22637_s6 + $0x30] sm:$0xff]   ;;  %v17789_v18 = vld [vmem:[%s22637_s6 + $0xb8] sm:$0xff]  }
 0xa28   : > { %16380 = vmatprep.subr.bf16.mxu0 %v17769_v30 }
 0xa2b   : > { %16381 = vmatpush3.bf16.msra.mxu0 %v17769_v30  ;;  %v11695_v30 = vpack.c.bf16 %v11567_v57, %v11566_v33 }
 0xa2c   : > { %16390 = vmatprep.subr.bf16.mxu0 %v17770_v43 }
 0xa2e   : > { %16383 = vmatmul.mubr.msk.bf16.vlgmr.msra.gmra.mrb[32].mxu0 %vm435_vm2, %v10853_v32  ;;  %v17784_v32 = vld [vmem:[%s22637_s6 + $0x50] sm:$0xff]  }
 0xa2f   : > { %16386 = vmatprep.mubr.msk.bf16.mxu0 %vm435_vm2, %v10854_v17  ;;  %16391 = vmatpush3.bf16.msra.mxu0 %v17770_v43  ;;  %v11575_v17 = vpack.c.bf16 %v11568_v24, %v11567_v57  ;;  %v17791_v43 = vld [vmem:[%s22637_s6 + $0x108] sm:$0xff]  }
 0xa30   : > { %16392 = vmatprep.subr.bf16.mxu0 %v17771_v42 }
 0xa33   : > { %16393 = vmatpush3.bf16.msra.mxu0 %v17771_v42  ;;  %v11696_v42 = vpack.c.bf16 %v11569_v55, %v11568_v24 }
 0xa34   : > { %16394 = vmatprep.subr.bf16.mxu0 %v17772_v23 }
 0xa36   : > { %16387 = vmatmul.mubr.msk.bf16.gmra.mrb[36].mxu0 %vm435_vm2, %v11093_v59  ;;  %v17794_v59 = vld [vmem:[%s22639_s8] sm:$0xff]  }
 0xa37   : > { %16395 = vmatpush3.bf16.msra.mxu0 %v17772_v23  ;;  %16398 = vmatprep.mubr.msk.bf16.mxu0 %vm435_vm2, %v11212_v1  ;;  %v17792_v23 = vld [vmem:[%s22637_s6 + $0x110] sm:$0xff]  }
 0xa38   : > { %16396 = vmatprep.subr.bf16.mxu0 %v17773_v0  ;;  %v17796_v1 = vld [vmem:[%s22639_s8 + $0x10] sm:$0xff]  }
 0xa3b   : > { %16397 = vmatpush3.bf16.msra.mxu0 %v17773_v0  ;;  %v17795_v0 = vld [vmem:[%s22639_s8 + $0x8] sm:$0xff]  }
 0xa3c   : > { %16406 = vmatprep.subr.bf16.mxu0 %v17774_v38 }
 0xa3e   : > { %16399 = vmatmul.mubr.msk.bf16.vlgmr.msra.gmra.mrb[32].mxu0 %vm435_vm2, %v11213_v48 }
 0xa3f   : > { %16402 = vmatprep.mubr.msk.bf16.mxu0 %vm435_vm2, %v11214_v49  ;;  %16407 = vmatpush3.bf16.msra.mxu0 %v17774_v38  ;;  %v11572_v38 = vld [vmem:[#allocation6 + $0x92] sm:$0xff] }
 0xa40   : > { %16408 = vmatprep.subr.bf16.mxu0 %v17775_v6  ;;  %v11815_v25 = vpack.c.bf16 %v11572_v38, %v11571_v16  ;;  %v17806_v38 = vld [vmem:[%s22639_s8 + $0xe0] sm:$0xff]  }
 0xa43   : > { %16409 = vmatpush3.bf16.msra.mxu0 %v17775_v6  ;;  %v17801_v6 = vld [vmem:[%s22639_s8 + $0x38] sm:$0xff]  }
 0xa44   : > { %16410 = vmatprep.subr.bf16.mxu0 %v17776_v4 }
 0xa46   : > { %16403 = vmatmul.mubr.msk.bf16.gmra.mrb[36].mxu0 %vm435_vm2, %v11215_v12 }
 0xa47   : > { %16411 = vmatpush3.bf16.msra.mxu0 %v17776_v4  ;;  %16414 = vmatprep.mubr.msk.bf16.mxu0 %vm435_vm2, %v11333_v35  ;;  %v14200_v4 = vld [vmem:[%s22638_s7] ss:$0 sm:$0xff] }
 0xa48   : > { %16412 = vmatprep.subr.bf16.mxu0 %v17777_v53 }
 0xa4b   : > { %16413 = vmatpush3.bf16.msra.mxu0 %v17777_v53 }
 0xa4c   : > { %16422 = vmatprep.subr.bf16.mxu0 %v17778_v28 }
 0xa4e   : > { %16415 = vmatmul.mubr.msk.bf16.vlgmr.msra.gmra.mrb[32].mxu0 %vm435_vm2, %v11334_v61 }
 0xa4f   : > { %16418 = vmatprep.mubr.msk.bf16.mxu0 %vm435_vm2, %v11335_v27  ;;  %16423 = vmatpush3.bf16.msra.mxu0 %v17778_v28 }
 0xa50   : > { %16424 = vmatprep.subr.bf16.mxu0 %v17779_v5 }
 0xa53   : > { %16425 = vmatpush3.bf16.msra.mxu0 %v17779_v5 }
 0xa54   : > { %16426 = vmatprep.subr.bf16.mxu0 %v17780_v15 }
 0xa56   : > { %16419 = vmatmul.mubr.msk.bf16.gmra.mrb[36].mxu0 %vm435_vm2, %v11336_v3 }
 0xa57   : > { %16427 = vmatpush3.bf16.msra.mxu0 %v17780_v15  ;;  %16430 = vmatprep.mubr.msk.bf16.mxu0 %vm435_vm2, %v11213_v48  ;;  %v17799_v48 = vld [vmem:[%s22639_s8 + $0x28] sm:$0xff]  }
 0xa58   : > { %16428 = vmatprep.subr.bf16.mxu0 %v17781_v36 }
 0xa5b   : > { %16429 = vmatpush3.bf16.msra.mxu0 %v17781_v36 }
 0xa5c   : > { %16438 = vmatprep.subr.bf16.mxu0 %v17782_v9 }
 0xa5e   : > { %16431 = vmatmul.mubr.msk.bf16.vlgmr.msra.gmra.mrb[32].mxu0 %vm435_vm2, %v11214_v49  ;;  %v17802_v49 = vld [vmem:[%s22639_s8 + $0xc0] sm:$0xff]  }
 0xa5f   : > { %16434 = vmatprep.mubr.msk.bf16.mxu0 %vm435_vm2, %v11215_v12  ;;  %16439 = vmatpush3.bf16.msra.mxu0 %v17782_v9 }
 0xa60   : > { %16440 = vmatprep.subr.bf16.mxu0 %v17783_v21 }
 0xa63   : > { %16441 = vmatpush3.bf16.msra.mxu0 %v17783_v21 }
 0xa64   : > { %16442 = vmatprep.subr.bf16.mxu0 %v17784_v32 }
 0xa66   : > { %16435 = vmatmul.mubr.msk.bf16.gmra.mrb[36].mxu0 %vm435_vm2, %v11454_v58 }
 0xa67   : > { %16443 = vmatpush3.bf16.msra.mxu0 %v17784_v32  ;;  %16446 = vmatprep.mubr.msk.bf16.mxu0 %vm435_vm2, %v11573_v37 }
 0xa68   : > { %16444 = vmatprep.subr.bf16.mxu0 %v17785_v50 }
 0xa6b   : > { %16445 = vmatpush3.bf16.msra.mxu0 %v17785_v50 }
 0xa6c   : > { %16454 = vmatprep.subr.bf16.mxu0 %v17786_v22 }
 0xa6e   : > { %16447 = vmatmul.mubr.msk.bf16.vlgmr.msra.gmra.mrb[32].mxu0 %vm435_vm2, %v11574_v11 }
 0xa6f   : > { %16450 = vmatprep.mubr.msk.bf16.mxu0 %vm435_vm2, %v11575_v17  ;;  %16455 = vmatpush3.bf16.msra.mxu0 %v17786_v22 }
 0xa70   : > { %16456 = vmatprep.subr.bf16.mxu0 %v17787_v54 }
 0xa73   : > { %16457 = vmatpush3.bf16.msra.mxu0 %v17787_v54  ;;  %v22383_v54 = vld [vmem:[#allocation7] sm:$0xff] }
 0xa74   : > { %16458 = vmatprep.subr.bf16.mxu0 %v17788_v14 }
 0xa76   : > { %16451 = vmatmul.mubr.msk.bf16.gmra.mrb[36].mxu0 %vm435_vm2, %v11576_v7 }
 0xa77   : > { %16459 = vmatpush3.bf16.msra.mxu0 %v17788_v14  ;;  %16462 = vmatprep.mubr.msk.bf16.mxu0 %vm435_vm2, %v11694_v10  ;;  %v17803_v10 = vld [vmem:[%s22639_s8 + $0xc8] sm:$0xff]  }
 0xa78   : > { %16460 = vmatprep.subr.bf16.mxu0 %v17789_v18 }
 0xa7b   : > { %16461 = vmatpush3.bf16.msra.mxu0 %v17789_v18 }
 0xa7c   : > { %16470 = vmatprep.subr.bf16.mxu0 %v17790_v45 }
 0xa7e   : > { %16463 = vmatmul.mubr.msk.bf16.vlgmr.msra.gmra.mrb[32].mxu0 %vm435_vm2, %v11695_v30 }
 0xa7f   : > { %16466 = vmatprep.mubr.msk.bf16.mxu0 %vm435_vm2, %v11696_v42  ;;  %16471 = vmatpush3.bf16.msra.mxu0 %v17790_v45 }
 0xa80   : > { %16472 = vmatprep.subr.bf16.mxu0 %v17791_v43 }
 0xa83   : > { %16473 = vmatpush3.bf16.msra.mxu0 %v17791_v43  ;;  %v17804_v43 = vld [vmem:[%s22639_s8 + $0xd0] sm:$0xff]  }
 0xa84   : > { %16474 = vmatprep.subr.bf16.mxu0 %v17792_v23 }
 0xa86   : > { %16467 = vmatmul.mubr.msk.bf16.gmra.mrb[36].mxu0 %vm435_vm2, %v11697_v60 }
 0xa87   : > { %16475 = vmatpush3.bf16.msra.mxu0 %v17792_v23  ;;  %16478 = vmatprep.mubr.msk.bf16.mxu0 %vm435_vm2, %v11574_v11 }
 0xa88   : > { %16476 = vmatprep.subr.bf16.mxu0 %v17793_v51 }
 0xa8b   : > { %16477 = vmatpush3.bf16.msra.mxu0 %v17793_v51 }
 0xa8c   : > { %16486 = vmatprep.subr.bf16.mxu0 %v17794_v59 }
 0xa8e   : > { %16479 = vmatmul.mubr.msk.bf16.vlgmr.msra.gmra.mrb[32].mxu0 %vm435_vm2, %v11575_v17 }
 0xa8f   : > { %16482 = vmatprep.mubr.msk.bf16.mxu0 %vm435_vm2, %v11576_v7  ;;  %16487 = vmatpush3.bf16.msra.mxu0 %v17794_v59 }
 0xa90   : > { %16488 = vmatprep.subr.bf16.mxu0 %v17795_v0 }
 0xa93   : > { %16489 = vmatpush3.bf16.msra.mxu0 %v17795_v0  ;;  %v17805_v0 = vld [vmem:[%s22639_s8 + $0xd8] sm:$0xff]  }
 0xa94   : > { %16490 = vmatprep.subr.bf16.mxu0 %v17796_v1 }
 0xa96   : > { %16483 = vmatmul.mubr.msk.bf16.gmra.mrb[36].mxu0 %vm435_vm2, %v11815_v25  ;;  %v17807_v25 = vld [vmem:[%s22639_s8 + $0xe8] sm:$0xff]  }
 0xa97   : > { %16491 = vmatpush3.bf16.msra.mxu0 %v17796_v1 }
 0xa98   : > { %16492 = vmatprep.subr.bf16.mxu0 %v17797_v20 }
 0xa9b   : > { %16493 = vmatpush3.bf16.msra.mxu0 %v17797_v20  ;;  %v17808_v20 = vld [vmem:[%s22639_s8 + $0xf0] sm:$0xff]  }
 0xa9c   : > { %16494 = vmatprep.subr.bf16.mxu0 %v17798_v62 }
 0xa9f   : > { %16495 = vmatpush3.bf16.msra.mxu0 %v17798_v62  ;;  %v17809_v62 = vld [vmem:[%s22639_s8 + $0xf8] sm:$0xff]  }
 0xaa0   : > { %16496 = vmatprep.subr.bf16.mxu0 %v17799_v48 }
 0xaa3   : > { %16497 = vmatpush3.bf16.msra.mxu0 %v17799_v48  ;;  %v17810_v48 = vld [vmem:[%s22639_s8 + $0x180] sm:$0xff]  }
 0xaa4   : > { %16498 = vmatprep.subr.bf16.mxu0 %v17800_v41 }
 0xaa7   : > { %16499 = vmatpush3.bf16.msra.mxu0 %v17800_v41 }
 0xaa8   : > { %16500 = vmatprep.subr.bf16.mxu0 %v17801_v6 }
 0xaab   : > { %16501 = vmatpush3.bf16.msra.mxu0 %v17801_v6  ;;  %v17811_v6 = vld [vmem:[%s22639_s8 + $0x188] sm:$0xff]  }
 0xaac   : > { %16510 = vmatprep.subr.bf16.mxu0 %v17802_v49 }
 0xb61   : > { %v16480_v56 = vpop.f32.mrb[32].mxu0 }
 0xb62   : > { %v16782_v29 = vadd.f32 %v16480_v56, %v14200_v4  ;;  %v11885_v12 = vpop.f32.mrb[33].mxu0 }
 0xb63   : > { %v16783_v53 = vadd.f32 %v14200_v4, %v11885_v12  ;;  %v16481_v35 = vpop.f32.mrb[34].mxu0  ;;  %v17813_v12 = vld [vmem:[%s22639_s8 + $0x198] sm:$0xff]  }
 0xb64   : > { %v22353_v28 = vmax.f32 %v16782_v29, 0.0  ;;  %v16784_v61 = vadd.f32 %v16481_v35, %v14200_v4  ;;  %v11888_v5 = vpop.f32.mrb[35].mxu0  ;;  %v17815_v35 = vld [vmem:[%s22639_s8 + $0x1a8] sm:$0xff]  }
 0xb65   : > { %v22355_v27 = vmax.f32 %v16783_v53, 0.0  ;;  %v16785_v15 = vadd.f32 %v14200_v4, %v11888_v5  ;;  %v17814_v53 = vld [vmem:[%s22639_s8 + $0x1a0] sm:$0xff]   ;;  %v17817_v5 = vld [vmem:[%s22639_s8 + $0x1b8] sm:$0xff]  }
 0xb66   : > { %11934 = vst [vmem:[#allocation7 + $0x31] sm:$0xff] %v22353_v28  ;;  %v22358_v19 = vmax.f32 %v16784_v61, 0.0  ;;  %v17816_v61 = vld [vmem:[%s22639_s8 + $0x1b0] sm:$0xff]  }
 0xb67   : > { %11932 = vst [vmem:[#allocation7 + $0x11] sm:$0xff] %v22355_v27  ;;  %v22361_v3 = vmax.f32 %v16785_v15, 0.0  ;;  %v17818_v15 = vld [vmem:[%s22639_s8 + $0x40] sm:$0xff]  }
 0xb68   : > { %11935 = vst [vmem:[#allocation7 + $0x41] sm:$0xff] %v22358_v19  ;;  %v12529_v36 = vpack.c.bf16 %v22358_v19, %v22353_v28 }
 0xb69   : > { %11933 = vst [vmem:[#allocation7 + $0x21] sm:$0xff] %v22361_v3  ;;  %v16484_v9 = vpop.f32.mrb[36].mxu0  ;;  %v22369_v21 = vpack.c.bf16 %v22353_v28, %v22361_v3  ;;  %v12528_v32 = vpack.c.bf16 %v22361_v3, %v22355_v27  ;;  %v17834_v3 = vld [vmem:[%s22639_s8 + $0x1c0] sm:$0xff]  }
 0xb6a   : > { %v16786_v44 = vadd.f32 %v16484_v9, %v14200_v4  ;;  %v11901_v26 = vpop.f32.mrb[37].mxu0  ;;  %v17819_v9 = vld [vmem:[%s22639_s8 + $0x48] sm:$0xff]   ;;  %v17838_v28 = vld [vmem:[%s22639_s8 + $0x1e0] sm:$0xff]  }
 0xb6b   : > { %v16787_v31 = vadd.f32 %v14200_v4, %v11901_v26  ;;  %v16485_v58 = vpop.f32.mrb[38].mxu0  ;;  %v12377_v26 = vld [vmem:[#allocation7 + $0x1] sm:$0xff] }
 0xb6c   : > { %v22373_v50 = vmax.f32 %v16786_v44, 0.0  ;;  %v16788_v37 = vadd.f32 %v16485_v58, %v14200_v4  ;;  %v11904_v22 = vpop.f32.mrb[39].mxu0  ;;  %v17820_v44 = vld [vmem:[%s22639_s8 + $0x50] sm:$0xff]   ;;  %v17821_v58 = vld [vmem:[%s22639_s8 + $0x58] sm:$0xff]  }
 0xb6d   : > { %v22375_v33 = vmax.f32 %v16787_v31, 0.0  ;;  %v16789_v24 = vadd.f32 %v14200_v4, %v11904_v22  ;;  %v11950_v55 = vld [vmem:[#allocation7 + $0x30] sm:$0xff]  ;;  %v17822_v22 = vld [vmem:[%s22639_s8 + $0x60] sm:$0xff]  }
 0xb6e   : > { %11938 = vst [vmem:[#allocation7 + $0x71] sm:$0xff] %v22373_v50  ;;  %v22378_v47 = vmax.f32 %v16788_v37, 0.0  ;;  %v11948_v11 = vld [vmem:[#allocation7 + $0x10] sm:$0xff]  ;;  %v12387_v37 = vpack.c.bf16 %v22355_v27, %v12377_v26  ;;  %v17833_v27 = vld [vmem:[%s22639_s8 + $0x138] sm:$0xff]  }
 0xb6f   : > { %11936 = vst [vmem:[#allocation7 + $0x51] sm:$0xff] %v22375_v33  ;;  %v22381_v57 = vmax.f32 %v16789_v24, 0.0  ;;  %v11957_v17 = vpack.c.bf16 %v11948_v11, %v22383_v54  ;;  %v22388_v14 = vpack.c.bf16 %v22375_v33, %v22358_v19  ;;  %v11951_v42 = vld [vmem:[#allocation7 + $0x40] sm:$0xff]  ;;  %v17812_v4 = vld [vmem:[%s22639_s8 + $0x190] sm:$0xff]   ;;  %v17823_v24 = vld [vmem:[%s22639_s8 + $0x68] sm:$0xff]  }
 0xb70   : > { %11939 = vst [vmem:[#allocation7 + $0x81] sm:$0xff] %v22378_v47  ;;  %v11949_v39 = vld [vmem:[#allocation7 + $0x20] sm:$0xff]  ;;  %v12531_v7 = vpack.c.bf16 %v22378_v47, %v22373_v50  ;;  %v12099_v41 = vpack.c.bf16 %v11951_v42, %v11950_v55  ;;  %v17839_v19 = vld [vmem:[%s22639_s8 + $0x1e8] sm:$0xff]  }
 0xb71   : > { %11937 = vst [vmem:[#allocation7 + $0x61] sm:$0xff] %v22381_v57  ;;  %16502 = vmatprep.mubr.bf16.mxu0 %v11957_v17  ;;  %v11958_v18 = vpack.c.bf16 %v11950_v55, %v11949_v39  ;;  %v22399_v45 = vpack.c.bf16 %v22373_v50, %v22381_v57  ;;  %v12530_v30 = vpack.c.bf16 %v22381_v57, %v22375_v33  ;;  %v17826_v17 = vld [vmem:[%s22639_s8 + $0x100] sm:$0xff]   ;;  %v17828_v55 = vld [vmem:[%s22639_s8 + $0x110] sm:$0xff]   ;;  %v17843_v33 = vld [vmem:[%s22639_s8 + $0x88] sm:$0xff]  }
 0xb72   : > { %v12098_v1 = vpack.c.bf16 %v11949_v39, %v11948_v11  ;;  %v17824_v11 = vld [vmem:[%s22639_s8 + $0x70] sm:$0xff]   ;;  %v17827_v39 = vld [vmem:[%s22639_s8 + $0x108] sm:$0xff]   ;;  %v17842_v50 = vld [vmem:[%s22639_s8 + $0x80] sm:$0xff]  }
 0xb73   : > { %16503 = vmatmul.mubr.bf16.vlgmr.msra.gmra.mrb[40].mxu0 %v11958_v18  ;;  %v17844_v57 = vld [vmem:[%s22639_s8 + $0x90] sm:$0xff]  }
 0xb74   : > { %16511 = vmatpush3.bf16.msra.mxu0 %v17802_v49 }
 0xb75   : > { %16512 = vmatprep.subr.bf16.mxu0 %v17803_v10  ;;  %v11954_v51 = vld [vmem:[#allocation7 + $0x70] sm:$0xff] }
 0xb76   : > { %v11952_v23 = vld [vmem:[#allocation7 + $0x50] sm:$0xff] }
 0xb77   : > { %v11959_v16 = vpack.c.bf16 %v11952_v23, %v11951_v42  ;;  %v11955_v56 = vld [vmem:[#allocation7 + $0x80] sm:$0xff]  ;;  %v17832_v42 = vld [vmem:[%s22639_s8 + $0x130] sm:$0xff]  }
 0xb78   : > { %16513 = vmatpush3.bf16.msra.mxu0 %v17803_v10  ;;  %v11953_v60 = vld [vmem:[#allocation7 + $0x60] sm:$0xff]  ;;  %v12101_v29 = vpack.c.bf16 %v11955_v56, %v11954_v51  ;;  %v12239_v31 = vpack.c.bf16 %v22383_v54, %v11955_v56  ;;  %v17825_v54 = vld [vmem:[%s22639_s8 + $0x78] sm:$0xff]  }
 0xb79   : > { %16506 = vmatprep.mubr.bf16.mxu0 %v11959_v16  ;;  %16514 = vmatprep.subr.bf16.mxu0 %v17804_v43  ;;  %v11960_v59 = vpack.c.bf16 %v11954_v51, %v11953_v60  ;;  %v12100_v49 = vpack.c.bf16 %v11953_v60, %v11952_v23  ;;  %v17830_v10 = vld [vmem:[%s22639_s8 + $0x120] sm:$0xff]   ;;  %v17836_v23 = vld [vmem:[%s22639_s8 + $0x1d0] sm:$0xff]  }
 0xb7a   : > { %v12808_v60 = vld [vmem:[#allocation7 + $0x12] sm:$0xff]  ;;  %v12813_v56 = vld [vmem:[#allocation7 + $0x62] sm:$0xff] }
 0xb7b   : > { %16507 = vmatmul.mubr.bf16.gmra.mrb[44].mxu0 %v11960_v59 }
 0xb7c   : > { %16515 = vmatpush3.bf16.msra.mxu0 %v17804_v43  ;;  %16526 = vmatprep.mubr.bf16.mxu0 %v12098_v1  ;;  %v17831_v43 = vld [vmem:[%s22639_s8 + $0x128] sm:$0xff]   ;;  %v17849_v1 = vld [vmem:[%s22639_s8 + $0xb8] sm:$0xff]  }
 0xb7d   : > { %16516 = vmatprep.subr.bf16.mxu0 %v17805_v0 }
 0xb80   : > { %16517 = vmatpush3.bf16.msra.mxu0 %v17805_v0  ;;  %v17848_v0 = vld [vmem:[%s22639_s8 + $0xb0] sm:$0xff]  }
 0xb81   : > { %16518 = vmatprep.subr.bf16.mxu0 %v17806_v38 }
 0xb84   : > { %16519 = vmatpush3.bf16.msra.mxu0 %v17806_v38  ;;  %v17850_v38 = vld [vmem:[%s22639_s8 + $0x140] sm:$0xff]  }
 0xb85   : > { %16520 = vmatprep.subr.bf16.mxu0 %v17807_v25 }
 0xb88   : > { %16521 = vmatpush3.bf16.msra.mxu0 %v17807_v25  ;;  %v12809_v25 = vld [vmem:[#allocation7 + $0x22] sm:$0xff] }
 0xb89   : > { %16522 = vmatprep.subr.bf16.mxu0 %v17808_v20 }
 0xb8c   : > { %16523 = vmatpush3.bf16.msra.mxu0 %v17808_v20  ;;  %v12812_v20 = vld [vmem:[#allocation7 + $0x52] sm:$0xff] }
 0xb8d   : > { %16524 = vmatprep.subr.bf16.mxu0 %v17809_v62 }
 0xb90   : > { %16525 = vmatpush3.bf16.msra.mxu0 %v17809_v62  ;;  %v12810_v62 = vld [vmem:[#allocation7 + $0x32] sm:$0xff] }
 0xb91   : > { %16534 = vmatprep.subr.bf16.mxu0 %v17810_v48 }
 0xb93   : > { %16527 = vmatmul.mubr.bf16.vlgmr.msra.gmra.mrb[40].mxu0 %v12099_v41  ;;  %v12811_v41 = vld [vmem:[#allocation7 + $0x42] sm:$0xff] }
 0xb94   : > { %16530 = vmatprep.mubr.bf16.mxu0 %v12100_v49  ;;  %16535 = vmatpush3.bf16.msra.mxu0 %v17810_v48  ;;  %v12818_v48 = vpack.c.bf16 %v12810_v62, %v12809_v25  ;;  %v12819_v49 = vpack.c.bf16 %v12812_v20, %v12811_v41  ;;  %v12959_v26 = vpack.c.bf16 %v12811_v41, %v12810_v62 }
 0xb95   : > { %16536 = vmatprep.subr.bf16.mxu0 %v17811_v6 }
 0xb98   : > { %16537 = vmatpush3.bf16.msra.mxu0 %v17811_v6  ;;  %v17851_v6 = vld [vmem:[%s22639_s8 + $0x148] sm:$0xff]  }
 0xb99   : > { %16538 = vmatprep.subr.bf16.mxu0 %v17812_v4 }
 0xb9b   : > { %16531 = vmatmul.mubr.bf16.gmra.mrb[44].mxu0 %v12101_v29  ;;  %v12814_v29 = vld [vmem:[#allocation7 + $0x72] sm:$0xff] }
 0xb9c   : > { %16539 = vmatpush3.bf16.msra.mxu0 %v17812_v4  ;;  %16550 = vmatprep.mubr.bf16.mxu0 %v11958_v18  ;;  %v17829_v18 = vld [vmem:[%s22639_s8 + $0x118] sm:$0xff]   ;;  %v17852_v4 = vld [vmem:[%s22639_s8 + $0x150] sm:$0xff]  }
 0xb9d   : > { %16540 = vmatprep.subr.bf16.mxu0 %v17813_v12 }
 0xba0   : > { %16541 = vmatpush3.bf16.msra.mxu0 %v17813_v12  ;;  %v12820_v12 = vpack.c.bf16 %v12814_v29, %v12813_v56 }
 0xba1   : > { %16542 = vmatprep.subr.bf16.mxu0 %v17814_v53 }
 0xba4   : > { %16543 = vmatpush3.bf16.msra.mxu0 %v17814_v53  ;;  %v17853_v53 = vld [vmem:[%s22639_s8 + $0x158] sm:$0xff]  }
 0xba5   : > { %16544 = vmatprep.subr.bf16.mxu0 %v17815_v35 }
 0xba8   : > { %16545 = vmatpush3.bf16.msra.mxu0 %v17815_v35  ;;  %v12958_v35 = vpack.c.bf16 %v12809_v25, %v12808_v60 }
 0xba9   : > { %16546 = vmatprep.subr.bf16.mxu0 %v17816_v61 }
 0xbac   : > { %16547 = vmatpush3.bf16.msra.mxu0 %v17816_v61  ;;  %v17854_v61 = vld [vmem:[%s22639_s8 + $0x160] sm:$0xff]  }
 0xbad   : > { %16548 = vmatprep.subr.bf16.mxu0 %v17817_v5 }
 0xbb0   : > { %16549 = vmatpush3.bf16.msra.mxu0 %v17817_v5  ;;  %v17855_v5 = vld [vmem:[%s22639_s8 + $0x168] sm:$0xff]  }
 0xbb1   : > { %16558 = vmatprep.subr.bf16.mxu0 %v17818_v15 }
 0xbb3   : > { %16551 = vmatmul.mubr.bf16.vlgmr.msra.gmra.mrb[40].mxu0 %v11959_v16  ;;  %v17837_v16 = vld [vmem:[%s22639_s8 + $0x1d8] sm:$0xff]  }
 0xbb4   : > { %16554 = vmatprep.mubr.bf16.mxu0 %v11960_v59  ;;  %16559 = vmatpush3.bf16.msra.mxu0 %v17818_v15  ;;  %v17845_v59 = vld [vmem:[%s22639_s8 + $0x98] sm:$0xff]   ;;  %v17856_v15 = vld [vmem:[%s22639_s8 + $0x170] sm:$0xff]  }
 0xbb5   : > { %16560 = vmatprep.subr.bf16.mxu0 %v17819_v9 }
 0xbb8   : > { %16561 = vmatpush3.bf16.msra.mxu0 %v17819_v9  ;;  %v17857_v9 = vld [vmem:[%s22639_s8 + $0x178] sm:$0xff]  }
 0xbb9   : > { %16562 = vmatprep.subr.bf16.mxu0 %v17820_v44 }
 0xbbb   : > { %16555 = vmatmul.mubr.bf16.gmra.mrb[44].mxu0 %v12239_v31  ;;  %v17859_v31 = vld [vmem:[%s22639_s8 + $0x208] sm:$0xff]  }
 0xbbc   : > { %16563 = vmatpush3.bf16.msra.mxu0 %v17820_v44  ;;  %16574 = vmatprep.mubr.bf16.mxu0 %v12387_v37  ;;  %v17858_v44 = vld [vmem:[%s22639_s8 + $0x200] sm:$0xff]   ;;  %v17860_v37 = vld [vmem:[%s22639_s8 + $0x210] sm:$0xff]  }
 0xbbd   : > { %16564 = vmatprep.subr.bf16.mxu0 %v17821_v58 }
 0xbc0   : > { %16565 = vmatpush3.bf16.msra.mxu0 %v17821_v58  ;;  %v12960_v58 = vpack.c.bf16 %v12813_v56, %v12812_v20 }
 0xbc1   : > { %16566 = vmatprep.subr.bf16.mxu0 %v17822_v22 }
 0xbc4   : > { %16567 = vmatpush3.bf16.msra.mxu0 %v17822_v22  ;;  %v12815_v22 = vld [vmem:[#allocation7 + $0x82] sm:$0xff] }
 0xbc5   : > { %16568 = vmatprep.subr.bf16.mxu0 %v17823_v24 }
 0xbc8   : > { %16569 = vmatpush3.bf16.msra.mxu0 %v17823_v24  ;;  %v12961_v24 = vpack.c.bf16 %v12815_v22, %v12814_v29 }
 0xbc9   : > { %16570 = vmatprep.subr.bf16.mxu0 %v17824_v11 }
 0xbcc   : > { %16571 = vmatpush3.bf16.msra.mxu0 %v17824_v11  ;;  %v17861_v11 = vld [vmem:[%s22639_s8 + $0x218] sm:$0xff]  }
 0xbcd   : > { %16572 = vmatprep.subr.bf16.mxu0 %v17825_v54 }
 0xbd0   : > { %16573 = vmatpush3.bf16.msra.mxu0 %v17825_v54  ;;  %v17862_v54 = vld [vmem:[%s22639_s8 + $0x220] sm:$0xff]  }
 0xbd1   : > { %16582 = vmatprep.subr.bf16.mxu0 %v17826_v17 }
 0xbd3   : > { %16575 = vmatmul.mubr.bf16.vlgmr.msra.gmra.mrb[40].mxu0 %v22369_v21 }
 0xbd4   : > { %16578 = vmatprep.mubr.bf16.mxu0 %v22388_v14  ;;  %16583 = vmatpush3.bf16.msra.mxu0 %v17826_v17  ;;  %v17863_v17 = vld [vmem:[%s22639_s8 + $0x228] sm:$0xff]  }
 0xbd5   : > { %16584 = vmatprep.subr.bf16.mxu0 %v17827_v39 }
 0xbd8   : > { %16585 = vmatpush3.bf16.msra.mxu0 %v17827_v39  ;;  %v17864_v39 = vld [vmem:[%s22639_s8 + $0x230] sm:$0xff]  }
 0xbd9   : > { %16586 = vmatprep.subr.bf16.mxu0 %v17828_v55 }
 0xbdb   : > { %16579 = vmatmul.mubr.bf16.gmra.mrb[44].mxu0 %v22399_v45 }
 0xbdc   : > { %16587 = vmatpush3.bf16.msra.mxu0 %v17828_v55  ;;  %16598 = vmatprep.mubr.bf16.mxu0 %v12528_v32  ;;  %v17835_v32 = vld [vmem:[%s22639_s8 + $0x1c8] sm:$0xff]   ;;  %v17865_v55 = vld [vmem:[%s22639_s8 + $0x238] sm:$0xff]  }
 0xbdd   : > { %16588 = vmatprep.subr.bf16.mxu0 %v17829_v18 }
 0xbe0   : > { %16589 = vmatpush3.bf16.msra.mxu0 %v17829_v18  ;;  %v12816_v18 = vld [vmem:[#allocation7 + $0x92] sm:$0xff] }
 0xbe1   : > { %16590 = vmatprep.subr.bf16.mxu0 %v17830_v10 }
 0xbe4   : > { %16591 = vmatpush3.bf16.msra.mxu0 %v17830_v10  ;;  %v13099_v10 = vpack.c.bf16 %v12816_v18, %v12815_v22 }
 0xbe5   : > { %16592 = vmatprep.subr.bf16.mxu0 %v17831_v43 }
 0xbe8   : > { %16593 = vmatpush3.bf16.msra.mxu0 %v17831_v43  ;;  %v13744_v43 = vld [vmem:[%s22640_s9] ss:$0 sm:$0xff] }
 0xbe9   : > { %16594 = vmatprep.subr.bf16.mxu0 %v17832_v42  ;;  %v16748_v25 = vadd.f32 %v21835_v46, %v13744_v43  ;;  %v16749_v20 = vadd.f32 %v13744_v43, %v21837_v63 }
 0xbeb   : > { %v6903_v46 = vmax.f32 %v16749_v20, 0.0 }
 0xbec   : > { %16595 = vmatpush3.bf16.msra.mxu0 %v17832_v42  ;;  %v14337_v42 = vld [vmem:[%s22640_s9] ss:$0 sm:$0xff] }
 0xbed   : > { %16596 = vmatprep.subr.bf16.mxu0 %v17833_v27 }
 0xbf0   : > { %16597 = vmatpush3.bf16.msra.mxu0 %v17833_v27  ;;  %v16742_v27 = vadd.f32 %v21809_v13, %v13744_v43 }
 0xbf1   : > { %16606 = vmatprep.subr.bf16.mxu0 %v17834_v3 }
 0xbf3   : > { %16599 = vmatmul.mubr.bf16.vlgmr.msra.gmra.mrb[40].mxu0 %v12529_v36  ;;  %v17840_v36 = vld [vmem:[%s22639_s8 + $0x1f0] sm:$0xff]  }
 0xbf4   : > { %16602 = vmatprep.mubr.bf16.mxu0 %v12530_v30  ;;  %16607 = vmatpush3.bf16.msra.mxu0 %v17834_v3  ;;  %v12807_v30 = vld [vmem:[#allocation7 + $0x2] sm:$0xff]  ;;  %v16743_v3 = vadd.f32 %v13744_v43, %v21811_v52 }
 0xbf5   : > { %16608 = vmatprep.subr.bf16.mxu0 %v17835_v32 }
 0xbf8   : > { %16609 = vmatpush3.bf16.msra.mxu0 %v17835_v32 }
 0xbf9   : > { %16610 = vmatprep.subr.bf16.mxu0 %v17836_v23 }
 0xbfb   : > { %16603 = vmatmul.mubr.bf16.gmra.mrb[44].mxu0 %v12531_v7  ;;  %v12386_v7 = vld [vmem:[#allocation7 + $0x91] sm:$0xff] }
 0xbfc   : > { %16611 = vmatpush3.bf16.msra.mxu0 %v17836_v23  ;;  %16622 = vmatprep.mubr.bf16.mxu0 %v22369_v21  ;;  %v17841_v21 = vld [vmem:[%s22639_s8 + $0x1f8] sm:$0xff]   ;;  %v12669_v51 = vpack.c.bf16 %v12386_v7, %v22378_v47  ;;  %v17847_v47 = vld [vmem:[%s22639_s8 + $0xa8] sm:$0xff]   ;;  %v16744_v23 = vadd.f32 %v21813_v34, %v13744_v43  ;;  %v16746_v34 = vadd.f32 %v21831_v40, %v13744_v43 }
 0xbfd   : > { %16612 = vmatprep.subr.bf16.mxu0 %v17837_v16 }
 0xbfe   : > { %v6904_v56 = vmax.f32 %v16746_v34, 0.0 }
 0xc00   : > { %16613 = vmatpush3.bf16.msra.mxu0 %v17837_v16 }
 0xc01   : > { %16614 = vmatprep.subr.bf16.mxu0 %v17838_v28 }
 0xc04   : > { %16615 = vmatpush3.bf16.msra.mxu0 %v17838_v28 }
 0xc05   : > { %16616 = vmatprep.subr.bf16.mxu0 %v17839_v19 }
 0xc08   : > { %16617 = vmatpush3.bf16.msra.mxu0 %v17839_v19  ;;  %v16745_v19 = vadd.f32 %v13744_v43, %v21815_v8 }
 0xc09   : > { %16618 = vmatprep.subr.bf16.mxu0 %v17840_v36 }
 0xc0a   : > { %v6899_v52 = vmax.f32 %v16745_v19, 0.0 }
 0xc0c   : > { %16619 = vmatpush3.bf16.msra.mxu0 %v17840_v36 }
 0xc0d   : > { %16620 = vmatprep.subr.bf16.mxu0 %v17841_v21 }
 0xc10   : > { %16621 = vmatpush3.bf16.msra.mxu0 %v17841_v21 }
 0xc11   : > { %16630 = vmatprep.subr.bf16.mxu0 %v17842_v50 }
 0xc13   : > { %16623 = vmatmul.mubr.bf16.vlgmr.msra.gmra.mrb[40].mxu0 %v22388_v14  ;;  %v12817_v14 = vpack.c.bf16 %v12808_v60, %v12807_v30  ;;  %v6898_v30 = vmax.f32 %v16743_v3, 0.0 }
 0xc14   : > { %16626 = vmatprep.mubr.bf16.mxu0 %v22399_v45  ;;  %16631 = vmatpush3.bf16.msra.mxu0 %v17842_v50  ;;  %v17846_v45 = vld [vmem:[%s22639_s8 + $0xa0] sm:$0xff]   ;;  %v6900_v50 = vmax.f32 %v16742_v27, 0.0 }
 0xc15   : > { %16632 = vmatprep.subr.bf16.mxu0 %v17843_v33 }
 0xc18   : > { %16633 = vmatpush3.bf16.msra.mxu0 %v17843_v33 }
 0xc19   : > { %16634 = vmatprep.subr.bf16.mxu0 %v17844_v57 }
 0xc1b   : > { %16627 = vmatmul.mubr.bf16.gmra.mrb[44].mxu0 %v12669_v51 }
 0xc1c   : > { %16635 = vmatpush3.bf16.msra.mxu0 %v17844_v57  ;;  %16646 = vmatprep.mubr.bf16.mxu0 %v12817_v14 }
 0xc1d   : > { %16636 = vmatprep.subr.bf16.mxu0 %v17845_v59 }
 0xc20   : > { %16637 = vmatpush3.bf16.msra.mxu0 %v17845_v59  ;;  %v6901_v59 = vmax.f32 %v16744_v23, 0.0 }
 0xc21   : > { %16638 = vmatprep.subr.bf16.mxu0 %v17846_v45 }
 0xc24   : > { %16639 = vmatpush3.bf16.msra.mxu0 %v17846_v45 }
 0xc25   : > { %16640 = vmatprep.subr.bf16.mxu0 %v17847_v47 }
 0xc28   : > { %16641 = vmatpush3.bf16.msra.mxu0 %v17847_v47 }
 0xc29   : > { %16642 = vmatprep.subr.bf16.mxu0 %v17848_v0 }
 0xc2c   : > { %16643 = vmatpush3.bf16.msra.mxu0 %v17848_v0  ;;  %v16747_v0 = vadd.f32 %v13744_v43, %v21833_v2 }
 0xc2d   : > { %16644 = vmatprep.subr.bf16.mxu0 %v17849_v1 }
 0xc2e   : > { %v6902_v29 = vmax.f32 %v16747_v0, 0.0 }
 0xc30   : > { %16645 = vmatpush3.bf16.msra.mxu0 %v17849_v1 }
 0xc31   : > { %16654 = vmatprep.subr.bf16.mxu0 %v17850_v38 }
 0xc33   : > { %16647 = vmatmul.mubr.bf16.vlgmr.msra.gmra.mrb[40].mxu0 %v12818_v48 }
 0xc34   : > { %16650 = vmatprep.mubr.bf16.mxu0 %v12819_v49  ;;  %16655 = vmatpush3.bf16.msra.mxu0 %v17850_v38 }
 0xc35   : > { %16656 = vmatprep.subr.bf16.mxu0 %v17851_v6 }
 0xc38   : > { %16657 = vmatpush3.bf16.msra.mxu0 %v17851_v6 }
 0xc39   : > { %16658 = vmatprep.subr.bf16.mxu0 %v17852_v4 }
 0xc3b   : > { %16651 = vmatmul.mubr.bf16.gmra.mrb[44].mxu0 %v12820_v12 }
 0xc3c   : > { %16659 = vmatpush3.bf16.msra.mxu0 %v17852_v4  ;;  %16670 = vmatprep.mubr.bf16.mxu0 %v12958_v35 }
 0xc3d   : > { %16660 = vmatprep.subr.bf16.mxu0 %v17853_v53 }
 0xc40   : > { %16661 = vmatpush3.bf16.msra.mxu0 %v17853_v53 }
 0xc41   : > { %16662 = vmatprep.subr.bf16.mxu0 %v17854_v61 }
 0xc44   : > { %16663 = vmatpush3.bf16.msra.mxu0 %v17854_v61 }
 0xc45   : > { %16664 = vmatprep.subr.bf16.mxu0 %v17855_v5 }
 0xc48   : > { %16665 = vmatpush3.bf16.msra.mxu0 %v17855_v5 }
 0xc49   : > { %16666 = vmatprep.subr.bf16.mxu0 %v17856_v15 }
 0xc4c   : > { %16667 = vmatpush3.bf16.msra.mxu0 %v17856_v15  ;;  %v6905_v15 = vmax.f32 %v16748_v25, 0.0 }
 0xc4d   : > { %16668 = vmatprep.subr.bf16.mxu0 %v17857_v9 }
 0xc50   : > { %16669 = vmatpush3.bf16.msra.mxu0 %v17857_v9 }
 0xc51   : > { %16678 = vmatprep.subr.bf16.mxu0 %v17858_v44 }
 0xc53   : > { %16671 = vmatmul.mubr.bf16.vlgmr.msra.gmra.mrb[40].mxu0 %v12959_v26 }
 0xc54   : > { %16674 = vmatprep.mubr.bf16.mxu0 %v12960_v58  ;;  %16679 = vmatpush3.bf16.msra.mxu0 %v17858_v44 }
 0xc55   : > { %16680 = vmatprep.subr.bf16.mxu0 %v17859_v31 }
 0xc58   : > { %16681 = vmatpush3.bf16.msra.mxu0 %v17859_v31 }
 0xc59   : > { %16682 = vmatprep.subr.bf16.mxu0 %v17860_v37 }
 0xc5b   : > { %16675 = vmatmul.mubr.bf16.gmra.mrb[44].mxu0 %v12961_v24 }
 0xc5c   : > { %16683 = vmatpush3.bf16.msra.mxu0 %v17860_v37  ;;  %16694 = vmatprep.mubr.bf16.mxu0 %v12818_v48 }
 0xc5d   : > { %16684 = vmatprep.subr.bf16.mxu0 %v17861_v11 }
 0xc60   : > { %16685 = vmatpush3.bf16.msra.mxu0 %v17861_v11 }
 0xc61   : > { %16686 = vmatprep.subr.bf16.mxu0 %v17862_v54 }
 0xc64   : > { %16687 = vmatpush3.bf16.msra.mxu0 %v17862_v54 }
 0xc65   : > { %16688 = vmatprep.subr.bf16.mxu0 %v17863_v17 }
 0xc68   : > { %16689 = vmatpush3.bf16.msra.mxu0 %v17863_v17 }
 0xc69   : > { %16690 = vmatprep.subr.bf16.mxu0 %v17864_v39 }
 0xc6c   : > { %16691 = vmatpush3.bf16.msra.mxu0 %v17864_v39 }
 0xc6d   : > { %16692 = vmatprep.subr.bf16.mxu0 %v17865_v55 }
 0xc70   : > { %16693 = vmatpush3.bf16.msra.mxu0 %v17865_v55 }
 0xc73   : > { %16695 = vmatmul.mubr.bf16.vlgmr.msra.gmra.mrb[40].mxu0 %v12819_v49 }
 0xc74   : > { %16698 = vmatprep.mubr.bf16.mxu0 %v12820_v12 }
 0xc7b   : > { %16699 = vmatmul.mubr.bf16.gmra.mrb[44].mxu0 %v13099_v10 }
 0xd46   : > { %v16696_v32 = vpop.f32.mrb[40].mxu0 }
 0xd47   : > { %v16790_v16 = vadd.f32 %v16696_v32, %v14337_v42  ;;  %v13198_v28 = vpop.f32.mrb[41].mxu0 }
 0xd48   : > { %v16791_v36 = vadd.f32 %v14337_v42, %v13198_v28  ;;  %v16697_v21 = vpop.f32.mrb[42].mxu0 }
 0xd49   : > { %v13239_v33 = vmax.f32 %v16790_v16, 0.0  ;;  %v16792_v57 = vadd.f32 %v16697_v21, %v14337_v42  ;;  %v13201_v7 = vpop.f32.mrb[43].mxu0 }
 0xd4a   : > { %v13237_v60 = vmax.f32 %v16791_v36, 0.0  ;;  %v16793_v51 = vadd.f32 %v14337_v42, %v13201_v7 }
 0xd4b   : > { %v13255_v13 = vsub.f32 %v13239_v33, %v6900_v50  ;;  %v13240_v14 = vmax.f32 %v16792_v57, 0.0 }
 0xd4c   : > { %v13253_v45 = vsub.f32 %v13237_v60, %v6898_v30  ;;  %v13238_v47 = vmax.f32 %v16793_v51, 0.0 }
 0xd4d   : > { %v13256_v8 = vsub.f32 %v13240_v14, %v6901_v59  ;;  %v13263_v35 = vmul.f32 %v13255_v13, %v13255_v13 }
 0xd4e   : > { %v13254_v1 = vsub.f32 %v13238_v47, %v6899_v52  ;;  %v16700_v38 = vpop.f32.mrb[44].mxu0  ;;  %v13261_v41 = vmul.f32 %v13253_v45, %v13253_v45 }
 0xd4f   : > { %v16794_v62 = vadd.f32 %v16700_v38, %v14337_v42  ;;  %v13214_v48 = vpop.f32.mrb[45].mxu0  ;;  %v13264_v44 = vmul.f32 %v13256_v8, %v13256_v8 }
 0xd50   : > { %v13262_v6 = vmul.f32 %v13254_v1, %v13254_v1  ;;  %v16795_v49 = vadd.f32 %v14337_v42, %v13214_v48  ;;  %v16701_v4 = vpop.f32.mrb[46].mxu0 }
 0xd51   : > { %v13243_v12 = vmax.f32 %v16794_v62, 0.0  ;;  %v16796_v53 = vadd.f32 %v16701_v4, %v14337_v42  ;;  %v13217_v40 = vpop.f32.mrb[47].mxu0 }
 0xd52   : > { %v13269_v2 = vadd.f32 %v13262_v6, %v13261_v41  ;;  %v13241_v61 = vmax.f32 %v16795_v49, 0.0  ;;  %v16797_v5 = vadd.f32 %v14337_v42, %v13217_v40 }
 0xd53   : > { %v13259_v9 = vsub.f32 %v13243_v12, %v6904_v56  ;;  %v13244_v63 = vmax.f32 %v16796_v53, 0.0 }
 0xd54   : > { %v13270_v26 = vadd.f32 %v13269_v2, %v13263_v35  ;;  %v13257_v31 = vsub.f32 %v13241_v61, %v6902_v29  ;;  %v13242_v58 = vmax.f32 %v16797_v5, 0.0 }
 0xd55   : > { %v13260_v37 = vsub.f32 %v13244_v63, %v6905_v15  ;;  %v13267_v39 = vmul.f32 %v13259_v9, %v13259_v9 }
 0xd56   : > { %v13265_v22 = vmul.f32 %v13257_v31, %v13257_v31  ;;  %v13271_v24 = vadd.f32 %v13270_v26, %v13264_v44  ;;  %v13258_v11 = vsub.f32 %v13242_v58, %v6903_v46 }
 0xd57   : > { %v13268_v18 = vmul.f32 %v13260_v37, %v13260_v37 }
 0xd58   : > { %v13272_v54 = vadd.f32 %v13271_v24, %v13265_v22  ;;  %v13266_v17 = vmul.f32 %v13258_v11, %v13258_v11 }
 0xd5a   : > { %v13273_v55 = vadd.f32 %v13272_v54, %v13266_v17 }
 0xd5c   : > { %v13274_v10 = vadd.f32 %v13273_v55, %v13267_v39 }
 0xd5e   : > { %v13275_v43 = vadd.f32 %v13274_v10, %v13268_v18 }
 0xd60   : > { %13276 = vst [vmem:[%s377_s12] sm:$0xff] %v13275_v43 }
 0xd61 PF: > { %s20_s13 = sadd.s32 1, %s17905_s13  }
 0xd62   : > { %p17_p4 = scmp.ge.s32.totalorder %s20_s13, 4  }
 0xd64   :  { %19 = sbr.rel (!%p17_p4) target bundleno = 1 (0x1), region = 137 }

</bundles_post_ra>
